<compile_context>
chip_gen: v5e
topology: v5e:2x2
jax: 0.10.0
libtpu: 0.0.40
codegen_flags: <defaults>
</compile_context>

<pallas_src>
import functools

import jax
import jax.numpy as jnp
import numpy as np
from jax import lax
from jax.experimental import pallas as pl
from jax.experimental.pallas import tpu as pltpu

_LANE = 128
_GI_OFF = 0 * _LANE           # GRU input->gate weights: r | z | n, one tile each
_GH_OFF = 3 * _LANE           # GRU hidden->gate weights: r | z | n
_T2_OFF = 6 * _LANE           # tau-encoder layer-2 weights
_OUT_OFF = 7 * _LANE          # output projection weights (128-wide, zero-padded)
_W_TOTAL = 8 * _LANE


def _tau_gnn_kernel(edges_ref, x_ref, w_x_ref, w_h_ref, b_h_ref, out_ref, *,
                    hidden, tau_dim, num_edges, max_recursion):
    f32 = jnp.float32
    hi = lax.Precision.HIGHEST
    H, E = hidden, num_edges
    x = x_ref[0]                                          # (N, D_in+1), last col = 1
    N = x.shape[0]

    # ---- fused input_proj + tau-encoder layer 1 (one MXU push, bias folded) ----
    xw = jnp.dot(x, w_x_ref[...], preferred_element_type=f32, precision=hi)  # (N, 2*128)
    h = jnp.maximum(xw[:, :H], 0.0)                       # relu(input_proj(x)), lanes [0,H)
    t1 = jnp.maximum(xw[:, _LANE:_LANE + H], 0.0)         # relu(tau_l1(x)), 128-aligned slice

    # ---- tau = mean(sigmoid(tau_l2(t1)), -1, keepdims=True) ----
    t2 = (jnp.dot(t1, w_h_ref[:, _T2_OFF:_T2_OFF + tau_dim],
                  preferred_element_type=f32, precision=hi)
          + b_h_ref[:, _T2_OFF:_T2_OFF + tau_dim])
    tau = jnp.mean(jax.nn.sigmoid(t2), axis=-1, keepdims=True)                # (N, 1)

    # ---- one-hot gather (2E, N) and tau-weighted scatter (N, E) ----
    # Out-of-range edge indices compare false everywhere -> all-zero rows.
    edges = edges_ref[0]                                   # (2E, 1) int32 [row; col]
    gather = (edges == lax.broadcasted_iota(jnp.int32, (2 * E, N), 1)).astype(f32)
    # scatter[n, e] = [row[e] == n]; one XLU transpose of the row half, with the
    # loop-invariant tau[row] weighting folded in once.
    scatter_w = gather[:E].T * tau                         # (N, E)

    # ---- GRU fused gate weights; each gate on its own 128-lane tile ----
    w_gi = w_h_ref[:, _GI_OFF:_GI_OFF + 3 * _LANE]         # (H, 384)
    w_gh = w_h_ref[:, _GH_OFF:_GH_OFF + 3 * _LANE]         # (H, 384)
    # Bias broadcasts hoisted out of the unrolled loop (no CSE of broadcast_in_dim).
    b_gi = jnp.broadcast_to(b_h_ref[:, _GI_OFF:_GI_OFF + 3 * _LANE], (N, 3 * _LANE))
    b_gh = jnp.broadcast_to(b_h_ref[:, _GH_OFF:_GH_OFF + 3 * _LANE], (N, 3 * _LANE))

    for _ in range(max_recursion):                         # static unroll (5)
        # gh depends only on the previous h: issue it before the gather->abs->
        # scatter chain so its MXU latency hides under that chain.
        gh = jnp.dot(h, w_gh, preferred_element_type=f32, precision=hi) + b_gh   # (N, 384)
        g = jnp.dot(gather, h, preferred_element_type=f32, precision=hi)          # (2E, H)
        d1 = jnp.abs(g[:E] - g[E:])                                                # (E, H)
        agg = jnp.dot(scatter_w, d1, preferred_element_type=f32, precision=hi)     # (N, H)
        gi = jnp.dot(agg, w_gi, preferred_element_type=f32, precision=hi) + b_gi   # (N, 384)

        # GRUCell(agg, h), PyTorch gate order (r, z, n); all slices lane-aligned.
        r = jax.nn.sigmoid(gi[:, 0:H] + gh[:, 0:H])
        z = jax.nn.sigmoid(gi[:, _LANE:_LANE + H] + gh[:, _LANE:_LANE + H])
        n_gate = jnp.tanh(gi[:, 2 * _LANE:2 * _LANE + H]
                          + r * gh[:, 2 * _LANE:2 * _LANE + H])
        h = (1.0 - z) * n_gate + z * h

    # ---- output projection, stored lane-dense (columns >= out_dim are zero) ----
    out_ref[0] = (jnp.dot(h, w_h_ref[:, _OUT_OFF:_OUT_OFF + _LANE],
                          preferred_element_type=f32, precision=hi)
                  + b_h_ref[:, _OUT_OFF:_OUT_OFF + _LANE])


def tau_attention_gnn_batched(x_b, edge_b, params, max_recursion=5):
    """x_b: (B, N, D_in) float32, edge_b: (B, 2, E) int32 -> (B, N, out_dim)."""
    B, N, input_dim = x_b.shape
    E = edge_b.shape[-1]
    H = params["w_in"].shape[0]
    tau_dim = params["w_t2"].shape[0]
    out_dim = params["w_out"].shape[0]
    assert H <= _LANE and tau_dim <= _LANE and out_dim <= _LANE

    # Stacked edge endpoints per graph: (B, 2E, 1) int32 = [row; col].
    edges_b = jnp.concatenate(
        [edge_b[:, 0, :], edge_b[:, 1, :]], axis=1
    ).astype(jnp.int32).reshape(B, 2 * E, 1)

    # Ones column folds the x-side biases into the weight slab.
    x_aug_b = jnp.concatenate(
        [x_b.astype(jnp.float32), jnp.ones((B, N, 1), jnp.float32)], axis=-1)

    # Fused x-contraction slab: [input_proj | pad | tau layer-1 | pad], each on
    # its own 128-lane tile; last row holds the biases.
    w_x = jnp.zeros((input_dim + 1, 2 * _LANE), jnp.float32)
    w_x = w_x.at[:input_dim, 0:H].set(params["w_in"].T)
    w_x = w_x.at[input_dim, 0:H].set(params["b_in"])
    w_x = w_x.at[:input_dim, _LANE:_LANE + H].set(params["w_t1"].T)
    w_x = w_x.at[input_dim, _LANE:_LANE + H].set(params["b_t1"])

    # Consolidated H-contraction slab; every segment starts on a 128-lane tile.
    w_h = jnp.zeros((H, _W_TOTAL), jnp.float32)
    b_h = jnp.zeros((1, _W_TOTAL), jnp.float32)
    for g in range(3):                                    # r, z, n gates
        w_h = w_h.at[:, _GI_OFF + g * _LANE:_GI_OFF + g * _LANE + H].set(
            params["w_ih"].T[:, g * H:(g + 1) * H])
        w_h = w_h.at[:, _GH_OFF + g * _LANE:_GH_OFF + g * _LANE + H].set(
            params["w_hh"].T[:, g * H:(g + 1) * H])
        b_h = b_h.at[:, _GI_OFF + g * _LANE:_GI_OFF + g * _LANE + H].set(
            params["b_ih"][g * H:(g + 1) * H])
        b_h = b_h.at[:, _GH_OFF + g * _LANE:_GH_OFF + g * _LANE + H].set(
            params["b_hh"][g * H:(g + 1) * H])
    w_h = w_h.at[:, _T2_OFF:_T2_OFF + tau_dim].set(params["w_t2"].T)
    b_h = b_h.at[:, _T2_OFF:_T2_OFF + tau_dim].set(params["b_t2"])
    w_h = w_h.at[:, _OUT_OFF:_OUT_OFF + out_dim].set(params["w_out"].T)
    b_h = b_h.at[:, _OUT_OFF:_OUT_OFF + out_dim].set(params["b_out"])

    kernel = functools.partial(
        _tau_gnn_kernel, hidden=H, tau_dim=tau_dim, num_edges=E,
        max_recursion=max_recursion)

    flops_round = 2 * (2 * E * N * H + N * E * H + 2 * N * H * 3 * _LANE)
    flops_once = 2 * (N * (input_dim + 1) * 2 * _LANE + N * H * tau_dim + N * H * _LANE)
    cost = pl.CostEstimate(
        flops=int(B * (max_recursion * flops_round + flops_once)),
        transcendentals=int(B * (max_recursion * 3 * N * H + N * tau_dim)),
        bytes_accessed=int(4 * (B * (2 * E + N * (input_dim + 1) + N * _LANE)
                                + (input_dim + 1) * 2 * _LANE
                                + (H + 1) * _W_TOTAL)))

    out = pl.pallas_call(
        kernel,
        out_shape=jax.ShapeDtypeStruct((B, N, _LANE), jnp.float32),
        grid=(B,),
        in_specs=[
            pl.BlockSpec((1, 2 * E, 1), lambda b: (b, 0, 0)),                 # edges
            pl.BlockSpec((1, N, input_dim + 1), lambda b: (b, 0, 0)),         # x (+ones)
            pl.BlockSpec((input_dim + 1, 2 * _LANE), lambda b: (0, 0)),       # w_x slab
            pl.BlockSpec((H, _W_TOTAL), lambda b: (0, 0)),                    # w_h slab
            pl.BlockSpec((1, _W_TOTAL), lambda b: (0, 0)),                    # b_h slab
        ],
        out_specs=pl.BlockSpec((1, N, _LANE), lambda b: (b, 0, 0)),
        compiler_params=pltpu.CompilerParams(dimension_semantics=("parallel",)),
        cost_estimate=cost,
    )(edges_b, x_aug_b, w_x, w_h, b_h)
    return out[..., :out_dim]


def tau_attention_gnn(x, edge_index, params, max_recursion=5):
    """Single-graph convenience wrapper (batch of 1)."""
    return tau_attention_gnn_batched(x[None], edge_index[None], params,
                                     max_recursion=max_recursion)[0]


def reference_forward(x, edge_index, params, max_recursion=5):
    """Pure-JAX replica of the PyTorch TauAttentionGNN, for verification."""
    H = params["w_in"].shape[0]
    h = jax.nn.relu(x @ params["w_in"].T + params["b_in"])
    t1 = jax.nn.relu(x @ params["w_t1"].T + params["b_t1"])
    tau = jax.nn.sigmoid(t1 @ params["w_t2"].T + params["b_t2"]).mean(
        axis=-1, keepdims=True)
    row, col = edge_index[0], edge_index[1]
    for _ in range(max_recursion):
        d1 = jnp.abs(h[row] - h[col])
        weighted = d1 * tau[row]
        agg = jnp.zeros_like(h).at[row].add(weighted)
        gi = agg @ params["w_ih"].T + params["b_ih"]
        gh = h @ params["w_hh"].T + params["b_hh"]
        r = jax.nn.sigmoid(gi[:, :H] + gh[:, :H])
        z = jax.nn.sigmoid(gi[:, H:2 * H] + gh[:, H:2 * H])
        n = jnp.tanh(gi[:, 2 * H:] + r * gh[:, 2 * H:])
        h = (1.0 - z) * n + z * h
    return h @ params["w_out"].T + params["b_out"]


def init_params(key, input_dim, hidden_dim, tau_dim, output_dim):
    """Deterministic PyTorch-default-style init (uniform +/- 1/sqrt(fan_in))."""
    def linear(k, out_f, in_f):
        k1, k2 = jax.random.split(k)
        bound = 1.0 / np.sqrt(in_f)
        w = jax.random.uniform(k1, (out_f, in_f), jnp.float32, -bound, bound)
        b = jax.random.uniform(k2, (out_f,), jnp.float32, -bound, bound)
        return w, b

    keys = jax.random.split(key, 5)
    w_in, b_in = linear(keys[0], hidden_dim, input_dim)
    w_t1, b_t1 = linear(keys[1], hidden_dim, input_dim)
    w_t2, b_t2 = linear(keys[2], tau_dim, hidden_dim)
    bound = 1.0 / np.sqrt(hidden_dim)
    k_ih, k_hh, k_bih, k_bhh = jax.random.split(keys[3], 4)
    w_ih = jax.random.uniform(k_ih, (3 * hidden_dim, hidden_dim), jnp.float32, -bound, bound)
    w_hh = jax.random.uniform(k_hh, (3 * hidden_dim, hidden_dim), jnp.float32, -bound, bound)
    b_ih = jax.random.uniform(k_bih, (3 * hidden_dim,), jnp.float32, -bound, bound)
    b_hh = jax.random.uniform(k_bhh, (3 * hidden_dim,), jnp.float32, -bound, bound)
    w_out, b_out = linear(keys[4], output_dim, hidden_dim)
    return dict(w_in=w_in, b_in=b_in, w_t1=w_t1, b_t1=b_t1, w_t2=w_t2, b_t2=b_t2,
                w_ih=w_ih, w_hh=w_hh, b_ih=b_ih, b_hh=b_hh,
                w_out=w_out, b_out=b_out)


if __name__ == "__main__":
    INPUT_DIM, HIDDEN_DIM, TAU_DIM, OUTPUT_DIM = 8, 32, 8, 8
    NUM_NODES, NUM_EDGES, MAX_RECURSION = 16, 32, 5
    BATCH = 8

    key = jax.random.PRNGKey(0)
    k_x, k_e, k_p = jax.random.split(key, 3)
    x_b = jax.random.normal(k_x, (BATCH, NUM_NODES, INPUT_DIM), jnp.float32)
    edge_b = jax.random.randint(k_e, (BATCH, 2, NUM_EDGES), 0, NUM_NODES,
                                dtype=jnp.int32)
    params = init_params(k_p, INPUT_DIM, HIDDEN_DIM, TAU_DIM, OUTPUT_DIM)

    out = tau_attention_gnn_batched(x_b, edge_b, params,
                                    max_recursion=MAX_RECURSION)
    out = jax.block_until_ready(out)

    with jax.default_matmul_precision("highest"):
        ref = jnp.stack([
            reference_forward(x_b[b], edge_b[b], params, MAX_RECURSION)
            for b in range(BATCH)])
    ref = jax.block_until_ready(ref)

    # All kernel matmuls run at HIGHEST precision -> tight f32 agreement.
    np.testing.assert_allclose(np.asarray(out), np.asarray(ref),
                               rtol=1e-4, atol=1e-4)
    print("KERNEL_OK")
</pallas_src>

<mosaic_0001>
module attributes {stable_mosaic.version = 11 : i64} {
  func.func @_tau_gnn_kernel(%arg0: i32, %arg1: memref<1x64x1xi32, #tpu.memory_space<vmem>>, %arg2: memref<1x16x9xf32, #tpu.memory_space<vmem>>, %arg3: memref<9x256xf32, #tpu.memory_space<vmem>>, %arg4: memref<32x1024xf32, #tpu.memory_space<vmem>>, %arg5: memref<1x1024xf32, #tpu.memory_space<vmem>>, %arg6: memref<1x16x128xf32, #tpu.memory_space<vmem>>) attributes {dimension_semantics = [#tpu.dimension_semantics<parallel>], iteration_bounds = array<i64: 8>, scalar_prefetch = 0 : i64, scratch_operands = 0 : i64, tpu.core_type = #tpu.core_type<tc>, window_params = [{transform_indices = @transform_0, window_bounds = array<i64: 1, 64, 1>}, {transform_indices = @transform_1, window_bounds = array<i64: 1, 16, 9>}, {pipeline_mode = #tpu.pipeline_mode<synchronous>, transform_indices = @transform_2, window_bounds = array<i64: 9, 256>}, {pipeline_mode = #tpu.pipeline_mode<synchronous>, transform_indices = @transform_3, window_bounds = array<i64: 32, 1024>}, {pipeline_mode = #tpu.pipeline_mode<synchronous>, transform_indices = @transform_4, window_bounds = array<i64: 1, 1024>}, {transform_indices = @transform_5, window_bounds = array<i64: 1, 16, 128>}]} {
    %c0 = arith.constant 0 : index
    %c0_0 = arith.constant 0 : index
    %c0_1 = arith.constant 0 : index
    %0 = vector.load %arg2[%c0, %c0_0, %c0_1] : memref<1x16x9xf32, #tpu.memory_space<vmem>>, vector<1x16x9xf32>
    %1 = vector.shape_cast %0 : vector<1x16x9xf32> to vector<16x9xf32>
    %c0_2 = arith.constant 0 : index
    %c0_3 = arith.constant 0 : index
    %2 = vector.load %arg3[%c0_2, %c0_3] : memref<9x256xf32, #tpu.memory_space<vmem>>, vector<9x256xf32>
    %cst = arith.constant dense<0.000000e+00> : vector<16x256xf32>
    %3 = tpu.matmul %1, %2, %cst {dimension_numbers = #tpu.dot_dimension_numbers<[1], [0], [0], [1], [0, 0, 1, 1], [], []>, precision = #tpu.contract_precision<fp32>} : vector<16x9xf32>, vector<9x256xf32>, vector<16x256xf32> -> vector<16x256xf32>
    %4 = vector.extract_strided_slice %3 {offsets = [0, 0], sizes = [16, 32], strides = [1, 1]} : vector<16x256xf32> to vector<16x32xf32>
    %cst_4 = arith.constant 0.000000e+00 : f32
    %5 = vector.broadcast %cst_4 : f32 to vector<16x32xf32>
    %6 = arith.maximumf %4, %5 : vector<16x32xf32>
    %7 = vector.extract_strided_slice %3 {offsets = [0, 128], sizes = [16, 32], strides = [1, 1]} : vector<16x256xf32> to vector<16x32xf32>
    %cst_5 = arith.constant 0.000000e+00 : f32
    %8 = vector.broadcast %cst_5 : f32 to vector<16x32xf32>
    %9 = arith.maximumf %7, %8 : vector<16x32xf32>
    %c0_6 = arith.constant 0 : index
    %c768 = arith.constant 768 : index
    %10 = vector.load %arg4[%c0_6, %c768] : memref<32x1024xf32, #tpu.memory_space<vmem>>, vector<32x8xf32>
    %cst_7 = arith.constant dense<0.000000e+00> : vector<16x8xf32>
    %11 = tpu.matmul %9, %10, %cst_7 {dimension_numbers = #tpu.dot_dimension_numbers<[1], [0], [0], [1], [0, 0, 1, 1], [], []>, precision = #tpu.contract_precision<fp32>} : vector<16x32xf32>, vector<32x8xf32>, vector<16x8xf32> -> vector<16x8xf32>
    %c0_8 = arith.constant 0 : index
    %c768_9 = arith.constant 768 : index
    %12 = vector.load %arg5[%c0_8, %c768_9] : memref<1x1024xf32, #tpu.memory_space<vmem>>, vector<1x8xf32>
    %13 = vector.broadcast %12 : vector<1x8xf32> to vector<16x8xf32>
    %14 = arith.addf %11, %13 : vector<16x8xf32>
    %15 = arith.negf %14 : vector<16x8xf32>
    %16 = math.exp %15 : vector<16x8xf32>
    %cst_10 = arith.constant 1.000000e+00 : f32
    %17 = vector.broadcast %cst_10 : f32 to vector<16x8xf32>
    %18 = arith.addf %17, %16 : vector<16x8xf32>
    %19 = arith.divf %17, %18 : vector<16x8xf32>
    %cst_11 = arith.constant dense<0.000000e+00> : vector<16xf32>
    %20 = vector.multi_reduction <add>, %19, %cst_11 [1] : vector<16x8xf32> to vector<16xf32>
    %21 = vector.shape_cast %20 : vector<16xf32> to vector<16x1xf32>
    %cst_12 = arith.constant 8.000000e+00 : f32
    %22 = vector.broadcast %cst_12 : f32 to vector<16x1xf32>
    %23 = arith.divf %21, %22 : vector<16x1xf32>
    %c0_13 = arith.constant 0 : index
    %c0_14 = arith.constant 0 : index
    %c0_15 = arith.constant 0 : index
    %24 = vector.load %arg1[%c0_13, %c0_14, %c0_15] : memref<1x64x1xi32, #tpu.memory_space<vmem>>, vector<1x64x1xi32>
    %25 = vector.shape_cast %24 : vector<1x64x1xi32> to vector<64x1xi32>
    %26 = tpu.iota {dimensions = array<i32: 1>} : vector<64x16xi32>
    %27 = vector.broadcast %25 : vector<64x1xi32> to vector<64x16xi32>
    %28 = arith.cmpi eq, %27, %26 : vector<64x16xi32>
    %29 = arith.extui %28 : vector<64x16xi1> to vector<64x16xi32>
    %30 = arith.sitofp %29 : vector<64x16xi32> to vector<64x16xf32>
    %31 = vector.extract_strided_slice %30 {offsets = [0, 0], sizes = [32, 16], strides = [1, 1]} : vector<64x16xf32> to vector<32x16xf32>
    %32 = tpu.transpose %31, [1, 0] : vector<32x16xf32> -> vector<16x32xf32>
    %33 = vector.broadcast %23 : vector<16x1xf32> to vector<16x32xf32>
    %34 = arith.mulf %32, %33 : vector<16x32xf32>
    %c0_16 = arith.constant 0 : index
    %c0_17 = arith.constant 0 : index
    %35 = vector.load %arg4[%c0_16, %c0_17] : memref<32x1024xf32, #tpu.memory_space<vmem>>, vector<32x384xf32>
    %c0_18 = arith.constant 0 : index
    %c384 = arith.constant 384 : index
    %36 = vector.load %arg4[%c0_18, %c384] : memref<32x1024xf32, #tpu.memory_space<vmem>>, vector<32x384xf32>
    %c0_19 = arith.constant 0 : index
    %c0_20 = arith.constant 0 : index
    %37 = vector.load %arg5[%c0_19, %c0_20] : memref<1x1024xf32, #tpu.memory_space<vmem>>, vector<1x384xf32>
    %38 = vector.shape_cast %37 : vector<1x384xf32> to vector<1x384xf32>
    %39 = vector.broadcast %38 : vector<1x384xf32> to vector<16x384xf32>
    %c0_21 = arith.constant 0 : index
    %c384_22 = arith.constant 384 : index
    %40 = vector.load %arg5[%c0_21, %c384_22] : memref<1x1024xf32, #tpu.memory_space<vmem>>, vector<1x384xf32>
    %41 = vector.shape_cast %40 : vector<1x384xf32> to vector<1x384xf32>
    %42 = vector.broadcast %41 : vector<1x384xf32> to vector<16x384xf32>
    %cst_23 = arith.constant dense<0.000000e+00> : vector<16x384xf32>
    %43 = tpu.matmul %6, %36, %cst_23 {dimension_numbers = #tpu.dot_dimension_numbers<[1], [0], [0], [1], [0, 0, 1, 1], [], []>, precision = #tpu.contract_precision<fp32>} : vector<16x32xf32>, vector<32x384xf32>, vector<16x384xf32> -> vector<16x384xf32>
    %44 = arith.addf %43, %42 : vector<16x384xf32>
    %cst_24 = arith.constant dense<0.000000e+00> : vector<64x32xf32>
    %45 = tpu.matmul %30, %6, %cst_24 {dimension_numbers = #tpu.dot_dimension_numbers<[1], [0], [0], [1], [0, 0, 1, 1], [], []>, precision = #tpu.contract_precision<fp32>} : vector<64x16xf32>, vector<16x32xf32>, vector<64x32xf32> -> vector<64x32xf32>
    %46 = vector.extract_strided_slice %45 {offsets = [0, 0], sizes = [32, 32], strides = [1, 1]} : vector<64x32xf32> to vector<32x32xf32>
    %47 = vector.extract_strided_slice %45 {offsets = [32, 0], sizes = [32, 32], strides = [1, 1]} : vector<64x32xf32> to vector<32x32xf32>
    %48 = arith.subf %46, %47 : vector<32x32xf32>
    %49 = math.absf %48 : vector<32x32xf32>
    %cst_25 = arith.constant dense<0.000000e+00> : vector<16x32xf32>
    %50 = tpu.matmul %34, %49, %cst_25 {dimension_numbers = #tpu.dot_dimension_numbers<[1], [0], [0], [1], [0, 0, 1, 1], [], []>, precision = #tpu.contract_precision<fp32>} : vector<16x32xf32>, vector<32x32xf32>, vector<16x32xf32> -> vector<16x32xf32>
    %cst_26 = arith.constant dense<0.000000e+00> : vector<16x384xf32>
    %51 = tpu.matmul %50, %35, %cst_26 {dimension_numbers = #tpu.dot_dimension_numbers<[1], [0], [0], [1], [0, 0, 1, 1], [], []>, precision = #tpu.contract_precision<fp32>} : vector<16x32xf32>, vector<32x384xf32>, vector<16x384xf32> -> vector<16x384xf32>
    %52 = arith.addf %51, %39 : vector<16x384xf32>
    %53 = vector.extract_strided_slice %52 {offsets = [0, 0], sizes = [16, 32], strides = [1, 1]} : vector<16x384xf32> to vector<16x32xf32>
    %54 = vector.extract_strided_slice %44 {offsets = [0, 0], sizes = [16, 32], strides = [1, 1]} : vector<16x384xf32> to vector<16x32xf32>
    %55 = arith.addf %53, %54 : vector<16x32xf32>
    %56 = arith.negf %55 : vector<16x32xf32>
    %57 = math.exp %56 : vector<16x32xf32>
    %cst_27 = arith.constant 1.000000e+00 : f32
    %58 = vector.broadcast %cst_27 : f32 to vector<16x32xf32>
    %59 = arith.addf %58, %57 : vector<16x32xf32>
    %60 = arith.divf %58, %59 : vector<16x32xf32>
    %61 = vector.extract_strided_slice %52 {offsets = [0, 128], sizes = [16, 32], strides = [1, 1]} : vector<16x384xf32> to vector<16x32xf32>
    %62 = vector.extract_strided_slice %44 {offsets = [0, 128], sizes = [16, 32], strides = [1, 1]} : vector<16x384xf32> to vector<16x32xf32>
    %63 = arith.addf %61, %62 : vector<16x32xf32>
    %64 = arith.negf %63 : vector<16x32xf32>
    %65 = math.exp %64 : vector<16x32xf32>
    %cst_28 = arith.constant 1.000000e+00 : f32
    %66 = vector.broadcast %cst_28 : f32 to vector<16x32xf32>
    %67 = arith.addf %66, %65 : vector<16x32xf32>
    %68 = arith.divf %66, %67 : vector<16x32xf32>
    %69 = vector.extract_strided_slice %52 {offsets = [0, 256], sizes = [16, 32], strides = [1, 1]} : vector<16x384xf32> to vector<16x32xf32>
    %70 = vector.extract_strided_slice %44 {offsets = [0, 256], sizes = [16, 32], strides = [1, 1]} : vector<16x384xf32> to vector<16x32xf32>
    %71 = arith.mulf %60, %70 : vector<16x32xf32>
    %72 = arith.addf %69, %71 : vector<16x32xf32>
    %73 = math.tanh %72 : vector<16x32xf32>
    %cst_29 = arith.constant 1.000000e+00 : f32
    %74 = vector.broadcast %cst_29 : f32 to vector<16x32xf32>
    %75 = arith.subf %74, %68 : vector<16x32xf32>
    %76 = arith.mulf %75, %73 : vector<16x32xf32>
    %77 = arith.mulf %68, %6 : vector<16x32xf32>
    %78 = arith.addf %76, %77 : vector<16x32xf32>
    %cst_30 = arith.constant dense<0.000000e+00> : vector<16x384xf32>
    %79 = tpu.matmul %78, %36, %cst_30 {dimension_numbers = #tpu.dot_dimension_numbers<[1], [0], [0], [1], [0, 0, 1, 1], [], []>, precision = #tpu.contract_precision<fp32>} : vector<16x32xf32>, vector<32x384xf32>, vector<16x384xf32> -> vector<16x384xf32>
    %80 = arith.addf %79, %42 : vector<16x384xf32>
    %cst_31 = arith.constant dense<0.000000e+00> : vector<64x32xf32>
    %81 = tpu.matmul %30, %78, %cst_31 {dimension_numbers = #tpu.dot_dimension_numbers<[1], [0], [0], [1], [0, 0, 1, 1], [], []>, precision = #tpu.contract_precision<fp32>} : vector<64x16xf32>, vector<16x32xf32>, vector<64x32xf32> -> vector<64x32xf32>
    %82 = vector.extract_strided_slice %81 {offsets = [0, 0], sizes = [32, 32], strides = [1, 1]} : vector<64x32xf32> to vector<32x32xf32>
    %83 = vector.extract_strided_slice %81 {offsets = [32, 0], sizes = [32, 32], strides = [1, 1]} : vector<64x32xf32> to vector<32x32xf32>
    %84 = arith.subf %82, %83 : vector<32x32xf32>
    %85 = math.absf %84 : vector<32x32xf32>
    %cst_32 = arith.constant dense<0.000000e+00> : vector<16x32xf32>
    %86 = tpu.matmul %34, %85, %cst_32 {dimension_numbers = #tpu.dot_dimension_numbers<[1], [0], [0], [1], [0, 0, 1, 1], [], []>, precision = #tpu.contract_precision<fp32>} : vector<16x32xf32>, vector<32x32xf32>, vector<16x32xf32> -> vector<16x32xf32>
    %cst_33 = arith.constant dense<0.000000e+00> : vector<16x384xf32>
    %87 = tpu.matmul %86, %35, %cst_33 {dimension_numbers = #tpu.dot_dimension_numbers<[1], [0], [0], [1], [0, 0, 1, 1], [], []>, precision = #tpu.contract_precision<fp32>} : vector<16x32xf32>, vector<32x384xf32>, vector<16x384xf32> -> vector<16x384xf32>
    %88 = arith.addf %87, %39 : vector<16x384xf32>
    %89 = vector.extract_strided_slice %88 {offsets = [0, 0], sizes = [16, 32], strides = [1, 1]} : vector<16x384xf32> to vector<16x32xf32>
    %90 = vector.extract_strided_slice %80 {offsets = [0, 0], sizes = [16, 32], strides = [1, 1]} : vector<16x384xf32> to vector<16x32xf32>
    %91 = arith.addf %89, %90 : vector<16x32xf32>
    %92 = arith.negf %91 : vector<16x32xf32>
    %93 = math.exp %92 : vector<16x32xf32>
    %cst_34 = arith.constant 1.000000e+00 : f32
    %94 = vector.broadcast %cst_34 : f32 to vector<16x32xf32>
    %95 = arith.addf %94, %93 : vector<16x32xf32>
    %96 = arith.divf %94, %95 : vector<16x32xf32>
    %97 = vector.extract_strided_slice %88 {offsets = [0, 128], sizes = [16, 32], strides = [1, 1]} : vector<16x384xf32> to vector<16x32xf32>
    %98 = vector.extract_strided_slice %80 {offsets = [0, 128], sizes = [16, 32], strides = [1, 1]} : vector<16x384xf32> to vector<16x32xf32>
    %99 = arith.addf %97, %98 : vector<16x32xf32>
    %100 = arith.negf %99 : vector<16x32xf32>
    %101 = math.exp %100 : vector<16x32xf32>
    %cst_35 = arith.constant 1.000000e+00 : f32
    %102 = vector.broadcast %cst_35 : f32 to vector<16x32xf32>
    %103 = arith.addf %102, %101 : vector<16x32xf32>
    %104 = arith.divf %102, %103 : vector<16x32xf32>
    %105 = vector.extract_strided_slice %88 {offsets = [0, 256], sizes = [16, 32], strides = [1, 1]} : vector<16x384xf32> to vector<16x32xf32>
    %106 = vector.extract_strided_slice %80 {offsets = [0, 256], sizes = [16, 32], strides = [1, 1]} : vector<16x384xf32> to vector<16x32xf32>
    %107 = arith.mulf %96, %106 : vector<16x32xf32>
    %108 = arith.addf %105, %107 : vector<16x32xf32>
    %109 = math.tanh %108 : vector<16x32xf32>
    %cst_36 = arith.constant 1.000000e+00 : f32
    %110 = vector.broadcast %cst_36 : f32 to vector<16x32xf32>
    %111 = arith.subf %110, %104 : vector<16x32xf32>
    %112 = arith.mulf %111, %109 : vector<16x32xf32>
    %113 = arith.mulf %104, %78 : vector<16x32xf32>
    %114 = arith.addf %112, %113 : vector<16x32xf32>
    %cst_37 = arith.constant dense<0.000000e+00> : vector<16x384xf32>
    %115 = tpu.matmul %114, %36, %cst_37 {dimension_numbers = #tpu.dot_dimension_numbers<[1], [0], [0], [1], [0, 0, 1, 1], [], []>, precision = #tpu.contract_precision<fp32>} : vector<16x32xf32>, vector<32x384xf32>, vector<16x384xf32> -> vector<16x384xf32>
    %116 = arith.addf %115, %42 : vector<16x384xf32>
    %cst_38 = arith.constant dense<0.000000e+00> : vector<64x32xf32>
    %117 = tpu.matmul %30, %114, %cst_38 {dimension_numbers = #tpu.dot_dimension_numbers<[1], [0], [0], [1], [0, 0, 1, 1], [], []>, precision = #tpu.contract_precision<fp32>} : vector<64x16xf32>, vector<16x32xf32>, vector<64x32xf32> -> vector<64x32xf32>
    %118 = vector.extract_strided_slice %117 {offsets = [0, 0], sizes = [32, 32], strides = [1, 1]} : vector<64x32xf32> to vector<32x32xf32>
    %119 = vector.extract_strided_slice %117 {offsets = [32, 0], sizes = [32, 32], strides = [1, 1]} : vector<64x32xf32> to vector<32x32xf32>
    %120 = arith.subf %118, %119 : vector<32x32xf32>
    %121 = math.absf %120 : vector<32x32xf32>
    %cst_39 = arith.constant dense<0.000000e+00> : vector<16x32xf32>
    %122 = tpu.matmul %34, %121, %cst_39 {dimension_numbers = #tpu.dot_dimension_numbers<[1], [0], [0], [1], [0, 0, 1, 1], [], []>, precision = #tpu.contract_precision<fp32>} : vector<16x32xf32>, vector<32x32xf32>, vector<16x32xf32> -> vector<16x32xf32>
    %cst_40 = arith.constant dense<0.000000e+00> : vector<16x384xf32>
    %123 = tpu.matmul %122, %35, %cst_40 {dimension_numbers = #tpu.dot_dimension_numbers<[1], [0], [0], [1], [0, 0, 1, 1], [], []>, precision = #tpu.contract_precision<fp32>} : vector<16x32xf32>, vector<32x384xf32>, vector<16x384xf32> -> vector<16x384xf32>
    %124 = arith.addf %123, %39 : vector<16x384xf32>
    %125 = vector.extract_strided_slice %124 {offsets = [0, 0], sizes = [16, 32], strides = [1, 1]} : vector<16x384xf32> to vector<16x32xf32>
    %126 = vector.extract_strided_slice %116 {offsets = [0, 0], sizes = [16, 32], strides = [1, 1]} : vector<16x384xf32> to vector<16x32xf32>
    %127 = arith.addf %125, %126 : vector<16x32xf32>
    %128 = arith.negf %127 : vector<16x32xf32>
    %129 = math.exp %128 : vector<16x32xf32>
    %cst_41 = arith.constant 1.000000e+00 : f32
    %130 = vector.broadcast %cst_41 : f32 to vector<16x32xf32>
    %131 = arith.addf %130, %129 : vector<16x32xf32>
    %132 = arith.divf %130, %131 : vector<16x32xf32>
    %133 = vector.extract_strided_slice %124 {offsets = [0, 128], sizes = [16, 32], strides = [1, 1]} : vector<16x384xf32> to vector<16x32xf32>
    %134 = vector.extract_strided_slice %116 {offsets = [0, 128], sizes = [16, 32], strides = [1, 1]} : vector<16x384xf32> to vector<16x32xf32>
    %135 = arith.addf %133, %134 : vector<16x32xf32>
    %136 = arith.negf %135 : vector<16x32xf32>
    %137 = math.exp %136 : vector<16x32xf32>
    %cst_42 = arith.constant 1.000000e+00 : f32
    %138 = vector.broadcast %cst_42 : f32 to vector<16x32xf32>
    %139 = arith.addf %138, %137 : vector<16x32xf32>
    %140 = arith.divf %138, %139 : vector<16x32xf32>
    %141 = vector.extract_strided_slice %124 {offsets = [0, 256], sizes = [16, 32], strides = [1, 1]} : vector<16x384xf32> to vector<16x32xf32>
    %142 = vector.extract_strided_slice %116 {offsets = [0, 256], sizes = [16, 32], strides = [1, 1]} : vector<16x384xf32> to vector<16x32xf32>
    %143 = arith.mulf %132, %142 : vector<16x32xf32>
    %144 = arith.addf %141, %143 : vector<16x32xf32>
    %145 = math.tanh %144 : vector<16x32xf32>
    %cst_43 = arith.constant 1.000000e+00 : f32
    %146 = vector.broadcast %cst_43 : f32 to vector<16x32xf32>
    %147 = arith.subf %146, %140 : vector<16x32xf32>
    %148 = arith.mulf %147, %145 : vector<16x32xf32>
    %149 = arith.mulf %140, %114 : vector<16x32xf32>
    %150 = arith.addf %148, %149 : vector<16x32xf32>
    %cst_44 = arith.constant dense<0.000000e+00> : vector<16x384xf32>
    %151 = tpu.matmul %150, %36, %cst_44 {dimension_numbers = #tpu.dot_dimension_numbers<[1], [0], [0], [1], [0, 0, 1, 1], [], []>, precision = #tpu.contract_precision<fp32>} : vector<16x32xf32>, vector<32x384xf32>, vector<16x384xf32> -> vector<16x384xf32>
    %152 = arith.addf %151, %42 : vector<16x384xf32>
    %cst_45 = arith.constant dense<0.000000e+00> : vector<64x32xf32>
    %153 = tpu.matmul %30, %150, %cst_45 {dimension_numbers = #tpu.dot_dimension_numbers<[1], [0], [0], [1], [0, 0, 1, 1], [], []>, precision = #tpu.contract_precision<fp32>} : vector<64x16xf32>, vector<16x32xf32>, vector<64x32xf32> -> vector<64x32xf32>
    %154 = vector.extract_strided_slice %153 {offsets = [0, 0], sizes = [32, 32], strides = [1, 1]} : vector<64x32xf32> to vector<32x32xf32>
    %155 = vector.extract_strided_slice %153 {offsets = [32, 0], sizes = [32, 32], strides = [1, 1]} : vector<64x32xf32> to vector<32x32xf32>
    %156 = arith.subf %154, %155 : vector<32x32xf32>
    %157 = math.absf %156 : vector<32x32xf32>
    %cst_46 = arith.constant dense<0.000000e+00> : vector<16x32xf32>
    %158 = tpu.matmul %34, %157, %cst_46 {dimension_numbers = #tpu.dot_dimension_numbers<[1], [0], [0], [1], [0, 0, 1, 1], [], []>, precision = #tpu.contract_precision<fp32>} : vector<16x32xf32>, vector<32x32xf32>, vector<16x32xf32> -> vector<16x32xf32>
    %cst_47 = arith.constant dense<0.000000e+00> : vector<16x384xf32>
    %159 = tpu.matmul %158, %35, %cst_47 {dimension_numbers = #tpu.dot_dimension_numbers<[1], [0], [0], [1], [0, 0, 1, 1], [], []>, precision = #tpu.contract_precision<fp32>} : vector<16x32xf32>, vector<32x384xf32>, vector<16x384xf32> -> vector<16x384xf32>
    %160 = arith.addf %159, %39 : vector<16x384xf32>
    %161 = vector.extract_strided_slice %160 {offsets = [0, 0], sizes = [16, 32], strides = [1, 1]} : vector<16x384xf32> to vector<16x32xf32>
    %162 = vector.extract_strided_slice %152 {offsets = [0, 0], sizes = [16, 32], strides = [1, 1]} : vector<16x384xf32> to vector<16x32xf32>
    %163 = arith.addf %161, %162 : vector<16x32xf32>
    %164 = arith.negf %163 : vector<16x32xf32>
    %165 = math.exp %164 : vector<16x32xf32>
    %cst_48 = arith.constant 1.000000e+00 : f32
    %166 = vector.broadcast %cst_48 : f32 to vector<16x32xf32>
    %167 = arith.addf %166, %165 : vector<16x32xf32>
    %168 = arith.divf %166, %167 : vector<16x32xf32>
    %169 = vector.extract_strided_slice %160 {offsets = [0, 128], sizes = [16, 32], strides = [1, 1]} : vector<16x384xf32> to vector<16x32xf32>
    %170 = vector.extract_strided_slice %152 {offsets = [0, 128], sizes = [16, 32], strides = [1, 1]} : vector<16x384xf32> to vector<16x32xf32>
    %171 = arith.addf %169, %170 : vector<16x32xf32>
    %172 = arith.negf %171 : vector<16x32xf32>
    %173 = math.exp %172 : vector<16x32xf32>
    %cst_49 = arith.constant 1.000000e+00 : f32
    %174 = vector.broadcast %cst_49 : f32 to vector<16x32xf32>
    %175 = arith.addf %174, %173 : vector<16x32xf32>
    %176 = arith.divf %174, %175 : vector<16x32xf32>
    %177 = vector.extract_strided_slice %160 {offsets = [0, 256], sizes = [16, 32], strides = [1, 1]} : vector<16x384xf32> to vector<16x32xf32>
    %178 = vector.extract_strided_slice %152 {offsets = [0, 256], sizes = [16, 32], strides = [1, 1]} : vector<16x384xf32> to vector<16x32xf32>
    %179 = arith.mulf %168, %178 : vector<16x32xf32>
    %180 = arith.addf %177, %179 : vector<16x32xf32>
    %181 = math.tanh %180 : vector<16x32xf32>
    %cst_50 = arith.constant 1.000000e+00 : f32
    %182 = vector.broadcast %cst_50 : f32 to vector<16x32xf32>
    %183 = arith.subf %182, %176 : vector<16x32xf32>
    %184 = arith.mulf %183, %181 : vector<16x32xf32>
    %185 = arith.mulf %176, %150 : vector<16x32xf32>
    %186 = arith.addf %184, %185 : vector<16x32xf32>
    %cst_51 = arith.constant dense<0.000000e+00> : vector<16x384xf32>
    %187 = tpu.matmul %186, %36, %cst_51 {dimension_numbers = #tpu.dot_dimension_numbers<[1], [0], [0], [1], [0, 0, 1, 1], [], []>, precision = #tpu.contract_precision<fp32>} : vector<16x32xf32>, vector<32x384xf32>, vector<16x384xf32> -> vector<16x384xf32>
    %188 = arith.addf %187, %42 : vector<16x384xf32>
    %cst_52 = arith.constant dense<0.000000e+00> : vector<64x32xf32>
    %189 = tpu.matmul %30, %186, %cst_52 {dimension_numbers = #tpu.dot_dimension_numbers<[1], [0], [0], [1], [0, 0, 1, 1], [], []>, precision = #tpu.contract_precision<fp32>} : vector<64x16xf32>, vector<16x32xf32>, vector<64x32xf32> -> vector<64x32xf32>
    %190 = vector.extract_strided_slice %189 {offsets = [0, 0], sizes = [32, 32], strides = [1, 1]} : vector<64x32xf32> to vector<32x32xf32>
    %191 = vector.extract_strided_slice %189 {offsets = [32, 0], sizes = [32, 32], strides = [1, 1]} : vector<64x32xf32> to vector<32x32xf32>
    %192 = arith.subf %190, %191 : vector<32x32xf32>
    %193 = math.absf %192 : vector<32x32xf32>
    %cst_53 = arith.constant dense<0.000000e+00> : vector<16x32xf32>
    %194 = tpu.matmul %34, %193, %cst_53 {dimension_numbers = #tpu.dot_dimension_numbers<[1], [0], [0], [1], [0, 0, 1, 1], [], []>, precision = #tpu.contract_precision<fp32>} : vector<16x32xf32>, vector<32x32xf32>, vector<16x32xf32> -> vector<16x32xf32>
    %cst_54 = arith.constant dense<0.000000e+00> : vector<16x384xf32>
    %195 = tpu.matmul %194, %35, %cst_54 {dimension_numbers = #tpu.dot_dimension_numbers<[1], [0], [0], [1], [0, 0, 1, 1], [], []>, precision = #tpu.contract_precision<fp32>} : vector<16x32xf32>, vector<32x384xf32>, vector<16x384xf32> -> vector<16x384xf32>
    %196 = arith.addf %195, %39 : vector<16x384xf32>
    %197 = vector.extract_strided_slice %196 {offsets = [0, 0], sizes = [16, 32], strides = [1, 1]} : vector<16x384xf32> to vector<16x32xf32>
    %198 = vector.extract_strided_slice %188 {offsets = [0, 0], sizes = [16, 32], strides = [1, 1]} : vector<16x384xf32> to vector<16x32xf32>
    %199 = arith.addf %197, %198 : vector<16x32xf32>
    %200 = arith.negf %199 : vector<16x32xf32>
    %201 = math.exp %200 : vector<16x32xf32>
    %cst_55 = arith.constant 1.000000e+00 : f32
    %202 = vector.broadcast %cst_55 : f32 to vector<16x32xf32>
    %203 = arith.addf %202, %201 : vector<16x32xf32>
    %204 = arith.divf %202, %203 : vector<16x32xf32>
    %205 = vector.extract_strided_slice %196 {offsets = [0, 128], sizes = [16, 32], strides = [1, 1]} : vector<16x384xf32> to vector<16x32xf32>
    %206 = vector.extract_strided_slice %188 {offsets = [0, 128], sizes = [16, 32], strides = [1, 1]} : vector<16x384xf32> to vector<16x32xf32>
    %207 = arith.addf %205, %206 : vector<16x32xf32>
    %208 = arith.negf %207 : vector<16x32xf32>
    %209 = math.exp %208 : vector<16x32xf32>
    %cst_56 = arith.constant 1.000000e+00 : f32
    %210 = vector.broadcast %cst_56 : f32 to vector<16x32xf32>
    %211 = arith.addf %210, %209 : vector<16x32xf32>
    %212 = arith.divf %210, %211 : vector<16x32xf32>
    %213 = vector.extract_strided_slice %196 {offsets = [0, 256], sizes = [16, 32], strides = [1, 1]} : vector<16x384xf32> to vector<16x32xf32>
    %214 = vector.extract_strided_slice %188 {offsets = [0, 256], sizes = [16, 32], strides = [1, 1]} : vector<16x384xf32> to vector<16x32xf32>
    %215 = arith.mulf %204, %214 : vector<16x32xf32>
    %216 = arith.addf %213, %215 : vector<16x32xf32>
    %217 = math.tanh %216 : vector<16x32xf32>
    %cst_57 = arith.constant 1.000000e+00 : f32
    %218 = vector.broadcast %cst_57 : f32 to vector<16x32xf32>
    %219 = arith.subf %218, %212 : vector<16x32xf32>
    %220 = arith.mulf %219, %217 : vector<16x32xf32>
    %221 = arith.mulf %212, %186 : vector<16x32xf32>
    %222 = arith.addf %220, %221 : vector<16x32xf32>
    %c0_58 = arith.constant 0 : index
    %c896 = arith.constant 896 : index
    %223 = vector.load %arg4[%c0_58, %c896] : memref<32x1024xf32, #tpu.memory_space<vmem>>, vector<32x128xf32>
    %cst_59 = arith.constant dense<0.000000e+00> : vector<16x128xf32>
    %224 = tpu.matmul %222, %223, %cst_59 {dimension_numbers = #tpu.dot_dimension_numbers<[1], [0], [0], [1], [0, 0, 1, 1], [], []>, precision = #tpu.contract_precision<fp32>} : vector<16x32xf32>, vector<32x128xf32>, vector<16x128xf32> -> vector<16x128xf32>
    %c0_60 = arith.constant 0 : index
    %c896_61 = arith.constant 896 : index
    %225 = vector.load %arg5[%c0_60, %c896_61] : memref<1x1024xf32, #tpu.memory_space<vmem>>, vector<1x128xf32>
    %226 = vector.broadcast %225 : vector<1x128xf32> to vector<16x128xf32>
    %227 = arith.addf %224, %226 : vector<16x128xf32>
    %c0_62 = arith.constant 0 : index
    %c0_63 = arith.constant 0 : index
    %c0_64 = arith.constant 0 : index
    %228 = vector.load %arg6[%c0_62, %c0_63, %c0_64] : memref<1x16x128xf32, #tpu.memory_space<vmem>>, vector<1x16x128xf32>
    %229 = vector.shape_cast %228 : vector<1x16x128xf32> to vector<16x128xf32>
    %230 = vector.shape_cast %227 : vector<16x128xf32> to vector<1x16x128xf32>
    tpu.vector_store %arg6[%c0_62, %c0_63, %c0_64], %230 {strides = array<i32>} : memref<1x16x128xf32, #tpu.memory_space<vmem>>, vector<1x16x128xf32>,
    return
  }
  func.func @transform_0(%arg0: i32) -> (i32, i32, i32) {
    %c0_i32 = arith.constant 0 : i32
    %c0_i32_0 = arith.constant 0 : i32
    %c0_i32_1 = arith.constant 0 : i32
    return %arg0, %c0_i32, %c0_i32_0 : i32, i32, i32
  }
  func.func @transform_1(%arg0: i32) -> (i32, i32, i32) {
    %c0_i32 = arith.constant 0 : i32
    %c0_i32_0 = arith.constant 0 : i32
    %c0_i32_1 = arith.constant 0 : i32
    return %arg0, %c0_i32, %c0_i32_0 : i32, i32, i32
  }
  func.func @transform_2(%arg0: i32) -> (i32, i32) {
    %c0_i32 = arith.constant 0 : i32
    %c0_i32_0 = arith.constant 0 : i32
    %c0_i32_1 = arith.constant 0 : i32
    return %c0_i32, %c0_i32_0 : i32, i32
  }
  func.func @transform_3(%arg0: i32) -> (i32, i32) {
    %c0_i32 = arith.constant 0 : i32
    %c0_i32_0 = arith.constant 0 : i32
    %c0_i32_1 = arith.constant 0 : i32
    return %c0_i32, %c0_i32_0 : i32, i32
  }
  func.func @transform_4(%arg0: i32) -> (i32, i32) {
    %c0_i32 = arith.constant 0 : i32
    %c0_i32_0 = arith.constant 0 : i32
    %c0_i32_1 = arith.constant 0 : i32
    return %c0_i32, %c0_i32_0 : i32, i32
  }
  func.func @transform_5(%arg0: i32) -> (i32, i32, i32) {
    %c0_i32 = arith.constant 0 : i32
    %c0_i32_0 = arith.constant 0 : i32
    %c0_i32_1 = arith.constant 0 : i32
    return %arg0, %c0_i32, %c0_i32_0 : i32, i32, i32
  }
}

</mosaic_0001>

<bundles_post_ra>
// kernel: tpu_custom_call.1
= control target key start
LH: loop header
LB: loop body
LE: loop exit
PB: predicated region body
PF: predicated region fallthrough
CT: control target
= control target key end

     0   :  { %10 = vsyncpa [#allocation3], 0  ;;  %s15380_s0 = inlined_call_operand.vmem [shape: s32[8,64,1], index: 0, kind: input, shape index: {}]   ;;  %s15381_s1 = inlined_call_operand.vmem [shape: f32[8,16,9], index: 1, kind: input, shape index: {}]   ;;  %s15382_s2 = inlined_call_operand.vmem [shape: f32[9,256], index: 2, kind: input, shape index: {}]   ;;  %s15383_s3 = inlined_call_operand.vmem [shape: f32[32,1024], index: 3, kind: input, shape index: {}]   ;;  %s15384_s4 = inlined_call_operand.vmem [shape: f32[1,1024], index: 4, kind: input, shape index: {}]   ;;  %s15385_s5 = inlined_call_operand.hbm [shape: f32[8,16,128], index: 5, kind: output, shape index: {}]  }
   0x1   :  { %12 = vsyncpa [#allocation3 + $0x1], 0  ;;  %s11856_s18 = smov 0   ;;  %s11858_s19 = smov 0  }
   0x2   :  { %s11860_s20 = smov 0   ;;  %s11862_s21 = smov 0  }
   0x3 LB: > { %s11877_s22 = sadd.s32 4294967295, %s11819_s21   ;;  %s11427_s23 = sadd.s32 4294967294, %s11819_s21   ;;  %s11819_s21 = sphi %s11862_s21, %s16856_s21   ;;  %s11815_s20 = sphi %s11860_s20, %s16855_s20   ;;  %s11811_s19 = sphi %s11858_s19, %s16854_s19   ;;  %s11807_s18 = sphi %s11856_s18, %s16853_s18  }
   0x4   : > { %s11881_s24 = sadd.s32 1, %s11819_s21   ;;  %s140_s25 = sadd.s32 1, %s11815_s20 }
   0x5   : > { %s137_s26 = ssub.s32 %s11819_s21, %s11881_s24  ;;  %p150_p0 = scmp.ne.s32.totalorder %s11815_s20, %s11811_s19 }
   0x6   : > { %p138_p1 = scmp.eq.s32.totalorder %s137_s26, 0  ;;  %p151_p2 = scmp.eq.s32.totalorder %s11877_s22, 7 }
   0x7   : > { %p156_p3 = scmp.ne.s32.totalorder %s11811_s19, %s11807_s18  ;;  %p157_p4 = scmp.eq.s32.totalorder %s11427_s23, 7 }
   0x8   : > { %s11892_s27 = scalar_select %p138_p1, %s11815_s20, %s140_s25  }
   0x9   : > { %p11894_p5 = por %p151_p2, %p150_p0  ;;  %p11898_p6 = por %p157_p4, %p156_p3 }
   0xa   : > { %p11430_p7 = scmp.ge.s32.totalorder %s11819_s21, 1  ;;  %p200_p8 = scmp.lt.s32.totalorder %s11819_s21, 9 }
   0xc   : > { %p201_p9 = pnand %p11430_p7, %p200_p8 }
   0xe   : > { %204 = sbr.rel (%p201_p9) target bundleno = 4060 (0xfdc), region = 40 }
  0x13   : > { %v247_v0 = vld [vmem:[%s15382_s2 + $0x10] sm:$0x1]  ;;  %vm256_vm0 = vcmask 1040384   ;;  %v245_v1 = vld [vmem:[%s15382_s2] sm:$0xff]  ;;  %p233_p10 = scmp.lt.s32.totalorder %s11877_s22, 7  ;;  %v246_v5 = vld [vmem:[%s15382_s2 + $0x8] sm:$0xff] }
  0x14   : > { %v258_v2 = vsel %vm256_vm0, %v247_v0, 0  ;;  %v279_v3 = vand.u32 4294901760, %v245_v1  ;;  %v248_v4 = vld [vmem:[%s15382_s2 + $0x18] sm:$0x1]  ;;  %v11920_v8 = vand.u32 4294901760, %v246_v5  ;;  %vm249_vm1 = vcmask 72704  }
  0x15   : > { %v277_v6 = vand.u32 4294901760, %v258_v2  ;;  %s11918_s13 = scalar_select %p233_p10, %s11877_s22, 7  ;;  %v261_v7 = vsel %vm256_vm0, %v248_v4, 0  ;;  %v11821_v40 = vmov 0   ;;  %v650_v48 = vld [vmem:[%s15383_s3 + $0xf0] sm:$0xff]  ;;  %vm655_vm2 = vcmask 261120  }
  0x16   : > { %v319_v9 = vsub.f32 %v245_v1, %v279_v3  ;;  %v467_v10 = vand.u32 4294901760, %v261_v7  ;;  %v509_v14 = vsub.f32 %v246_v5, %v11920_v8  ;;  %11642 = vset.pattern.permute.xlu0 %v11821_v40  ;;  %11643 = vset.pattern.permute.xlu1 %v11821_v40  ;;  %v674_v50 = vand.u32 4294901760, %v650_v48  ;;  %v649_v51 = vld [vmem:[%s15383_s3 + $0xb0] sm:$0xff]  ;;  %s11593_s16 = sshll.u32 %s11877_s22, 4  ;;  %s11777_s11 = scalar_lea.hbm %s15385_s5, 128 }
  0x17   : > { %11594 = vmatpush.msra.mxu2 %v277_v6  ;;  %v313_v11 = vsub.f32 %v258_v2, %v277_v6  ;;  %s11592_s14 = sshll.u32 %s11918_s13, 4  ;;  %278 = vmatpush.msra.mxu0 %v277_v6  ;;  %s11591_s23 = sshll.u32 %s11918_s13, 6  ;;  %v676_v53 = vand.u32 4294901760, %v649_v51  ;;  %v648_v55 = vld [vmem:[%s15383_s3 + $0x70] sm:$0xff]  ;;  %vm1718_vm9 = vcmask 130048   ;;  %vm916_vm15 = vcmask 64512  }
  0x18   : > { %v320_v12 = vand.u32 4294901760, %v319_v9  ;;  %s242_s17 = scalar_lea.vmem %s15381_s1, %s11592_s14  ;;  %v503_v13 = vsub.f32 %v261_v7, %v467_v10  ;;  %v510_v25 = vand.u32 4294901760, %v509_v14  ;;  %s11943_s30 = scalar_lea.vmem %s15380_s0, %s11591_s23  ;;  %11644 = vset.pattern.permute.xlu2 %v11821_v40  ;;  %v712_v52 = vsub.f32 %v650_v48, %v674_v50  ;;  %v647_v60 = vld [vmem:[%s15383_s3 + $0x30] sm:$0xff] }
  0x19   : > { %v314_v15 = vand.u32 4294901760, %v313_v11  ;;  %11595 = vmatpush.msra.mxu2 %v279_v3  ;;  %v244_v16 = vld [vmem:[%s242_s17 + $0x8] sm:$0xff]  ;;  %280 = vmatpush.msra.mxu0 %v279_v3  ;;  %v243_v17 = vld [vmem:[%s242_s17] sm:$0xff]  ;;  %v934_v43 = vld [vmem:[%s11943_s30 + $0x10] sm:$0xff]  ;;  %v718_v58 = vsub.f32 %v649_v51, %v676_v53  ;;  %v678_v59 = vand.u32 4294901760, %v648_v55  ;;  %v680_v0 = vand.u32 4294901760, %v647_v60  ;;  %s11349_s26 = scalar_lea.hbm %s15385_s5, %s11593_s16 }
  0x1a   : > { %v321_v18 = vsub.f32 %v319_v9, %v320_v12  ;;  %v254_v19 = vsel %vm249_vm1, %v244_v16, 0  ;;  %v251_v20 = vsel %vm249_vm1, %v243_v17, 0  ;;  %v504_v24 = vand.u32 4294901760, %v503_v13  ;;  %v932_v41 = vld [vmem:[%s11943_s30] sm:$0xff]  ;;  %v933_v42 = vld [vmem:[%s11943_s30 + $0x8] sm:$0xff]  ;;  %v938_v44 = vld [vmem:[%s11943_s30 + $0x30] sm:$0xff]  ;;  %949 = vperm.xlu1 %11643, %v934_v43  }
  0x1b   : > { %349 = vmatpush.msrb.mxu2 %v313_v11  ;;  %v315_v21 = vsub.f32 %v313_v11, %v314_v15  ;;  %v11927_v22 = vand.u32 4294901760, %v254_v19  ;;  %v281_v23 = vand.u32 4294901760, %v251_v20  ;;  %412 = vmatpush.msrb.mxu0 %v314_v15  ;;  %v511_v35 = vsub.f32 %v509_v14, %v510_v25  ;;  %v935_v49 = vld [vmem:[%s11943_s30 + $0x18] sm:$0xff]  ;;  %s230_s14 = sand.u32 1, %s11811_s19   ;;  %s11352_s7 = sshll.u32 %s11349_s26, 4  ;;  %s11353_s7 = int_to_ptr.hbm [resolvable:$true] %s11352_s7 }
  0x1c   : > { %v322_v27 = vand.u32 4294901760, %v321_v18  ;;  %v505_v32 = vsub.f32 %v503_v13, %v504_v24  ;;  %943 = vperm.xlu0 %11642, %v932_v41   ;;  %v713_v57 = vand.u32 4294901760, %v712_v52  ;;  %v719_v62 = vand.u32 4294901760, %v718_v58  ;;  %v939_v2 = vld [vmem:[%s11943_s30 + $0x38] sm:$0xff]  ;;  %s11431_s15 = sshll.u32 %s230_s14, 4  ;;  %s11338_s22 = scalar_lea.sflag [#allocation3], %s230_s14 }
  0x1d   : > { %352 = vmatpush.msrb.mxu2 %v319_v9  ;;  %v316_v26 = vand.u32 4294901760, %v315_v21  ;;  %v290_v28 = vsub.f32 %v254_v19, %v11927_v22  ;;  %v282_v29 = vsub.f32 %v251_v20, %v281_v23  ;;  %416 = vmatpush.msrb.mxu0 %v320_v12  ;;  %v512_v39 = vand.u32 4294901760, %v511_v35  ;;  %v1045_v18 = vld [vmem:[%s15383_s3 + $0xd8] sm:$0xff]  ;;  %s232_s17 = scalar_lea.vmem [#allocation2], %s11431_s15  ;;  %s11771_s8 = sshra.s32 %s11353_s7, 4  ;;  %s11772_s8 = int_to_ptr.hbm [resolvable:$true] %s11771_s8 }
  0x1e   : > { %v506_v38 = vand.u32 4294901760, %v505_v32  ;;  %v714_v61 = vsub.f32 %v712_v52, %v713_v57  ;;  %v724_v63 = vsub.f32 %v648_v55, %v678_v59  ;;  %v720_v4 = vsub.f32 %v718_v58, %v719_v62  ;;  %v1042_v21 = vld [vmem:[%s15383_s3 + $0x98] sm:$0xff]  ;;  %s11350_s6 = sshll.u32 %s232_s17, 4  ;;  %s11773_s9 = scalar_lea.hbm %s11772_s8, 16  ;;  %s11351_s6 = int_to_ptr.vmem [resolvable:$true] %s11350_s6 }
  0x1f   : > { %11596 = vmatpush.msra.mxu3 %v316_v26  ;;  %v291_v30 = vand.u32 4294901760, %v290_v28  ;;  %317 = vmatpush.msra.mxu1 %v316_v26  ;;  %v283_v31 = vand.u32 4294901760, %v282_v29  ;;  %v730_v7 = vsub.f32 %v647_v60, %v680_v0  ;;  %v11978_v20 = vand.u32 4294901760, %v1045_v18  ;;  %p11774_p11 = scmp.ne.s32.totalorder %s11772_s8, %s11773_s9  ;;  %p11778_p0 = scmp.lt.s32.totalorder %s11772_s8, %s15385_s5 }
  0x20   : > { %v725_v5 = vand.u32 4294901760, %v724_v63  ;;  %p11779_p1 = scmp.lt.s32.totalorder %s11777_s11, %s11773_s9 }
  0x21   : > { %11597 = vmatpush.msra.mxu3 %v322_v27  ;;  %v292_v33 = vsub.f32 %v290_v28, %v291_v30  ;;  %v284_v34 = vsub.f32 %v282_v29, %v283_v31  ;;  %323 = vmatpush.msra.mxu1 %v322_v27  ;;  %15778 = vst [vmem:[#allocation5_spill] sm:$0xff] %v11978_v20  ;;  %v1039_v27 = vld [vmem:[%s15383_s3 + $0x58] sm:$0xff]  ;;  %p11775_p12 = pnand %p11774_p11, %p11894_p5 }
  0x22   : > { %329 = vmatmul.f32.vlgmr.msra.gmra.mxu3 %v11927_v22  ;;  %325 = vmatmul.f32.vlgmr.msra.gmra.mxu1 %v281_v23  ;;  %v726_v9 = vsub.f32 %v724_v63, %v725_v5  ;;  %p11780_p2 = por %p11779_p1, %p11778_p0 }
  0x23   : > { %v293_v36 = vand.u32 4294901760, %v292_v33  ;;  %379 = vmatpush.msrb.mxu3 %v277_v6  ;;  %v285_v37 = vand.u32 4294901760, %v284_v34  ;;  %441 = vmatpush.msrb.mxu1 %v277_v6  ;;  %p11776_p13 = pneg %p11775_p12 }
  0x24   : > { %946 = vperm.xlu0 %11642, %v933_v42   ;;  %952 = vperm.xlu1 %11643, %v935_v49   ;;  %v727_v12 = vand.u32 4294901760, %v726_v9 }
  0x25   : > { %294 = vmatmul.f32.vlgmr.msra.gmra.mxu2 %v293_v36  ;;  %381 = vmatpush.msrb.mxu3 %v279_v3  ;;  %p11781_p3 = pnand %p11780_p2, %p11776_p13 }
  0x26   : > { %286 = vmatmul.f32.vlgmr.msra.gmra.mxu0 %v285_v37  ;;  %443 = vmatpush.msrb.mxu1 %v279_v3  ;;  %v715_v3 = vand.u32 4294901760, %v714_v61 }
  0x27   : > { %468 = vmatpush.msra.mxu2 %v467_v10  ;;  %507 = vmatpush.msra.mxu3 %v506_v38 }
  0x28   : > { %539 = vmatpush.msra.mxu0 %v503_v13  ;;  %569 = vmatpush.msra.mxu1 %v467_v10 }
  0x29   : > { %470 = vmatpush.msra.mxu2 %v11920_v8  ;;  %513 = vmatpush.msra.mxu3 %v512_v39 }
  0x2a   : > { %385 = vmatmul.f32.vlgmr.msrb.gmra.mxu3 %v283_v31  ;;  %445 = vmatmul.f32.vlgmr.msrb.gmra.mxu1 %v281_v23 }
  0x2b   : > { %542 = vmatpush.msra.mxu0 %v509_v14  ;;  %571 = vmatpush.msra.mxu1 %v11920_v8 }
  0x2c   : > { %631 = vmatpush.msrb.mxu3 %v467_v10  ;;  %961 = vperm.xlu0 %11642, %v938_v44   ;;  %v731_v10 = vand.u32 4294901760, %v730_v7 }
  0x2d   : > { %355 = vmatmul.f32.vlgmr.msrb.gmra.mxu2 %v282_v29  ;;  %964 = vperm.xlu1 %11643, %v939_v2  }
  0x2e   : > { %418 = vmatmul.f32.vlgmr.msrb.gmra.mxu0 %v281_v23  ;;  %602 = vmatpush.msrb.mxu2 %v504_v24  ;;  %v732_v14 = vsub.f32 %v730_v7, %v731_v10  ;;  %v11988_v24 = vsub.f32 %v1045_v18, %v11978_v20 }
  0x2f   : > { %633 = vmatpush.msrb.mxu3 %v11920_v8  ;;  %675 = vmatpush.msrb.mxu0 %v674_v50  ;;  %v721_v8 = vand.u32 4294901760, %v720_v4 }
  0x30   : > { %606 = vmatpush.msrb.mxu2 %v510_v25  ;;  %716 = vmatpush.msrb.mxu1 %v715_v3  ;;  %v733_v16 = vand.u32 4294901760, %v732_v14  ;;  %15780 = vst [vmem:[#allocation7_spill] sm:$0xff] %v11988_v24 }
  0x31   : > { %677 = vmatpush.msrb.mxu0 %v676_v53 }
  0x32   : > { %391 = vmatmul.f32.gmra.mxu3 %v291_v30  ;;  %449 = vmatmul.f32.gmra.mxu1 %v11927_v22 }
  0x33   : > { %679 = vmatpush.msrb.mxu0 %v678_v59  ;;  %722 = vmatpush.msrb.mxu1 %v721_v8 }
  0x35   : > { %360 = vmatmul.f32.gmra.mxu2 %v290_v28  ;;  %681 = vmatpush.msrb.mxu0 %v680_v0 }
  0x36   : > { %422 = vmatmul.f32.gmra.mxu0 %v11927_v22  ;;  %728 = vmatpush.msrb.mxu1 %v727_v12 }
  0x38   : > { %734 = vmatpush.msrb.mxu1 %v733_v16  ;;  %v1046_v16 = vld [vmem:[%s15383_s3 + $0xe0] sm:$0xff] }
  0x3a   : > { %515 = vmatmul.f32.vlgmr.msra.gmra.mxu3 %v281_v23  ;;  %575 = vmatmul.f32.vlgmr.msra.gmra.mxu1 %v283_v31  ;;  %v1036_v31 = vld [vmem:[%s15383_s3 + $0x18] sm:$0xff] }
  0x3b   : > { %792 = vmatpush.msra.mxu3 %v674_v50  ;;  %862 = vmatpush.msra.mxu1 %v674_v50  ;;  %v12011_v35 = vand.u32 4294901760, %v1036_v31 }
  0x3d   : > { %476 = vmatmul.f32.vlgmr.msra.gmra.mxu2 %v285_v37  ;;  %794 = vmatpush.msra.mxu3 %v676_v53  ;;  %15785 = vst [vmem:[#allocation12_spill] sm:$0xff] %v12011_v35  ;;  %v12025_v42 = vsub.f32 %v1036_v31, %v12011_v35 }
  0x3e   : > { %545 = vmatmul.f32.vlgmr.msra.gmra.mxu0 %v282_v29  ;;  %758 = vmatpush.msra.mxu2 %v712_v52  ;;  %v11997_v29 = vand.u32 4294901760, %v1039_v27 }
  0x3f   : > { %796 = vmatpush.msra.mxu3 %v678_v59  ;;  %827 = vmatpush.msra.mxu0 %v713_v57  ;;  %15789 = vst [vmem:[#allocation16_spill] sm:$0xff] %v12025_v42  ;;  %v12034_v50 = vand.u32 4294901760, %v12025_v42 }
  0x40   : > { %761 = vmatpush.msra.mxu2 %v718_v58  ;;  %864 = vmatpush.msra.mxu1 %v676_v53  ;;  %15782 = vst [vmem:[#allocation9_spill] sm:$0xff] %v11997_v29 }
  0x41   : > { %798 = vmatpush.msra.mxu3 %v680_v0  ;;  %831 = vmatpush.msra.mxu0 %v719_v62  ;;  %15791 = vst [vmem:[#allocation18_spill] sm:$0xff] %v12034_v50 }
  0x42   : > { %519 = vmatmul.f32.gmra.mxu3 %v11927_v22  ;;  %581 = vmatmul.f32.gmra.mxu1 %v291_v30 }
  0x43   : > { %764 = vmatpush.msra.mxu2 %v724_v63  ;;  %835 = vmatpush.msra.mxu0 %v725_v5 }
  0x44   : > { %866 = vmatpush.msra.mxu1 %v678_v59 }
  0x45   : > { %484 = vmatmul.f32.gmra.mxu2 %v293_v36  ;;  %839 = vmatpush.msra.mxu0 %v731_v10  ;;  %v12014_v36 = vsub.f32 %v1039_v27, %v11997_v29 }
  0x46   : > { %550 = vmatmul.f32.gmra.mxu0 %v290_v28  ;;  %767 = vmatpush.msra.mxu2 %v730_v7  ;;  %v11995_v28 = vand.u32 4294901760, %v11988_v24 }
  0x47   : > { %868 = vmatpush.msra.mxu1 %v680_v0  ;;  %15786 = vst [vmem:[#allocation13_spill] sm:$0xff] %v12014_v36  ;;  %v12022_v41 = vand.u32 4294901760, %v12014_v36 }
  0x48   : > { %15781 = vst [vmem:[#allocation8_spill] sm:$0xff] %v11995_v28  ;;  %v1122_v33 = vsub.f32 %v11988_v24, %v11995_v28 }
  0x49   : > { %15788 = vst [vmem:[#allocation15_spill] sm:$0xff] %v12022_v41  ;;  %v1134_v49 = vsub.f32 %v12014_v36, %v12022_v41 }
  0x4a   : > { %635 = vmatmul.f32.vlgmr.msrb.gmra.mxu3 %v281_v23  ;;  %v12016_v37 = vand.u32 4294901760, %v1122_v33 }
  0x4b   : > { %v12039_v53 = vand.u32 4294901760, %v1134_v49 }
  0x4c   : > { %15787 = vst [vmem:[#allocation14_spill] sm:$0xff] %v12016_v37  ;;  %1124 = vmatpush.msrb.mxu3 %v12016_v37 }
  0x4d   : > { %608 = vmatmul.f32.vlgmr.msrb.gmra.mxu2 %v281_v23  ;;  %v11985_v23 = vand.u32 4294901760, %v1042_v21  ;;  %15792 = vst [vmem:[#allocation19_spill] sm:$0xff] %v12039_v53 }
  0x4e   : > { %1083 = vmatpush.msrb.mxu2 %v11978_v20 }
  0x4f   : > { %15779 = vst [vmem:[#allocation6_spill] sm:$0xff] %v11985_v23  ;;  %v12000_v30 = vsub.f32 %v1042_v21, %v11985_v23  ;;  %v12065_v21 = vand.u32 4294901760, %v1046_v16 }
  0x50   : > { %1085 = vmatpush.msrb.mxu2 %v11985_v23 }
  0x51   : > { %15783 = vst [vmem:[#allocation10_spill] sm:$0xff] %v12000_v30  ;;  %v12009_v34 = vand.u32 4294901760, %v12000_v30  ;;  %v12074_v31 = vsub.f32 %v1046_v16, %v12065_v21 }
  0x52   : > { %639 = vmatmul.f32.gmra.mxu3 %v11927_v22  ;;  %1087 = vmatpush.msrb.mxu2 %v11997_v29  ;;  %15795 = vst [vmem:[#allocation22_spill] sm:$0xff] %v12065_v21 }
  0x53   : > { %15784 = vst [vmem:[#allocation11_spill] sm:$0xff] %v12009_v34  ;;  %v1128_v40 = vsub.f32 %v12000_v30, %v12009_v34 }
  0x54   : > { %1089 = vmatpush.msrb.mxu2 %v12011_v35  ;;  %15797 = vst [vmem:[#allocation24_spill] sm:$0xff] %v12074_v31 }
  0x55   : > { %612 = vmatmul.f32.gmra.mxu2 %v11927_v22  ;;  %v12029_v48 = vand.u32 4294901760, %v1128_v40 }
  0x57   : > { %15790 = vst [vmem:[#allocation17_spill] sm:$0xff] %v12029_v48  ;;  %1130 = vmatpush.msrb.mxu3 %v12029_v48 }
  0x59   : > { %1136 = vmatpush.msrb.mxu3 %v12039_v53 }
  0x9f   : > { %v326_v54 = vpop.f32.mrf.mxu1 }
  0xa3   : > { %v11953_v47 = vpop.f32.mrf.mxu0 }
  0xa4   : > { %v327_v22 = vadd.f32 %v326_v54, %v11953_v47  ;;  %v1140_v54 = vsub.f32 %v12025_v42, %v12034_v50 }
  0xa5   : > { %v11949_v45 = vpop.f32.mrf.mxu3 }
  0xa6   : > { %v12045_v58 = vand.u32 4294901760, %v1140_v54 }
  0xa7   : > { %v446_v13 = vpop.f32.mrf.mxu1 }
  0xa8   : > { %v11951_v46 = vpop.f32.mrf.mxu2  ;;  %15793 = vst [vmem:[#allocation20_spill] sm:$0xff] %v12045_v58  ;;  %1142 = vmatpush.msrb.mxu3 %v12045_v58 }
  0xa9   : > { %v331_v51 = vadd.f32 %v11949_v45, %v11951_v46 }
  0xab   : > { %v11971_v6 = vpop.f32.mrf.mxu0 }
  0xad   : > { %v11965_v56 = vpop.f32.mrf.mxu3 }
  0xaf   : > { %v450_v25 = vpop.f32.mrf.mxu1 }
  0xb0   : > { %v356_v1 = vpop.f32.mrf.mxu2 }
  0xb1   : > { %v357_v32 = vadd.f32 %v356_v1, %v327_v22  ;;  %v936_v1 = vld [vmem:[%s11943_s30 + $0x20] sm:$0xff] }
  0xb2   : > { %955 = vperm.xlu2 %11644, %v936_v1  }
  0xb3   : > { %v423_v17 = vpop.f32.mrf.mxu0  ;;  %v387_v43 = vadd.f32 %v11965_v56, %v357_v32 }
  0xb5   : > { %v11973_v11 = vpop.f32.mrf.mxu3  ;;  %v420_v55 = vadd.f32 %v11971_v6, %v387_v43 }
  0xb7   : > { %v576_v52 = vpop.f32.mrf.mxu1  ;;  %v447_v45 = vadd.f32 %v446_v13, %v420_v55 }
  0xb8   : > { %v361_v15 = vpop.f32.mrf.mxu2 }
  0xb9   : > { %v362_v56 = vadd.f32 %v361_v15, %v331_v51  ;;  %v12050_v2 = vmax.f32 %v447_v45, 0.0  ;;  %v12097_v51 = vand.u32 4294901760, %v12074_v31 }
  0xbb   : > { %v546_v38 = vpop.f32.mrf.mxu0  ;;  %v393_v46 = vadd.f32 %v11973_v11, %v362_v56  ;;  %15794 = vst [vmem:[#allocation21_spill] sm:$0xff] %v12050_v2  ;;  %v1065_v8 = vsel %vm655_vm2, %v12050_v2, 0 }
  0xbc   : > { %15801 = vst [vmem:[#allocation28_spill] sm:$0xff] %v12097_v51 }
  0xbd   : > { %v516_v19 = vpop.f32.mrf.mxu3  ;;  %v424_v3 = vadd.f32 %v423_v17, %v393_v46  ;;  %v12060_v17 = vand.u32 4294901760, %v1065_v8 }
  0xbf   : > { %v582_v6 = vpop.f32.mrf.mxu1  ;;  %v451_v9 = vadd.f32 %v450_v25, %v424_v3 }
  0xc0   : > { %v477_v26 = vpop.f32.mrf.mxu2 }
  0xc1   : > { %v517_v44 = vadd.f32 %v516_v19, %v477_v26  ;;  %v937_v19 = vld [vmem:[%s11943_s30 + $0x28] sm:$0xff]  ;;  %v12067_v22 = vmax.f32 %v451_v9, 0.0  ;;  %v1043_v26 = vld [vmem:[%s15383_s3 + $0xa0] sm:$0xff] }
  0xc2   : > { %958 = vperm.xlu2 %11644, %v937_v19   ;;  %v12076_v32 = vand.u32 4294901760, %v1043_v26  ;;  %v1044_v19 = vld [vmem:[%s15383_s3 + $0xa8] sm:$0xff] }
  0xc3   : > { %v547_v57 = vadd.f32 %v546_v38, %v517_v44  ;;  %v551_v62 = vpop.f32.mrf.mxu0  ;;  %15796 = vst [vmem:[#allocation23_spill] sm:$0xff] %v12067_v22  ;;  %v1040_v38 = vld [vmem:[%s15383_s3 + $0x60] sm:$0xff] }
  0xc4   : > { %15798 = vst [vmem:[#allocation25_spill] sm:$0xff] %v12076_v32  ;;  %v12087_v43 = vsub.f32 %v1043_v26, %v12076_v32  ;;  %v12089_v44 = vand.u32 4294901760, %v1040_v38 }
  0xc5   : > { %v520_v39 = vpop.f32.mrf.mxu3  ;;  %v577_v60 = vadd.f32 %v576_v52, %v547_v57  ;;  %v1037_v52 = vld [vmem:[%s15383_s3 + $0x20] sm:$0xff] }
  0xc6   : > { %15799 = vst [vmem:[#allocation26_spill] sm:$0xff] %v12087_v43  ;;  %v12108_v56 = vand.u32 4294901760, %v12087_v43  ;;  %v12111_v57 = vsub.f32 %v1040_v38, %v12089_v44 }
  0xc7   : > { %15800 = vst [vmem:[#allocation27_spill] sm:$0xff] %v12089_v44 }
  0xc8   : > { %v485_v47 = vpop.f32.mrf.mxu2  ;;  %15802 = vst [vmem:[#allocation29_spill] sm:$0xff] %v12108_v56  ;;  %v1344_v1 = vsub.f32 %v12087_v43, %v12108_v56 }
  0xc9   : > { %v521_v61 = vadd.f32 %v520_v39, %v485_v47  ;;  %v12084_v39 = vsub.f32 %v1065_v8, %v12060_v17  ;;  %v1068_v47 = vsel %vm655_vm2, %v12067_v22, 0  ;;  %15803 = vst [vmem:[#allocation30_spill] sm:$0xff] %v12111_v57 }
  0xca   : > { %v12115_v45 = vand.u32 4294901760, %v1068_v47 }
  0xcb   : > { %v552_v4 = vadd.f32 %v551_v62, %v521_v61  ;;  %v1338_v61 = vsub.f32 %v12074_v31, %v12097_v51  ;;  %v12127_v62 = vand.u32 4294901760, %v12111_v57 }
  0xcd   : > { %v636_v59 = vpop.f32.mrf.mxu3  ;;  %v583_v10 = vadd.f32 %v582_v6, %v552_v4  ;;  %15805 = vst [vmem:[#allocation32_spill] sm:$0xff] %v12127_v62  ;;  %v12140_v4 = vsub.f32 %v1068_v47, %v12115_v45  ;;  %v1350_v8 = vsub.f32 %v12111_v57, %v12127_v62 }
  0xcf   : > { %v12166_v16 = vand.u32 4294901760, %v1350_v8 }
  0xd0   : > { %v609_v63 = vpop.f32.mrf.mxu2 }
  0xd1   : > { %v610_v0 = vadd.f32 %v609_v63, %v577_v60  ;;  %v12120_v60 = vand.u32 4294901760, %v12084_v39  ;;  %15810 = vst [vmem:[#allocation37_spill] sm:$0xff] %v12166_v16 }
  0xd3   : > { %v637_v5 = vadd.f32 %v636_v59, %v610_v0  ;;  %v12113_v59 = vand.u32 4294901760, %v1037_v52  ;;  %v1093_v6 = vsub.f32 %v12084_v39, %v12120_v60 }
  0xd5   : > { %v645_v7 = vmax.f32 %v637_v5, 0.0  ;;  %v640_v14 = vpop.f32.mrf.mxu3  ;;  %15804 = vst [vmem:[#allocation31_spill] sm:$0xff] %v12113_v59  ;;  %v12130_v63 = vsub.f32 %v1037_v52, %v12113_v59 }
  0xd7   : > { %v657_v11 = vsel %vm655_vm2, %v645_v7, 0  ;;  %15806 = vst [vmem:[#allocation33_spill] sm:$0xff] %v12130_v63  ;;  %v12137_v3 = vand.u32 4294901760, %v12130_v63  ;;  %v12146_v7 = vand.u32 4294901760, %v1338_v61 }
  0xd8   : > { %v12055_v12 = vand.u32 4294901760, %v657_v11  ;;  %v613_v13 = vpop.f32.mrf.mxu2 }
  0xd9   : > { %v614_v15 = vadd.f32 %v613_v13, %v583_v10  ;;  %15807 = vst [vmem:[#allocation34_spill] sm:$0xff] %v12137_v3  ;;  %v12151_v10 = vand.u32 4294901760, %v1344_v1  ;;  %v1047_v13 = vld [vmem:[%s15383_s3 + $0xe8] sm:$0xff] }
  0xda   : > { %v683_v18 = vsub.f32 %v657_v11, %v12055_v12  ;;  %736 = vmatmul.f32.vlgmr.msrb.gmra.mxu1 %v12055_v12  ;;  %15808 = vst [vmem:[#allocation35_spill] sm:$0xff] %v12146_v7  ;;  %v1356_v11 = vsub.f32 %v12130_v63, %v12137_v3 }
  0xdb   : > { %v641_v25 = vadd.f32 %v640_v14, %v614_v15  ;;  %1200 = vmatpush.msrb.mxu1 %v11978_v20  ;;  %15809 = vst [vmem:[#allocation36_spill] sm:$0xff] %v12151_v10  ;;  %v12159_v14 = vand.u32 4294901760, %v1093_v6  ;;  %v12162_v15 = vand.u32 4294901760, %v12140_v4 }
  0xdc   : > { %770 = vmatmul.f32.vlgmr.msra.gmra.mxu2 %v683_v18  ;;  %v684_v27 = vand.u32 4294901760, %v683_v18 }
  0xdd   : > { %v646_v33 = vmax.f32 %v641_v25, 0.0  ;;  %1202 = vmatpush.msrb.mxu1 %v11985_v23  ;;  %1235 = vmatpush.msra.mxu2 %v11995_v28  ;;  %v12176_v25 = vand.u32 4294901760, %v1356_v11  ;;  %v1101_v26 = vsub.f32 %v12140_v4, %v12162_v15 }
  0xde   : > { %802 = vmatmul.f32.vlgmr.msra.gmra.mxu3 %v684_v27  ;;  %v685_v40 = vsub.f32 %v683_v18, %v684_v27  ;;  %v12169_v18 = vand.u32 4294901760, %v1047_v13  ;;  %v1041_v27 = vld [vmem:[%s15383_s3 + $0x68] sm:$0xff] }
  0xdf   : > { %v660_v49 = vsel %vm655_vm2, %v646_v33, 0  ;;  %1204 = vmatpush.msrb.mxu1 %v11997_v29  ;;  %1239 = vmatpush.msra.mxu2 %v12009_v34  ;;  %15812 = vst [vmem:[#allocation39_spill] sm:$0xff] %v12176_v25  ;;  %v12186_v33 = vand.u32 4294901760, %v1044_v19  ;;  %v12197_v47 = vand.u32 4294901760, %v1041_v27 }
  0xe0   : > { %v12102_v54 = vand.u32 4294901760, %v660_v49  ;;  %v686_v55 = vand.u32 4294901760, %v685_v40  ;;  %1270 = vmatpush.msra.mxu3 %v11978_v20  ;;  %15811 = vst [vmem:[#allocation38_spill] sm:$0xff] %v12169_v18  ;;  %v12190_v38 = vsub.f32 %v1047_v13, %v12169_v18  ;;  %v1038_v40 = vld [vmem:[%s15383_s3 + $0x28] sm:$0xff] }
  0xe1   : > { %1206 = vmatpush.msrb.mxu1 %v12011_v35  ;;  %1243 = vmatpush.msra.mxu2 %v12022_v41  ;;  %15813 = vst [vmem:[#allocation40_spill] sm:$0xff] %v12186_v33  ;;  %v12206_v52 = vsub.f32 %v1044_v19, %v12186_v33 }
  0xe2   : > { %687 = vmatmul.f32.vlgmr.msrb.gmra.mxu0 %v686_v55  ;;  %740 = vmatmul.f32.gmra.mxu1 %v12102_v54  ;;  %v691_v46 = vsub.f32 %v660_v49, %v12102_v54  ;;  %15814 = vst [vmem:[#allocation41_spill] sm:$0xff] %v12190_v38  ;;  %v12201_v49 = vand.u32 4294901760, %v1101_v26  ;;  %v12208_v55 = vand.u32 4294901760, %v1038_v40 }
  0xe3   : > { %1272 = vmatpush.msra.mxu3 %v11985_v23  ;;  %1166 = vmatpush.msrb.mxu0 %v11988_v24  ;;  %15815 = vst [vmem:[#allocation42_spill] sm:$0xff] %v12197_v47  ;;  %v12223_v61 = vand.u32 4294901760, %v12206_v52 }
  0xe4   : > { %775 = vmatmul.f32.gmra.mxu2 %v691_v46  ;;  %v692_v0 = vand.u32 4294901760, %v691_v46  ;;  %15816 = vst [vmem:[#allocation43_spill] sm:$0xff] %v12206_v52 }
  0xe5   : > { %1247 = vmatpush.msra.mxu2 %v12034_v50  ;;  %1274 = vmatpush.msra.mxu3 %v11997_v29  ;;  %15817 = vst [vmem:[#allocation44_spill] sm:$0xff] %v12208_v55  ;;  %v1560_v6 = vsub.f32 %v12206_v52, %v12223_v61 }
  0xe6   : > { %808 = vmatmul.f32.gmra.mxu3 %v692_v0  ;;  %v693_v5 = vsub.f32 %v691_v46, %v692_v0  ;;  %1169 = vmatpush.msrb.mxu0 %v12000_v30  ;;  %v12212_v46 = vand.u32 4294901760, %v12190_v38  ;;  %15820 = vst [vmem:[#allocation47_spill] sm:$0xff] %v12223_v61  ;;  %v12226_v0 = vsub.f32 %v1038_v40, %v12208_v55  ;;  %v944_v40 = vpop.permute.xlu0 %943 }
  0xe7   : > { %1276 = vmatpush.msra.mxu3 %v12011_v35  ;;  %v12253_v11 = vand.u32 4294901760, %v1560_v6  ;;  %v12278_v6 = vand.u32 4294901760, %v12067_v22 }
  0xe8   : > { %v694_v9 = vand.u32 4294901760, %v693_v5  ;;  %1172 = vmatpush.msrb.mxu0 %v12014_v36  ;;  %15818 = vst [vmem:[#allocation45_spill] sm:$0xff] %v12212_v46  ;;  %v1554_v1 = vsub.f32 %v12190_v38, %v12212_v46  ;;  %v12241_v8 = vand.u32 4294901760, %v12226_v0 }
  0xe9   : > { %15821 = vst [vmem:[#allocation48_spill] sm:$0xff] %v12226_v0 }
  0xea   : > { %695 = vmatmul.f32.gmra.mxu0 %v694_v9  ;;  %870 = vmatmul.f32.vlgmr.msra.gmra.mxu1 %v12055_v12  ;;  %15823 = vst [vmem:[#allocation50_spill] sm:$0xff] %v12241_v8  ;;  %v12244_v9 = vand.u32 4294901760, %v1554_v1  ;;  %v1572_v13 = vsub.f32 %v12226_v0, %v12241_v8 }
  0xeb   : > { %1175 = vmatpush.msrb.mxu0 %v12025_v42  ;;  %1340 = vmatpush.msra.mxu1 %v12146_v7  ;;  %15825 = vst [vmem:[#allocation52_spill] sm:$0xff] %v12253_v11 }
  0xec   : > { %1095 = vmatmul.f32.vlgmr.msrb.gmra.mxu2 %v12159_v14  ;;  %15824 = vst [vmem:[#allocation51_spill] sm:$0xff] %v12244_v9  ;;  %v12266_v26 = vand.u32 4294901760, %v1572_v13 }
  0xed   : > { %1346 = vmatpush.msra.mxu1 %v12151_v10  ;;  %1382 = vmatpush.msrb.mxu2 %v12074_v31 }
  0xee   : > { %1144 = vmatmul.f32.vlgmr.msrb.gmra.mxu3 %v12060_v17  ;;  %15827 = vst [vmem:[#allocation54_spill] sm:$0xff] %v12266_v26 }
  0xef   : > { %1352 = vmatpush.msra.mxu1 %v12166_v16  ;;  %1385 = vmatpush.msrb.mxu2 %v12087_v43 }
  0xf0   : > { %1416 = vmatpush.msrb.mxu3 %v12065_v21 }
  0xf1   : > { %1358 = vmatpush.msra.mxu1 %v12176_v25  ;;  %1388 = vmatpush.msrb.mxu2 %v12111_v57 }
  0xf2   : > { %841 = vmatmul.f32.vlgmr.msra.gmra.mxu0 %v12055_v12  ;;  %874 = vmatmul.f32.gmra.mxu1 %v12102_v54  ;;  %v12217_v12 = vsub.f32 %v1041_v27, %v12197_v47  ;;  %v940_v27 = vlaneseq }
  0xf3   : > { %1418 = vmatpush.msrb.mxu3 %v12076_v32  ;;  %1299 = vmatpush.msra.mxu0 %v12065_v21 }
  0xf4   : > { %1103 = vmatmul.f32.gmra.mxu2 %v12201_v49  ;;  %15819 = vst [vmem:[#allocation46_spill] sm:$0xff] %v12217_v12  ;;  %v12232_v5 = vand.u32 4294901760, %v12217_v12  ;;  %v12274_v1 = vand.u32 127, %v940_v27  ;;  %v12295_v27 = vsub.f32 %v12067_v22, %v12278_v6 }
  0xf5   : > { %1391 = vmatpush.msrb.mxu2 %v12130_v63  ;;  %1420 = vmatpush.msrb.mxu3 %v12089_v44 }
  0xf6   : > { %1148 = vmatmul.f32.gmra.mxu3 %v12115_v45  ;;  %1301 = vmatpush.msra.mxu0 %v12076_v32  ;;  %15822 = vst [vmem:[#allocation49_spill] sm:$0xff] %v12232_v5  ;;  %vm966_vm3 = vcmp.eq.s32.totalorder %v944_v40, %v12274_v1  ;;  %v947_v40 = vpop.permute.xlu0 %946 }
  0xf7   : > { %1422 = vmatpush.msrb.mxu3 %v12113_v59  ;;  %vm967_vm4 = vcmp.eq.s32.totalorder %v947_v40, %v12274_v1 }
  0xf8   : > { %1303 = vmatpush.msra.mxu0 %v12089_v44 }
  0xfa   : > { %845 = vmatmul.f32.gmra.mxu0 %v12102_v54  ;;  %1210 = vmatmul.f32.vlgmr.msrb.gmra.mxu1 %v12120_v60  ;;  %v1566_v54 = vsub.f32 %v12217_v12, %v12232_v5 }
  0xfb   : > { %1486 = vmatpush.msrb.mxu1 %v12065_v21  ;;  %1305 = vmatpush.msra.mxu0 %v12113_v59 }
  0xfc   : > { %1249 = vmatmul.f32.vlgmr.msra.gmra.mxu2 %v12060_v17  ;;  %v12260_v19 = vand.u32 4294901760, %v1566_v54  ;;  %v15388_v54 = vmov 0.0  }
  0xfd   : > { %1488 = vmatpush.msrb.mxu1 %v12076_v32  ;;  %1515 = vmatpush.msra.mxu2 %v12169_v18  ;;  %v12284_v13 = vsel %vm966_vm3, 1.0, %v15388_v54 }
  0xfe   : > { %1278 = vmatmul.f32.vlgmr.msra.gmra.mxu3 %v12060_v17  ;;  %15826 = vst [vmem:[#allocation53_spill] sm:$0xff] %v12260_v19  ;;  %990 = vxpose.xlu1.b32.start [1/4] (short) (narrow) %v12284_v13, 16 }
  0xff   : > { %1490 = vmatpush.msrb.mxu1 %v12089_v44  ;;  %1517 = vmatpush.msra.mxu2 %v12186_v33  ;;  %15828 = vst [vmem:[#allocation55_spill] sm:$0xff] %v12284_v13 }
 0x100   : > { %1556 = vmatpush.msra.mxu3 %v12244_v9 }
 0x101   : > { %1492 = vmatpush.msrb.mxu1 %v12113_v59  ;;  %1519 = vmatpush.msra.mxu2 %v12197_v47 }
 0x102   : > { %1178 = vmatmul.f32.vlgmr.msrb.gmra.mxu0 %v12084_v39  ;;  %1216 = vmatmul.f32.gmra.mxu1 %v12162_v15 }
 0x103   : > { %1562 = vmatpush.msra.mxu3 %v12253_v11  ;;  %1451 = vmatpush.msrb.mxu0 %v12097_v51  ;;  %v962_v11 = vpop.permute.xlu0 %961 }
 0x104   : > { %1253 = vmatmul.f32.gmra.mxu2 %v12115_v45  ;;  %vm972_vm6 = vcmp.eq.s32.totalorder %v962_v11, %v12274_v1 }
 0x105   : > { %1521 = vmatpush.msra.mxu2 %v12208_v55  ;;  %1568 = vmatpush.msra.mxu3 %v12260_v19  ;;  %v12287_v19 = vand.u32 4294901760, %v12050_v2 }
 0x106   : > { %1282 = vmatmul.f32.gmra.mxu3 %v12115_v45  ;;  %1455 = vmatpush.msrb.mxu0 %v12108_v56 }
 0x107   : > { %1574 = vmatpush.msra.mxu3 %v12266_v26  ;;  %v12304_v54 = vsub.f32 %v12050_v2, %v12287_v19  ;;  %v15829_v26 = vmov 0.0  }
 0x108   : > { %1459 = vmatpush.msrb.mxu0 %v12127_v62 }
 0x10a   : > { %1183 = vmatmul.f32.gmra.mxu0 %v12140_v4  ;;  %1360 = vmatmul.f32.vlgmr.msra.gmra.mxu1 %v12060_v17 }
 0x10b   : > { %1632 = vmatpush.msra.mxu1 %v12169_v18  ;;  %1463 = vmatpush.msrb.mxu0 %v12137_v3 }
 0x10c   : > { %1394 = vmatmul.f32.vlgmr.msrb.gmra.mxu2 %v12084_v39 }
 0x10d   : > { %1634 = vmatpush.msra.mxu1 %v12186_v33  ;;  %1667 = vmatpush.msrb.mxu2 %v12212_v46  ;;  %v1842_v46 = vand.u32 4294901760, %v12295_v27 }
 0x10e   : > { %1426 = vmatmul.f32.vlgmr.msrb.gmra.mxu3 %v12120_v60 }
 0x10f   : > { %1636 = vmatpush.msra.mxu1 %v12197_v47  ;;  %1671 = vmatpush.msrb.mxu2 %v12223_v61  ;;  %v1848_v61 = vand.u32 4294901760, %v12304_v54  ;;  %v1843_v40 = vsub.f32 %v12295_v27, %v1842_v46 }
 0x110   : > { %1702 = vmatpush.msrb.mxu3 %v12169_v18  ;;  %v12317_v18 = vsel %vm967_vm4, 1.0, %v15829_v26 }
 0x111   : > { %1638 = vmatpush.msra.mxu1 %v12208_v55  ;;  %1675 = vmatpush.msrb.mxu2 %v12232_v5  ;;  %15830 = vst [vmem:[#allocation56_spill] sm:$0xff] %v12317_v18  ;;  %v950_v5 = vpop.permute.xlu1 %949 }
 0x112   : > { %1311 = vmatmul.f32.vlgmr.msra.gmra.mxu0 %v12159_v14  ;;  %1364 = vmatmul.f32.gmra.mxu1 %v12115_v45  ;;  %vm968_vm5 = vcmp.eq.s32.totalorder %v950_v5, %v12274_v1 }
 0x113   : > { %1704 = vmatpush.msrb.mxu3 %v12186_v33  ;;  %1598 = vmatpush.msra.mxu0 %v12190_v38  ;;  %v1849_v33 = vsub.f32 %v12304_v54, %v1848_v61  ;;  %v12331_v38 = vsel %vm972_vm6, 1.0, %v15829_v26 }
 0x114   : > { %1399 = vmatmul.f32.gmra.mxu2 %v12140_v4  ;;  %991 = vxpose.xlu1.b32.cont [2/4] (short) (narrow) %v12317_v18, 16  ;;  %15831 = vst [vmem:[#allocation57_spill] sm:$0xff] %v12331_v38 }
 0x115   : > { %1679 = vmatpush.msrb.mxu2 %v12241_v8  ;;  %1706 = vmatpush.msrb.mxu3 %v12197_v47  ;;  %v1844_v8 = vand.u32 4294901760, %v1843_v40  ;;  %v12335_v47 = vsel %vm968_vm5, 1.0, %v15829_v26  ;;  %v1850_v5 = vand.u32 4294901760, %v1849_v33 }
 0x116   : > { %1432 = vmatmul.f32.gmra.mxu3 %v12162_v15  ;;  %1601 = vmatpush.msra.mxu0 %v12206_v52  ;;  %15832 = vst [vmem:[#allocation58_spill] sm:$0xff] %v12335_v47 }
 0x117   : > { %1708 = vmatpush.msrb.mxu3 %v12208_v55 }
 0x118   : > { %1604 = vmatpush.msra.mxu0 %v12217_v12 }
 0x119   : > { %v953_v11 = vpop.permute.xlu1 %952 }
 0x11a   : > { %1319 = vmatmul.f32.gmra.mxu0 %v12201_v49  ;;  %1494 = vmatmul.f32.vlgmr.msrb.gmra.mxu1 %v12060_v17  ;;  %vm969_vm7 = vcmp.eq.s32.totalorder %v953_v11, %v12274_v1 }
 0x11b   : > { %1845 = vmatpush.msrb.mxu1 %v1844_v8  ;;  %1607 = vmatpush.msra.mxu0 %v12226_v0 }
 0x11c   : > { %1527 = vmatmul.f32.vlgmr.msra.gmra.mxu2 %v12159_v14  ;;  %992 = vxpose.xlu1.b32.cont [3/4] (short) (narrow) %v12335_v47, 16  ;;  %v12352_v14 = vsel %vm969_vm7, 1.0, %v15829_v26 }
 0x11d   : > { %1851 = vmatpush.msrb.mxu1 %v1850_v5  ;;  %1901 = vmatpush.msra.mxu2 %v12295_v27  ;;  %15833 = vst [vmem:[#allocation59_spill] sm:$0xff] %v12352_v14  ;;  %v1720_v27 = vsel %vm1718_vm9, %v12284_v13, 0  ;;  %v1729_v11 = vsel %vm1718_vm9, %v12352_v14, 0 }
 0x11e   : > { %1576 = vmatmul.f32.vlgmr.msra.gmra.mxu3 %v12060_v17 }
 0x11f   : > { %1904 = vmatpush.msra.mxu2 %v12304_v54  ;;  %1961 = vmatpush.msra.mxu3 %v12278_v6 }
 0x121   : > { %1963 = vmatpush.msra.mxu3 %v12287_v19  ;;  %v965_v33 = vpop.permute.xlu1 %964 }
 0x122   : > { %1465 = vmatmul.f32.vlgmr.msrb.gmra.mxu0 %v12060_v17  ;;  %1498 = vmatmul.f32.gmra.mxu1 %v12115_v45  ;;  %vm973_vm8 = vcmp.eq.s32.totalorder %v965_v33, %v12274_v1 }
 0x123   : > { %1758 = vmatpush.msrb.mxu0 %v12278_v6  ;;  %v12360_v8 = vsel %vm973_vm8, 1.0, %v15829_v26 }
 0x124   : > { %1535 = vmatmul.f32.gmra.mxu2 %v12201_v49  ;;  %993 = vxpose.xlu1.b32.end [4/4] (short) (narrow) %v12352_v14, 16  ;;  %15834 = vst [vmem:[#allocation60_spill] sm:$0xff] %v12360_v8  ;;  %v956_v49 = vpop.permute.xlu2 %955 }
 0x125   : > { %1760 = vmatpush.msrb.mxu0 %v12287_v19  ;;  %vm970_vm10 = vcmp.eq.s32.totalorder %v956_v49, %v12274_v1  ;;  %v12427_v49 = vsub.f32 %v1729_v11, %v1729_v11 }
 0x126   : > { %1580 = vmatmul.f32.gmra.mxu3 %v12115_v45  ;;  %v12370_v54 = vsel %vm970_vm10, 1.0, %v15829_v26 }
 0x127   : > { %15835 = vst [vmem:[#allocation61_spill] sm:$0xff] %v12370_v54 }
 0x128   : > { %15845 = vst [vmem:[#allocation71_spill] sm:$0xff] %v12427_v49 }
 0x12a   : > { %1469 = vmatmul.f32.gmra.mxu0 %v12115_v45  ;;  %1642 = vmatmul.f32.vlgmr.msra.gmra.mxu1 %v12120_v60  ;;  %v12377_v60 = vsub.f32 %v1720_v27, %v1720_v27 }
 0x12b   : > { %2083 = vmatpush.msra.mxu1 %v12278_v6 }
 0x12c   : > { %1681 = vmatmul.f32.vlgmr.msrb.gmra.mxu2 %v12060_v17  ;;  %15836 = vst [vmem:[#allocation62_spill] sm:$0xff] %v12377_v60  ;;  %v12385_v6 = vand.u32 4294901760, %v12377_v60 }
 0x12d   : > { %2085 = vmatpush.msra.mxu1 %v12287_v19 }
 0x12e   : > { %1710 = vmatmul.f32.vlgmr.msrb.gmra.mxu3 %v12060_v17  ;;  %v959_v17 = vpop.permute.xlu2 %958  ;;  %15838 = vst [vmem:[#allocation64_spill] sm:$0xff] %v12385_v6 }
 0x12f   : > { %vm971_vm11 = vcmp.eq.s32.totalorder %v959_v17, %v12274_v1  ;;  %v12433_v17 = vand.u32 4294901760, %v12427_v49 }
 0x130   : > { %v12382_v19 = vsel %vm971_vm11, 1.0, %v15829_v26 }
 0x131   : > { %15837 = vst [vmem:[#allocation63_spill] sm:$0xff] %v12382_v19 }
 0x132   : > { %1610 = vmatmul.f32.vlgmr.msra.gmra.mxu0 %v12084_v39  ;;  %1648 = vmatmul.f32.gmra.mxu1 %v12162_v15  ;;  %v1723_v39 = vsel %vm1718_vm9, %v12317_v18, 0  ;;  %15847 = vst [vmem:[#allocation73_spill] sm:$0xff] %v12433_v17 }
 0x133   : > { %2030 = vmatpush.msra.mxu0 %v1842_v46  ;;  %v12395_v15 = vsub.f32 %v1723_v39, %v1723_v39  ;;  %v1732_v39 = vsel %vm1718_vm9, %v12370_v54, 0 }
 0x134   : > { %1685 = vmatmul.f32.gmra.mxu2 %v12115_v45 }
 0x135   : > { %2034 = vmatpush.msra.mxu0 %v1848_v61  ;;  %15839 = vst [vmem:[#allocation65_spill] sm:$0xff] %v12395_v15  ;;  %v12401_v61 = vand.u32 4294901760, %v12395_v15 }
 0x136   : > { %1714 = vmatmul.f32.gmra.mxu3 %v12115_v45  ;;  %v1764_v45 = vsub.f32 %v12377_v60, %v12385_v6 }
 0x137   : > { %15841 = vst [vmem:[#allocation67_spill] sm:$0xff] %v12401_v61  ;;  %v1772_v26 = vsub.f32 %v12395_v15, %v12401_v61 }
 0x138   : > { %v12398_v46 = vand.u32 4294901760, %v1764_v45  ;;  %v1788_v45 = vsub.f32 %v12427_v49, %v12433_v17 }
 0x139   : > { %v12414_v40 = vand.u32 4294901760, %v1772_v26 }
 0x13a   : > { %1615 = vmatmul.f32.gmra.mxu0 %v12140_v4  ;;  %11446 = vmatmul.msk.f32.vlgmr.msrb.gmra.mxu1 %vm1718_vm9, %v12284_v13  ;;  %15840 = vst [vmem:[#allocation66_spill] sm:$0xff] %v12398_v46  ;;  %v1726_v4 = vsel %vm1718_vm9, %v12335_v47, 0  ;;  %v12446_v11 = vand.u32 4294901760, %v1788_v45  ;;  %v11645_v45 = vld [vmem:[%s15384_s4 + $0x6] ss:$0 sm:$0xff] }
 0x13b   : > { %v12411_v1 = vsub.f32 %v1726_v4, %v1726_v4  ;;  %15843 = vst [vmem:[#allocation69_spill] sm:$0xff] %v12414_v40  ;;  %v12443_v4 = vsub.f32 %v1732_v39, %v1732_v39 }
 0x13c   : > { %1907 = vmatmul.f32.vlgmr.msra.gmra.mxu2 %v12377_v60  ;;  %15849 = vst [vmem:[#allocation75_spill] sm:$0xff] %v12446_v11 }
 0x13d   : > { %15842 = vst [vmem:[#allocation68_spill] sm:$0xff] %v12411_v1  ;;  %v12417_v5 = vand.u32 4294901760, %v12411_v1 }
 0x13e   : > { %1967 = vmatmul.f32.vlgmr.msra.gmra.mxu3 %v12385_v6  ;;  %15848 = vst [vmem:[#allocation74_spill] sm:$0xff] %v12443_v4 }
 0x13f   : > { %15844 = vst [vmem:[#allocation70_spill] sm:$0xff] %v12417_v5  ;;  %v1780_v33 = vsub.f32 %v12411_v1, %v12417_v5 }
 0x141   : > { %v12430_v27 = vand.u32 4294901760, %v1780_v33  ;;  %v12449_v33 = vand.u32 4294901760, %v12443_v4 }
 0x142   : > { %1766 = vmatmul.f32.vlgmr.msrb.gmra.mxu0 %v12398_v46  ;;  %11447 = vmatmul.msk.f32.gmra.mxu1 %vm1718_vm9, %v12317_v18 }
 0x143   : > { %15846 = vst [vmem:[#allocation72_spill] sm:$0xff] %v12430_v27  ;;  %v1796_v39 = vsub.f32 %v12443_v4, %v12449_v33 }
 0x144   : > { %1912 = vmatmul.f32.gmra.mxu2 %v12395_v15  ;;  %15850 = vst [vmem:[#allocation76_spill] sm:$0xff] %v12449_v33 }
 0x145   : > { %v12465_v15 = vand.u32 4294901760, %v1796_v39 }
 0x146   : > { %1973 = vmatmul.f32.gmra.mxu3 %v12401_v61  ;;  %v1738_v61 = vsel %vm1718_vm9, %v12331_v38, 0 }
 0x147   : > { %15852 = vst [vmem:[#allocation78_spill] sm:$0xff] %v12465_v15 }
 0x14a   : > { %1774 = vmatmul.f32.gmra.mxu0 %v12414_v40  ;;  %11448 = vmatmul.msk.f32.gmra.mxu1 %vm1718_vm9, %v12335_v47 }
 0x14c   : > { %1917 = vmatmul.f32.gmra.mxu2 %v12411_v1  ;;  %v1735_v1 = vsel %vm1718_vm9, %v12382_v19, 0 }
 0x14e   : > { %1979 = vmatmul.f32.gmra.mxu3 %v12417_v5 }
 0x152   : > { %1782 = vmatmul.f32.gmra.mxu0 %v12430_v27  ;;  %11449 = vmatmul.msk.f32.gmra.mxu1 %vm1718_vm9, %v12352_v14 }
 0x154   : > { %1922 = vmatmul.f32.gmra.mxu2 %v12427_v49  ;;  %v12459_v49 = vsub.f32 %v1735_v1, %v1735_v1 }
 0x156   : > { %1985 = vmatmul.f32.gmra.mxu3 %v12433_v17  ;;  %15851 = vst [vmem:[#allocation77_spill] sm:$0xff] %v12459_v49 }
 0x157   : > { %v737_v26 = vpop.f32.mrf.mxu1 }
 0x15a   : > { %1790 = vmatmul.f32.gmra.mxu0 %v12446_v11  ;;  %11450 = vmatmul.msk.f32.gmra.mxu1 %vm1718_vm9, %v12370_v54  ;;  %v12468_v11 = vand.u32 4294901760, %v12459_v49 }
 0x15c   : > { %1927 = vmatmul.f32.gmra.mxu2 %v12443_v4  ;;  %15853 = vst [vmem:[#allocation79_spill] sm:$0xff] %v12468_v11  ;;  %v1804_v1 = vsub.f32 %v12459_v49, %v12468_v11  ;;  %v12478_v4 = vsub.f32 %v1738_v61, %v1738_v61 }
 0x15e   : > { %1991 = vmatmul.f32.gmra.mxu3 %v12449_v33  ;;  %15854 = vst [vmem:[#allocation80_spill] sm:$0xff] %v12478_v4  ;;  %v12481_v40 = vand.u32 4294901760, %v1804_v1 }
 0x15f   : > { %v688_v17 = vpop.f32.mrf.mxu0  ;;  %v741_v5 = vpop.f32.mrf.mxu1 }
 0x160   : > { %v689_v60 = vadd.f32 %v11645_v45, %v688_v17  ;;  %v771_v33 = vpop.f32.mrf.mxu2  ;;  %15855 = vst [vmem:[#allocation81_spill] sm:$0xff] %v12481_v40  ;;  %v12484_v17 = vand.u32 4294901760, %v12478_v4 }
 0x162   : > { %1798 = vmatmul.f32.gmra.mxu0 %v12465_v15  ;;  %11451 = vmatmul.msk.f32.gmra.mxu1 %vm1718_vm9, %v12382_v19  ;;  %v738_v39 = vadd.f32 %v737_v26, %v689_v60  ;;  %15856 = vst [vmem:[#allocation82_spill] sm:$0xff] %v12484_v17  ;;  %v1741_v15 = vsel %vm1718_vm9, %v12360_v8, 0  ;;  %v803_v60 = vpop.f32.mrf.mxu3  ;;  %v1812_v61 = vsub.f32 %v12478_v4, %v12484_v17 }
 0x163   : > { %v12494_v26 = vsub.f32 %v1741_v15, %v1741_v15 }
 0x164   : > { %1932 = vmatmul.f32.gmra.mxu2 %v12459_v49  ;;  %v772_v46 = vadd.f32 %v771_v33, %v738_v39 }
 0x165   : > { %15857 = vst [vmem:[#allocation83_spill] sm:$0xff] %v12494_v26  ;;  %v12500_v39 = vand.u32 4294901760, %v12494_v26 }
 0x166   : > { %1997 = vmatmul.f32.gmra.mxu3 %v12468_v11  ;;  %v804_v1 = vadd.f32 %v803_v60, %v772_v46 }
 0x167   : > { %v696_v27 = vpop.f32.mrf.mxu0  ;;  %v871_v6 = vpop.f32.mrf.mxu1  ;;  %15859 = vst [vmem:[#allocation85_spill] sm:$0xff] %v12500_v39 }
 0x168   : > { %v697_v55 = vadd.f32 %v11645_v45, %v696_v27  ;;  %v12497_v45 = vand.u32 4294901760, %v1812_v61 }
 0x16a   : > { %1806 = vmatmul.f32.gmra.mxu0 %v12481_v40  ;;  %11452 = vmatmul.msk.f32.gmra.mxu1 %vm1718_vm9, %v12331_v38  ;;  %v742_v49 = vadd.f32 %v741_v5, %v697_v55  ;;  %15858 = vst [vmem:[#allocation84_spill] sm:$0xff] %v12497_v45  ;;  %v776_v40 = vpop.f32.mrf.mxu2  ;;  %v1820_v55 = vsub.f32 %v12494_v26, %v12500_v39  ;;  %v809_v46 = vpop.f32.mrf.mxu3 }
 0x16c   : > { %1937 = vmatmul.f32.gmra.mxu2 %v12478_v4  ;;  %v777_v0 = vadd.f32 %v776_v40, %v742_v49  ;;  %v12511_v40 = vand.u32 4294901760, %v1820_v55 }
 0x16e   : > { %2003 = vmatmul.f32.gmra.mxu3 %v12484_v17  ;;  %v810_v5 = vadd.f32 %v809_v46, %v777_v0  ;;  %15861 = vst [vmem:[#allocation87_spill] sm:$0xff] %v12511_v40 }
 0x16f   : > { %v842_v11 = vpop.f32.mrf.mxu0  ;;  %v875_v33 = vpop.f32.mrf.mxu1 }
 0x170   : > { %v843_v27 = vadd.f32 %v842_v11, %v804_v1 }
 0x172   : > { %v872_v12 = vadd.f32 %v871_v6, %v843_v27  ;;  %1814 = vmatmul.f32.gmra.mxu0 %v12497_v45  ;;  %11453 = vmatmul.msk.f32.gmra.mxu1 %vm1718_vm9, %v12360_v8  ;;  %v12524_v46 = vpop.f32.mrf.mxu2 }
 0x173   : > { %15864 = vst [vmem:[#allocation90_spill] sm:$0xff] %v12524_v46 }
 0x174   : > { %v11436_v15 = vmul.f32 -1.442695, %v872_v12  ;;  %1942 = vmatmul.f32.gmra.mxu2 %v12494_v26 }
 0x176   : > { %11647 = vpow2.f32 %v11436_v15  ;;  %2009 = vmatmul.f32.gmra.mxu3 %v12500_v39 }
 0x177   : > { %v846_v11 = vpop.f32.mrf.mxu0  ;;  %v12509_v60 = vpop.f32.mrf.mxu1 }
 0x178   : > { %15860 = vst [vmem:[#allocation86_spill] sm:$0xff] %v12509_v60  ;;  %v847_v6 = vadd.f32 %v846_v11, %v810_v5 }
 0x17a   : > { %v876_v49 = vadd.f32 %v875_v33, %v847_v6  ;;  %1822 = vmatmul.f32.gmra.mxu0 %v12511_v40  ;;  %11462 = vmatmul.msk.f32.vlgmr.msra.gmra.mxu1 %vm1718_vm9, %v12284_v13  ;;  %v12540_v52 = vpop.f32.mrf.mxu2 }
 0x17b   : > { %15870 = vst [vmem:[#allocation96_spill] sm:$0xff] %v12540_v52 }
 0x17c   : > { %v11648_v12 = vpop.eup %11647  ;;  %v11437_v61 = vmul.f32 -1.442695, %v876_v49 }
 0x17d   : > { %v884_v1 = vadd.f32 1.0, %v11648_v12 }
 0x17e   : > { %11649 = vpow2.f32 %v11437_v61  ;;  %v12530_v61 = vpop.f32.mrf.mxu3 }
 0x17f   : > { %11651 = vrcp.f32 %v884_v1  ;;  %v12516_v0 = vpop.f32.mrf.mxu0  ;;  %v12518_v27 = vpop.f32.mrf.mxu1  ;;  %v897_v12 = vand.u32 2147483648, %v884_v1  ;;  %15867 = vst [vmem:[#allocation93_spill] sm:$0xff] %v12530_v61  ;;  %vm891_vm13 = vweird.f32 %v884_v1 }
 0x180   : > { %15862 = vst [vmem:[#allocation88_spill] sm:$0xff] %v12516_v0 }
 0x181   : > { %15863 = vst [vmem:[#allocation89_spill] sm:$0xff] %v12518_v27  ;;  %v898_v17 = vor.u32 1.1754944e-38, %v897_v12  ;;  %v11823_v27 = vmov 8.0  }
 0x182   : > { %11454 = vmatmul.msk.f32.vlgmr.msra.gmra.mxu0 %vm1718_vm9, %v12284_v13  ;;  %11463 = vmatmul.msk.f32.gmra.mxu1 %vm1718_vm9, %v12317_v18 }
 0x184   : > { %v11650_v33 = vpop.eup %11649 }
 0x185   : > { %v11652_v15 = vpop.eup %11651  ;;  %v885_v55 = vadd.f32 1.0, %v11650_v33  ;;  %v895_v33 = vand.u32 2147483647, %v884_v1 }
 0x186   : > { %v887_v5 = vmul.f32 %v11652_v15, %v884_v1  ;;  %vm892_vm12 = vweird.f32 %v11652_v15 }
 0x187   : > { %11653 = vrcp.f32 %v885_v55  ;;  %v12526_v11 = vpop.f32.mrf.mxu0  ;;  %v12528_v6 = vpop.f32.mrf.mxu1  ;;  %vm893_vm14 = vmor %vm891_vm13, %vm892_vm12  ;;  %vm896_vm0 = vcmp.eq.f32.partialorder %v895_v33, 8.507059e+37  ;;  %v910_v1 = vand.u32 2147483647, %v885_v55  ;;  %vm906_vm3 = vweird.f32 %v885_v55 }
 0x188   : > { %15865 = vst [vmem:[#allocation91_spill] sm:$0xff] %v12526_v11  ;;  %v888_v49 = vsub.f32 1.0, %v887_v5  ;;  %11655 = vrcp.f32 %v11823_v27 }
 0x189   : > { %15866 = vst [vmem:[#allocation92_spill] sm:$0xff] %v12528_v6  ;;  %vm911_vm5 = vcmp.eq.f32.partialorder %v910_v1, 8.507059e+37 }
 0x18a   : > { %11455 = vmatmul.msk.f32.gmra.mxu0 %vm1718_vm9, %v12317_v18  ;;  %11464 = vmatmul.msk.f32.gmra.mxu1 %vm1718_vm9, %v12335_v47  ;;  %v889_v26 = vmul.f32 %v11652_v15, %v888_v49 }
 0x18c   : > { %v890_v39 = vadd.f32 %v11652_v15, %v889_v26  ;;  %v912_v26 = vand.u32 2147483648, %v885_v55 }
 0x18d   : > { %v11654_v4 = vpop.eup %11653 }
 0x18e   : > { %v894_v40 = vsel %vm893_vm14, %v11652_v15, %v890_v39  ;;  %v902_v5 = vmul.f32 %v11654_v4, %v885_v55  ;;  %vm907_vm1 = vweird.f32 %v11654_v4  ;;  %v12547_v15 = vpop.f32.mrf.mxu3 }
 0x18f   : > { %v12536_v45 = vpop.f32.mrf.mxu0  ;;  %v12538_v13 = vpop.f32.mrf.mxu1  ;;  %v899_v18 = vsel %vm896_vm0, %v898_v17, %v894_v40  ;;  %15871 = vst [vmem:[#allocation97_spill] sm:$0xff] %v12547_v15  ;;  %vm908_vm4 = vmor %vm906_vm3, %vm907_vm1  ;;  %v913_v17 = vor.u32 1.1754944e-38, %v912_v26 }
 0x190   : > { %15868 = vst [vmem:[#allocation94_spill] sm:$0xff] %v12536_v45  ;;  %v917_v49 = vsel %vm916_vm15, %v899_v18, 0.0  ;;  %v903_v63 = vsub.f32 1.0, %v902_v5 }
 0x191   : > { %15869 = vst [vmem:[#allocation95_spill] sm:$0xff] %v12538_v13  ;;  %918 = vadd.xlane.f32.xlu2 %v917_v49 }
 0x192   : > { %11456 = vmatmul.msk.f32.gmra.mxu0 %vm1718_vm9, %v12335_v47  ;;  %11465 = vmatmul.msk.f32.gmra.mxu1 %vm1718_vm9, %v12352_v14  ;;  %v904_v39 = vmul.f32 %v11654_v4, %v903_v63  ;;  %v12554_v47 = vpop.f32.mrf.mxu2 }
 0x193   : > { %15874 = vst [vmem:[#allocation100_spill] sm:$0xff] %v12554_v47  ;;  %v11656_v47 = vpop.eup %11655 }
 0x194   : > { %v905_v12 = vadd.f32 %v11654_v4, %v904_v39  ;;  %v924_v52 = vmul.f32 8.0, %v11656_v47  ;;  %vm928_vm6 = vweird.f32 %v11656_v47 }
 0x196   : > { %v909_v40 = vsel %vm908_vm4, %v11654_v4, %v905_v12  ;;  %v12560_v63 = vpop.f32.mrf.mxu3  ;;  %v925_v46 = vsub.f32 1.0, %v924_v52 }
 0x197   : > { %v12549_v18 = vpop.f32.mrf.mxu0  ;;  %v12551_v33 = vpop.f32.mrf.mxu1  ;;  %v914_v5 = vsel %vm911_vm5, %v913_v17, %v909_v40  ;;  %15875 = vst [vmem:[#allocation101_spill] sm:$0xff] %v12560_v63 }
 0x198   : > { %15872 = vst [vmem:[#allocation98_spill] sm:$0xff] %v12549_v18  ;;  %v920_v49 = vsel %vm916_vm15, %v914_v5, 0.0  ;;  %v926_v32 = vmul.f32 %v11656_v47, %v925_v46 }
 0x199   : > { %15873 = vst [vmem:[#allocation99_spill] sm:$0xff] %v12551_v33  ;;  %921 = vadd.xlane.f32.xlu0 %v920_v49 }
 0x19a   : > { %11457 = vmatmul.msk.f32.gmra.mxu0 %vm1718_vm9, %v12352_v14  ;;  %11466 = vmatmul.msk.f32.gmra.mxu1 %vm1718_vm9, %v12370_v54  ;;  %v12570_v26 = vpop.f32.mrf.mxu2  ;;  %v927_v27 = vadd.f32 %v11656_v47, %v926_v32 }
 0x19b   : > { %15878 = vst [vmem:[#allocation104_spill] sm:$0xff] %v12570_v26 }
 0x19c   : > { %v929_v52 = vsel %vm928_vm6, %v11656_v47, %v927_v27 }
 0x19e   : > { %v12576_v12 = vpop.f32.mrf.mxu3 }
 0x19f   : > { %v12562_v4 = vpop.f32.mrf.mxu0  ;;  %v12564_v55 = vpop.f32.mrf.mxu1  ;;  %15881 = vst [vmem:[#allocation107_spill] sm:$0xff] %v12576_v12 }
 0x1a0   : > { %15876 = vst [vmem:[#allocation102_spill] sm:$0xff] %v12562_v4 }
 0x1a1   : > { %15877 = vst [vmem:[#allocation103_spill] sm:$0xff] %v12564_v55 }
 0x1a2   : > { %11458 = vmatmul.msk.f32.gmra.mxu0 %vm1718_vm9, %v12370_v54  ;;  %11467 = vmatmul.msk.f32.gmra.mxu1 %vm1718_vm9, %v12382_v19  ;;  %v12582_v17 = vpop.f32.mrf.mxu2 }
 0x1a3   : > { %15882 = vst [vmem:[#allocation108_spill] sm:$0xff] %v12582_v17 }
 0x1a6   : > { %v12588_v49 = vpop.f32.mrf.mxu3 }
 0x1a7   : > { %v12572_v39 = vpop.f32.mrf.mxu0  ;;  %v12574_v1 = vpop.f32.mrf.mxu1  ;;  %15885 = vst [vmem:[#allocation111_spill] sm:$0xff] %v12588_v49 }
 0x1a8   : > { %15879 = vst [vmem:[#allocation105_spill] sm:$0xff] %v12572_v39 }
 0x1a9   : > { %15880 = vst [vmem:[#allocation106_spill] sm:$0xff] %v12574_v1 }
 0x1aa   : > { %11459 = vmatmul.msk.f32.gmra.mxu0 %vm1718_vm9, %v12382_v19  ;;  %11468 = vmatmul.msk.f32.gmra.mxu1 %vm1718_vm9, %v12331_v38  ;;  %v12596_v14 = vpop.f32.mrf.mxu2 }
 0x1ab   : > { %15887 = vst [vmem:[#allocation113_spill] sm:$0xff] %v12596_v14 }
 0x1ae   : > { %v12600_v9 = vpop.f32.mrf.mxu3 }
 0x1af   : > { %v12584_v40 = vpop.f32.mrf.mxu0  ;;  %v12586_v5 = vpop.f32.mrf.mxu1  ;;  %15888 = vst [vmem:[#allocation114_spill] sm:$0xff] %v12600_v9 }
 0x1b0   : > { %15883 = vst [vmem:[#allocation109_spill] sm:$0xff] %v12584_v40 }
 0x1b1   : > { %15884 = vst [vmem:[#allocation110_spill] sm:$0xff] %v12586_v5 }
 0x1b2   : > { %11460 = vmatmul.msk.f32.gmra.mxu0 %vm1718_vm9, %v12331_v38  ;;  %11469 = vmatmul.msk.f32.gmra.mxu1 %vm1718_vm9, %v12360_v8  ;;  %v12602_v31 = vpop.f32.mrf.mxu2 }
 0x1b3   : > { %15889 = vst [vmem:[#allocation115_spill] sm:$0xff] %v12602_v31 }
 0x1b6   : > { %v12604_v3 = vpop.f32.mrf.mxu3 }
 0x1b7   : > { %v12594_v54 = vpop.f32.mrf.mxu0  ;;  %v1854_v19 = vpop.f32.mrf.mxu1  ;;  %15890 = vst [vmem:[#allocation116_spill] sm:$0xff] %v12604_v3 }
 0x1b8   : > { %15886 = vst [vmem:[#allocation112_spill] sm:$0xff] %v12594_v54 }
 0x1ba   : > { %11461 = vmatmul.msk.f32.gmra.mxu0 %vm1718_vm9, %v12360_v8  ;;  %v12606_v56 = vpop.f32.mrf.mxu2 }
 0x1bb   : > { %15891 = vst [vmem:[#allocation117_spill] sm:$0xff] %v12606_v56 }
 0x1be   : > { %v12610_v2 = vpop.f32.mrf.mxu3 }
 0x1bf   : > { %v1767_v57 = vpop.f32.mrf.mxu0  ;;  %v1858_v43 = vpop.f32.mrf.mxu1  ;;  %15892 = vst [vmem:[#allocation118_spill] sm:$0xff] %v12610_v2 }
 0x1c0   : > { %v1855_v7 = vadd.f32 %v1854_v19, %v1767_v57 }
 0x1c2   : > { %v12612_v5 = vpop.f32.mrf.mxu2 }
 0x1c3   : > { %15893 = vst [vmem:[#allocation119_spill] sm:$0xff] %v12612_v5 }
 0x1c6   : > { %v12614_v1 = vpop.f32.mrf.mxu3 }
 0x1c7   : > { %v1775_v38 = vpop.f32.mrf.mxu0  ;;  %v1862_v62 = vpop.f32.mrf.mxu1  ;;  %15894 = vst [vmem:[#allocation120_spill] sm:$0xff] %v12614_v1 }
 0x1c8   : > { %v1859_v25 = vadd.f32 %v1858_v43, %v1775_v38 }
 0x1ca   : > { %v12616_v31 = vpop.f32.mrf.mxu2 }
 0x1cb   : > { %15895 = vst [vmem:[#allocation121_spill] sm:$0xff] %v12616_v31 }
 0x1ce   : > { %v12618_v3 = vpop.f32.mrf.mxu3 }
 0x1cf   : > { %v1783_v51 = vpop.f32.mrf.mxu0  ;;  %v12608_v22 = vpop.f32.mrf.mxu1  ;;  %15896 = vst [vmem:[#allocation122_spill] sm:$0xff] %v12618_v3 }
 0x1d0   : > { %v1863_v16 = vadd.f32 %v1862_v62, %v1783_v51 }
 0x1d2   : > { %v1908_v56 = vpop.f32.mrf.mxu2 }
 0x1d3   : > { %v1909_v35 = vadd.f32 %v1908_v56, %v1855_v7 }
 0x1d6   : > { %v1968_v33 = vpop.f32.mrf.mxu3 }
 0x1d7   : > { %v1791_v8 = vpop.f32.mrf.mxu0  ;;  %v1870_v54 = vpop.f32.mrf.mxu1 }
 0x1d8   : > { %v1867_v43 = vadd.f32 %v12608_v22, %v1791_v8 }
 0x1da   : > { %v1913_v13 = vpop.f32.mrf.mxu2 }
 0x1db   : > { %v1914_v30 = vadd.f32 %v1913_v13, %v1859_v25 }
 0x1de   : > { %v1974_v5 = vpop.f32.mrf.mxu3 }
 0x1df   : > { %v1799_v40 = vpop.f32.mrf.mxu0  ;;  %v1874_v55 = vpop.f32.mrf.mxu1 }
 0x1e0   : > { %v1871_v10 = vadd.f32 %v1870_v54, %v1799_v40 }
 0x1e2   : > { %v1918_v18 = vpop.f32.mrf.mxu2 }
 0x1e3   : > { %v1919_v34 = vadd.f32 %v1918_v18, %v1863_v16 }
 0x1e6   : > { %v1980_v12 = vpop.f32.mrf.mxu3 }
 0x1e7   : > { %v1807_v39 = vpop.f32.mrf.mxu0  ;;  %v1878_v9 = vpop.f32.mrf.mxu1  ;;  %v1981_v57 = vadd.f32 %v1980_v12, %v1919_v34 }
 0x1e8   : > { %v1875_v21 = vadd.f32 %v1874_v55, %v1807_v39  ;;  %v1975_v55 = vadd.f32 %v1974_v5, %v1914_v30 }
 0x1ea   : > { %v1923_v3 = vpop.f32.mrf.mxu2 }
 0x1eb   : > { %v1924_v56 = vadd.f32 %v1923_v3, %v1867_v43 }
 0x1ee   : > { %v12626_v26 = vpop.f32.mrf.mxu3 }
 0x1ef   : > { %v1815_v14 = vpop.f32.mrf.mxu0  ;;  %v1882_v4 = vpop.f32.mrf.mxu1 }
 0x1f0   : > { %v1879_v36 = vadd.f32 %v1878_v9, %v1815_v14  ;;  %v1969_v9 = vadd.f32 %v1968_v33, %v1909_v35 }
 0x1f2   : > { %v1928_v11 = vpop.f32.mrf.mxu2 }
 0x1f3   : > { %v1929_v28 = vadd.f32 %v1928_v11, %v1871_v10 }
 0x1f6   : > { %v1992_v15 = vpop.f32.mrf.mxu3 }
 0x1f7   : > { %v1823_v2 = vpop.f32.mrf.mxu0  ;;  %v12620_v49 = vpop.f32.mrf.mxu1  ;;  %v1993_v32 = vadd.f32 %v1992_v15, %v1929_v28 }
 0x1f8   : > { %v1883_v14 = vadd.f32 %v1882_v4, %v1823_v2 }
 0x1fa   : > { %v1933_v61 = vpop.f32.mrf.mxu2 }
 0x1fb   : > { %v1934_v50 = vadd.f32 %v1933_v61, %v1875_v21  ;;  %v1006_v21 = vpop.trf.xlu1 }
 0x1fe   : > { %v1998_v44 = vpop.f32.mrf.mxu3 }
 0x1ff   : > { %v2037_v17 = vpop.f32.mrf.mxu0  ;;  %v12622_v1 = vpop.f32.mrf.mxu1  ;;  %v1999_v58 = vadd.f32 %v1998_v44, %v1934_v50 }
 0x202   : > { %v1938_v41 = vpop.f32.mrf.mxu2 }
 0x203   : > { %v1939_v46 = vadd.f32 %v1938_v41, %v1879_v36  ;;  %v2038_v36 = vadd.f32 %v2037_v17, %v1969_v9 }
 0x204   : > { %v919_v29 = vpop.xlane.xlu2 %918 }
 0x205   : > { %v930_v62 = vmul.f32 %v929_v52, %v919_v29  ;;  %v2089_v2 = vadd.f32 %v12620_v49, %v2038_v36 }
 0x206   : > { %v2004_v51 = vpop.f32.mrf.mxu3 }
 0x207   : > { %v2041_v6 = vpop.f32.mrf.mxu0  ;;  %v12624_v31 = vpop.f32.mrf.mxu1  ;;  %v2005_v25 = vadd.f32 %v2004_v51, %v1939_v46  ;;  %v1022_v30 = vmul.f32 %v1006_v21, %v930_v62 }
 0x208   : > { %v2042_v13 = vadd.f32 %v2041_v6, %v1975_v55 }
 0x20a   : > { %v1943_v50 = vpop.f32.mrf.mxu2  ;;  %v2093_v28 = vadd.f32 %v12622_v1, %v2042_v13 }
 0x20b   : > { %v1944_v44 = vadd.f32 %v1943_v50, %v1883_v14 }
 0x20c   : > { %v922_v29 = vpop.xlane.xlu0 %921 }
 0x20d   : > { %v931_v19 = vmul.f32 %v929_v52, %v922_v29 }
 0x20e   : > { %v2010_v54 = vpop.f32.mrf.mxu3 }
 0x20f   : > { %v2045_v45 = vpop.f32.mrf.mxu0  ;;  %v12628_v63 = vpop.f32.mrf.mxu1 }
 0x210   : > { %v2046_v16 = vadd.f32 %v2045_v45, %v1981_v57  ;;  %v1007_v45 = vpop.trf.xlu1 }
 0x211   : > { %v1023_v33 = vmul.f32 %v1007_v45, %v931_v19 }
 0x217   : > { %v12630_v60 = vpop.f32.mrf.mxu0  ;;  %v2104_v0 = vpop.f32.mrf.mxu1 }
 0x21f   : > { %v2053_v59 = vpop.f32.mrf.mxu0  ;;  %v2108_v42 = vpop.f32.mrf.mxu1 }
 0x220   : > { %v2054_v10 = vadd.f32 %v2053_v59, %v1993_v32  ;;  %v2128_v59 = vsel %vm655_vm2, %v1022_v30, 0 }
 0x221   : > { %v12639_v15 = vand.u32 4294901760, %v2128_v59 }
 0x222   : > { %v2105_v34 = vadd.f32 %v2104_v0, %v2054_v10 }
 0x223   : > { %v12643_v17 = vsub.f32 %v2128_v59, %v12639_v15 }
 0x224   : > { %v2119_v6 = vsub.f32 %v2089_v2, %v2105_v34 }
 0x225   : > { %v12647_v46 = vand.u32 4294901760, %v12643_v17 }
 0x226   : > { %v2123_v39 = vand.u32 2147483647, %v2119_v6 }
 0x227   : > { %v2057_v24 = vpop.f32.mrf.mxu0  ;;  %v2112_v7 = vpop.f32.mrf.mxu1  ;;  %15897 = vst [vmem:[#allocation123_spill] sm:$0xff] %v12647_v46  ;;  %v2156_v62 = vsub.f32 %v12643_v17, %v12647_v46 }
 0x228   : > { %v2058_v38 = vadd.f32 %v2057_v24, %v1999_v58  ;;  %v2097_v24 = vadd.f32 %v12624_v31, %v2046_v16  ;;  %v1987_v58 = vadd.f32 %v12626_v26, %v1924_v56  ;;  %v2151_v27 = vand.u32 4294901760, %v2123_v39 }
 0x229   : > { %v12656_v16 = vand.u32 4294901760, %v2156_v62 }
 0x22a   : > { %v2109_v41 = vadd.f32 %v2108_v42, %v2058_v38  ;;  %v2011_v42 = vadd.f32 %v2010_v54, %v1944_v44  ;;  %v2050_v11 = vadd.f32 %v12630_v60, %v1987_v58  ;;  %v2131_v60 = vsel %vm655_vm2, %v1023_v33, 0  ;;  %v1027_v58 = vld [vmem:[%s15383_s3 + $0x40] sm:$0xff] }
 0x22b   : > { %v12649_v55 = vand.u32 4294901760, %v2131_v60  ;;  %v2201_v32 = vsub.f32 %v2123_v39, %v2151_v27 }
 0x22c   : > { %v2120_v3 = vsub.f32 %v2093_v28, %v2109_v41  ;;  %v2101_v26 = vadd.f32 %v12628_v63, %v2050_v11  ;;  %v1033_v28 = vld [vmem:[%s15383_s3 + $0xc0] sm:$0xff] }
 0x22d   : > { %v12654_v21 = vsub.f32 %v2131_v60, %v12649_v55  ;;  %v2202_v13 = vand.u32 4294901760, %v2201_v32  ;;  %v12682_v29 = vand.u32 4294901760, %v1033_v28  ;;  %v1034_v60 = vld [vmem:[%s15383_s3 + $0xc8] sm:$0xff] }
 0x22e   : > { %v2124_v0 = vand.u32 2147483647, %v2120_v3  ;;  %v12704_v3 = vand.u32 4294901760, %v1027_v58 }
 0x22f   : > { %v2061_v47 = vpop.f32.mrf.mxu0  ;;  %v2116_v4 = vpop.f32.mrf.mxu1  ;;  %15898 = vst [vmem:[#allocation124_spill] sm:$0xff] %v12654_v21  ;;  %v12659_v10 = vand.u32 4294901760, %v12654_v21  ;;  %v2203_v50 = vsub.f32 %v2201_v32, %v2202_v13  ;;  %v12688_v34 = vsub.f32 %v1033_v28, %v12682_v29  ;;  %2485 = vmatpush.msrb.mxu1 %v12682_v29 }
 0x230   : > { %v2062_v22 = vadd.f32 %v2061_v47, %v2005_v25  ;;  %v2149_v5 = vand.u32 4294901760, %v2124_v0  ;;  %15904 = vst [vmem:[#allocation130_spill] sm:$0xff] %v12704_v3 }
 0x231   : > { %15899 = vst [vmem:[#allocation125_spill] sm:$0xff] %v12659_v10  ;;  %v2164_v30 = vsub.f32 %v12654_v21, %v12659_v10  ;;  %v2204_v41 = vand.u32 4294901760, %v2203_v50  ;;  %v12698_v2 = vand.u32 4294901760, %v12688_v34  ;;  %2451 = vmatpush.msrb.mxu0 %v12688_v34 }
 0x232   : > { %v2113_v35 = vadd.f32 %v2112_v7, %v2062_v22  ;;  %v2195_v63 = vsub.f32 %v2124_v0, %v2149_v5  ;;  %15900 = vst [vmem:[#allocation126_spill] sm:$0xff] %v12688_v34 }
 0x233   : > { %v12664_v22 = vand.u32 4294901760, %v2164_v30  ;;  %15902 = vst [vmem:[#allocation128_spill] sm:$0xff] %v12698_v2  ;;  %v2407_v54 = vsub.f32 %v12688_v34, %v12698_v2 }
 0x234   : > { %v2121_v8 = vsub.f32 %v2097_v24, %v2113_v35  ;;  %v2196_v9 = vand.u32 4294901760, %v2195_v63  ;;  %v1030_v24 = vld [vmem:[%s15383_s3 + $0x80] sm:$0xff] }
 0x235   : > { %v12690_v35 = vand.u32 4294901760, %v1030_v24 }
 0x236   : > { %v2125_v61 = vand.u32 2147483647, %v2121_v8  ;;  %v2197_v7 = vsub.f32 %v2195_v63, %v2196_v9  ;;  %v1024_v8 = vld [vmem:[%s15383_s3] sm:$0xff] }
 0x237   : > { %v2065_v31 = vpop.f32.mrf.mxu0  ;;  %15901 = vst [vmem:[#allocation127_spill] sm:$0xff] %v12690_v35  ;;  %v12701_v59 = vsub.f32 %v1030_v24, %v12690_v35  ;;  %2487 = vmatpush.msrb.mxu1 %v12690_v35  ;;  %v12720_v45 = vand.u32 4294901760, %v1024_v8 }
 0x238   : > { %v2066_v18 = vadd.f32 %v2065_v31, %v2011_v42  ;;  %v2147_v12 = vand.u32 4294901760, %v2125_v61  ;;  %v2198_v36 = vand.u32 4294901760, %v2197_v7  ;;  %v12717_v42 = vsub.f32 %v1027_v58, %v12704_v3 }
 0x239   : > { %15903 = vst [vmem:[#allocation129_spill] sm:$0xff] %v12701_v59  ;;  %v12714_v19 = vand.u32 4294901760, %v12701_v59  ;;  %2454 = vmatpush.msrb.mxu0 %v12701_v59  ;;  %2489 = vmatpush.msrb.mxu1 %v12704_v3 }
 0x23a   : > { %v2117_v1 = vadd.f32 %v2116_v4, %v2066_v18  ;;  %v2189_v52 = vsub.f32 %v2125_v61, %v2147_v12  ;;  %15906 = vst [vmem:[#allocation132_spill] sm:$0xff] %v12717_v42  ;;  %v12728_v61 = vand.u32 4294901760, %v2407_v54  ;;  %v12733_v0 = vand.u32 4294901760, %v12717_v42 }
 0x23b   : > { %15905 = vst [vmem:[#allocation131_spill] sm:$0xff] %v12714_v19  ;;  %v2413_v31 = vsub.f32 %v12701_v59, %v12714_v19  ;;  %2457 = vmatpush.msrb.mxu0 %v12717_v42  ;;  %2491 = vmatpush.msrb.mxu1 %v12720_v45  ;;  %v12738_v18 = vsub.f32 %v1024_v8, %v12720_v45 }
 0x23c   : > { %v2122_v40 = vsub.f32 %v2101_v26, %v2117_v1  ;;  %v2190_v57 = vand.u32 4294901760, %v2189_v52  ;;  %15907 = vst [vmem:[#allocation133_spill] sm:$0xff] %v12720_v45  ;;  %v2419_v4 = vsub.f32 %v12717_v42, %v12733_v0 }
 0x23d   : > { %15908 = vst [vmem:[#allocation134_spill] sm:$0xff] %v12728_v61  ;;  %v12742_v33 = vand.u32 4294901760, %v2413_v31  ;;  %v12748_v26 = vand.u32 4294901760, %v12738_v18  ;;  %2460 = vmatpush.msrb.mxu0 %v12738_v18 }
 0x23e   : > { %v2126_v49 = vand.u32 2147483647, %v2122_v40  ;;  %v2191_v25 = vsub.f32 %v2189_v52, %v2190_v57  ;;  %15909 = vst [vmem:[#allocation135_spill] sm:$0xff] %v12733_v0  ;;  %v12752_v39 = vand.u32 4294901760, %v2419_v4 }
 0x23f   : > { %15910 = vst [vmem:[#allocation136_spill] sm:$0xff] %v12738_v18  ;;  %v2425_v1 = vsub.f32 %v12738_v18, %v12748_v26 }
 0x240   : > { %v2145_v43 = vand.u32 4294901760, %v2126_v49  ;;  %v2192_v47 = vand.u32 4294901760, %v2191_v25  ;;  %15911 = vst [vmem:[#allocation137_spill] sm:$0xff] %v12742_v33 }
 0x241   : > { %15912 = vst [vmem:[#allocation138_spill] sm:$0xff] %v12748_v26 }
 0x242   : > { %2146 = vmatpush.msrb.mxu2 %v2145_v43  ;;  %v2183_v51 = vsub.f32 %v2126_v49, %v2145_v43  ;;  %15913 = vst [vmem:[#allocation139_spill] sm:$0xff] %v12752_v39  ;;  %v12768_v49 = vand.u32 4294901760, %v1034_v60 }
 0x244   : > { %2148 = vmatpush.msrb.mxu2 %v2147_v12  ;;  %v2184_v38 = vand.u32 4294901760, %v2183_v51  ;;  %15915 = vst [vmem:[#allocation141_spill] sm:$0xff] %v12768_v49  ;;  %2584 = vmatpush.msra.mxu0 %v12768_v49 }
 0x246   : > { %2150 = vmatpush.msrb.mxu2 %v2149_v5  ;;  %v2185_v14 = vsub.f32 %v2183_v51, %v2184_v38 }
 0x248   : > { %2152 = vmatpush.msrb.mxu2 %v2151_v27  ;;  %v2186_v56 = vand.u32 4294901760, %v2185_v14 }
 0x249   : > { %2158 = vmatmul.f32.vlgmr.msrb.gmra.mxu2 %v12656_v16 }
 0x24a   : > { %2229 = vmatpush.msra.mxu2 %v2183_v51  ;;  %2187 = vmatpush.msrb.mxu3 %v2186_v56 }
 0x24c   : > { %2232 = vmatpush.msra.mxu2 %v2189_v52  ;;  %2193 = vmatpush.msrb.mxu3 %v2192_v47 }
 0x24e   : > { %2235 = vmatpush.msra.mxu2 %v2195_v63  ;;  %2199 = vmatpush.msrb.mxu3 %v2198_v36  ;;  %v1028_v63 = vld [vmem:[%s15383_s3 + $0x48] sm:$0xff] }
 0x24f   : > { %v12788_v62 = vand.u32 4294901760, %v1028_v63 }
 0x250   : > { %2238 = vmatpush.msra.mxu2 %v2201_v32  ;;  %2205 = vmatpush.msrb.mxu3 %v2204_v41 }
 0x251   : > { %2207 = vmatmul.f32.vlgmr.msrb.gmra.mxu3 %v12639_v15  ;;  %2166 = vmatmul.f32.gmra.mxu2 %v12664_v22  ;;  %15919 = vst [vmem:[#allocation145_spill] sm:$0xff] %v12788_v62  ;;  %v12805_v56 = vsub.f32 %v1028_v63, %v12788_v62 }
 0x252   : > { %2298 = vmatpush.msrb.mxu2 %v2184_v38  ;;  %2263 = vmatpush.msra.mxu3 %v2145_v43 }
 0x253   : > { %15923 = vst [vmem:[#allocation149_spill] sm:$0xff] %v12805_v56  ;;  %v12813_v50 = vand.u32 4294901760, %v12805_v56 }
 0x254   : > { %2302 = vmatpush.msrb.mxu2 %v2190_v57  ;;  %2265 = vmatpush.msra.mxu3 %v2147_v12 }
 0x255   : > { %15925 = vst [vmem:[#allocation151_spill] sm:$0xff] %v12813_v50  ;;  %v2635_v41 = vsub.f32 %v12805_v56, %v12813_v50 }
 0x256   : > { %2306 = vmatpush.msrb.mxu2 %v2196_v9  ;;  %2267 = vmatpush.msra.mxu3 %v2149_v5  ;;  %v1025_v9 = vld [vmem:[%s15383_s3 + $0x8] sm:$0xff] }
 0x257   : > { %v12827_v58 = vand.u32 4294901760, %v2635_v41 }
 0x258   : > { %2310 = vmatpush.msrb.mxu2 %v2202_v13  ;;  %2269 = vmatpush.msra.mxu3 %v2151_v27  ;;  %v12802_v13 = vand.u32 4294901760, %v1025_v9 }
 0x259   : > { %2211 = vmatmul.f32.gmra.mxu3 %v12649_v55  ;;  %2241 = vmatmul.f32.vlgmr.msra.gmra.mxu2 %v12643_v17  ;;  %15929 = vst [vmem:[#allocation155_spill] sm:$0xff] %v12827_v58 }
 0x25a   : > { %2333 = vmatpush.msrb.mxu3 %v2145_v43  ;;  %2368 = vmatpush.msra.mxu2 %v12682_v29  ;;  %v12778_v43 = vsub.f32 %v1034_v60, %v12768_v49  ;;  %15922 = vst [vmem:[#allocation148_spill] sm:$0xff] %v12802_v13  ;;  %v12816_v36 = vsub.f32 %v1025_v9, %v12802_v13 }
 0x25c   : > { %2335 = vmatpush.msrb.mxu3 %v2147_v12  ;;  %2370 = vmatpush.msra.mxu2 %v12690_v35  ;;  %v12759_v12 = vand.u32 4294901760, %v2425_v1  ;;  %15917 = vst [vmem:[#allocation143_spill] sm:$0xff] %v12778_v43  ;;  %v12785_v32 = vand.u32 4294901760, %v12778_v43  ;;  %v12824_v28 = vand.u32 4294901760, %v12816_v36 }
 0x25d   : > { %15926 = vst [vmem:[#allocation152_spill] sm:$0xff] %v12816_v36 }
 0x25e   : > { %2337 = vmatpush.msrb.mxu3 %v2149_v5  ;;  %2372 = vmatpush.msra.mxu2 %v12704_v3  ;;  %15914 = vst [vmem:[#allocation140_spill] sm:$0xff] %v12759_v12  ;;  %v2623_v14 = vsub.f32 %v12778_v43, %v12785_v32  ;;  %v2641_v8 = vsub.f32 %v12816_v36, %v12824_v28 }
 0x25f   : > { %15918 = vst [vmem:[#allocation144_spill] sm:$0xff] %v12785_v32 }
 0x260   : > { %2339 = vmatpush.msrb.mxu3 %v2151_v27  ;;  %2374 = vmatpush.msra.mxu2 %v12720_v45  ;;  %v1031_v27 = vld [vmem:[%s15383_s3 + $0x88] sm:$0xff]  ;;  %v12807_v7 = vand.u32 4294901760, %v2623_v14  ;;  %15928 = vst [vmem:[#allocation154_spill] sm:$0xff] %v12824_v28  ;;  %v12834_v4 = vand.u32 4294901760, %v2641_v8 }
 0x261   : > { %2246 = vmatmul.f32.gmra.mxu2 %v12654_v21  ;;  %2273 = vmatmul.f32.vlgmr.msra.gmra.mxu3 %v12647_v46  ;;  %v12775_v52 = vand.u32 4294901760, %v1031_v27 }
 0x262   : > { %2409 = vmatpush.msra.mxu3 %v12728_v61  ;;  %15924 = vst [vmem:[#allocation150_spill] sm:$0xff] %v12807_v7  ;;  %2625 = vmatpush.msra.mxu1 %v12807_v7 }
 0x263   : > { %15916 = vst [vmem:[#allocation142_spill] sm:$0xff] %v12775_v52  ;;  %2586 = vmatpush.msra.mxu0 %v12775_v52  ;;  %v12791_v38 = vsub.f32 %v1031_v27, %v12775_v52 }
 0x264   : > { %2415 = vmatpush.msra.mxu3 %v12742_v33  ;;  %15930 = vst [vmem:[#allocation156_spill] sm:$0xff] %v12834_v4 }
 0x265   : > { %15920 = vst [vmem:[#allocation146_spill] sm:$0xff] %v12791_v38  ;;  %2588 = vmatpush.msra.mxu0 %v12788_v62  ;;  %v12800_v25 = vand.u32 4294901760, %v12791_v38 }
 0x266   : > { %2421 = vmatpush.msra.mxu3 %v12752_v39 }
 0x267   : > { %15921 = vst [vmem:[#allocation147_spill] sm:$0xff] %v12800_v25  ;;  %v2629_v47 = vsub.f32 %v12791_v38, %v12800_v25  ;;  %2590 = vmatpush.msra.mxu0 %v12802_v13 }
 0x268   : > { %2427 = vmatpush.msra.mxu3 %v12759_v12 }
 0x269   : > { %2279 = vmatmul.f32.gmra.mxu3 %v12659_v10  ;;  %2312 = vmatmul.f32.vlgmr.msrb.gmra.mxu2 %v12639_v15  ;;  %v12819_v30 = vand.u32 4294901760, %v2629_v47 }
 0x26a   : > { %2520 = vmatpush.msrb.mxu2 %v12698_v2 }
 0x26b   : > { %15927 = vst [vmem:[#allocation153_spill] sm:$0xff] %v12819_v30  ;;  %2631 = vmatpush.msra.mxu1 %v12819_v30 }
 0x26c   : > { %2524 = vmatpush.msrb.mxu2 %v12714_v19 }
 0x26d   : > { %2637 = vmatpush.msra.mxu1 %v12827_v58 }
 0x26e   : > { %2528 = vmatpush.msrb.mxu2 %v12733_v0 }
 0x26f   : > { %2643 = vmatpush.msra.mxu1 %v12834_v4 }
 0x270   : > { %2532 = vmatpush.msrb.mxu2 %v12748_v26 }
 0x271   : > { %2316 = vmatmul.f32.gmra.mxu2 %v12649_v55  ;;  %2341 = vmatmul.f32.vlgmr.msrb.gmra.mxu3 %v12639_v15 }
 0x272   : > { %2555 = vmatpush.msrb.mxu3 %v12682_v29 }
 0x274   : > { %2557 = vmatpush.msrb.mxu3 %v12690_v35 }
 0x276   : > { %2559 = vmatpush.msrb.mxu3 %v12704_v3 }
 0x278   : > { %2561 = vmatpush.msrb.mxu3 %v12720_v45 }
 0x279   : > { %2345 = vmatmul.f32.gmra.mxu3 %v12649_v55 }
 0x2cc   : > { %v12677_v44 = vpop.f32.mrf.mxu2 }
 0x2d4   : > { %v12723_v11 = vpop.f32.mrf.mxu3  ;;  %v12726_v6 = vpop.f32.mrf.mxu2 }
 0x2d5   : > { %v2209_v54 = vadd.f32 %v12723_v11, %v12677_v44 }
 0x2dc   : > { %v2212_v40 = vpop.f32.mrf.mxu3  ;;  %v2242_v5 = vpop.f32.mrf.mxu2 }
 0x2dd   : > { %v2243_v1 = vadd.f32 %v2242_v5, %v2209_v54  ;;  %v2213_v9 = vadd.f32 %v2212_v40, %v12726_v6  ;;  %v1035_v6 = vld [vmem:[%s15383_s3 + $0xd0] sm:$0xff] }
 0x2e4   : > { %v2247_v51 = vpop.f32.mrf.mxu2  ;;  %v2274_v57 = vpop.f32.mrf.mxu3 }
 0x2e5   : > { %v2275_v60 = vadd.f32 %v2274_v57, %v2243_v1  ;;  %v2248_v47 = vadd.f32 %v2247_v51, %v2213_v9  ;;  %v12853_v57 = vand.u32 4294901760, %v1035_v6 }
 0x2e7   : > { %15931 = vst [vmem:[#allocation157_spill] sm:$0xff] %v12853_v57  ;;  %v12864_v54 = vsub.f32 %v1035_v6, %v12853_v57 }
 0x2e9   : > { %15932 = vst [vmem:[#allocation158_spill] sm:$0xff] %v12864_v54  ;;  %v12880_v9 = vand.u32 4294901760, %v12864_v54 }
 0x2eb   : > { %15934 = vst [vmem:[#allocation160_spill] sm:$0xff] %v12880_v9 }
 0x2ec   : > { %v2280_v24 = vpop.f32.mrf.mxu3  ;;  %v2313_v31 = vpop.f32.mrf.mxu2 }
 0x2ed   : > { %v2314_v27 = vadd.f32 %v2313_v31, %v2275_v60  ;;  %v2281_v44 = vadd.f32 %v2280_v24, %v2248_v47  ;;  %v1029_v60 = vld [vmem:[%s15383_s3 + $0x50] sm:$0xff] }
 0x2ee   : > { %v12887_v47 = vand.u32 4294901760, %v1029_v60 }
 0x2f0   : > { %15936 = vst [vmem:[#allocation162_spill] sm:$0xff] %v12887_v47 }
 0x2f4   : > { %v2342_v63 = vpop.f32.mrf.mxu3  ;;  %v2317_v26 = vpop.f32.mrf.mxu2 }
 0x2f5   : > { %v2343_v14 = vadd.f32 %v2342_v63, %v2314_v27  ;;  %v2318_v5 = vadd.f32 %v2317_v26, %v2281_v44  ;;  %v1032_v26 = vld [vmem:[%s15383_s3 + $0x90] sm:$0xff] }
 0x2f6   : > { %v12866_v31 = vand.u32 4294901760, %v1032_v26 }
 0x2f7   : > { %v2350_v41 = vsel %vm655_vm2, %v2343_v14, 0 }
 0x2f8   : > { %v12839_v0 = vand.u32 4294901760, %v2350_v41  ;;  %15933 = vst [vmem:[#allocation159_spill] sm:$0xff] %v12866_v31  ;;  %v12883_v14 = vsub.f32 %v1032_v26, %v12866_v31 }
 0x2fa   : > { %v12842_v11 = vsub.f32 %v2350_v41, %v12839_v0  ;;  %2429 = vmatmul.f32.vlgmr.msra.gmra.mxu3 %v12839_v0  ;;  %15935 = vst [vmem:[#allocation161_spill] sm:$0xff] %v12883_v14  ;;  %v1026_v41 = vld [vmem:[%s15383_s3 + $0x10] sm:$0xff] }
 0x2fb   : > { %2701 = vmatpush.msra.mxu3 %v12768_v49  ;;  %v12900_v6 = vand.u32 4294901760, %v1026_v41 }
 0x2fc   : > { %v2346_v40 = vpop.f32.mrf.mxu3  ;;  %2463 = vmatmul.f32.vlgmr.msrb.gmra.mxu0 %v12842_v11  ;;  %v12851_v51 = vand.u32 4294901760, %v12842_v11 }
 0x2fd   : > { %v2347_v24 = vadd.f32 %v2346_v40, %v2318_v5  ;;  %2703 = vmatpush.msra.mxu3 %v12775_v52  ;;  %2736 = vmatpush.msrb.mxu0 %v12785_v32  ;;  %v12898_v5 = vand.u32 4294901760, %v12883_v14  ;;  %15938 = vst [vmem:[#allocation164_spill] sm:$0xff] %v12900_v6  ;;  %v2839_v40 = vsub.f32 %v12864_v54, %v12880_v9 }
 0x2fe   : > { %2495 = vmatmul.f32.vlgmr.msrb.gmra.mxu1 %v12851_v51  ;;  %v2378_v8 = vsub.f32 %v12842_v11, %v12851_v51 }
 0x2ff   : > { %v2353_v1 = vsel %vm655_vm2, %v2347_v24, 0  ;;  %2705 = vmatpush.msra.mxu3 %v12788_v62  ;;  %2740 = vmatpush.msrb.mxu0 %v12800_v25  ;;  %15937 = vst [vmem:[#allocation163_spill] sm:$0xff] %v12898_v5  ;;  %v12907_v24 = vsub.f32 %v1029_v60, %v12887_v47 }
 0x300   : > { %v12874_v27 = vand.u32 4294901760, %v2353_v1  ;;  %v12876_v63 = vand.u32 4294901760, %v2378_v8  ;;  %2771 = vmatpush.msrb.mxu1 %v12768_v49  ;;  %v12914_v8 = vsub.f32 %v1026_v41, %v12900_v6 }
 0x301   : > { %2707 = vmatpush.msra.mxu3 %v12802_v13  ;;  %2744 = vmatpush.msrb.mxu0 %v12813_v50  ;;  %15939 = vst [vmem:[#allocation165_spill] sm:$0xff] %v12907_v24 }
 0x302   : > { %v12893_v44 = vsub.f32 %v2353_v1, %v12874_v27  ;;  %2380 = vmatmul.f32.vlgmr.msra.gmra.mxu2 %v12876_v63  ;;  %2433 = vmatmul.f32.gmra.mxu3 %v12874_v27  ;;  %15940 = vst [vmem:[#allocation166_spill] sm:$0xff] %v12914_v8  ;;  %v2845_v1 = vsub.f32 %v12883_v14, %v12898_v5  ;;  %v12928_v41 = vand.u32 4294901760, %v12914_v8 }
 0x303   : > { %2773 = vmatpush.msrb.mxu1 %v12775_v52  ;;  %2667 = vmatpush.msra.mxu2 %v12778_v43  ;;  %v12921_v43 = vand.u32 4294901760, %v12907_v24 }
 0x304   : > { %2468 = vmatmul.f32.gmra.mxu0 %v12893_v44  ;;  %v12911_v26 = vand.u32 4294901760, %v12893_v44  ;;  %15942 = vst [vmem:[#allocation168_spill] sm:$0xff] %v12928_v41  ;;  %v12938_v32 = vand.u32 4294901760, %v2845_v1  ;;  %v2857_v19 = vsub.f32 %v12914_v8, %v12928_v41 }
 0x305   : > { %2748 = vmatpush.msrb.mxu0 %v12824_v28  ;;  %2775 = vmatpush.msrb.mxu1 %v12788_v62  ;;  %15941 = vst [vmem:[#allocation167_spill] sm:$0xff] %v12921_v43  ;;  %v12931_v28 = vand.u32 4294901760, %v2839_v40  ;;  %v2851_v50 = vsub.f32 %v12907_v24, %v12921_v43 }
 0x306   : > { %2501 = vmatmul.f32.gmra.mxu1 %v12911_v26  ;;  %v2386_v60 = vsub.f32 %v12893_v44, %v12911_v26  ;;  %2670 = vmatpush.msra.mxu2 %v12791_v38  ;;  %15944 = vst [vmem:[#allocation170_spill] sm:$0xff] %v12938_v32  ;;  %v12951_v1 = vand.u32 4294901760, %v2857_v19  ;;  %v15947_v19 = vld [vmem:[#allocation20_spill] sm:$0xff] }
 0x307   : > { %2777 = vmatpush.msrb.mxu1 %v12802_v13  ;;  %15943 = vst [vmem:[#allocation169_spill] sm:$0xff] %v12931_v28  ;;  %v12946_v40 = vand.u32 4294901760, %v2851_v50  ;;  %v15948_v50 = vld [vmem:[#allocation9_spill] sm:$0xff] }
 0x308   : > { %v12935_v25 = vand.u32 4294901760, %v2386_v60  ;;  %2673 = vmatpush.msra.mxu2 %v12805_v56  ;;  %15946 = vst [vmem:[#allocation172_spill] sm:$0xff] %v12951_v1  ;;  %v15949_v60 = vld [vmem:[#allocation12_spill] sm:$0xff] }
 0x309   : > { %15945 = vst [vmem:[#allocation171_spill] sm:$0xff] %v12946_v40 }
 0x30a   : > { %2388 = vmatmul.f32.gmra.mxu2 %v12935_v25  ;;  %2563 = vmatmul.f32.vlgmr.msrb.gmra.mxu3 %v12839_v0 }
 0x30b   : > { %2676 = vmatpush.msra.mxu2 %v12816_v36  ;;  %2841 = vmatpush.msrb.mxu3 %v12931_v28 }
 0x30c   : > { %2596 = vmatmul.f32.vlgmr.msra.gmra.mxu0 %v12876_v63 }
 0x30d   : > { %2847 = vmatpush.msrb.mxu3 %v12938_v32  ;;  %2883 = vmatpush.msra.mxu0 %v12864_v54 }
 0x30e   : > { %2645 = vmatmul.f32.vlgmr.msra.gmra.mxu1 %v12839_v0 }
 0x30f   : > { %2853 = vmatpush.msrb.mxu3 %v12946_v40  ;;  %2886 = vmatpush.msra.mxu0 %v12883_v14  ;;  %v15972_v14 = vld [vmem:[#allocation86_spill] sm:$0xff] }
 0x310   : > { %2917 = vmatpush.msra.mxu1 %v12853_v57 }
 0x311   : > { %2859 = vmatpush.msrb.mxu3 %v12951_v1  ;;  %2889 = vmatpush.msra.mxu0 %v12907_v24  ;;  %v15971_v1 = vld [vmem:[#allocation96_spill] sm:$0xff] }
 0x312   : > { %2534 = vmatmul.f32.vlgmr.msrb.gmra.mxu2 %v12839_v0  ;;  %2567 = vmatmul.f32.gmra.mxu3 %v12874_v27 }
 0x313   : > { %2919 = vmatpush.msra.mxu1 %v12866_v31  ;;  %2800 = vmatpush.msrb.mxu2 %v12853_v57 }
 0x314   : > { %2604 = vmatmul.f32.gmra.mxu0 %v12935_v25 }
 0x315   : > { %2892 = vmatpush.msra.mxu0 %v12914_v8  ;;  %2921 = vmatpush.msra.mxu1 %v12887_v47 }
 0x316   : > { %2649 = vmatmul.f32.gmra.mxu1 %v12874_v27  ;;  %2802 = vmatpush.msrb.mxu2 %v12866_v31 }
 0x317   : > { %2923 = vmatpush.msra.mxu1 %v12900_v6 }
 0x318   : > { %2804 = vmatpush.msrb.mxu2 %v12887_v47 }
 0x31a   : > { %2538 = vmatmul.f32.gmra.mxu2 %v12874_v27  ;;  %2711 = vmatmul.f32.vlgmr.msra.gmra.mxu3 %v12851_v51 }
 0x31b   : > { %2806 = vmatpush.msrb.mxu2 %v12900_v6  ;;  %2987 = vmatpush.msra.mxu3 %v12853_v57 }
 0x31c   : > { %2750 = vmatmul.f32.vlgmr.msrb.gmra.mxu0 %v12839_v0 }
 0x31d   : > { %2989 = vmatpush.msra.mxu3 %v12866_v31  ;;  %3116 = vmatpush.msrb.mxu0 %v11978_v20 }
 0x31e   : > { %2779 = vmatmul.f32.vlgmr.msrb.gmra.mxu1 %v12839_v0 }
 0x31f   : > { %2991 = vmatpush.msra.mxu3 %v12887_v47  ;;  %3157 = vmatpush.msrb.mxu1 %v12016_v37 }
 0x320   : > { %3118 = vmatpush.msrb.mxu0 %v11985_v23 }
 0x321   : > { %2993 = vmatpush.msra.mxu3 %v12900_v6  ;;  %3163 = vmatpush.msrb.mxu1 %v12029_v48  ;;  %v15970_v6 = vld [vmem:[#allocation88_spill] sm:$0xff] }
 0x322   : > { %2679 = vmatmul.f32.vlgmr.msra.gmra.mxu2 %v12842_v11  ;;  %2717 = vmatmul.f32.gmra.mxu3 %v12911_v26 }
 0x323   : > { %2952 = vmatpush.msra.mxu2 %v12880_v9  ;;  %3169 = vmatpush.msrb.mxu1 %v12039_v53 }
 0x324   : > { %2754 = vmatmul.f32.gmra.mxu0 %v12874_v27 }
 0x325   : > { %2956 = vmatpush.msra.mxu2 %v12898_v5  ;;  %3175 = vmatpush.msrb.mxu1 %v15947_v19  ;;  %v15950_v19 = vld [vmem:[#allocation8_spill] sm:$0xff]  ;;  %v15968_v5 = vld [vmem:[#allocation90_spill] sm:$0xff] }
 0x326   : > { %2783 = vmatmul.f32.gmra.mxu1 %v12874_v27  ;;  %3120 = vmatpush.msrb.mxu0 %v15948_v50 }
 0x327   : > { %2960 = vmatpush.msra.mxu2 %v12921_v43  ;;  %v15951_v43 = vld [vmem:[#allocation11_spill] sm:$0xff] }
 0x328   : > { %3122 = vmatpush.msrb.mxu0 %v15949_v60 }
 0x329   : > { %2964 = vmatpush.msra.mxu2 %v12928_v41  ;;  %v15956_v41 = vld [vmem:[#allocation18_spill] sm:$0xff] }
 0x32a   : > { %2684 = vmatmul.f32.gmra.mxu2 %v12893_v44  ;;  %2861 = vmatmul.f32.vlgmr.msrb.gmra.mxu3 %v12839_v0 }
 0x32b   : > { %3233 = vmatpush.msrb.mxu3 %v11978_v20 }
 0x32c   : > { %2895 = vmatmul.f32.vlgmr.msra.gmra.mxu0 %v12842_v11  ;;  %v15952_v11 = vld [vmem:[#allocation7_spill] sm:$0xff] }
 0x32d   : > { %3235 = vmatpush.msrb.mxu3 %v11985_v23  ;;  %3268 = vmatpush.msra.mxu0 %v15950_v19  ;;  %v15955_v19 = vld [vmem:[#allocation13_spill] sm:$0xff] }
 0x32e   : > { %2927 = vmatmul.f32.vlgmr.msra.gmra.mxu1 %v12851_v51  ;;  %v15953_v51 = vld [vmem:[#allocation10_spill] sm:$0xff] }
 0x32f   : > { %3237 = vmatpush.msrb.mxu3 %v15948_v50  ;;  %3303 = vmatpush.msra.mxu1 %v11978_v20 }
 0x330   : > { %3272 = vmatpush.msra.mxu0 %v15951_v43  ;;  %v15954_v43 = vld [vmem:[#allocation15_spill] sm:$0xff] }
 0x331   : > { %3239 = vmatpush.msrb.mxu3 %v15949_v60  ;;  %3305 = vmatpush.msra.mxu1 %v11985_v23  ;;  %v15969_v23 = vld [vmem:[#allocation93_spill] sm:$0xff] }
 0x332   : > { %2812 = vmatmul.f32.vlgmr.msrb.gmra.mxu2 %v12876_v63  ;;  %2865 = vmatmul.f32.gmra.mxu3 %v12874_v27  ;;  %v15957_v63 = vld [vmem:[#allocation16_spill] sm:$0xff] }
 0x333   : > { %3199 = vmatpush.msrb.mxu2 %v15952_v11  ;;  %3307 = vmatpush.msra.mxu1 %v15948_v50  ;;  %v15958_v11 = vld [vmem:[#allocation35_spill] sm:$0xff] }
 0x334   : > { %2900 = vmatmul.f32.gmra.mxu0 %v12893_v44  ;;  %v15959_v44 = vld [vmem:[#allocation36_spill] sm:$0xff] }
 0x335   : > { %3202 = vmatpush.msrb.mxu2 %v15953_v51  ;;  %3309 = vmatpush.msra.mxu1 %v15949_v60  ;;  %v15960_v51 = vld [vmem:[#allocation37_spill] sm:$0xff]  ;;  %v15961_v60 = vld [vmem:[#allocation39_spill] sm:$0xff] }
 0x336   : > { %2933 = vmatmul.f32.gmra.mxu1 %v12911_v26  ;;  %3276 = vmatpush.msra.mxu0 %v15954_v43  ;;  %v15962_v26 = vld [vmem:[#allocation22_spill] sm:$0xff] }
 0x337   : > { %3205 = vmatpush.msrb.mxu2 %v15955_v19 }
 0x338   : > { %3280 = vmatpush.msra.mxu0 %v15956_v41  ;;  %v15963_v41 = vld [vmem:[#allocation25_spill] sm:$0xff] }
 0x339   : > { %3208 = vmatpush.msrb.mxu2 %v15957_v63  ;;  %v15964_v63 = vld [vmem:[#allocation27_spill] sm:$0xff] }
 0x33a   : > { %2820 = vmatmul.f32.gmra.mxu2 %v12935_v25  ;;  %2995 = vmatmul.f32.vlgmr.msra.gmra.mxu3 %v12839_v0  ;;  %v15965_v25 = vld [vmem:[#allocation31_spill] sm:$0xff] }
 0x33b   : > { %3373 = vmatpush.msra.mxu3 %v15958_v11 }
 0x33d   : > { %3379 = vmatpush.msra.mxu3 %v15959_v44 }
 0x33f   : > { %3385 = vmatpush.msra.mxu3 %v15960_v51  ;;  %v13040_v51 = vld [vmem:[%s15384_s4] sm:$0x7] }
 0x340   : > { %v13046_v43 = vperm.slane %v13040_v51, 0 }
 0x341   : > { %3391 = vmatpush.msra.mxu3 %v15961_v60  ;;  %v13035_v60 = vld [vmem:[%s15384_s4 + $0x3] sm:$0x7] }
 0x342   : > { %2966 = vmatmul.f32.vlgmr.msra.gmra.mxu2 %v12839_v0  ;;  %2999 = vmatmul.f32.gmra.mxu3 %v12874_v27  ;;  %v13043_v19 = vperm.slane %v13035_v60, 0  ;;  %15967 = vst [vmem:[#allocation174_spill] sm:$0xff] %v13046_v43  ;;  %v13061_v2 = vperm.slane %v13035_v60, 1 }
 0x343   : > { %3332 = vmatpush.msra.mxu2 %v15962_v26 }
 0x344   : > { %15966 = vst [vmem:[#allocation173_spill] sm:$0xff] %v13043_v19  ;;  %v1097_v53 = vadd.f32 %v15968_v5, %v13043_v19  ;;  %v1105_v57 = vadd.f32 %v15971_v1, %v13043_v19  ;;  %v15973_v5 = vld [vmem:[#allocation97_spill] sm:$0xff] }
 0x345   : > { %3334 = vmatpush.msra.mxu2 %v15963_v41  ;;  %15976 = vst [vmem:[#allocation90_spill] sm:$0xff] %v13061_v2 }
 0x346   : > { %v1146_v37 = vadd.f32 %v15969_v23, %v1097_v53  ;;  %v1150_v28 = vadd.f32 %v15973_v5, %v1105_v57  ;;  %v15975_v23 = vld [vmem:[#allocation91_spill] sm:$0xff]  ;;  %v15979_v5 = vld [vmem:[#allocation94_spill] sm:$0xff] }
 0x347   : > { %3336 = vmatpush.msra.mxu2 %v15964_v63 }
 0x348   : > { %v1180_v47 = vadd.f32 %v15970_v6, %v1146_v37  ;;  %v1185_v53 = vadd.f32 %v15975_v23, %v1150_v28  ;;  %v15980_v28 = vld [vmem:[#allocation104_spill] sm:$0xff] }
 0x349   : > { %3338 = vmatpush.msra.mxu2 %v15965_v25 }
 0x34a   : > { %2970 = vmatmul.f32.gmra.mxu2 %v12874_v27  ;;  %v1212_v40 = vadd.f32 %v15972_v14, %v1180_v47  ;;  %v15977_v14 = vld [vmem:[#allocation101_spill] sm:$0xff] }
 0x379   : > { %v2464_v44 = vpop.f32.mrf.mxu0 }
 0x37b   : > { %v2496_v0 = vpop.f32.mrf.mxu1 }
 0x37d   : > { %v2430_v11 = vpop.f32.mrf.mxu3 }
 0x381   : > { %v2469_v9 = vpop.f32.mrf.mxu0 }
 0x383   : > { %v2502_v20 = vpop.f32.mrf.mxu1 }
 0x385   : > { %v2381_v27 = vpop.f32.mrf.mxu2  ;;  %v2434_v50 = vpop.f32.mrf.mxu3 }
 0x386   : > { %v2382_v48 = vadd.f32 %v2381_v27, %v13046_v43  ;;  %v15974_v27 = vld [vmem:[#allocation100_spill] sm:$0xff] }
 0x387   : > { %v1251_v56 = vadd.f32 %v15974_v27, %v1212_v40  ;;  %v1313_v40 = vadd.f32 %v15979_v5, %v13061_v2 }
 0x388   : > { %v2431_v8 = vadd.f32 %v2430_v11, %v2382_v48 }
 0x389   : > { %v2597_v36 = vpop.f32.mrf.mxu0  ;;  %v1280_v47 = vadd.f32 %v15977_v14, %v1251_v56 }
 0x38a   : > { %v2465_v32 = vadd.f32 %v2464_v44, %v2431_v8 }
 0x38b   : > { %v2646_v38 = vpop.f32.mrf.mxu1 }
 0x38c   : > { %v2497_v48 = vadd.f32 %v2496_v0, %v2465_v32  ;;  %v13069_v32 = vperm.slane %v13040_v51, 1 }
 0x38d   : > { %v2389_v31 = vpop.f32.mrf.mxu2  ;;  %v2564_v24 = vpop.f32.mrf.mxu3 }
 0x38e   : > { %v2390_v54 = vadd.f32 %v2389_v31, %v13046_v43  ;;  %v15978_v31 = vld [vmem:[#allocation89_spill] sm:$0xff]  ;;  %15981 = vst [vmem:[#allocation93_spill] sm:$0xff] %v13069_v32 }
 0x38f   : > { %v1218_v8 = vadd.f32 %v15978_v31, %v1185_v53 }
 0x390   : > { %v2435_v37 = vadd.f32 %v2434_v50, %v2390_v54 }
 0x391   : > { %v1255_v23 = vadd.f32 %v15980_v28, %v1218_v8  ;;  %v2605_v54 = vpop.f32.mrf.mxu0  ;;  %v15985_v8 = vld [vmem:[#allocation98_spill] sm:$0xff] }
 0x392   : > { %v2470_v57 = vadd.f32 %v2469_v9, %v2435_v37  ;;  %v15983_v9 = vld [vmem:[#allocation107_spill] sm:$0xff] }
 0x393   : > { %v1284_v37 = vadd.f32 %v15983_v9, %v1255_v23  ;;  %v2606_v9 = vadd.f32 %v2605_v54, %v13069_v32 }
 0x394   : > { %v2503_v0 = vadd.f32 %v2502_v20, %v2470_v57 }
 0x395   : > { %v2535_v6 = vpop.f32.mrf.mxu2  ;;  %v2568_v11 = vpop.f32.mrf.mxu3 }
 0x396   : > { %v2536_v1 = vadd.f32 %v2535_v6, %v2497_v48  ;;  %v15982_v6 = vld [vmem:[#allocation92_spill] sm:$0xff] }
 0x397   : > { %v1362_v56 = vadd.f32 %v15982_v6, %v1313_v40 }
 0x398   : > { %v2565_v44 = vadd.f32 %v2564_v24, %v2536_v1  ;;  %v2650_v24 = vpop.f32.mrf.mxu1  ;;  %v2598_v1 = vadd.f32 %v2597_v36, %v13069_v32 }
 0x399   : > { %v2751_v36 = vpop.f32.mrf.mxu0 }
 0x39a   : > { %v3003_v27 = vadd.f32 %v2565_v44, %v1280_v47  ;;  %v15984_v47 = vld [vmem:[#allocation108_spill] sm:$0xff]  ;;  %v1321_v44 = vadd.f32 %v15985_v8, %v13061_v2  ;;  %v2647_v20 = vadd.f32 %v2646_v38, %v2598_v1  ;;  %v15989_v1 = vld [vmem:[#allocation113_spill] sm:$0xff] }
 0x39b   : > { %v1396_v31 = vadd.f32 %v15984_v47, %v1362_v56 }
 0x39c   : > { %v11470_v50 = vmul.f32 -1.442695, %v3003_v27 }
 0x39d   : > { %v2539_v43 = vpop.f32.mrf.mxu2  ;;  %v2712_v48 = vpop.f32.mrf.mxu3 }
 0x39e   : > { %11657 = vpow2.f32 %v11470_v50  ;;  %v2540_v53 = vadd.f32 %v2539_v43, %v2503_v0  ;;  %v15986_v50 = vld [vmem:[#allocation111_spill] sm:$0xff] }
 0x39f   : > { %v1428_v43 = vadd.f32 %v15986_v50, %v1396_v31  ;;  %v15987_v0 = vld [vmem:[#allocation95_spill] sm:$0xff]  ;;  %v15991_v50 = vld [vmem:[#allocation114_spill] sm:$0xff] }
 0x3a0   : > { %v2569_v14 = vadd.f32 %v2568_v11, %v2540_v53  ;;  %v1366_v6 = vadd.f32 %v15987_v0, %v1321_v44  ;;  %v15988_v53 = vld [vmem:[#allocation102_spill] sm:$0xff]  ;;  %v2780_v38 = vpop.f32.mrf.mxu1 }
 0x3a1   : > { %v1467_v56 = vadd.f32 %v15988_v53, %v1428_v43 }
 0x3a2   : > { %v3004_v5 = vadd.f32 %v2569_v14, %v1284_v37  ;;  %v1401_v14 = vadd.f32 %v15989_v1, %v1366_v6 }
 0x3a4   : > { %v11658_v27 = vpop.eup %11657  ;;  %v11471_v57 = vmul.f32 -1.442695, %v3004_v5  ;;  %v15990_v5 = vld [vmem:[#allocation99_spill] sm:$0xff]  ;;  %v1434_v43 = vadd.f32 %v15991_v50, %v1401_v14 }
 0x3a5   : > { %v13077_v28 = vadd.f32 1.0, %v11658_v27  ;;  %v2680_v40 = vpop.f32.mrf.mxu2  ;;  %v2718_v11 = vpop.f32.mrf.mxu3  ;;  %v1496_v31 = vadd.f32 %v15990_v5, %v1467_v56  ;;  %v2651_v27 = vadd.f32 %v2650_v24, %v2606_v9  ;;  %v13102_v5 = vperm.slane %v13040_v51, 2 }
 0x3a6   : > { %11659 = vpow2.f32 %v11471_v57  ;;  %v2681_v23 = vadd.f32 %v2680_v40, %v2647_v20  ;;  %v2755_v24 = vpop.f32.mrf.mxu0 }
 0x3a7   : > { %11661 = vrcp.f32 %v13077_v28  ;;  %15996 = vst [vmem:[#allocation96_spill] sm:$0xff] %v13102_v5  ;;  %vm3018_vm8 = vweird.f32 %v13077_v28 }
 0x3a8   : > { %v2713_v37 = vadd.f32 %v2712_v48, %v2681_v23  ;;  %v13092_v48 = vperm.slane %v13035_v60, 2  ;;  %v15993_v23 = vld [vmem:[#allocation105_spill] sm:$0xff]  ;;  %v2784_v14 = vpop.f32.mrf.mxu1 }
 0x3a9   : > { %v1471_v6 = vadd.f32 %v15993_v23, %v1434_v43  ;;  %v15998_v23 = vld [vmem:[#allocation109_spill] sm:$0xff] }
 0x3aa   : > { %v2752_v47 = vadd.f32 %v2751_v36, %v2713_v37  ;;  %15992 = vst [vmem:[#allocation88_spill] sm:$0xff] %v13092_v48 }
 0x3ac   : > { %v11660_v8 = vpop.eup %11659  ;;  %v2781_v44 = vadd.f32 %v2780_v38, %v2752_v47  ;;  %v15994_v38 = vld [vmem:[#allocation115_spill] sm:$0xff] }
 0x3ad   : > { %v13086_v57 = vadd.f32 1.0, %v11660_v8  ;;  %v2685_v20 = vpop.f32.mrf.mxu2  ;;  %v13088_v40 = vpop.eup %11661  ;;  %v1529_v1 = vadd.f32 %v15994_v38, %v13092_v48  ;;  %v15995_v47 = vld [vmem:[#allocation103_spill] sm:$0xff] }
 0x3ae   : > { %v3043_v54 = vadd.f32 %v2781_v44, %v1496_v31  ;;  %v2686_v0 = vadd.f32 %v2685_v20, %v2651_v27  ;;  %v2862_v56 = vpop.f32.mrf.mxu3  ;;  %v3014_v9 = vmul.f32 %v13088_v40, %v13077_v28  ;;  %v1500_v60 = vadd.f32 %v15995_v47, %v1471_v6  ;;  %v15997_v20 = vld [vmem:[#allocation116_spill] sm:$0xff]  ;;  %v2896_v47 = vpop.f32.mrf.mxu0 }
 0x3af   : > { %11663 = vrcp.f32 %v13086_v57  ;;  %v1578_v50 = vadd.f32 %v15997_v20, %v1529_v1  ;;  %v16000_v1 = vld [vmem:[#allocation106_spill] sm:$0xff]  ;;  %vm3019_vm7 = vweird.f32 %v13088_v40  ;;  %vm3033_vm12 = vweird.f32 %v13086_v57 }
 0x3b0   : > { %v11472_v36 = vmul.f32 -1.442695, %v3043_v54  ;;  %v2719_v53 = vadd.f32 %v2718_v11, %v2686_v0  ;;  %v3015_v31 = vsub.f32 1.0, %v3014_v9  ;;  %vm13125_vm10 = vmor %vm3018_vm8, %vm3019_vm7 }
 0x3b2   : > { %11665 = vpow2.f32 %v11472_v36  ;;  %v2756_v37 = vadd.f32 %v2755_v24, %v2719_v53  ;;  %v1612_v36 = vadd.f32 %v15998_v23, %v1578_v50  ;;  %v3016_v6 = vmul.f32 %v13088_v40, %v3015_v31  ;;  %v15999_v24 = vld [vmem:[#allocation117_spill] sm:$0xff] }
 0x3b3   : > { %v1537_v9 = vadd.f32 %v15999_v24, %v13092_v48  ;;  %v3022_v50 = vand.u32 2147483647, %v13077_v28  ;;  %v16005_v24 = vld [vmem:[#allocation112_spill] sm:$0xff] }
 0x3b4   : > { %v2785_v8 = vadd.f32 %v2784_v14, %v2756_v37  ;;  %v1644_v14 = vadd.f32 %v16000_v1, %v1612_v36  ;;  %v16004_v36 = vld [vmem:[#allocation119_spill] sm:$0xff] }
 0x3b5   : > { %v2813_v11 = vpop.f32.mrf.mxu2  ;;  %v13104_v44 = vpop.eup %11663  ;;  %vm3023_vm11 = vcmp.eq.f32.partialorder %v3022_v50, 8.507059e+37 }
 0x3b6   : > { %v3044_v27 = vadd.f32 %v2785_v8, %v1500_v60  ;;  %v2814_v0 = vadd.f32 %v2813_v11, %v13102_v5  ;;  %v3029_v51 = vmul.f32 %v13104_v44, %v13086_v57  ;;  %v2866_v37 = vpop.f32.mrf.mxu3  ;;  %v3017_v8 = vadd.f32 %v13088_v40, %v3016_v6 }
 0x3b7   : > { %v3024_v11 = vand.u32 2147483648, %v13077_v28  ;;  %v1683_v6 = vadd.f32 %v16004_v36, %v1644_v14  ;;  %vm3034_vm13 = vweird.f32 %v13104_v44 }
 0x3b8   : > { %v11666_v43 = vpop.eup %11665  ;;  %v11473_v54 = vmul.f32 -1.442695, %v3044_v27  ;;  %v2863_v38 = vadd.f32 %v2862_v56, %v2814_v0  ;;  %v3030_v31 = vsub.f32 1.0, %v3029_v51  ;;  %v16001_v27 = vld [vmem:[#allocation118_spill] sm:$0xff]  ;;  %v2928_v51 = vpop.f32.mrf.mxu1  ;;  %v3021_v28 = vsel %vm13125_vm10, %v13088_v40, %v3017_v8  ;;  %vm13151_vm0 = vmor %vm3033_vm12, %vm3034_vm13 }
 0x3b9   : > { %v13109_v53 = vadd.f32 1.0, %v11666_v43  ;;  %v1582_v20 = vadd.f32 %v16001_v27, %v1537_v9 }
 0x3ba   : > { %11667 = vpow2.f32 %v11473_v54  ;;  %v2897_v54 = vadd.f32 %v2896_v47, %v2863_v38  ;;  %v3031_v38 = vmul.f32 %v13104_v44, %v3030_v31  ;;  %v2901_v31 = vpop.f32.mrf.mxu0 }
 0x3bb   : > { %11669 = vrcp.f32 %v13109_v53  ;;  %v1617_v1 = vadd.f32 %v16005_v24, %v1582_v20  ;;  %v16006_v20 = vld [vmem:[#allocation120_spill] sm:$0xff]  ;;  %vm3058_vm15 = vweird.f32 %v13109_v53 }
 0x3bc   : > { %v2929_v14 = vadd.f32 %v2928_v51, %v2897_v54  ;;  %v1712_v24 = vadd.f32 %v16006_v20, %v1683_v6  ;;  %v3064_v6 = vand.u32 2147483648, %v13109_v53 }
 0x3bd   : > { %v2821_v60 = vpop.f32.mrf.mxu2 }
 0x3be   : > { %v2822_v56 = vadd.f32 %v2821_v60, %v13102_v5  ;;  %v3025_v60 = vor.u32 1.1754944e-38, %v3024_v11  ;;  %v2996_v32 = vpop.f32.mrf.mxu3  ;;  %v3032_v11 = vadd.f32 %v13104_v44, %v3031_v38  ;;  %v3065_v20 = vor.u32 1.1754944e-38, %v3064_v6 }
 0x3c0   : > { %v11668_v43 = vpop.eup %11667  ;;  %v2867_v27 = vadd.f32 %v2866_v37, %v2822_v56  ;;  %v3026_v36 = vsel %vm3023_vm11, %v3025_v60, %v3021_v28  ;;  %v3037_v37 = vand.u32 2147483647, %v13086_v57  ;;  %v3039_v56 = vand.u32 2147483648, %v13086_v57 }
 0x3c1   : > { %v11670_v23 = vpop.eup %11669  ;;  %v13131_v48 = vadd.f32 1.0, %v11668_v43  ;;  %v16007_v43 = vld [vmem:[#allocation110_spill] sm:$0xff]  ;;  %v3083_v50 = vmul.f32 %v3026_v36, %v1712_v24 }
 0x3c2   : > { %v3054_v9 = vmul.f32 %v11670_v23, %v13109_v53  ;;  %v1650_v5 = vadd.f32 %v16007_v43, %v1617_v1  ;;  %vm3059_vm14 = vweird.f32 %v11670_v23  ;;  %v2902_v1 = vadd.f32 %v2901_v31, %v2867_v27 }
 0x3c3   : > { %11671 = vrcp.f32 %v13131_v48  ;;  %vm13157_vm1 = vmor %vm3058_vm15, %vm3059_vm14  ;;  %v3036_v27 = vsel %vm13151_vm0, %v13104_v44, %v3032_v11  ;;  %vm3038_vm3 = vcmp.eq.f32.partialorder %v3037_v37, 8.507059e+37  ;;  %vm3073_vm6 = vweird.f32 %v13131_v48 }
 0x3c4   : > { %v3055_v47 = vsub.f32 1.0, %v3054_v9  ;;  %v16010_v9 = vld [vmem:[#allocation121_spill] sm:$0xff] }
 0x3c5   : > { %v2967_v2 = vpop.f32.mrf.mxu2  ;;  %v1687_v60 = vadd.f32 %v16010_v9, %v1650_v5  ;;  %v16014_v9 = vld [vmem:[#allocation21_spill] sm:$0xff] }
 0x3c6   : > { %v2968_v40 = vadd.f32 %v2967_v2, %v2929_v14  ;;  %v3056_v8 = vmul.f32 %v11670_v23, %v3055_v47  ;;  %v3062_v2 = vand.u32 2147483647, %v13109_v53  ;;  %v2934_v53 = vpop.f32.mrf.mxu1  ;;  %v3040_v14 = vor.u32 1.1754944e-38, %v3039_v56  ;;  %v3000_v28 = vpop.f32.mrf.mxu3 }
 0x3c7   : > { %v2935_v5 = vadd.f32 %v2934_v53, %v2902_v1 }
 0x3c8   : > { %v2997_v54 = vadd.f32 %v2996_v32, %v2968_v40  ;;  %v3057_v0 = vadd.f32 %v11670_v23, %v3056_v8  ;;  %vm3063_vm4 = vcmp.eq.f32.partialorder %v3062_v2, 8.507059e+37  ;;  %v3041_v43 = vsel %vm3038_vm3, %v3040_v14, %v3036_v27  ;;  %v16013_v40 = vld [vmem:[#allocation122_spill] sm:$0xff] }
 0x3c9   : > { %v11672_v51 = vpop.eup %11671  ;;  %v1716_v8 = vadd.f32 %v16013_v40, %v1687_v60  ;;  %v16018_v40 = vld [vmem:[#allocation28_spill] sm:$0xff] }
 0x3ca   : > { %v3069_v38 = vmul.f32 %v11672_v51, %v13131_v48  ;;  %v3085_v47 = vadd.f32 %v3083_v50, %v2997_v54  ;;  %v3061_v57 = vsel %vm13157_vm1, %v11670_v23, %v3057_v0  ;;  %vm3074_vm5 = vweird.f32 %v11672_v51 }
 0x3cb   : > { %v3066_v31 = vsel %vm3063_vm4, %v3065_v20, %v3061_v57  ;;  %v3079_v23 = vand.u32 2147483648, %v13131_v48  ;;  %v3084_v37 = vmul.f32 %v3041_v43, %v1716_v8  ;;  %v3077_v0 = vand.u32 2147483647, %v13131_v48  ;;  %vm3075_vm7 = vmor %vm3073_vm6, %vm3074_vm5 }
 0x3cc   : > { %v3070_v36 = vsub.f32 1.0, %v3069_v38  ;;  %11673 = vtanh.f32 %v3085_v47  ;;  %v3089_v56 = vsub.f32 1.0, %v3066_v31  ;;  %v3093_v60 = vmul.f32 %v3066_v31, %v16014_v9  ;;  %v16025_v9 = vld [vmem:[#allocation51_spill] sm:$0xff] }
 0x3cd   : > { %v2971_v24 = vpop.f32.mrf.mxu2  ;;  %v3080_v32 = vor.u32 1.1754944e-38, %v3079_v23  ;;  %vm3078_vm8 = vcmp.eq.f32.partialorder %v3077_v0, 8.507059e+37  ;;  %v16021_v23 = vld [vmem:[#allocation34_spill] sm:$0xff] }
 0x3ce   : > { %v2972_v50 = vadd.f32 %v2971_v24, %v2935_v5  ;;  %v3071_v54 = vmul.f32 %v11672_v51, %v3070_v36 }
 0x3d0   : > { %v3001_v44 = vadd.f32 %v3000_v28, %v2972_v50  ;;  %v3072_v11 = vadd.f32 %v11672_v51, %v3071_v54  ;;  %v16019_v50 = vld [vmem:[#allocation29_spill] sm:$0xff] }
 0x3d2   : > { %v11674_v6 = vpop.eup %11673  ;;  %v3086_v1 = vadd.f32 %v3084_v37, %v3001_v44  ;;  %v3076_v38 = vsel %vm3075_vm7, %v11672_v51, %v3072_v11  ;;  %v16016_v51 = vld [vmem:[#allocation23_spill] sm:$0xff]  ;;  %v16020_v44 = vld [vmem:[#allocation32_spill] sm:$0xff] }
 0x3d3   : > { %v3091_v2 = vmul.f32 %v11674_v6, %v3089_v56  ;;  %v3081_v27 = vsel %vm3078_vm8, %v3080_v32, %v3076_v38  ;;  %v16022_v56 = vld [vmem:[#allocation24_spill] sm:$0xff]  ;;  %v16023_v6 = vld [vmem:[#allocation26_spill] sm:$0xff]  ;;  %v16027_v38 = vld [vmem:[#allocation41_spill] sm:$0xff] }
 0x3d4   : > { %11675 = vtanh.f32 %v3086_v1  ;;  %v3090_v14 = vsub.f32 1.0, %v3081_v27  ;;  %v3094_v5 = vmul.f32 %v3081_v27, %v16016_v51  ;;  %v16028_v27 = vld [vmem:[#allocation52_spill] sm:$0xff]  ;;  %v16032_v51 = vld [vmem:[#allocation46_spill] sm:$0xff] }
 0x3d5   : > { %v13171_v47 = vadd.f32 %v3093_v60, %v3091_v2  ;;  %v16024_v2 = vld [vmem:[#allocation30_spill] sm:$0xff]  ;;  %v16026_v60 = vld [vmem:[#allocation33_spill] sm:$0xff] }
 0x3d7   : > { %16015 = vst [vmem:[#allocation86_spill] sm:$0xff] %v13171_v47  ;;  %v3098_v53 = vsel %vm655_vm2, %v13171_v47, 0 }
 0x3d8   : > { %v13175_v57 = vand.u32 4294901760, %v3098_v53 }
 0x3da   : > { %v11676_v48 = vpop.eup %11675  ;;  %3177 = vmatmul.f32.vlgmr.msrb.gmra.mxu1 %v13175_v57  ;;  %v13179_v36 = vsub.f32 %v3098_v53, %v13175_v57  ;;  %v16029_v53 = vld [vmem:[#allocation43_spill] sm:$0xff] }
 0x3db   : > { %v3092_v20 = vmul.f32 %v11676_v48, %v3090_v14  ;;  %3449 = vmatpush.msrb.mxu1 %v15962_v26  ;;  %v16030_v14 = vld [vmem:[#allocation38_spill] sm:$0xff]  ;;  %v3767_v48 = vand.u32 4294901760, %v13171_v47 }
 0x3dc   : > { %3211 = vmatmul.f32.vlgmr.msrb.gmra.mxu2 %v13179_v36  ;;  %v13185_v24 = vand.u32 4294901760, %v13179_v36 }
 0x3dd   : > { %v13187_v43 = vadd.f32 %v3094_v5, %v3092_v20  ;;  %3484 = vmatpush.msrb.mxu2 %v16018_v40  ;;  %3451 = vmatpush.msrb.mxu1 %v15963_v41  ;;  %v16031_v20 = vld [vmem:[#allocation53_spill] sm:$0xff]  ;;  %v16033_v5 = vld [vmem:[#allocation40_spill] sm:$0xff] }
 0x3de   : > { %3243 = vmatmul.f32.vlgmr.msrb.gmra.mxu3 %v13185_v24  ;;  %v3126_v8 = vsub.f32 %v13179_v36, %v13185_v24 }
 0x3df   : > { %16017 = vst [vmem:[#allocation97_spill] sm:$0xff] %v13187_v43  ;;  %v3101_v31 = vsel %vm655_vm2, %v13187_v43, 0  ;;  %3488 = vmatpush.msrb.mxu2 %v16019_v50  ;;  %3519 = vmatpush.msrb.mxu3 %v15962_v26  ;;  %v3765_v32 = vand.u32 4294901760, %v13187_v43 }
 0x3e0   : > { %v13198_v54 = vand.u32 4294901760, %v3101_v31  ;;  %v13200_v28 = vand.u32 4294901760, %v3126_v8  ;;  %3453 = vmatpush.msrb.mxu1 %v15964_v63 }
 0x3e1   : > { %3492 = vmatpush.msrb.mxu2 %v16020_v44  ;;  %3521 = vmatpush.msrb.mxu3 %v15963_v41  ;;  %v3849_v8 = vsub.f32 %v13187_v43, %v3765_v32 }
 0x3e2   : > { %3128 = vmatmul.f32.vlgmr.msrb.gmra.mxu0 %v13200_v28  ;;  %3181 = vmatmul.f32.gmra.mxu1 %v13198_v54  ;;  %v13208_v11 = vsub.f32 %v3101_v31, %v13198_v54  ;;  %v16034_v31 = vld [vmem:[#allocation48_spill] sm:$0xff] }
 0x3e3   : > { %3496 = vmatpush.msrb.mxu2 %v16021_v23  ;;  %3523 = vmatpush.msrb.mxu3 %v15964_v63 }
 0x3e4   : > { %3216 = vmatmul.f32.gmra.mxu2 %v13208_v11  ;;  %v13214_v37 = vand.u32 4294901760, %v13208_v11  ;;  %3455 = vmatpush.msrb.mxu1 %v15965_v25 }
 0x3e5   : > { %3525 = vmatpush.msrb.mxu3 %v15965_v25  ;;  %3415 = vmatpush.msrb.mxu0 %v16022_v56 }
 0x3e6   : > { %3249 = vmatmul.f32.gmra.mxu3 %v13214_v37  ;;  %v3134_v0 = vsub.f32 %v13208_v11, %v13214_v37 }
 0x3e7   : > { %3418 = vmatpush.msrb.mxu0 %v16023_v6 }
 0x3e8   : > { %v13223_v1 = vand.u32 4294901760, %v3134_v0  ;;  %v16035_v0 = vld [vmem:[#allocation42_spill] sm:$0xff] }
 0x3e9   : > { %3421 = vmatpush.msrb.mxu0 %v16024_v2 }
 0x3ea   : > { %3136 = vmatmul.f32.gmra.mxu0 %v13223_v1  ;;  %3311 = vmatmul.f32.vlgmr.msra.gmra.mxu1 %v13175_v57 }
 0x3eb   : > { %3589 = vmatpush.msra.mxu1 %v16025_v9  ;;  %3424 = vmatpush.msrb.mxu0 %v16026_v60 }
 0x3ec   : > { %3344 = vmatmul.f32.vlgmr.msra.gmra.mxu2 %v13200_v28 }
 0x3ed   : > { %3631 = vmatpush.msra.mxu2 %v16027_v38  ;;  %3595 = vmatpush.msra.mxu1 %v16028_v27  ;;  %v16036_v27 = vld [vmem:[#allocation54_spill] sm:$0xff] }
 0x3ee   : > { %3393 = vmatmul.f32.vlgmr.msra.gmra.mxu3 %v13175_v57 }
 0x3ef   : > { %3634 = vmatpush.msra.mxu2 %v16029_v53  ;;  %3665 = vmatpush.msra.mxu3 %v16030_v14  ;;  %v3855_v53 = vsub.f32 %v13171_v47, %v3767_v48 }
 0x3f0   : > { %3601 = vmatpush.msra.mxu1 %v16031_v20  ;;  %v16037_v20 = vld [vmem:[#allocation44_spill] sm:$0xff] }
 0x3f1   : > { %3637 = vmatpush.msra.mxu2 %v16032_v51  ;;  %3667 = vmatpush.msra.mxu3 %v16033_v5  ;;  %v3850_v51 = vand.u32 4294901760, %v3849_v8  ;;  %v3856_v38 = vand.u32 4294901760, %v3855_v53 }
 0x3f2   : > { %3282 = vmatmul.f32.vlgmr.msra.gmra.mxu0 %v13175_v57  ;;  %3315 = vmatmul.f32.gmra.mxu1 %v13198_v54 }
 0x3f3   : > { %3640 = vmatpush.msra.mxu2 %v16034_v31  ;;  %3669 = vmatpush.msra.mxu3 %v16035_v0  ;;  %v3851_v60 = vsub.f32 %v3849_v8, %v3850_v51  ;;  %v3857_v31 = vsub.f32 %v3855_v53, %v3856_v38 }
 0x3f4   : > { %3352 = vmatmul.f32.gmra.mxu2 %v13223_v1  ;;  %3607 = vmatpush.msra.mxu1 %v16036_v27 }
 0x3f5   : > { %3671 = vmatpush.msra.mxu3 %v16037_v20  ;;  %3548 = vmatpush.msra.mxu0 %v16030_v14  ;;  %v3852_v27 = vand.u32 4294901760, %v3851_v60  ;;  %v3858_v9 = vand.u32 4294901760, %v3857_v31  ;;  %v16039_v60 = vld [vmem:[#allocation47_spill] sm:$0xff]  ;;  %v16057_v31 = vld [vmem:[#allocation68_spill] sm:$0xff] }
 0x3f6   : > { %3397 = vmatmul.f32.gmra.mxu3 %v13198_v54 }
 0x3f7   : > { %3550 = vmatpush.msra.mxu0 %v16033_v5 }
 0x3f9   : > { %3552 = vmatpush.msra.mxu0 %v16035_v0 }
 0x3fa   : > { %3286 = vmatmul.f32.gmra.mxu0 %v13198_v54  ;;  %3459 = vmatmul.f32.vlgmr.msrb.gmra.mxu1 %v13185_v24 }
 0x3fb   : > { %3735 = vmatpush.msrb.mxu1 %v16030_v14  ;;  %3554 = vmatpush.msra.mxu0 %v16037_v20  ;;  %v16038_v14 = vld [vmem:[#allocation45_spill] sm:$0xff] }
 0x3fc   : > { %3498 = vmatmul.f32.vlgmr.msrb.gmra.mxu2 %v13175_v57 }
 0x3fd   : > { %3766 = vmatpush.msrb.mxu2 %v3765_v32  ;;  %3737 = vmatpush.msrb.mxu1 %v16033_v5  ;;  %v16040_v5 = vld [vmem:[#allocation49_spill] sm:$0xff] }
 0x3fe   : > { %3527 = vmatmul.f32.vlgmr.msrb.gmra.mxu3 %v13175_v57 }
 0x3ff   : > { %3768 = vmatpush.msrb.mxu2 %v3767_v48  ;;  %3853 = vmatpush.msrb.mxu3 %v3852_v27  ;;  %v16041_v27 = vld [vmem:[#allocation50_spill] sm:$0xff] }
 0x400   : > { %3739 = vmatpush.msrb.mxu1 %v16035_v0 }
 0x401   : > { %3859 = vmatpush.msrb.mxu3 %v3858_v9  ;;  %v16049_v9 = vld [vmem:[#allocation62_spill] sm:$0xff] }
 0x402   : > { %3427 = vmatmul.f32.vlgmr.msrb.gmra.mxu0 %v13179_v36  ;;  %3465 = vmatmul.f32.gmra.mxu1 %v13214_v37 }
 0x403   : > { %3741 = vmatpush.msrb.mxu1 %v16037_v20  ;;  %3700 = vmatpush.msrb.mxu0 %v16038_v14 }
 0x404   : > { %3502 = vmatmul.f32.gmra.mxu2 %v13198_v54 }
 0x405   : > { %3704 = vmatpush.msrb.mxu0 %v16039_v60 }
 0x406   : > { %3531 = vmatmul.f32.gmra.mxu3 %v13198_v54 }
 0x407   : > { %3708 = vmatpush.msrb.mxu0 %v16040_v5 }
 0x409   : > { %3712 = vmatpush.msrb.mxu0 %v16041_v27 }
 0x40a   : > { %3432 = vmatmul.f32.gmra.mxu0 %v13208_v11  ;;  %3609 = vmatmul.f32.vlgmr.msra.gmra.mxu1 %v13175_v57 }
 0x40b   : > { %3969 = vmatpush.msra.mxu1 %v3765_v32 }
 0x40c   : > { %3643 = vmatmul.f32.vlgmr.msra.gmra.mxu2 %v13179_v36  ;;  %v16042_v36 = vld [vmem:[#allocation66_spill] sm:$0xff] }
 0x40d   : > { %3971 = vmatpush.msra.mxu1 %v3767_v48  ;;  %4038 = vmatpush.msra.mxu2 %v3850_v51  ;;  %v16054_v51 = vld [vmem:[#allocation70_spill] sm:$0xff] }
 0x40e   : > { %3675 = vmatmul.f32.vlgmr.msra.gmra.mxu3 %v13185_v24  ;;  %v16043_v24 = vld [vmem:[#allocation55_spill] sm:$0xff] }
 0x40f   : > { %4042 = vmatpush.msra.mxu2 %v3856_v38  ;;  %4091 = vmatpush.msra.mxu3 %v3765_v32  ;;  %v16050_v38 = vld [vmem:[#allocation67_spill] sm:$0xff] }
 0x410   : > { %v16051_v32 = vld [vmem:[#allocation75_spill] sm:$0xff] }
 0x411   : > { %4093 = vmatpush.msra.mxu3 %v3767_v48  ;;  %v16053_v48 = vld [vmem:[#allocation65_spill] sm:$0xff] }
 0x412   : > { %3560 = vmatmul.f32.vlgmr.msra.gmra.mxu0 %v13200_v28  ;;  %3613 = vmatmul.f32.gmra.mxu1 %v13198_v54  ;;  %v16044_v28 = vld [vmem:[#allocation69_spill] sm:$0xff] }
 0x413   : > { %3909 = vmatpush.msra.mxu0 %v3849_v8  ;;  %v16056_v8 = vld [vmem:[#allocation61_spill] sm:$0xff] }
 0x414   : > { %3648 = vmatmul.f32.gmra.mxu2 %v13208_v11  ;;  %v16045_v11 = vld [vmem:[#allocation56_spill] sm:$0xff] }
 0x415   : > { %3912 = vmatpush.msra.mxu0 %v3855_v53  ;;  %v16052_v53 = vld [vmem:[#allocation59_spill] sm:$0xff] }
 0x416   : > { %3681 = vmatmul.f32.gmra.mxu3 %v13214_v37  ;;  %v16046_v37 = vld [vmem:[#allocation64_spill] sm:$0xff] }
 0x41a   : > { %3568 = vmatmul.f32.gmra.mxu0 %v13223_v1  ;;  %3743 = vmatmul.f32.vlgmr.msrb.gmra.mxu1 %v13175_v57  ;;  %v16047_v1 = vld [vmem:[#allocation72_spill] sm:$0xff] }
 0x41c   : > { %3774 = vmatmul.f32.vlgmr.msrb.gmra.mxu2 %v16042_v36 }
 0x41d   : > { %4453 = vmatpush.msrb.mxu2 %v12688_v34 }
 0x41e   : > { %11474 = vmatmul.msk.f32.vlgmr.msrb.gmra.mxu3 %vm1718_vm9, %v16043_v24 }
 0x41f   : > { %4456 = vmatpush.msrb.mxu2 %v12701_v59  ;;  %4487 = vmatpush.msrb.mxu3 %v12682_v29 }
 0x421   : > { %4459 = vmatpush.msrb.mxu2 %v12717_v42  ;;  %4489 = vmatpush.msrb.mxu3 %v12690_v35 }
 0x422   : > { %3714 = vmatmul.f32.vlgmr.msrb.gmra.mxu0 %v13175_v57  ;;  %3747 = vmatmul.f32.gmra.mxu1 %v13198_v54  ;;  %v16048_v57 = vld [vmem:[#allocation58_spill] sm:$0xff] }
 0x423   : > { %4462 = vmatpush.msrb.mxu2 %v12738_v18  ;;  %4491 = vmatpush.msrb.mxu3 %v12704_v3  ;;  %v16070_v18 = vld [vmem:[#allocation82_spill] sm:$0xff] }
 0x424   : > { %3782 = vmatmul.f32.gmra.mxu2 %v16044_v28  ;;  %v16066_v28 = vld [vmem:[#allocation79_spill] sm:$0xff] }
 0x425   : > { %4493 = vmatpush.msrb.mxu3 %v12720_v45 }
 0x426   : > { %11475 = vmatmul.msk.f32.gmra.mxu3 %vm1718_vm9, %v16045_v11 }
 0x42a   : > { %3718 = vmatmul.f32.gmra.mxu0 %v13198_v54  ;;  %3975 = vmatmul.f32.vlgmr.msra.gmra.mxu1 %v16046_v37  ;;  %v16055_v54 = vld [vmem:[#allocation78_spill] sm:$0xff]  ;;  %v16062_v37 = vld [vmem:[#allocation76_spill] sm:$0xff] }
 0x42c   : > { %3790 = vmatmul.f32.gmra.mxu2 %v16047_v1  ;;  %v16058_v1 = vld [vmem:[#allocation73_spill] sm:$0xff] }
 0x42e   : > { %11476 = vmatmul.msk.f32.gmra.mxu3 %vm1718_vm9, %v16048_v57 }
 0x432   : > { %3915 = vmatmul.f32.vlgmr.msra.gmra.mxu0 %v16049_v9  ;;  %3981 = vmatmul.f32.gmra.mxu1 %v16050_v38  ;;  %v16059_v9 = vld [vmem:[#allocation81_spill] sm:$0xff]  ;;  %v16060_v38 = vld [vmem:[#allocation63_spill] sm:$0xff] }
 0x434   : > { %3798 = vmatmul.f32.gmra.mxu2 %v16051_v32  ;;  %v16061_v32 = vld [vmem:[#allocation71_spill] sm:$0xff] }
 0x436   : > { %11477 = vmatmul.msk.f32.gmra.mxu3 %vm1718_vm9, %v16052_v53 }
 0x43a   : > { %3920 = vmatmul.f32.gmra.mxu0 %v16053_v48  ;;  %3987 = vmatmul.f32.gmra.mxu1 %v16054_v51  ;;  %v16063_v48 = vld [vmem:[#allocation84_spill] sm:$0xff]  ;;  %v16064_v51 = vld [vmem:[#allocation57_spill] sm:$0xff] }
 0x43c   : > { %3806 = vmatmul.f32.gmra.mxu2 %v16055_v54  ;;  %v16065_v54 = vld [vmem:[#allocation74_spill] sm:$0xff] }
 0x43e   : > { %11478 = vmatmul.msk.f32.gmra.mxu3 %vm1718_vm9, %v16056_v8 }
 0x442   : > { %3925 = vmatmul.f32.gmra.mxu0 %v16057_v31  ;;  %3993 = vmatmul.f32.gmra.mxu1 %v16058_v1  ;;  %v16067_v31 = vld [vmem:[#allocation87_spill] sm:$0xff]  ;;  %v16068_v1 = vld [vmem:[#allocation60_spill] sm:$0xff] }
 0x444   : > { %3814 = vmatmul.f32.gmra.mxu2 %v16059_v9  ;;  %v16069_v9 = vld [vmem:[#allocation77_spill] sm:$0xff] }
 0x446   : > { %11479 = vmatmul.msk.f32.gmra.mxu3 %vm1718_vm9, %v16060_v38 }
 0x44a   : > { %3930 = vmatmul.f32.gmra.mxu0 %v16061_v32  ;;  %3999 = vmatmul.f32.gmra.mxu1 %v16062_v37 }
 0x44c   : > { %3822 = vmatmul.f32.gmra.mxu2 %v16063_v48 }
 0x44e   : > { %11480 = vmatmul.msk.f32.gmra.mxu3 %vm1718_vm9, %v16064_v51 }
 0x452   : > { %3935 = vmatmul.f32.gmra.mxu0 %v16065_v54  ;;  %4005 = vmatmul.f32.gmra.mxu1 %v16066_v28 }
 0x454   : > { %3830 = vmatmul.f32.gmra.mxu2 %v16067_v31 }
 0x456   : > { %11481 = vmatmul.msk.f32.gmra.mxu3 %vm1718_vm9, %v16068_v1 }
 0x45a   : > { %3940 = vmatmul.f32.gmra.mxu0 %v16069_v9  ;;  %4011 = vmatmul.f32.gmra.mxu1 %v16070_v18  ;;  %v16073_v18 = vld [vmem:[#allocation80_spill] sm:$0xff]  ;;  %v16074_v9 = vld [vmem:[#allocation85_spill] sm:$0xff] }
 0x45c   : > { %11482 = vmatmul.msk.f32.vlgmr.msra.gmra.mxu2 %vm1718_vm9, %v16043_v24 }
 0x45d   : > { %4586 = vmatpush.msra.mxu2 %v12768_v49 }
 0x45e   : > { %11490 = vmatmul.msk.f32.vlgmr.msra.gmra.mxu3 %vm1718_vm9, %v16043_v24 }
 0x45f   : > { %4588 = vmatpush.msra.mxu2 %v12775_v52  ;;  %4627 = vmatpush.msra.mxu3 %v12807_v7  ;;  %v13336_v31 = vpop.f32.mrf.mxu2  ;;  %v13348_v7 = vpop.f32.mrf.mxu0 }
 0x460   : > { %16071 = vst [vmem:[#allocation100_spill] sm:$0xff] %v13336_v31 }
 0x461   : > { %v13338_v28 = vpop.f32.mrf.mxu3  ;;  %4590 = vmatpush.msra.mxu2 %v12788_v62  ;;  %4633 = vmatpush.msra.mxu3 %v12819_v30  ;;  %16075 = vst [vmem:[#allocation101_spill] sm:$0xff] %v13348_v7 }
 0x462   : > { %16072 = vst [vmem:[#allocation91_spill] sm:$0xff] %v13338_v28  ;;  %3945 = vmatmul.f32.gmra.mxu0 %v16073_v18  ;;  %4017 = vmatmul.f32.gmra.mxu1 %v16074_v9  ;;  %v16078_v18 = vld [vmem:[#allocation83_spill] sm:$0xff]  ;;  %v13358_v9 = vpop.f32.mrf.mxu1 }
 0x463   : > { %4592 = vmatpush.msra.mxu2 %v12802_v13  ;;  %4639 = vmatpush.msra.mxu3 %v12827_v58  ;;  %16079 = vst [vmem:[#allocation104_spill] sm:$0xff] %v13358_v9 }
 0x464   : > { %11483 = vmatmul.msk.f32.gmra.mxu2 %vm1718_vm9, %v16045_v11 }
 0x465   : > { %4645 = vmatpush.msra.mxu3 %v12834_v4 }
 0x466   : > { %11491 = vmatmul.msk.f32.gmra.mxu3 %vm1718_vm9, %v16045_v11 }
 0x467   : > { %v13353_v54 = vpop.f32.mrf.mxu2  ;;  %v13364_v58 = vpop.f32.mrf.mxu0 }
 0x468   : > { %16076 = vst [vmem:[#allocation89_spill] sm:$0xff] %v13353_v54 }
 0x469   : > { %v13355_v30 = vpop.f32.mrf.mxu3  ;;  %16080 = vst [vmem:[#allocation92_spill] sm:$0xff] %v13364_v58 }
 0x46a   : > { %16077 = vst [vmem:[#allocation94_spill] sm:$0xff] %v13355_v30  ;;  %3950 = vmatmul.f32.gmra.mxu0 %v16078_v18  ;;  %v13372_v37 = vpop.f32.mrf.mxu1 }
 0x46b   : > { %16083 = vst [vmem:[#allocation98_spill] sm:$0xff] %v13372_v37 }
 0x46c   : > { %11484 = vmatmul.msk.f32.gmra.mxu2 %vm1718_vm9, %v16048_v57 }
 0x46e   : > { %11492 = vmatmul.msk.f32.gmra.mxu3 %vm1718_vm9, %v16048_v57 }
 0x46f   : > { %v13366_v4 = vpop.f32.mrf.mxu2  ;;  %v13378_v32 = vpop.f32.mrf.mxu0 }
 0x470   : > { %16081 = vst [vmem:[#allocation107_spill] sm:$0xff] %v13366_v4 }
 0x471   : > { %v13368_v48 = vpop.f32.mrf.mxu3  ;;  %16085 = vst [vmem:[#allocation95_spill] sm:$0xff] %v13378_v32 }
 0x472   : > { %16082 = vst [vmem:[#allocation108_spill] sm:$0xff] %v13368_v48  ;;  %v13386_v57 = vpop.f32.mrf.mxu1 }
 0x473   : > { %16087 = vst [vmem:[#allocation113_spill] sm:$0xff] %v13386_v57 }
 0x474   : > { %11485 = vmatmul.msk.f32.gmra.mxu2 %vm1718_vm9, %v16052_v53 }
 0x476   : > { %11493 = vmatmul.msk.f32.gmra.mxu3 %vm1718_vm9, %v16052_v53 }
 0x477   : > { %v13376_v18 = vpop.f32.mrf.mxu2  ;;  %v13392_v24 = vpop.f32.mrf.mxu0 }
 0x478   : > { %16084 = vst [vmem:[#allocation111_spill] sm:$0xff] %v13376_v18 }
 0x479   : > { %v13380_v11 = vpop.f32.mrf.mxu3  ;;  %16090 = vst [vmem:[#allocation105_spill] sm:$0xff] %v13392_v24 }
 0x47a   : > { %16086 = vst [vmem:[#allocation102_spill] sm:$0xff] %v13380_v11  ;;  %v13402_v36 = vpop.f32.mrf.mxu1 }
 0x47b   : > { %16093 = vst [vmem:[#allocation116_spill] sm:$0xff] %v13402_v36 }
 0x47c   : > { %11486 = vmatmul.msk.f32.gmra.mxu2 %vm1718_vm9, %v16056_v8 }
 0x47e   : > { %11494 = vmatmul.msk.f32.gmra.mxu3 %vm1718_vm9, %v16056_v8 }
 0x47f   : > { %v13388_v42 = vpop.f32.mrf.mxu2  ;;  %v13406_v8 = vpop.f32.mrf.mxu0 }
 0x480   : > { %16088 = vst [vmem:[#allocation99_spill] sm:$0xff] %v13388_v42 }
 0x481   : > { %v13390_v59 = vpop.f32.mrf.mxu3  ;;  %16094 = vst [vmem:[#allocation109_spill] sm:$0xff] %v13406_v8 }
 0x482   : > { %16089 = vst [vmem:[#allocation114_spill] sm:$0xff] %v13390_v59  ;;  %v13414_v60 = vpop.f32.mrf.mxu1 }
 0x483   : > { %16097 = vst [vmem:[#allocation118_spill] sm:$0xff] %v13414_v60 }
 0x484   : > { %11487 = vmatmul.msk.f32.gmra.mxu2 %vm1718_vm9, %v16060_v38 }
 0x486   : > { %11495 = vmatmul.msk.f32.gmra.mxu3 %vm1718_vm9, %v16060_v38 }
 0x487   : > { %v13398_v53 = vpop.f32.mrf.mxu2  ;;  %v13420_v38 = vpop.f32.mrf.mxu0 }
 0x488   : > { %16091 = vst [vmem:[#allocation115_spill] sm:$0xff] %v13398_v53 }
 0x489   : > { %v13400_v34 = vpop.f32.mrf.mxu3  ;;  %16098 = vst [vmem:[#allocation119_spill] sm:$0xff] %v13420_v38 }
 0x48a   : > { %16092 = vst [vmem:[#allocation103_spill] sm:$0xff] %v13400_v34  ;;  %v13426_v0 = vpop.f32.mrf.mxu1 }
 0x48b   : > { %16101 = vst [vmem:[#allocation110_spill] sm:$0xff] %v13426_v0 }
 0x48c   : > { %11488 = vmatmul.msk.f32.gmra.mxu2 %vm1718_vm9, %v16064_v51 }
 0x48e   : > { %11496 = vmatmul.msk.f32.gmra.mxu3 %vm1718_vm9, %v16064_v51 }
 0x48f   : > { %v13410_v27 = vpop.f32.mrf.mxu2  ;;  %v13428_v2 = vpop.f32.mrf.mxu0 }
 0x490   : > { %16095 = vst [vmem:[#allocation117_spill] sm:$0xff] %v13410_v27 }
 0x491   : > { %v13412_v5 = vpop.f32.mrf.mxu3  ;;  %16102 = vst [vmem:[#allocation121_spill] sm:$0xff] %v13428_v2 }
 0x492   : > { %16096 = vst [vmem:[#allocation106_spill] sm:$0xff] %v13412_v5  ;;  %v13430_v56 = vpop.f32.mrf.mxu1 }
 0x493   : > { %16103 = vst [vmem:[#allocation122_spill] sm:$0xff] %v13430_v56 }
 0x494   : > { %11489 = vmatmul.msk.f32.gmra.mxu2 %vm1718_vm9, %v16068_v1 }
 0x496   : > { %11497 = vmatmul.msk.f32.gmra.mxu3 %vm1718_vm9, %v16068_v1 }
 0x497   : > { %v13422_v14 = vpop.f32.mrf.mxu2  ;;  %v13432_v50 = vpop.f32.mrf.mxu0 }
 0x498   : > { %16099 = vst [vmem:[#allocation112_spill] sm:$0xff] %v13422_v14 }
 0x499   : > { %v13424_v20 = vpop.f32.mrf.mxu3  ;;  %16104 = vst [vmem:[#allocation21_spill] sm:$0xff] %v13432_v50 }
 0x49a   : > { %16100 = vst [vmem:[#allocation120_spill] sm:$0xff] %v13424_v20  ;;  %v13434_v43 = vpop.f32.mrf.mxu1 }
 0x49b   : > { %16105 = vst [vmem:[#allocation23_spill] sm:$0xff] %v13434_v43 }
 0x49f   : > { %v3775_v51 = vpop.f32.mrf.mxu2  ;;  %v13436_v47 = vpop.f32.mrf.mxu0 }
 0x4a0   : > { %16106 = vst [vmem:[#allocation175_spill] sm:$0xff] %v13436_v47 }
 0x4a1   : > { %v3862_v6 = vpop.f32.mrf.mxu3 }
 0x4a2   : > { %v13438_v5 = vpop.f32.mrf.mxu1  ;;  %v3863_v13 = vadd.f32 %v3862_v6, %v3775_v51 }
 0x4a3   : > { %16107 = vst [vmem:[#allocation176_spill] sm:$0xff] %v13438_v5 }
 0x4a7   : > { %v3783_v23 = vpop.f32.mrf.mxu2  ;;  %v13440_v27 = vpop.f32.mrf.mxu0 }
 0x4a8   : > { %16108 = vst [vmem:[#allocation177_spill] sm:$0xff] %v13440_v27 }
 0x4a9   : > { %v3866_v44 = vpop.f32.mrf.mxu3 }
 0x4aa   : > { %v13442_v53 = vpop.f32.mrf.mxu1  ;;  %v3867_v25 = vadd.f32 %v3866_v44, %v3783_v23 }
 0x4ab   : > { %16109 = vst [vmem:[#allocation178_spill] sm:$0xff] %v13442_v53 }
 0x4af   : > { %v3791_v40 = vpop.f32.mrf.mxu2  ;;  %v3916_v0 = vpop.f32.mrf.mxu0 }
 0x4b0   : > { %v3917_v33 = vadd.f32 %v3916_v0, %v3863_v13 }
 0x4b1   : > { %v3870_v1 = vpop.f32.mrf.mxu3 }
 0x4b2   : > { %v3976_v50 = vpop.f32.mrf.mxu1  ;;  %v3871_v63 = vadd.f32 %v3870_v1, %v3791_v40 }
 0x4b3   : > { %v3977_v44 = vadd.f32 %v3976_v50, %v3917_v33 }
 0x4b7   : > { %v3799_v14 = vpop.f32.mrf.mxu2  ;;  %v3921_v11 = vpop.f32.mrf.mxu0 }
 0x4b8   : > { %v3922_v52 = vadd.f32 %v3921_v11, %v3867_v25 }
 0x4b9   : > { %v3874_v20 = vpop.f32.mrf.mxu3 }
 0x4ba   : > { %v3982_v47 = vpop.f32.mrf.mxu1 }
 0x4bb   : > { %v3983_v45 = vadd.f32 %v3982_v47, %v3922_v52 }
 0x4bf   : > { %v3807_v34 = vpop.f32.mrf.mxu2  ;;  %v3926_v18 = vpop.f32.mrf.mxu0 }
 0x4c0   : > { %v3927_v49 = vadd.f32 %v3926_v18, %v3871_v63 }
 0x4c1   : > { %v3878_v2 = vpop.f32.mrf.mxu3 }
 0x4c2   : > { %v3988_v5 = vpop.f32.mrf.mxu1  ;;  %v3879_v41 = vadd.f32 %v3878_v2, %v3807_v34 }
 0x4c3   : > { %v3989_v3 = vadd.f32 %v3988_v5, %v3927_v49 }
 0x4c7   : > { %v3815_v56 = vpop.f32.mrf.mxu2  ;;  %v3931_v48 = vpop.f32.mrf.mxu0 }
 0x4c9   : > { %v3882_v59 = vpop.f32.mrf.mxu3 }
 0x4ca   : > { %v3994_v30 = vpop.f32.mrf.mxu1  ;;  %v3883_v7 = vadd.f32 %v3882_v59, %v3815_v56  ;;  %v3875_v56 = vadd.f32 %v3874_v20, %v3799_v14 }
 0x4cf   : > { %v3823_v38 = vpop.f32.mrf.mxu2  ;;  %v3936_v53 = vpop.f32.mrf.mxu0 }
 0x4d0   : > { %v3937_v10 = vadd.f32 %v3936_v53, %v3879_v41  ;;  %v3932_v41 = vadd.f32 %v3931_v48, %v3875_v56  ;;  %v16111_v56 = vld [vmem:[#allocation130_spill] sm:$0xff] }
 0x4d1   : > { %v3886_v42 = vpop.f32.mrf.mxu3 }
 0x4d2   : > { %v4000_v54 = vpop.f32.mrf.mxu1  ;;  %v3887_v12 = vadd.f32 %v3886_v42, %v3823_v38 }
 0x4d3   : > { %v4001_v35 = vadd.f32 %v4000_v54, %v3937_v10 }
 0x4d7   : > { %v3831_v43 = vpop.f32.mrf.mxu2  ;;  %v3941_v28 = vpop.f32.mrf.mxu0 }
 0x4d8   : > { %v3942_v26 = vadd.f32 %v3941_v28, %v3883_v7 }
 0x4d9   : > { %v3890_v60 = vpop.f32.mrf.mxu3 }
 0x4da   : > { %v4006_v9 = vpop.f32.mrf.mxu1  ;;  %v3891_v25 = vadd.f32 %v3890_v60, %v3831_v43 }
 0x4db   : > { %v4007_v46 = vadd.f32 %v4006_v9, %v3942_v26 }
 0x4df   : > { %v4045_v36 = vpop.f32.mrf.mxu2  ;;  %v3946_v19 = vpop.f32.mrf.mxu0 }
 0x4e0   : > { %v3947_v61 = vadd.f32 %v3946_v19, %v3887_v12  ;;  %v4046_v42 = vadd.f32 %v4045_v36, %v3977_v44  ;;  %v16112_v44 = vld [vmem:[#allocation133_spill] sm:$0xff] }
 0x4e1   : > { %v4096_v8 = vpop.f32.mrf.mxu3 }
 0x4e2   : > { %v4012_v21 = vpop.f32.mrf.mxu1 }
 0x4e3   : > { %v4013_v6 = vadd.f32 %v4012_v21, %v3947_v61 }
 0x4e7   : > { %v4049_v27 = vpop.f32.mrf.mxu2  ;;  %v3951_v40 = vpop.f32.mrf.mxu0 }
 0x4e8   : > { %v4050_v34 = vadd.f32 %v4049_v27, %v3983_v45  ;;  %v3952_v19 = vadd.f32 %v3951_v40, %v3891_v25  ;;  %v16113_v40 = vld [vmem:[#allocation124_spill] sm:$0xff] }
 0x4e9   : > { %v4100_v24 = vpop.f32.mrf.mxu3  ;;  %v16118_v25 = vld [vmem:[#allocation140_spill] sm:$0xff] }
 0x4ea   : > { %v4101_v26 = vadd.f32 %v4100_v24, %v4050_v34  ;;  %v4018_v45 = vpop.f32.mrf.mxu1  ;;  %v16114_v34 = vld [vmem:[#allocation123_spill] sm:$0xff] }
 0x4eb   : > { %v4019_v61 = vadd.f32 %v4018_v45, %v3952_v19 }
 0x4ef   : > { %v4053_v4 = vpop.f32.mrf.mxu2 }
 0x4f0   : > { %v4054_v7 = vadd.f32 %v4053_v4, %v3989_v3 }
 0x4f1   : > { %v4104_v57 = vpop.f32.mrf.mxu3 }
 0x4f2   : > { %v4105_v52 = vadd.f32 %v4104_v57, %v4054_v7  ;;  %v16115_v7 = vld [vmem:[#allocation134_spill] sm:$0xff] }
 0x4f7   : > { %v4057_v32 = vpop.f32.mrf.mxu2 }
 0x4f9   : > { %v4108_v37 = vpop.f32.mrf.mxu3 }
 0x4ff   : > { %v4061_v58 = vpop.f32.mrf.mxu2 }
 0x500   : > { %v4062_v23 = vadd.f32 %v4061_v58, %v4001_v35 }
 0x501   : > { %v4112_v31 = vpop.f32.mrf.mxu3 }
 0x502   : > { %v4113_v49 = vadd.f32 %v4112_v31, %v4062_v23  ;;  %v16116_v23 = vld [vmem:[#allocation137_spill] sm:$0xff] }
 0x507   : > { %v4065_v62 = vpop.f32.mrf.mxu2 }
 0x508   : > { %v4066_v59 = vadd.f32 %v4065_v62, %v4007_v46  ;;  %v4097_v46 = vadd.f32 %v4096_v8, %v4046_v42  ;;  %v3995_v62 = vadd.f32 %v3994_v30, %v3932_v41  ;;  %v16120_v41 = vld [vmem:[#allocation128_spill] sm:$0xff]  ;;  %v16121_v42 = vld [vmem:[#allocation131_spill] sm:$0xff] }
 0x509   : > { %v4116_v39 = vpop.f32.mrf.mxu3 }
 0x50a   : > { %v4117_v63 = vadd.f32 %v4116_v39, %v4066_v59  ;;  %v4058_v3 = vadd.f32 %v4057_v32, %v3995_v62  ;;  %v4127_v35 = vsub.f32 %v4097_v46, %v4113_v49  ;;  %v16110_v59 = vld [vmem:[#allocation127_spill] sm:$0xff] }
 0x50c   : > { %v4128_v33 = vsub.f32 %v4101_v26, %v4117_v63  ;;  %v4109_v50 = vadd.f32 %v4108_v37, %v4058_v3  ;;  %v4131_v2 = vand.u32 2147483647, %v4127_v35  ;;  %v16122_v63 = vld [vmem:[#allocation135_spill] sm:$0xff] }
 0x50e   : > { %v4132_v4 = vand.u32 2147483647, %v4128_v33  ;;  %v4153_v60 = vand.u32 4294901760, %v4131_v2 }
 0x50f   : > { %v4069_v18 = vpop.f32.mrf.mxu2 }
 0x510   : > { %v4070_v13 = vadd.f32 %v4069_v18, %v4013_v6  ;;  %v4151_v5 = vand.u32 4294901760, %v4132_v4  ;;  %v4203_v1 = vsub.f32 %v4131_v2, %v4153_v60  ;;  %v16117_v6 = vld [vmem:[#allocation139_spill] sm:$0xff]  ;;  %v16119_v18 = vld [vmem:[#allocation125_spill] sm:$0xff] }
 0x511   : > { %v4120_v12 = vpop.f32.mrf.mxu3 }
 0x512   : > { %v4121_v10 = vadd.f32 %v4120_v12, %v4070_v13  ;;  %v4197_v24 = vsub.f32 %v4132_v4, %v4151_v5  ;;  %v4204_v32 = vand.u32 4294901760, %v4203_v1  ;;  %v16123_v13 = vld [vmem:[#allocation138_spill] sm:$0xff] }
 0x514   : > { %v4129_v47 = vsub.f32 %v4105_v52, %v4121_v10  ;;  %v4198_v9 = vand.u32 4294901760, %v4197_v24  ;;  %v4205_v54 = vsub.f32 %v4203_v1, %v4204_v32 }
 0x516   : > { %v4133_v21 = vand.u32 2147483647, %v4129_v47  ;;  %v4199_v48 = vsub.f32 %v4197_v24, %v4198_v9  ;;  %v4206_v31 = vand.u32 4294901760, %v4205_v54 }
 0x517   : > { %v4073_v58 = vpop.f32.mrf.mxu2 }
 0x518   : > { %v4074_v43 = vadd.f32 %v4073_v58, %v4019_v61  ;;  %v4149_v14 = vand.u32 4294901760, %v4133_v21  ;;  %v4200_v8 = vand.u32 4294901760, %v4199_v48 }
 0x519   : > { %v4124_v39 = vpop.f32.mrf.mxu3 }
 0x51a   : > { %v4125_v20 = vadd.f32 %v4124_v39, %v4074_v43  ;;  %v4191_v30 = vsub.f32 %v4133_v21, %v4149_v14 }
 0x51c   : > { %v4130_v0 = vsub.f32 %v4109_v50, %v4125_v20  ;;  %v4192_v11 = vand.u32 4294901760, %v4191_v30 }
 0x51e   : > { %v4134_v27 = vand.u32 2147483647, %v4130_v0  ;;  %v4193_v37 = vsub.f32 %v4191_v30, %v4192_v11 }
 0x520   : > { %v4147_v36 = vand.u32 4294901760, %v4134_v27  ;;  %v4194_v51 = vand.u32 4294901760, %v4193_v37  ;;  %v16130_v37 = vld [vmem:[#allocation151_spill] sm:$0xff] }
 0x522   : > { %v4185_v28 = vsub.f32 %v4134_v27, %v4147_v36  ;;  %4148 = vmatpush.msrb.mxu0 %v4147_v36 }
 0x524   : > { %4150 = vmatpush.msrb.mxu0 %v4149_v14  ;;  %v4186_v57 = vand.u32 4294901760, %v4185_v28 }
 0x526   : > { %4152 = vmatpush.msrb.mxu0 %v4151_v5  ;;  %v4187_v38 = vsub.f32 %v4185_v28, %v4186_v57 }
 0x528   : > { %4154 = vmatpush.msrb.mxu0 %v4153_v60  ;;  %v4188_v53 = vand.u32 4294901760, %v4187_v38  ;;  %v16129_v38 = vld [vmem:[#allocation148_spill] sm:$0xff] }
 0x529   : > { %4160 = vmatmul.f32.vlgmr.msrb.gmra.mxu0 %v12656_v16 }
 0x52a   : > { %4231 = vmatpush.msra.mxu0 %v4185_v28  ;;  %4189 = vmatpush.msrb.mxu1 %v4188_v53  ;;  %v16131_v53 = vld [vmem:[#allocation143_spill] sm:$0xff] }
 0x52c   : > { %4234 = vmatpush.msra.mxu0 %v4191_v30  ;;  %4195 = vmatpush.msrb.mxu1 %v4194_v51  ;;  %v16125_v30 = vld [vmem:[#allocation142_spill] sm:$0xff] }
 0x52d   : > { %v16132_v51 = vld [vmem:[#allocation154_spill] sm:$0xff] }
 0x52e   : > { %4237 = vmatpush.msra.mxu0 %v4197_v24  ;;  %4201 = vmatpush.msrb.mxu1 %v4200_v8  ;;  %v16133_v8 = vld [vmem:[#allocation146_spill] sm:$0xff] }
 0x530   : > { %4240 = vmatpush.msra.mxu0 %v4203_v1  ;;  %4207 = vmatpush.msrb.mxu1 %v4206_v31  ;;  %v16128_v1 = vld [vmem:[#allocation147_spill] sm:$0xff] }
 0x531   : > { %4209 = vmatmul.f32.vlgmr.msrb.gmra.mxu1 %v12639_v15  ;;  %4168 = vmatmul.f32.gmra.mxu0 %v12664_v22 }
 0x532   : > { %4300 = vmatpush.msrb.mxu0 %v4186_v57  ;;  %4265 = vmatpush.msra.mxu1 %v4147_v36 }
 0x534   : > { %4304 = vmatpush.msrb.mxu0 %v4192_v11  ;;  %4267 = vmatpush.msra.mxu1 %v4149_v14  ;;  %v16127_v11 = vld [vmem:[#allocation145_spill] sm:$0xff] }
 0x536   : > { %4308 = vmatpush.msrb.mxu0 %v4198_v9  ;;  %4269 = vmatpush.msra.mxu1 %v4151_v5 }
 0x538   : > { %4312 = vmatpush.msrb.mxu0 %v4204_v32  ;;  %4271 = vmatpush.msra.mxu1 %v4153_v60 }
 0x539   : > { %4213 = vmatmul.f32.gmra.mxu1 %v12649_v55  ;;  %4243 = vmatmul.f32.vlgmr.msra.gmra.mxu0 %v12643_v17 }
 0x53a   : > { %4335 = vmatpush.msrb.mxu1 %v4147_v36  ;;  %4370 = vmatpush.msra.mxu0 %v12682_v29  ;;  %v16126_v36 = vld [vmem:[#allocation144_spill] sm:$0xff] }
 0x53c   : > { %4337 = vmatpush.msrb.mxu1 %v4149_v14  ;;  %4372 = vmatpush.msra.mxu0 %v16110_v59 }
 0x53e   : > { %4339 = vmatpush.msrb.mxu1 %v4151_v5  ;;  %4374 = vmatpush.msra.mxu0 %v16111_v56  ;;  %v16124_v5 = vld [vmem:[#allocation141_spill] sm:$0xff] }
 0x540   : > { %4341 = vmatpush.msrb.mxu1 %v4153_v60  ;;  %4376 = vmatpush.msra.mxu0 %v16112_v44 }
 0x541   : > { %4248 = vmatmul.f32.gmra.mxu0 %v16113_v40  ;;  %4275 = vmatmul.f32.vlgmr.msra.gmra.mxu1 %v16114_v34 }
 0x542   : > { %4411 = vmatpush.msra.mxu1 %v16115_v7 }
 0x544   : > { %4417 = vmatpush.msra.mxu1 %v16116_v23 }
 0x546   : > { %4423 = vmatpush.msra.mxu1 %v16117_v6 }
 0x548   : > { %4429 = vmatpush.msra.mxu1 %v16118_v25 }
 0x549   : > { %4281 = vmatmul.f32.gmra.mxu1 %v16119_v18  ;;  %4314 = vmatmul.f32.vlgmr.msrb.gmra.mxu0 %v12639_v15 }
 0x54a   : > { %4522 = vmatpush.msrb.mxu0 %v16120_v41 }
 0x54c   : > { %4526 = vmatpush.msrb.mxu0 %v16121_v42 }
 0x54e   : > { %4530 = vmatpush.msrb.mxu0 %v16122_v63 }
 0x550   : > { %4534 = vmatpush.msrb.mxu0 %v16123_v13 }
 0x551   : > { %4318 = vmatmul.f32.gmra.mxu0 %v12649_v55  ;;  %4343 = vmatmul.f32.vlgmr.msrb.gmra.mxu1 %v12639_v15 }
 0x552   : > { %4557 = vmatpush.msrb.mxu1 %v12682_v29 }
 0x554   : > { %4559 = vmatpush.msrb.mxu1 %v16110_v59 }
 0x556   : > { %4561 = vmatpush.msrb.mxu1 %v16111_v56 }
 0x558   : > { %4563 = vmatpush.msrb.mxu1 %v16112_v44 }
 0x559   : > { %4347 = vmatmul.f32.gmra.mxu1 %v12649_v55 }
 0x5a6   : > { %v4161_v12 = vpop.f32.mrf.mxu0 }
 0x5ae   : > { %v4210_v19 = vpop.f32.mrf.mxu1  ;;  %v4169_v26 = vpop.f32.mrf.mxu0 }
 0x5af   : > { %v4211_v33 = vadd.f32 %v4210_v19, %v4161_v12  ;;  %v16134_v12 = vld [vmem:[#allocation149_spill] sm:$0xff]  ;;  %v16135_v19 = vld [vmem:[#allocation152_spill] sm:$0xff] }
 0x5b6   : > { %v4214_v52 = vpop.f32.mrf.mxu1  ;;  %v4244_v49 = vpop.f32.mrf.mxu0 }
 0x5b7   : > { %v4245_v45 = vadd.f32 %v4244_v49, %v4211_v33  ;;  %v4215_v61 = vadd.f32 %v4214_v52, %v4169_v26  ;;  %v16136_v26 = vld [vmem:[#allocation169_spill] sm:$0xff]  ;;  %v16137_v52 = vld [vmem:[#allocation170_spill] sm:$0xff]  ;;  %v16142_v33 = vld [vmem:[#allocation172_spill] sm:$0xff] }
 0x5b8   : > { %v16138_v49 = vld [vmem:[#allocation158_spill] sm:$0xff] }
 0x5be   : > { %v4249_v10 = vpop.f32.mrf.mxu0  ;;  %v4276_v46 = vpop.f32.mrf.mxu1 }
 0x5bf   : > { %v4277_v3 = vadd.f32 %v4276_v46, %v4245_v45  ;;  %v4250_v4 = vadd.f32 %v4249_v10, %v4215_v61  ;;  %v16139_v10 = vld [vmem:[#allocation171_spill] sm:$0xff]  ;;  %v16140_v46 = vld [vmem:[#allocation161_spill] sm:$0xff] }
 0x5c0   : > { %v16144_v45 = vld [vmem:[#allocation159_spill] sm:$0xff]  ;;  %v16148_v61 = vld [vmem:[#allocation5_spill] sm:$0xff] }
 0x5c6   : > { %v4282_v62 = vpop.f32.mrf.mxu1  ;;  %v4315_v47 = vpop.f32.mrf.mxu0 }
 0x5c7   : > { %v4316_v35 = vadd.f32 %v4315_v47, %v4277_v3  ;;  %v4283_v2 = vadd.f32 %v4282_v62, %v4250_v4  ;;  %v16141_v62 = vld [vmem:[#allocation157_spill] sm:$0xff]  ;;  %v16145_v3 = vld [vmem:[#allocation166_spill] sm:$0xff] }
 0x5c8   : > { %v16143_v47 = vld [vmem:[#allocation165_spill] sm:$0xff]  ;;  %v16150_v4 = vld [vmem:[#allocation6_spill] sm:$0xff] }
 0x5ce   : > { %v4344_v21 = vpop.f32.mrf.mxu1  ;;  %v4319_v39 = vpop.f32.mrf.mxu0 }
 0x5cf   : > { %v4345_v58 = vadd.f32 %v4344_v21, %v4316_v35  ;;  %v4320_v20 = vadd.f32 %v4319_v39, %v4283_v2  ;;  %v16146_v35 = vld [vmem:[#allocation162_spill] sm:$0xff]  ;;  %v16147_v21 = vld [vmem:[#allocation164_spill] sm:$0xff]  ;;  %v16153_v2 = vld [vmem:[#allocation19_spill] sm:$0xff] }
 0x5d0   : > { %v16152_v39 = vld [vmem:[#allocation160_spill] sm:$0xff] }
 0x5d1   : > { %v4352_v43 = vsel %vm655_vm2, %v4345_v58, 0  ;;  %v16149_v58 = vld [vmem:[#allocation14_spill] sm:$0xff] }
 0x5d2   : > { %v13473_v50 = vand.u32 4294901760, %v4352_v43 }
 0x5d4   : > { %v13476_v14 = vsub.f32 %v4352_v43, %v13473_v50  ;;  %4431 = vmatmul.f32.vlgmr.msra.gmra.mxu1 %v13473_v50  ;;  %v16151_v43 = vld [vmem:[#allocation17_spill] sm:$0xff] }
 0x5d5   : > { %4703 = vmatpush.msra.mxu1 %v16124_v5 }
 0x5d6   : > { %v4348_v0 = vpop.f32.mrf.mxu1  ;;  %4465 = vmatmul.f32.vlgmr.msrb.gmra.mxu2 %v13476_v14  ;;  %v13482_v60 = vand.u32 4294901760, %v13476_v14 }
 0x5d7   : > { %v4349_v27 = vadd.f32 %v4348_v0, %v4320_v20  ;;  %4705 = vmatpush.msra.mxu1 %v16125_v30  ;;  %4738 = vmatpush.msrb.mxu2 %v16126_v36  ;;  %v16154_v20 = vld [vmem:[#allocation163_spill] sm:$0xff]  ;;  %v16155_v0 = vld [vmem:[#allocation20_spill] sm:$0xff] }
 0x5d8   : > { %4497 = vmatmul.f32.vlgmr.msrb.gmra.mxu3 %v13482_v60  ;;  %v4380_v24 = vsub.f32 %v13476_v14, %v13482_v60 }
 0x5d9   : > { %v4355_v28 = vsel %vm655_vm2, %v4349_v27, 0  ;;  %4707 = vmatpush.msra.mxu1 %v16127_v11  ;;  %4742 = vmatpush.msrb.mxu2 %v16128_v1  ;;  %v16156_v27 = vld [vmem:[#allocation9_spill] sm:$0xff] }
 0x5da   : > { %v13492_v57 = vand.u32 4294901760, %v4355_v28  ;;  %v13494_v9 = vand.u32 4294901760, %v4380_v24  ;;  %4773 = vmatpush.msrb.mxu3 %v16124_v5  ;;  %v16157_v24 = vld [vmem:[#allocation167_spill] sm:$0xff] }
 0x5db   : > { %4709 = vmatpush.msra.mxu1 %v16129_v38  ;;  %4746 = vmatpush.msrb.mxu2 %v16130_v37 }
 0x5dc   : > { %v13500_v32 = vsub.f32 %v4355_v28, %v13492_v57  ;;  %4382 = vmatmul.f32.vlgmr.msra.gmra.mxu0 %v13494_v9  ;;  %4435 = vmatmul.f32.gmra.mxu1 %v13492_v57  ;;  %v16158_v28 = vld [vmem:[#allocation12_spill] sm:$0xff] }
 0x5dd   : > { %4775 = vmatpush.msrb.mxu3 %v16125_v30  ;;  %4669 = vmatpush.msra.mxu0 %v16131_v53 }
 0x5de   : > { %4470 = vmatmul.f32.gmra.mxu2 %v13500_v32  ;;  %v13508_v48 = vand.u32 4294901760, %v13500_v32 }
 0x5df   : > { %4750 = vmatpush.msrb.mxu2 %v16132_v51  ;;  %4777 = vmatpush.msrb.mxu3 %v16127_v11 }
 0x5e0   : > { %4503 = vmatmul.f32.gmra.mxu3 %v13508_v48  ;;  %v4388_v54 = vsub.f32 %v13500_v32, %v13508_v48  ;;  %4672 = vmatpush.msra.mxu0 %v16133_v8 }
 0x5e1   : > { %4779 = vmatpush.msrb.mxu3 %v16129_v38 }
 0x5e2   : > { %v13517_v31 = vand.u32 4294901760, %v4388_v54  ;;  %4675 = vmatpush.msra.mxu0 %v16134_v12  ;;  %v16159_v54 = vld [vmem:[#allocation168_spill] sm:$0xff] }
 0x5e4   : > { %4390 = vmatmul.f32.gmra.mxu0 %v13517_v31  ;;  %4565 = vmatmul.f32.vlgmr.msrb.gmra.mxu1 %v13473_v50 }
 0x5e5   : > { %4678 = vmatpush.msra.mxu0 %v16135_v19  ;;  %4843 = vmatpush.msrb.mxu1 %v16136_v26  ;;  %v16185_v26 = vld [vmem:[#allocation89_spill] sm:$0xff] }
 0x5e6   : > { %4598 = vmatmul.f32.vlgmr.msra.gmra.mxu2 %v13494_v9 }
 0x5e7   : > { %4849 = vmatpush.msrb.mxu1 %v16137_v52  ;;  %4885 = vmatpush.msra.mxu2 %v16138_v49 }
 0x5e8   : > { %4647 = vmatmul.f32.vlgmr.msra.gmra.mxu3 %v13473_v50 }
 0x5e9   : > { %4855 = vmatpush.msrb.mxu1 %v16139_v10  ;;  %4888 = vmatpush.msra.mxu2 %v16140_v46  ;;  %v16183_v10 = vld [vmem:[#allocation98_spill] sm:$0xff] }
 0x5ea   : > { %4919 = vmatpush.msra.mxu3 %v16141_v62 }
 0x5eb   : > { %4861 = vmatpush.msrb.mxu1 %v16142_v33  ;;  %4891 = vmatpush.msra.mxu2 %v16143_v47 }
 0x5ec   : > { %4536 = vmatmul.f32.vlgmr.msrb.gmra.mxu0 %v13473_v50  ;;  %4569 = vmatmul.f32.gmra.mxu1 %v13492_v57 }
 0x5ed   : > { %4921 = vmatpush.msra.mxu3 %v16144_v45  ;;  %4802 = vmatpush.msrb.mxu0 %v16141_v62 }
 0x5ee   : > { %4606 = vmatmul.f32.gmra.mxu2 %v13517_v31 }
 0x5ef   : > { %4894 = vmatpush.msra.mxu2 %v16145_v3  ;;  %4923 = vmatpush.msra.mxu3 %v16146_v35  ;;  %v16181_v3 = vld [vmem:[#allocation92_spill] sm:$0xff] }
 0x5f0   : > { %4651 = vmatmul.f32.gmra.mxu3 %v13492_v57  ;;  %4804 = vmatpush.msrb.mxu0 %v16144_v45 }
 0x5f1   : > { %4925 = vmatpush.msra.mxu3 %v16147_v21 }
 0x5f2   : > { %4806 = vmatpush.msrb.mxu0 %v16146_v35 }
 0x5f4   : > { %4540 = vmatmul.f32.gmra.mxu0 %v13492_v57  ;;  %4713 = vmatmul.f32.vlgmr.msra.gmra.mxu1 %v13482_v60 }
 0x5f5   : > { %4808 = vmatpush.msrb.mxu0 %v16147_v21  ;;  %4989 = vmatpush.msra.mxu1 %v16141_v62 }
 0x5f6   : > { %4752 = vmatmul.f32.vlgmr.msrb.gmra.mxu2 %v13473_v50 }
 0x5f7   : > { %4991 = vmatpush.msra.mxu1 %v16144_v45  ;;  %5118 = vmatpush.msrb.mxu2 %v16148_v61 }
 0x5f8   : > { %4781 = vmatmul.f32.vlgmr.msrb.gmra.mxu3 %v13473_v50 }
 0x5f9   : > { %4993 = vmatpush.msra.mxu1 %v16146_v35  ;;  %5159 = vmatpush.msrb.mxu3 %v16149_v58 }
 0x5fa   : > { %5120 = vmatpush.msrb.mxu2 %v16150_v4 }
 0x5fb   : > { %4995 = vmatpush.msra.mxu1 %v16147_v21  ;;  %5165 = vmatpush.msrb.mxu3 %v16151_v43  ;;  %v16180_v21 = vld [vmem:[#allocation100_spill] sm:$0xff] }
 0x5fc   : > { %4681 = vmatmul.f32.vlgmr.msra.gmra.mxu0 %v13476_v14  ;;  %4719 = vmatmul.f32.gmra.mxu1 %v13508_v48 }
 0x5fd   : > { %4954 = vmatpush.msra.mxu0 %v16152_v39  ;;  %5171 = vmatpush.msrb.mxu3 %v16153_v2  ;;  %v16179_v39 = vld [vmem:[#allocation104_spill] sm:$0xff] }
 0x5fe   : > { %4756 = vmatmul.f32.gmra.mxu2 %v13492_v57 }
 0x5ff   : > { %4958 = vmatpush.msra.mxu0 %v16154_v20  ;;  %5177 = vmatpush.msrb.mxu3 %v16155_v0  ;;  %v16160_v0 = vld [vmem:[#allocation8_spill] sm:$0xff]  ;;  %v16178_v20 = vld [vmem:[#allocation174_spill] sm:$0xff] }
 0x600   : > { %4785 = vmatmul.f32.gmra.mxu3 %v13492_v57  ;;  %5122 = vmatpush.msrb.mxu2 %v16156_v27 }
 0x601   : > { %4962 = vmatpush.msra.mxu0 %v16157_v24  ;;  %v16161_v24 = vld [vmem:[#allocation11_spill] sm:$0xff] }
 0x602   : > { %5124 = vmatpush.msrb.mxu2 %v16158_v28 }
 0x603   : > { %4966 = vmatpush.msra.mxu0 %v16159_v54  ;;  %v16166_v54 = vld [vmem:[#allocation18_spill] sm:$0xff] }
 0x604   : > { %4686 = vmatmul.f32.gmra.mxu0 %v13500_v32  ;;  %4863 = vmatmul.f32.vlgmr.msrb.gmra.mxu1 %v13473_v50 }
 0x605   : > { %5235 = vmatpush.msrb.mxu1 %v16148_v61 }
 0x606   : > { %4897 = vmatmul.f32.vlgmr.msra.gmra.mxu2 %v13476_v14  ;;  %v16162_v14 = vld [vmem:[#allocation7_spill] sm:$0xff] }
 0x607   : > { %5237 = vmatpush.msrb.mxu1 %v16150_v4  ;;  %5270 = vmatpush.msra.mxu2 %v16160_v0  ;;  %v16165_v0 = vld [vmem:[#allocation13_spill] sm:$0xff] }
 0x608   : > { %4929 = vmatmul.f32.vlgmr.msra.gmra.mxu3 %v13482_v60  ;;  %v16163_v60 = vld [vmem:[#allocation10_spill] sm:$0xff] }
 0x609   : > { %5239 = vmatpush.msrb.mxu1 %v16156_v27  ;;  %5305 = vmatpush.msra.mxu3 %v16148_v61 }
 0x60a   : > { %5274 = vmatpush.msra.mxu2 %v16161_v24  ;;  %v16164_v24 = vld [vmem:[#allocation15_spill] sm:$0xff] }
 0x60b   : > { %5241 = vmatpush.msrb.mxu1 %v16158_v28  ;;  %5307 = vmatpush.msra.mxu3 %v16150_v4 }
 0x60c   : > { %4814 = vmatmul.f32.vlgmr.msrb.gmra.mxu0 %v13494_v9  ;;  %4867 = vmatmul.f32.gmra.mxu1 %v13492_v57  ;;  %v16167_v9 = vld [vmem:[#allocation16_spill] sm:$0xff] }
 0x60d   : > { %5201 = vmatpush.msrb.mxu0 %v16162_v14  ;;  %5309 = vmatpush.msra.mxu3 %v16156_v27  ;;  %v16168_v14 = vld [vmem:[#allocation35_spill] sm:$0xff] }
 0x60e   : > { %4902 = vmatmul.f32.gmra.mxu2 %v13500_v32  ;;  %v16169_v32 = vld [vmem:[#allocation36_spill] sm:$0xff] }
 0x60f   : > { %5204 = vmatpush.msrb.mxu0 %v16163_v60  ;;  %5311 = vmatpush.msra.mxu3 %v16158_v28  ;;  %v16170_v60 = vld [vmem:[#allocation37_spill] sm:$0xff]  ;;  %v16171_v28 = vld [vmem:[#allocation39_spill] sm:$0xff] }
 0x610   : > { %4935 = vmatmul.f32.gmra.mxu3 %v13508_v48  ;;  %5278 = vmatpush.msra.mxu2 %v16164_v24  ;;  %v16172_v48 = vld [vmem:[#allocation22_spill] sm:$0xff]  ;;  %v16177_v24 = vld [vmem:[#allocation101_spill] sm:$0xff] }
 0x611   : > { %5207 = vmatpush.msrb.mxu0 %v16165_v0 }
 0x612   : > { %5282 = vmatpush.msra.mxu2 %v16166_v54  ;;  %v16173_v54 = vld [vmem:[#allocation25_spill] sm:$0xff] }
 0x613   : > { %5210 = vmatpush.msrb.mxu0 %v16167_v9  ;;  %v16174_v9 = vld [vmem:[#allocation27_spill] sm:$0xff] }
 0x614   : > { %4822 = vmatmul.f32.gmra.mxu0 %v13517_v31  ;;  %4997 = vmatmul.f32.vlgmr.msra.gmra.mxu1 %v13473_v50  ;;  %v16175_v31 = vld [vmem:[#allocation31_spill] sm:$0xff] }
 0x615   : > { %5375 = vmatpush.msra.mxu1 %v16168_v14 }
 0x617   : > { %5381 = vmatpush.msra.mxu1 %v16169_v32 }
 0x619   : > { %5387 = vmatpush.msra.mxu1 %v16170_v60  ;;  %v16176_v60 = vld [vmem:[#allocation173_spill] sm:$0xff] }
 0x61b   : > { %5393 = vmatpush.msra.mxu1 %v16171_v28  ;;  %v3130_v28 = vadd.f32 %v16177_v24, %v16176_v60  ;;  %v16182_v24 = vld [vmem:[#allocation91_spill] sm:$0xff] }
 0x61c   : > { %4968 = vmatmul.f32.vlgmr.msra.gmra.mxu0 %v13473_v50  ;;  %5001 = vmatmul.f32.gmra.mxu1 %v13492_v57 }
 0x61d   : > { %5334 = vmatpush.msra.mxu0 %v16172_v48  ;;  %v3179_v43 = vadd.f32 %v16179_v39, %v3130_v28 }
 0x61f   : > { %5336 = vmatpush.msra.mxu0 %v16173_v54  ;;  %v3213_v35 = vadd.f32 %v16180_v21, %v3179_v43 }
 0x621   : > { %5338 = vmatpush.msra.mxu0 %v16174_v9  ;;  %v3245_v46 = vadd.f32 %v16182_v24, %v3213_v35  ;;  %v16189_v24 = vld [vmem:[#allocation94_spill] sm:$0xff] }
 0x623   : > { %5340 = vmatpush.msra.mxu0 %v16175_v31 }
 0x624   : > { %4972 = vmatmul.f32.gmra.mxu0 %v13492_v57  ;;  %v3138_v57 = vadd.f32 %v16181_v3, %v16176_v60  ;;  %v16186_v60 = vld [vmem:[#allocation113_spill] sm:$0xff] }
 0x626   : > { %v3183_v49 = vadd.f32 %v16183_v10, %v3138_v57 }
 0x628   : > { %v3218_v21 = vadd.f32 %v16185_v26, %v3183_v49 }
 0x62a   : > { %v3251_v10 = vadd.f32 %v16189_v24, %v3218_v21 }
 0x651   : > { %v4432_v14 = vpop.f32.mrf.mxu1 }
 0x659   : > { %v4383_v32 = vpop.f32.mrf.mxu0  ;;  %v4436_v0 = vpop.f32.mrf.mxu1 }
 0x65a   : > { %v4466_v27 = vpop.f32.mrf.mxu2  ;;  %v4384_v2 = vadd.f32 %v4383_v32, %v16178_v20  ;;  %v16184_v32 = vld [vmem:[#allocation95_spill] sm:$0xff] }
 0x65b   : > { %v4498_v50 = vpop.f32.mrf.mxu3  ;;  %v3284_v52 = vadd.f32 %v16184_v32, %v3245_v46  ;;  %v16190_v46 = vld [vmem:[#allocation105_spill] sm:$0xff] }
 0x65c   : > { %v4433_v4 = vadd.f32 %v4432_v14, %v4384_v2 }
 0x65d   : > { %v3313_v12 = vadd.f32 %v16186_v60, %v3284_v52  ;;  %v16192_v52 = vld [vmem:[#allocation109_spill] sm:$0xff]  ;;  %v16193_v60 = vld [vmem:[#allocation116_spill] sm:$0xff] }
 0x65e   : > { %v4467_v33 = vadd.f32 %v4466_v27, %v4433_v4 }
 0x660   : > { %v4499_v39 = vadd.f32 %v4498_v50, %v4467_v33  ;;  %v3288_v33 = vadd.f32 %v16190_v46, %v3251_v10  ;;  %v16191_v50 = vld [vmem:[#allocation108_spill] sm:$0xff] }
 0x661   : > { %v4391_v58 = vpop.f32.mrf.mxu0  ;;  %v4566_v61 = vpop.f32.mrf.mxu1 }
 0x662   : > { %v4471_v45 = vpop.f32.mrf.mxu2  ;;  %v4392_v62 = vadd.f32 %v4391_v58, %v16178_v20  ;;  %v16187_v58 = vld [vmem:[#allocation90_spill] sm:$0xff]  ;;  %v16188_v20 = vld [vmem:[#allocation107_spill] sm:$0xff] }
 0x663   : > { %v4504_v47 = vpop.f32.mrf.mxu3  ;;  %v3346_v35 = vadd.f32 %v16188_v20, %v16187_v58  ;;  %v16194_v20 = vld [vmem:[#allocation93_spill] sm:$0xff] }
 0x664   : > { %v4437_v2 = vadd.f32 %v4436_v0, %v4392_v62 }
 0x665   : > { %v3395_v32 = vadd.f32 %v16191_v50, %v3346_v35 }
 0x666   : > { %v4472_v4 = vadd.f32 %v4471_v45, %v4437_v2  ;;  %v3317_v2 = vadd.f32 %v16193_v60, %v3288_v33  ;;  %v16198_v33 = vld [vmem:[#allocation99_spill] sm:$0xff] }
 0x667   : > { %v3429_v45 = vadd.f32 %v16192_v52, %v3395_v32 }
 0x668   : > { %v4505_v62 = vadd.f32 %v4504_v47, %v4472_v4  ;;  %v16196_v4 = vld [vmem:[#allocation118_spill] sm:$0xff] }
 0x669   : > { %v4537_v28 = vpop.f32.mrf.mxu0  ;;  %v4570_v14 = vpop.f32.mrf.mxu1  ;;  %v3461_v24 = vadd.f32 %v16196_v4, %v3429_v45 }
 0x66a   : > { %v4538_v43 = vadd.f32 %v4537_v28, %v4499_v39  ;;  %v4599_v19 = vpop.f32.mrf.mxu2 }
 0x66b   : > { %v4648_v3 = vpop.f32.mrf.mxu3 }
 0x66c   : > { %v4567_v27 = vadd.f32 %v4566_v61, %v4538_v43  ;;  %v4600_v43 = vadd.f32 %v4599_v19, %v16194_v20 }
 0x66e   : > { %v5005_v57 = vadd.f32 %v4567_v27, %v3313_v12  ;;  %v16195_v12 = vld [vmem:[#allocation111_spill] sm:$0xff]  ;;  %v4649_v10 = vadd.f32 %v4648_v3, %v4600_v43 }
 0x66f   : > { %v3354_v27 = vadd.f32 %v16195_v12, %v16187_v58 }
 0x670   : > { %v11498_v0 = vmul.f32 -1.442695, %v5005_v57 }
 0x671   : > { %v4541_v26 = vpop.f32.mrf.mxu0  ;;  %v4714_v49 = vpop.f32.mrf.mxu1 }
 0x672   : > { %11677 = vpow2.f32 %v11498_v0  ;;  %v4542_v39 = vadd.f32 %v4541_v26, %v4505_v62  ;;  %v4607_v28 = vpop.f32.mrf.mxu2  ;;  %v16197_v0 = vld [vmem:[#allocation102_spill] sm:$0xff]  ;;  %v3500_v26 = vadd.f32 %v16198_v33, %v3461_v24 }
 0x673   : > { %v4652_v61 = vpop.f32.mrf.mxu3  ;;  %v3399_v50 = vadd.f32 %v16197_v0, %v3354_v27  ;;  %v4608_v45 = vadd.f32 %v4607_v28, %v16194_v20 }
 0x674   : > { %v4571_v21 = vadd.f32 %v4570_v14, %v4542_v39  ;;  %v16199_v39 = vld [vmem:[#allocation119_spill] sm:$0xff] }
 0x675   : > { %v3434_v52 = vadd.f32 %v16199_v39, %v3399_v50  ;;  %v4653_v4 = vadd.f32 %v4652_v61, %v4608_v45  ;;  %v16202_v50 = vld [vmem:[#allocation115_spill] sm:$0xff]  ;;  %v16203_v39 = vld [vmem:[#allocation88_spill] sm:$0xff] }
 0x676   : > { %v5006_v47 = vadd.f32 %v4571_v21, %v3317_v2  ;;  %v16200_v21 = vld [vmem:[#allocation114_spill] sm:$0xff] }
 0x677   : > { %v3529_v12 = vadd.f32 %v16200_v21, %v3500_v26 }
 0x678   : > { %v11678_v35 = vpop.eup %11677  ;;  %v11499_v57 = vmul.f32 -1.442695, %v5006_v47  ;;  %v16201_v47 = vld [vmem:[#allocation110_spill] sm:$0xff] }
 0x679   : > { %v13630_v46 = vadd.f32 1.0, %v11678_v35  ;;  %v4682_v62 = vpop.f32.mrf.mxu0  ;;  %v4720_v19 = vpop.f32.mrf.mxu1  ;;  %v3467_v27 = vadd.f32 %v16201_v47, %v3434_v52  ;;  %v16204_v52 = vld [vmem:[#allocation121_spill] sm:$0xff] }
 0x67a   : > { %11679 = vpow2.f32 %v11499_v57  ;;  %v4683_v32 = vadd.f32 %v4682_v62, %v4649_v10  ;;  %v4753_v14 = vpop.f32.mrf.mxu2  ;;  %v3562_v45 = vadd.f32 %v16204_v52, %v16203_v39 }
 0x67b   : > { %11681 = vrcp.f32 %v13630_v46  ;;  %v4782_v3 = vpop.f32.mrf.mxu3  ;;  %v3504_v33 = vadd.f32 %v16202_v50, %v3467_v27  ;;  %v16206_v27 = vld [vmem:[#allocation122_spill] sm:$0xff]  ;;  %v16208_v50 = vld [vmem:[#allocation21_spill] sm:$0xff]  ;;  %vm5020_vm11 = vweird.f32 %v13630_v46 }
 0x67c   : > { %v4715_v60 = vadd.f32 %v4714_v49, %v4683_v32 }
 0x67e   : > { %v4754_v2 = vadd.f32 %v4753_v14, %v4715_v60 }
 0x680   : > { %v11680_v43 = vpop.eup %11679  ;;  %v4783_v35 = vadd.f32 %v4782_v3, %v4754_v2  ;;  %v16205_v3 = vld [vmem:[#allocation103_spill] sm:$0xff] }
 0x681   : > { %v13639_v10 = vadd.f32 1.0, %v11680_v43  ;;  %v4687_v24 = vpop.f32.mrf.mxu0  ;;  %v13641_v57 = vpop.eup %11681  ;;  %v3533_v2 = vadd.f32 %v16205_v3, %v3504_v33 }
 0x682   : > { %v5045_v62 = vadd.f32 %v4783_v35, %v3529_v12  ;;  %v4688_v0 = vadd.f32 %v4687_v24, %v4653_v4  ;;  %v4757_v32 = vpop.f32.mrf.mxu2  ;;  %v4864_v14 = vpop.f32.mrf.mxu1  ;;  %v5016_v26 = vmul.f32 %v13641_v57, %v13630_v46  ;;  %v3611_v4 = vadd.f32 %v16206_v27, %v3562_v45  ;;  %v16211_v27 = vld [vmem:[#allocation106_spill] sm:$0xff] }
 0x683   : > { %11683 = vrcp.f32 %v13639_v10  ;;  %v4786_v60 = vpop.f32.mrf.mxu3  ;;  %vm5021_vm10 = vweird.f32 %v13641_v57  ;;  %vm5035_vm14 = vweird.f32 %v13639_v10 }
 0x684   : > { %v11500_v28 = vmul.f32 -1.442695, %v5045_v62  ;;  %v4721_v49 = vadd.f32 %v4720_v19, %v4688_v0  ;;  %v5017_v12 = vsub.f32 1.0, %v5016_v26  ;;  %v16207_v62 = vld [vmem:[#allocation96_spill] sm:$0xff]  ;;  %v16209_v26 = vld [vmem:[#allocation117_spill] sm:$0xff]  ;;  %vm13671_vm12 = vmor %vm5020_vm11, %vm5021_vm10 }
 0x686   : > { %11685 = vpow2.f32 %v11500_v28  ;;  %v4758_v61 = vadd.f32 %v4757_v32, %v4721_v49  ;;  %v3570_v28 = vadd.f32 %v16208_v50, %v16203_v39  ;;  %v5018_v32 = vmul.f32 %v13641_v57, %v5017_v12 }
 0x687   : > { %v5026_v12 = vand.u32 2147483648, %v13630_v46 }
 0x688   : > { %v4787_v43 = vadd.f32 %v4786_v60, %v4758_v61  ;;  %v3645_v61 = vadd.f32 %v16209_v26, %v3611_v4  ;;  %v16210_v60 = vld [vmem:[#allocation23_spill] sm:$0xff]  ;;  %v5024_v4 = vand.u32 2147483647, %v13630_v46 }
 0x689   : > { %v4815_v21 = vpop.f32.mrf.mxu0  ;;  %v13650_v19 = vpop.eup %11683  ;;  %v3615_v3 = vadd.f32 %v16210_v60, %v3570_v28  ;;  %v16215_v60 = vld [vmem:[#allocation175_spill] sm:$0xff] }
 0x68a   : > { %v5046_v47 = vadd.f32 %v4787_v43, %v3533_v2  ;;  %v4816_v0 = vadd.f32 %v4815_v21, %v16207_v62  ;;  %v5031_v33 = vmul.f32 %v13650_v19, %v13639_v10  ;;  %v4868_v52 = vpop.f32.mrf.mxu1  ;;  %v4898_v2 = vpop.f32.mrf.mxu2  ;;  %v5019_v21 = vadd.f32 %v13641_v57, %v5018_v32  ;;  %v16214_v32 = vld [vmem:[#allocation112_spill] sm:$0xff] }
 0x68b   : > { %v3650_v26 = vadd.f32 %v16214_v32, %v3615_v3  ;;  %vm5025_vm13 = vcmp.eq.f32.partialorder %v5024_v4, 8.507059e+37  ;;  %vm5036_vm15 = vweird.f32 %v13650_v19 }
 0x68c   : > { %v11686_v35 = vpop.eup %11685  ;;  %v11501_v24 = vmul.f32 -1.442695, %v5046_v47  ;;  %v4865_v45 = vadd.f32 %v4864_v14, %v4816_v0  ;;  %v5032_v47 = vsub.f32 1.0, %v5031_v33  ;;  %v5023_v46 = vsel %vm13671_vm12, %v13641_v57, %v5019_v21  ;;  %vm13697_vm3 = vmor %vm5035_vm14, %vm5036_vm15 }
 0x68d   : > { %v13656_v49 = vadd.f32 1.0, %v11686_v35  ;;  %v3677_v35 = vadd.f32 %v16211_v27, %v3645_v61  ;;  %v4930_v61 = vpop.f32.mrf.mxu3 }
 0x68e   : > { %11687 = vpow2.f32 %v11501_v24  ;;  %v4899_v50 = vadd.f32 %v4898_v2, %v4865_v45  ;;  %v5027_v2 = vor.u32 1.1754944e-38, %v5026_v12 }
 0x68f   : > { %11689 = vrcp.f32 %v13656_v49  ;;  %v3716_v39 = vadd.f32 %v16215_v60, %v3677_v35  ;;  %v16216_v35 = vld [vmem:[#allocation120_spill] sm:$0xff]  ;;  %vm5060_vm1 = vweird.f32 %v13656_v49 }
 0x690   : > { %v5028_v32 = vsel %vm5025_vm13, %v5027_v2, %v5023_v46  ;;  %v16217_v60 = vld [vmem:[#allocation176_spill] sm:$0xff] }
 0x691   : > { %v4823_v43 = vpop.f32.mrf.mxu0  ;;  %v3745_v20 = vadd.f32 %v16217_v60, %v3716_v39 }
 0x692   : > { %v4824_v14 = vadd.f32 %v4823_v43, %v16207_v62  ;;  %v5033_v43 = vmul.f32 %v13650_v19, %v5032_v47  ;;  %v4931_v62 = vadd.f32 %v4930_v61, %v4899_v50  ;;  %v4998_v58 = vpop.f32.mrf.mxu1  ;;  %v4903_v47 = vpop.f32.mrf.mxu2  ;;  %v5041_v50 = vand.u32 2147483648, %v13639_v10 }
 0x693   : > { %v5085_v4 = vmul.f32 %v5028_v32, %v3745_v20  ;;  %v16220_v20 = vld [vmem:[#allocation177_spill] sm:$0xff] }
 0x694   : > { %v11688_v24 = vpop.eup %11687  ;;  %v4869_v3 = vadd.f32 %v4868_v52, %v4824_v14  ;;  %v5034_v12 = vadd.f32 %v13650_v19, %v5033_v43  ;;  %v5039_v52 = vand.u32 2147483647, %v13639_v10  ;;  %v5066_v14 = vand.u32 2147483648, %v13656_v49 }
 0x695   : > { %v11690_v28 = vpop.eup %11689  ;;  %v13677_v33 = vadd.f32 1.0, %v11688_v24  ;;  %v3683_v24 = vadd.f32 %v16216_v35, %v3650_v26 }
 0x696   : > { %v5056_v45 = vmul.f32 %v11690_v28, %v13656_v49  ;;  %vm5061_vm0 = vweird.f32 %v11690_v28  ;;  %v4904_v39 = vadd.f32 %v4903_v47, %v4869_v3  ;;  %v5038_v43 = vsel %vm13697_vm3, %v13650_v19, %v5034_v12 }
 0x697   : > { %11691 = vrcp.f32 %v13677_v33  ;;  %v3720_v46 = vadd.f32 %v16220_v20, %v3683_v24  ;;  %vm13702_vm4 = vmor %vm5060_vm1, %vm5061_vm0  ;;  %vm5040_vm5 = vcmp.eq.f32.partialorder %v5039_v52, 8.507059e+37  ;;  %v5067_v3 = vor.u32 1.1754944e-38, %v5066_v14  ;;  %v16224_v20 = vld [vmem:[#allocation86_spill] sm:$0xff] }
 0x698   : > { %v5057_v27 = vsub.f32 1.0, %v5056_v45  ;;  %v5081_v12 = vand.u32 2147483648, %v13677_v33  ;;  %vm5075_vm8 = vweird.f32 %v13677_v33  ;;  %v5079_v14 = vand.u32 2147483647, %v13677_v33 }
 0x699   : > { %v4969_v8 = vpop.f32.mrf.mxu0 }
 0x69a   : > { %v5058_v57 = vmul.f32 %v11690_v28, %v5057_v27  ;;  %v4970_v21 = vadd.f32 %v4969_v8, %v4931_v62  ;;  %v5064_v8 = vand.u32 2147483647, %v13656_v49  ;;  %v4936_v49 = vpop.f32.mrf.mxu3  ;;  %v5042_v27 = vor.u32 1.1754944e-38, %v5041_v50  ;;  %v5002_v19 = vpop.f32.mrf.mxu1 }
 0x69b   : > { %v4937_v35 = vadd.f32 %v4936_v49, %v4904_v39  ;;  %vm5080_vm11 = vcmp.eq.f32.partialorder %v5079_v14, 8.507059e+37 }
 0x69c   : > { %v4999_v0 = vadd.f32 %v4998_v58, %v4970_v21  ;;  %v5059_v26 = vadd.f32 %v11690_v28, %v5058_v57  ;;  %vm5065_vm6 = vcmp.eq.f32.partialorder %v5064_v8, 8.507059e+37  ;;  %v5043_v60 = vsel %vm5040_vm5, %v5042_v27, %v5038_v43  ;;  %v16223_v57 = vld [vmem:[#allocation178_spill] sm:$0xff] }
 0x69d   : > { %v11692_v61 = vpop.eup %11691  ;;  %v3749_v21 = vadd.f32 %v16223_v57, %v3720_v46  ;;  %v16228_v57 = vld [vmem:[#allocation28_spill] sm:$0xff] }
 0x69e   : > { %v5071_v58 = vmul.f32 %v11692_v61, %v13677_v33  ;;  %v5087_v2 = vadd.f32 %v5085_v4, %v4999_v0  ;;  %v5063_v10 = vsel %vm13702_vm4, %v11690_v28, %v5059_v26  ;;  %vm5076_vm7 = vweird.f32 %v11692_v61 }
 0x69f   : > { %v5068_v4 = vsel %vm5065_vm6, %v5067_v3, %v5063_v10  ;;  %v5086_v52 = vmul.f32 %v5043_v60, %v3749_v21  ;;  %vm5077_vm10 = vmor %vm5075_vm8, %vm5076_vm7 }
 0x6a0   : > { %v5072_v32 = vsub.f32 1.0, %v5071_v58  ;;  %11693 = vtanh.f32 %v5087_v2  ;;  %v5091_v50 = vsub.f32 1.0, %v5068_v4  ;;  %v5095_v46 = vmul.f32 %v5068_v4, %v16224_v20  ;;  %v16229_v4 = vld [vmem:[#allocation29_spill] sm:$0xff]  ;;  %v16235_v20 = vld [vmem:[#allocation51_spill] sm:$0xff] }
 0x6a1   : > { %v4973_v24 = vpop.f32.mrf.mxu0  ;;  %v5082_v58 = vor.u32 1.1754944e-38, %v5081_v12  ;;  %v16230_v12 = vld [vmem:[#allocation32_spill] sm:$0xff] }
 0x6a2   : > { %v5073_v47 = vmul.f32 %v11692_v61, %v5072_v32  ;;  %v4974_v0 = vadd.f32 %v4973_v24, %v4937_v35 }
 0x6a4   : > { %v5003_v62 = vadd.f32 %v5002_v19, %v4974_v0  ;;  %v5074_v28 = vadd.f32 %v11692_v61, %v5073_v47 }
 0x6a6   : > { %v11694_v39 = vpop.eup %11693  ;;  %v5088_v26 = vadd.f32 %v5086_v52, %v5003_v62  ;;  %v5078_v45 = vsel %vm5077_vm10, %v11692_v61, %v5074_v28  ;;  %v16226_v61 = vld [vmem:[#allocation97_spill] sm:$0xff]  ;;  %v16231_v28 = vld [vmem:[#allocation34_spill] sm:$0xff] }
 0x6a7   : > { %v5093_v8 = vmul.f32 %v11694_v39, %v5091_v50  ;;  %v5083_v43 = vsel %vm5080_vm11, %v5082_v58, %v5078_v45  ;;  %v16232_v50 = vld [vmem:[#allocation24_spill] sm:$0xff]  ;;  %v16233_v39 = vld [vmem:[#allocation26_spill] sm:$0xff]  ;;  %v16237_v45 = vld [vmem:[#allocation41_spill] sm:$0xff] }
 0x6a8   : > { %11695 = vtanh.f32 %v5088_v26  ;;  %v5092_v27 = vsub.f32 1.0, %v5083_v43  ;;  %v5096_v35 = vmul.f32 %v5083_v43, %v16226_v61  ;;  %v16238_v43 = vld [vmem:[#allocation52_spill] sm:$0xff]  ;;  %v16242_v61 = vld [vmem:[#allocation46_spill] sm:$0xff] }
 0x6a9   : > { %v13717_v2 = vadd.f32 %v5095_v46, %v5093_v8  ;;  %v16234_v8 = vld [vmem:[#allocation30_spill] sm:$0xff]  ;;  %v16236_v46 = vld [vmem:[#allocation33_spill] sm:$0xff] }
 0x6ab   : > { %16225 = vst [vmem:[#allocation101_spill] sm:$0xff] %v13717_v2  ;;  %v5100_v49 = vsel %vm655_vm2, %v13717_v2, 0 }
 0x6ac   : > { %v13721_v10 = vand.u32 4294901760, %v5100_v49 }
 0x6ae   : > { %v11696_v33 = vpop.eup %11695  ;;  %5179 = vmatmul.f32.vlgmr.msrb.gmra.mxu3 %v13721_v10  ;;  %v13725_v3 = vsub.f32 %v5100_v49, %v13721_v10  ;;  %v16239_v49 = vld [vmem:[#allocation43_spill] sm:$0xff] }
 0x6af   : > { %v5094_v32 = vmul.f32 %v11696_v33, %v5092_v27  ;;  %5451 = vmatpush.msrb.mxu3 %v16172_v48  ;;  %v16240_v27 = vld [vmem:[#allocation38_spill] sm:$0xff]  ;;  %v5769_v33 = vand.u32 4294901760, %v13717_v2 }
 0x6b0   : > { %5213 = vmatmul.f32.vlgmr.msrb.gmra.mxu0 %v13725_v3  ;;  %v13731_v24 = vand.u32 4294901760, %v13725_v3 }
 0x6b1   : > { %v13733_v60 = vadd.f32 %v5096_v35, %v5094_v32  ;;  %5486 = vmatpush.msrb.mxu0 %v16228_v57  ;;  %5453 = vmatpush.msrb.mxu3 %v16173_v54  ;;  %v16241_v32 = vld [vmem:[#allocation53_spill] sm:$0xff]  ;;  %v16243_v35 = vld [vmem:[#allocation40_spill] sm:$0xff] }
 0x6b2   : > { %5245 = vmatmul.f32.vlgmr.msrb.gmra.mxu1 %v13731_v24  ;;  %v5128_v21 = vsub.f32 %v13725_v3, %v13731_v24 }
 0x6b3   : > { %16227 = vst [vmem:[#allocation104_spill] sm:$0xff] %v13733_v60  ;;  %v5103_v47 = vsel %vm655_vm2, %v13733_v60, 0  ;;  %5490 = vmatpush.msrb.mxu0 %v16229_v4  ;;  %5521 = vmatpush.msrb.mxu1 %v16172_v48  ;;  %v5767_v58 = vand.u32 4294901760, %v13733_v60 }
 0x6b4   : > { %v13744_v0 = vand.u32 4294901760, %v5103_v47  ;;  %v13746_v19 = vand.u32 4294901760, %v5128_v21  ;;  %5455 = vmatpush.msrb.mxu3 %v16174_v9 }
 0x6b5   : > { %5494 = vmatpush.msrb.mxu0 %v16230_v12  ;;  %5523 = vmatpush.msrb.mxu1 %v16173_v54  ;;  %v5851_v21 = vsub.f32 %v13733_v60, %v5767_v58 }
 0x6b6   : > { %5130 = vmatmul.f32.vlgmr.msrb.gmra.mxu2 %v13746_v19  ;;  %5183 = vmatmul.f32.gmra.mxu3 %v13744_v0  ;;  %v13754_v62 = vsub.f32 %v5103_v47, %v13744_v0  ;;  %v16244_v47 = vld [vmem:[#allocation48_spill] sm:$0xff] }
 0x6b7   : > { %5498 = vmatpush.msrb.mxu0 %v16231_v28  ;;  %5525 = vmatpush.msrb.mxu1 %v16174_v9 }
 0x6b8   : > { %5218 = vmatmul.f32.gmra.mxu0 %v13754_v62  ;;  %v13760_v52 = vand.u32 4294901760, %v13754_v62  ;;  %5457 = vmatpush.msrb.mxu3 %v16175_v31 }
 0x6b9   : > { %5527 = vmatpush.msrb.mxu1 %v16175_v31  ;;  %5417 = vmatpush.msrb.mxu2 %v16232_v50 }
 0x6ba   : > { %5251 = vmatmul.f32.gmra.mxu1 %v13760_v52  ;;  %v5136_v14 = vsub.f32 %v13754_v62, %v13760_v52 }
 0x6bb   : > { %5420 = vmatpush.msrb.mxu2 %v16233_v39 }
 0x6bc   : > { %v13769_v26 = vand.u32 4294901760, %v5136_v14  ;;  %v16245_v14 = vld [vmem:[#allocation42_spill] sm:$0xff] }
 0x6bd   : > { %5423 = vmatpush.msrb.mxu2 %v16234_v8 }
 0x6be   : > { %5138 = vmatmul.f32.gmra.mxu2 %v13769_v26  ;;  %5313 = vmatmul.f32.vlgmr.msra.gmra.mxu3 %v13721_v10 }
 0x6bf   : > { %5591 = vmatpush.msra.mxu3 %v16235_v20  ;;  %5426 = vmatpush.msrb.mxu2 %v16236_v46 }
 0x6c0   : > { %5346 = vmatmul.f32.vlgmr.msra.gmra.mxu0 %v13746_v19 }
 0x6c1   : > { %5633 = vmatpush.msra.mxu0 %v16237_v45  ;;  %5597 = vmatpush.msra.mxu3 %v16238_v43  ;;  %v16246_v43 = vld [vmem:[#allocation54_spill] sm:$0xff] }
 0x6c2   : > { %5395 = vmatmul.f32.vlgmr.msra.gmra.mxu1 %v13721_v10 }
 0x6c3   : > { %5636 = vmatpush.msra.mxu0 %v16239_v49  ;;  %5667 = vmatpush.msra.mxu1 %v16240_v27  ;;  %v5857_v49 = vsub.f32 %v13717_v2, %v5769_v33 }
 0x6c4   : > { %5603 = vmatpush.msra.mxu3 %v16241_v32  ;;  %v16247_v32 = vld [vmem:[#allocation44_spill] sm:$0xff] }
 0x6c5   : > { %5639 = vmatpush.msra.mxu0 %v16242_v61  ;;  %5669 = vmatpush.msra.mxu1 %v16243_v35  ;;  %v5852_v61 = vand.u32 4294901760, %v5851_v21  ;;  %v5858_v45 = vand.u32 4294901760, %v5857_v49 }
 0x6c6   : > { %5284 = vmatmul.f32.vlgmr.msra.gmra.mxu2 %v13721_v10  ;;  %5317 = vmatmul.f32.gmra.mxu3 %v13744_v0 }
 0x6c7   : > { %5642 = vmatpush.msra.mxu0 %v16244_v47  ;;  %5671 = vmatpush.msra.mxu1 %v16245_v14  ;;  %v5853_v46 = vsub.f32 %v5851_v21, %v5852_v61  ;;  %v5859_v47 = vsub.f32 %v5857_v49, %v5858_v45 }
 0x6c8   : > { %5354 = vmatmul.f32.gmra.mxu0 %v13769_v26  ;;  %5609 = vmatpush.msra.mxu3 %v16246_v43 }
 0x6c9   : > { %5673 = vmatpush.msra.mxu1 %v16247_v32  ;;  %5550 = vmatpush.msra.mxu2 %v16240_v27  ;;  %v5854_v43 = vand.u32 4294901760, %v5853_v46  ;;  %v5860_v20 = vand.u32 4294901760, %v5859_v47  ;;  %v16249_v46 = vld [vmem:[#allocation47_spill] sm:$0xff] }
 0x6ca   : > { %5399 = vmatmul.f32.gmra.mxu1 %v13744_v0  ;;  %v16266_v47 = vld [vmem:[#allocation59_spill] sm:$0xff] }
 0x6cb   : > { %5552 = vmatpush.msra.mxu2 %v16243_v35 }
 0x6cd   : > { %5554 = vmatpush.msra.mxu2 %v16245_v14 }
 0x6ce   : > { %5288 = vmatmul.f32.gmra.mxu2 %v13744_v0  ;;  %5461 = vmatmul.f32.vlgmr.msrb.gmra.mxu3 %v13731_v24 }
 0x6cf   : > { %5737 = vmatpush.msrb.mxu3 %v16240_v27  ;;  %5556 = vmatpush.msra.mxu2 %v16247_v32  ;;  %v16248_v27 = vld [vmem:[#allocation45_spill] sm:$0xff] }
 0x6d0   : > { %5500 = vmatmul.f32.vlgmr.msrb.gmra.mxu0 %v13721_v10 }
 0x6d1   : > { %5768 = vmatpush.msrb.mxu0 %v5767_v58  ;;  %5739 = vmatpush.msrb.mxu3 %v16243_v35  ;;  %v16250_v35 = vld [vmem:[#allocation49_spill] sm:$0xff] }
 0x6d2   : > { %5529 = vmatmul.f32.vlgmr.msrb.gmra.mxu1 %v13721_v10 }
 0x6d3   : > { %5770 = vmatpush.msrb.mxu0 %v5769_v33  ;;  %5855 = vmatpush.msrb.mxu1 %v5854_v43  ;;  %v16251_v43 = vld [vmem:[#allocation50_spill] sm:$0xff] }
 0x6d4   : > { %5741 = vmatpush.msrb.mxu3 %v16245_v14 }
 0x6d5   : > { %5861 = vmatpush.msrb.mxu1 %v5860_v20  ;;  %v16254_v20 = vld [vmem:[#allocation55_spill] sm:$0xff] }
 0x6d6   : > { %5429 = vmatmul.f32.vlgmr.msrb.gmra.mxu2 %v13725_v3  ;;  %5467 = vmatmul.f32.gmra.mxu3 %v13760_v52 }
 0x6d7   : > { %5743 = vmatpush.msrb.mxu3 %v16247_v32  ;;  %5702 = vmatpush.msrb.mxu2 %v16248_v27 }
 0x6d8   : > { %5504 = vmatmul.f32.gmra.mxu0 %v13744_v0 }
 0x6d9   : > { %5706 = vmatpush.msrb.mxu2 %v16249_v46 }
 0x6da   : > { %5533 = vmatmul.f32.gmra.mxu1 %v13744_v0 }
 0x6db   : > { %5710 = vmatpush.msrb.mxu2 %v16250_v35  ;;  %v16296_v35 = vld [vmem:[#allocation156_spill] sm:$0xff] }
 0x6dd   : > { %5714 = vmatpush.msrb.mxu2 %v16251_v43  ;;  %v16293_v43 = vld [vmem:[#allocation155_spill] sm:$0xff] }
 0x6de   : > { %5434 = vmatmul.f32.gmra.mxu2 %v13754_v62  ;;  %5611 = vmatmul.f32.vlgmr.msra.gmra.mxu3 %v13721_v10 }
 0x6df   : > { %5971 = vmatpush.msra.mxu3 %v5767_v58 }
 0x6e0   : > { %5645 = vmatmul.f32.vlgmr.msra.gmra.mxu0 %v13725_v3  ;;  %v16252_v3 = vld [vmem:[#allocation66_spill] sm:$0xff] }
 0x6e1   : > { %5973 = vmatpush.msra.mxu3 %v5769_v33  ;;  %6040 = vmatpush.msra.mxu0 %v5852_v61  ;;  %v16264_v61 = vld [vmem:[#allocation67_spill] sm:$0xff] }
 0x6e2   : > { %5677 = vmatmul.f32.vlgmr.msra.gmra.mxu1 %v13731_v24  ;;  %v16253_v24 = vld [vmem:[#allocation126_spill] sm:$0xff] }
 0x6e3   : > { %6044 = vmatpush.msra.mxu0 %v5858_v45  ;;  %6093 = vmatpush.msra.mxu1 %v5767_v58  ;;  %v16256_v45 = vld [vmem:[#allocation132_spill] sm:$0xff] }
 0x6e4   : > { %v16260_v58 = vld [vmem:[#allocation64_spill] sm:$0xff] }
 0x6e5   : > { %6095 = vmatpush.msra.mxu1 %v5769_v33  ;;  %v16263_v33 = vld [vmem:[#allocation62_spill] sm:$0xff] }
 0x6e6   : > { %5562 = vmatmul.f32.vlgmr.msra.gmra.mxu2 %v13746_v19  ;;  %5615 = vmatmul.f32.gmra.mxu3 %v13744_v0  ;;  %v16255_v19 = vld [vmem:[#allocation129_spill] sm:$0xff] }
 0x6e7   : > { %5911 = vmatpush.msra.mxu2 %v5851_v21  ;;  %v16265_v21 = vld [vmem:[#allocation75_spill] sm:$0xff] }
 0x6e8   : > { %5650 = vmatmul.f32.gmra.mxu0 %v13754_v62  ;;  %v16257_v62 = vld [vmem:[#allocation136_spill] sm:$0xff] }
 0x6e9   : > { %5914 = vmatpush.msra.mxu2 %v5857_v49  ;;  %v16261_v49 = vld [vmem:[#allocation72_spill] sm:$0xff] }
 0x6ea   : > { %5683 = vmatmul.f32.gmra.mxu1 %v13760_v52  ;;  %v16258_v52 = vld [vmem:[#allocation69_spill] sm:$0xff] }
 0x6ee   : > { %5570 = vmatmul.f32.gmra.mxu2 %v13769_v26  ;;  %5745 = vmatmul.f32.vlgmr.msrb.gmra.mxu3 %v13721_v10  ;;  %v16259_v26 = vld [vmem:[#allocation56_spill] sm:$0xff] }
 0x6f0   : > { %5776 = vmatmul.f32.vlgmr.msrb.gmra.mxu0 %v16252_v3  ;;  %v16284_v3 = vld [vmem:[#allocation77_spill] sm:$0xff] }
 0x6f1   : > { %6455 = vmatpush.msrb.mxu0 %v16253_v24  ;;  %v16280_v24 = vld [vmem:[#allocation79_spill] sm:$0xff] }
 0x6f2   : > { %11502 = vmatmul.msk.f32.vlgmr.msrb.gmra.mxu1 %vm1718_vm9, %v16254_v20 }
 0x6f3   : > { %6458 = vmatpush.msrb.mxu0 %v16255_v19  ;;  %6489 = vmatpush.msrb.mxu1 %v12682_v29  ;;  %v16276_v19 = vld [vmem:[#allocation76_spill] sm:$0xff] }
 0x6f5   : > { %6461 = vmatpush.msrb.mxu0 %v16256_v45  ;;  %6491 = vmatpush.msrb.mxu1 %v16110_v59  ;;  %v16272_v45 = vld [vmem:[#allocation73_spill] sm:$0xff] }
 0x6f6   : > { %5716 = vmatmul.f32.vlgmr.msrb.gmra.mxu2 %v13721_v10  ;;  %5749 = vmatmul.f32.gmra.mxu3 %v13744_v0  ;;  %v16262_v10 = vld [vmem:[#allocation58_spill] sm:$0xff] }
 0x6f7   : > { %6464 = vmatpush.msrb.mxu0 %v16257_v62  ;;  %6493 = vmatpush.msrb.mxu1 %v16111_v56  ;;  %v16268_v62 = vld [vmem:[#allocation70_spill] sm:$0xff] }
 0x6f8   : > { %5784 = vmatmul.f32.gmra.mxu0 %v16258_v52  ;;  %v16267_v52 = vld [vmem:[#allocation65_spill] sm:$0xff] }
 0x6f9   : > { %6495 = vmatpush.msrb.mxu1 %v16112_v44 }
 0x6fa   : > { %11503 = vmatmul.msk.f32.gmra.mxu1 %vm1718_vm9, %v16259_v26 }
 0x6fe   : > { %5720 = vmatmul.f32.gmra.mxu2 %v13744_v0  ;;  %5977 = vmatmul.f32.vlgmr.msra.gmra.mxu3 %v16260_v58  ;;  %v16269_v0 = vld [vmem:[#allocation78_spill] sm:$0xff]  ;;  %v16270_v58 = vld [vmem:[#allocation61_spill] sm:$0xff] }
 0x700   : > { %5792 = vmatmul.f32.gmra.mxu0 %v16261_v49  ;;  %v16271_v49 = vld [vmem:[#allocation68_spill] sm:$0xff] }
 0x702   : > { %11504 = vmatmul.msk.f32.gmra.mxu1 %vm1718_vm9, %v16262_v10 }
 0x706   : > { %5917 = vmatmul.f32.vlgmr.msra.gmra.mxu2 %v16263_v33  ;;  %5983 = vmatmul.f32.gmra.mxu3 %v16264_v61  ;;  %v16273_v33 = vld [vmem:[#allocation81_spill] sm:$0xff]  ;;  %v16274_v61 = vld [vmem:[#allocation63_spill] sm:$0xff] }
 0x708   : > { %5800 = vmatmul.f32.gmra.mxu0 %v16265_v21  ;;  %v16275_v21 = vld [vmem:[#allocation71_spill] sm:$0xff] }
 0x70a   : > { %11505 = vmatmul.msk.f32.gmra.mxu1 %vm1718_vm9, %v16266_v47 }
 0x70e   : > { %5922 = vmatmul.f32.gmra.mxu2 %v16267_v52  ;;  %5989 = vmatmul.f32.gmra.mxu3 %v16268_v62  ;;  %v16277_v52 = vld [vmem:[#allocation84_spill] sm:$0xff]  ;;  %v16278_v62 = vld [vmem:[#allocation57_spill] sm:$0xff] }
 0x710   : > { %5808 = vmatmul.f32.gmra.mxu0 %v16269_v0  ;;  %v16279_v0 = vld [vmem:[#allocation74_spill] sm:$0xff] }
 0x712   : > { %11506 = vmatmul.msk.f32.gmra.mxu1 %vm1718_vm9, %v16270_v58 }
 0x716   : > { %5927 = vmatmul.f32.gmra.mxu2 %v16271_v49  ;;  %5995 = vmatmul.f32.gmra.mxu3 %v16272_v45  ;;  %v16281_v49 = vld [vmem:[#allocation87_spill] sm:$0xff]  ;;  %v16282_v45 = vld [vmem:[#allocation60_spill] sm:$0xff] }
 0x718   : > { %5816 = vmatmul.f32.gmra.mxu0 %v16273_v33 }
 0x71a   : > { %11507 = vmatmul.msk.f32.gmra.mxu1 %vm1718_vm9, %v16274_v61 }
 0x71e   : > { %5932 = vmatmul.f32.gmra.mxu2 %v16275_v21  ;;  %6001 = vmatmul.f32.gmra.mxu3 %v16276_v19  ;;  %v16285_v21 = vld [vmem:[#allocation82_spill] sm:$0xff] }
 0x720   : > { %5824 = vmatmul.f32.gmra.mxu0 %v16277_v52 }
 0x722   : > { %11508 = vmatmul.msk.f32.gmra.mxu1 %vm1718_vm9, %v16278_v62 }
 0x726   : > { %5937 = vmatmul.f32.gmra.mxu2 %v16279_v0  ;;  %6007 = vmatmul.f32.gmra.mxu3 %v16280_v24  ;;  %v16291_v0 = vld [vmem:[#allocation85_spill] sm:$0xff] }
 0x728   : > { %5832 = vmatmul.f32.gmra.mxu0 %v16281_v49  ;;  %v16287_v49 = vld [vmem:[#allocation150_spill] sm:$0xff] }
 0x72a   : > { %11509 = vmatmul.msk.f32.gmra.mxu1 %vm1718_vm9, %v16282_v45 }
 0x72d   : > { %v13873_v33 = vpop.f32.mrf.mxu0 }
 0x72e   : > { %16283 = vst [vmem:[#allocation100_spill] sm:$0xff] %v13873_v33  ;;  %5942 = vmatmul.f32.gmra.mxu2 %v16284_v3  ;;  %6013 = vmatmul.f32.gmra.mxu3 %v16285_v21  ;;  %v16289_v3 = vld [vmem:[#allocation153_spill] sm:$0xff]  ;;  %v16290_v21 = vld [vmem:[#allocation80_spill] sm:$0xff] }
 0x72f   : > { %v13877_v19 = vpop.f32.mrf.mxu1 }
 0x730   : > { %16286 = vst [vmem:[#allocation92_spill] sm:$0xff] %v13877_v19  ;;  %11510 = vmatmul.msk.f32.vlgmr.msra.gmra.mxu0 %vm1718_vm9, %v16254_v20 }
 0x731   : > { %6588 = vmatpush.msra.mxu0 %v16124_v5 }
 0x732   : > { %11518 = vmatmul.msk.f32.vlgmr.msra.gmra.mxu1 %vm1718_vm9, %v16254_v20 }
 0x733   : > { %6590 = vmatpush.msra.mxu0 %v16125_v30  ;;  %6629 = vmatpush.msra.mxu1 %v16287_v49  ;;  %v13898_v49 = vpop.f32.mrf.mxu3 }
 0x734   : > { %16294 = vst [vmem:[#allocation95_spill] sm:$0xff] %v13898_v49 }
 0x735   : > { %v13886_v24 = vpop.f32.mrf.mxu0  ;;  %6592 = vmatpush.msra.mxu0 %v16127_v11  ;;  %6635 = vmatpush.msra.mxu1 %v16289_v3 }
 0x736   : > { %16288 = vst [vmem:[#allocation91_spill] sm:$0xff] %v13886_v24  ;;  %5947 = vmatmul.f32.gmra.mxu2 %v16290_v21  ;;  %6019 = vmatmul.f32.gmra.mxu3 %v16291_v0  ;;  %v16298_v0 = vld [vmem:[#allocation83_spill] sm:$0xff] }
 0x737   : > { %v13892_v52 = vpop.f32.mrf.mxu1  ;;  %6594 = vmatpush.msra.mxu0 %v16129_v38  ;;  %6641 = vmatpush.msra.mxu1 %v16293_v43 }
 0x738   : > { %16292 = vst [vmem:[#allocation98_spill] sm:$0xff] %v13892_v52  ;;  %11511 = vmatmul.msk.f32.gmra.mxu0 %vm1718_vm9, %v16259_v26 }
 0x739   : > { %v13900_v20 = vpop.f32.mrf.mxu2  ;;  %6647 = vmatpush.msra.mxu1 %v16296_v35 }
 0x73a   : > { %16295 = vst [vmem:[#allocation89_spill] sm:$0xff] %v13900_v20  ;;  %11519 = vmatmul.msk.f32.gmra.mxu1 %vm1718_vm9, %v16259_v26 }
 0x73b   : > { %v13916_v46 = vpop.f32.mrf.mxu3 }
 0x73c   : > { %16301 = vst [vmem:[#allocation105_spill] sm:$0xff] %v13916_v46 }
 0x73d   : > { %v13905_v21 = vpop.f32.mrf.mxu0 }
 0x73e   : > { %16297 = vst [vmem:[#allocation113_spill] sm:$0xff] %v13905_v21  ;;  %5952 = vmatmul.f32.gmra.mxu2 %v16298_v0 }
 0x73f   : > { %v13908_v3 = vpop.f32.mrf.mxu1 }
 0x740   : > { %16299 = vst [vmem:[#allocation107_spill] sm:$0xff] %v13908_v3  ;;  %11512 = vmatmul.msk.f32.gmra.mxu0 %vm1718_vm9, %v16262_v10 }
 0x741   : > { %v13912_v43 = vpop.f32.mrf.mxu2 }
 0x742   : > { %16300 = vst [vmem:[#allocation94_spill] sm:$0xff] %v13912_v43  ;;  %11520 = vmatmul.msk.f32.gmra.mxu1 %vm1718_vm9, %v16262_v10 }
 0x743   : > { %v13928_v26 = vpop.f32.mrf.mxu3 }
 0x744   : > { %16305 = vst [vmem:[#allocation111_spill] sm:$0xff] %v13928_v26 }
 0x745   : > { %v13918_v35 = vpop.f32.mrf.mxu0 }
 0x746   : > { %16302 = vst [vmem:[#allocation108_spill] sm:$0xff] %v13918_v35 }
 0x747   : > { %v13920_v27 = vpop.f32.mrf.mxu1 }
 0x748   : > { %16303 = vst [vmem:[#allocation109_spill] sm:$0xff] %v13920_v27  ;;  %11513 = vmatmul.msk.f32.gmra.mxu0 %vm1718_vm9, %v16266_v47 }
 0x749   : > { %v13924_v0 = vpop.f32.mrf.mxu2 }
 0x74a   : > { %16304 = vst [vmem:[#allocation116_spill] sm:$0xff] %v13924_v0  ;;  %11521 = vmatmul.msk.f32.gmra.mxu1 %vm1718_vm9, %v16266_v47 }
 0x74b   : > { %v13942_v39 = vpop.f32.mrf.mxu3 }
 0x74c   : > { %16310 = vst [vmem:[#allocation114_spill] sm:$0xff] %v13942_v39 }
 0x74d   : > { %v13930_v32 = vpop.f32.mrf.mxu0 }
 0x74e   : > { %16306 = vst [vmem:[#allocation118_spill] sm:$0xff] %v13930_v32 }
 0x74f   : > { %v13932_v14 = vpop.f32.mrf.mxu1 }
 0x750   : > { %16307 = vst [vmem:[#allocation102_spill] sm:$0xff] %v13932_v14  ;;  %11514 = vmatmul.msk.f32.gmra.mxu0 %vm1718_vm9, %v16270_v58 }
 0x751   : > { %v13936_v10 = vpop.f32.mrf.mxu2 }
 0x752   : > { %16308 = vst [vmem:[#allocation99_spill] sm:$0xff] %v13936_v10  ;;  %11522 = vmatmul.msk.f32.gmra.mxu1 %vm1718_vm9, %v16270_v58 }
 0x753   : > { %v13958_v58 = vpop.f32.mrf.mxu3 }
 0x754   : > { %16315 = vst [vmem:[#allocation122_spill] sm:$0xff] %v13958_v58 }
 0x755   : > { %v13940_v8 = vpop.f32.mrf.mxu0 }
 0x756   : > { %16309 = vst [vmem:[#allocation119_spill] sm:$0xff] %v13940_v8 }
 0x757   : > { %v13944_v50 = vpop.f32.mrf.mxu1 }
 0x758   : > { %16311 = vst [vmem:[#allocation110_spill] sm:$0xff] %v13944_v50  ;;  %11515 = vmatmul.msk.f32.gmra.mxu0 %vm1718_vm9, %v16274_v61 }
 0x759   : > { %v13950_v47 = vpop.f32.mrf.mxu2 }
 0x75a   : > { %11523 = vmatmul.msk.f32.gmra.mxu1 %vm1718_vm9, %v16274_v61  ;;  %16312 = vst [vmem:[#allocation115_spill] sm:$0xff] %v13950_v47 }
 0x75b   : > { %v13972_v61 = vpop.f32.mrf.mxu3 }
 0x75c   : > { %16319 = vst [vmem:[#allocation106_spill] sm:$0xff] %v13972_v61 }
 0x75d   : > { %v13952_v28 = vpop.f32.mrf.mxu0 }
 0x75e   : > { %16313 = vst [vmem:[#allocation121_spill] sm:$0xff] %v13952_v28 }
 0x75f   : > { %v13954_v12 = vpop.f32.mrf.mxu1 }
 0x760   : > { %16314 = vst [vmem:[#allocation103_spill] sm:$0xff] %v13954_v12  ;;  %11516 = vmatmul.msk.f32.gmra.mxu0 %vm1718_vm9, %v16278_v62 }
 0x761   : > { %v13962_v4 = vpop.f32.mrf.mxu2 }
 0x762   : > { %11524 = vmatmul.msk.f32.gmra.mxu1 %vm1718_vm9, %v16278_v62  ;;  %16316 = vst [vmem:[#allocation21_spill] sm:$0xff] %v13962_v4 }
 0x763   : > { %v13976_v50 = vpop.f32.mrf.mxu3 }
 0x764   : > { %16321 = vst [vmem:[#allocation175_spill] sm:$0xff] %v13976_v50 }
 0x765   : > { %v13964_v57 = vpop.f32.mrf.mxu0 }
 0x766   : > { %16317 = vst [vmem:[#allocation117_spill] sm:$0xff] %v13964_v57 }
 0x767   : > { %v13966_v60 = vpop.f32.mrf.mxu1 }
 0x768   : > { %16318 = vst [vmem:[#allocation23_spill] sm:$0xff] %v13966_v60  ;;  %11517 = vmatmul.msk.f32.gmra.mxu0 %vm1718_vm9, %v16282_v45 }
 0x769   : > { %v13974_v12 = vpop.f32.mrf.mxu2 }
 0x76a   : > { %11525 = vmatmul.msk.f32.gmra.mxu1 %vm1718_vm9, %v16282_v45  ;;  %16320 = vst [vmem:[#allocation112_spill] sm:$0xff] %v13974_v12 }
 0x76b   : > { %v13980_v60 = vpop.f32.mrf.mxu3 }
 0x76c   : > { %16323 = vst [vmem:[#allocation176_spill] sm:$0xff] %v13980_v60 }
 0x76d   : > { %v5777_v2 = vpop.f32.mrf.mxu0 }
 0x76f   : > { %v5864_v28 = vpop.f32.mrf.mxu1 }
 0x770   : > { %v5865_v42 = vadd.f32 %v5864_v28, %v5777_v2 }
 0x771   : > { %v13978_v14 = vpop.f32.mrf.mxu2 }
 0x772   : > { %16322 = vst [vmem:[#allocation120_spill] sm:$0xff] %v13978_v14 }
 0x773   : > { %v13984_v58 = vpop.f32.mrf.mxu3 }
 0x774   : > { %16325 = vst [vmem:[#allocation178_spill] sm:$0xff] %v13984_v58 }
 0x775   : > { %v5785_v62 = vpop.f32.mrf.mxu0 }
 0x777   : > { %v5868_v8 = vpop.f32.mrf.mxu1 }
 0x778   : > { %v5869_v1 = vadd.f32 %v5868_v8, %v5785_v62 }
 0x779   : > { %v13982_v32 = vpop.f32.mrf.mxu2 }
 0x77a   : > { %16324 = vst [vmem:[#allocation177_spill] sm:$0xff] %v13982_v32 }
 0x77b   : > { %v13988_v39 = vpop.f32.mrf.mxu3 }
 0x77c   : > { %16327 = vst [vmem:[#allocation97_spill] sm:$0xff] %v13988_v39 }
 0x77d   : > { %v5793_v57 = vpop.f32.mrf.mxu0 }
 0x77f   : > { %v5872_v4 = vpop.f32.mrf.mxu1 }
 0x780   : > { %v5873_v36 = vadd.f32 %v5872_v4, %v5793_v57 }
 0x781   : > { %v13986_v61 = vpop.f32.mrf.mxu2 }
 0x782   : > { %16326 = vst [vmem:[#allocation86_spill] sm:$0xff] %v13986_v61 }
 0x783   : > { %v5978_v14 = vpop.f32.mrf.mxu3 }
 0x785   : > { %v5801_v27 = vpop.f32.mrf.mxu0 }
 0x787   : > { %v5876_v45 = vpop.f32.mrf.mxu1 }
 0x788   : > { %v5877_v8 = vadd.f32 %v5876_v45, %v5801_v27 }
 0x789   : > { %v5918_v47 = vpop.f32.mrf.mxu2 }
 0x78a   : > { %v5919_v23 = vadd.f32 %v5918_v47, %v5865_v42 }
 0x78b   : > { %v5984_v26 = vpop.f32.mrf.mxu3 }
 0x78c   : > { %v5979_v57 = vadd.f32 %v5978_v14, %v5919_v23 }
 0x78d   : > { %v5809_v12 = vpop.f32.mrf.mxu0 }
 0x78f   : > { %v5880_v35 = vpop.f32.mrf.mxu1 }
 0x790   : > { %v5881_v30 = vadd.f32 %v5880_v35, %v5809_v12 }
 0x791   : > { %v5923_v60 = vpop.f32.mrf.mxu2 }
 0x792   : > { %v5924_v13 = vadd.f32 %v5923_v60, %v5869_v1 }
 0x793   : > { %v5990_v58 = vpop.f32.mrf.mxu3 }
 0x794   : > { %v5985_v44 = vadd.f32 %v5984_v26, %v5924_v13 }
 0x795   : > { %v5817_v50 = vpop.f32.mrf.mxu0 }
 0x797   : > { %v5884_v3 = vpop.f32.mrf.mxu1 }
 0x798   : > { %v5885_v38 = vadd.f32 %v5884_v3, %v5817_v50 }
 0x799   : > { %v5928_v24 = vpop.f32.mrf.mxu2 }
 0x79a   : > { %v5929_v41 = vadd.f32 %v5928_v24, %v5873_v36 }
 0x79b   : > { %v5996_v43 = vpop.f32.mrf.mxu3 }
 0x79c   : > { %v5991_v56 = vadd.f32 %v5990_v58, %v5929_v41 }
 0x79d   : > { %v5825_v10 = vpop.f32.mrf.mxu0 }
 0x79f   : > { %v5888_v52 = vpop.f32.mrf.mxu1 }
 0x7a0   : > { %v5889_v18 = vadd.f32 %v5888_v52, %v5825_v10 }
 0x7a1   : > { %v5933_v46 = vpop.f32.mrf.mxu2 }
 0x7a3   : > { %v6002_v31 = vpop.f32.mrf.mxu3 }
 0x7a5   : > { %v5833_v21 = vpop.f32.mrf.mxu0 }
 0x7a7   : > { %v5892_v32 = vpop.f32.mrf.mxu1 }
 0x7a8   : > { %v5893_v60 = vadd.f32 %v5892_v32, %v5833_v21 }
 0x7a9   : > { %v5938_v39 = vpop.f32.mrf.mxu2 }
 0x7aa   : > { %v5939_v25 = vadd.f32 %v5938_v39, %v5881_v30 }
 0x7ab   : > { %v6008_v53 = vpop.f32.mrf.mxu3 }
 0x7ac   : > { %v6003_v59 = vadd.f32 %v6002_v31, %v5939_v25 }
 0x7ad   : > { %v6047_v0 = vpop.f32.mrf.mxu0 }
 0x7ae   : > { %v6048_v30 = vadd.f32 %v6047_v0, %v5979_v57  ;;  %v16331_v57 = vld [vmem:[#allocation124_spill] sm:$0xff] }
 0x7af   : > { %v6098_v19 = vpop.f32.mrf.mxu1 }
 0x7b1   : > { %v5943_v48 = vpop.f32.mrf.mxu2 }
 0x7b2   : > { %v5944_v5 = vadd.f32 %v5943_v48, %v5885_v38  ;;  %v5934_v48 = vadd.f32 %v5933_v46, %v5877_v8  ;;  %v16329_v8 = vld [vmem:[#allocation130_spill] sm:$0xff] }
 0x7b3   : > { %v6014_v40 = vpop.f32.mrf.mxu3 }
 0x7b4   : > { %v6009_v34 = vadd.f32 %v6008_v53, %v5944_v5 }
 0x7b5   : > { %v6051_v61 = vpop.f32.mrf.mxu0 }
 0x7b6   : > { %v6052_v3 = vadd.f32 %v6051_v61, %v5985_v44 }
 0x7b7   : > { %v6102_v33 = vpop.f32.mrf.mxu1 }
 0x7b9   : > { %v5948_v11 = vpop.f32.mrf.mxu2 }
 0x7ba   : > { %v5949_v7 = vadd.f32 %v5948_v11, %v5889_v18  ;;  %v6103_v18 = vadd.f32 %v6102_v33, %v6052_v3  ;;  %v16330_v3 = vld [vmem:[#allocation133_spill] sm:$0xff] }
 0x7bc   : > { %v6015_v1 = vadd.f32 %v6014_v40, %v5949_v7 }
 0x7bd   : > { %v6055_v49 = vpop.f32.mrf.mxu0 }
 0x7be   : > { %v6056_v4 = vadd.f32 %v6055_v49, %v5991_v56  ;;  %v6020_v56 = vpop.f32.mrf.mxu3 }
 0x7bf   : > { %v6106_v20 = vpop.f32.mrf.mxu1 }
 0x7c0   : > { %v6107_v11 = vadd.f32 %v6106_v20, %v6056_v4  ;;  %v16332_v4 = vld [vmem:[#allocation123_spill] sm:$0xff] }
 0x7c1   : > { %v5953_v2 = vpop.f32.mrf.mxu2 }
 0x7c2   : > { %v5954_v13 = vadd.f32 %v5953_v2, %v5893_v60  ;;  %v16336_v2 = vld [vmem:[#allocation140_spill] sm:$0xff] }
 0x7c3   : > { %v16338_v60 = vld [vmem:[#allocation128_spill] sm:$0xff] }
 0x7c4   : > { %v6021_v53 = vadd.f32 %v6020_v56, %v5954_v13 }
 0x7c5   : > { %v6059_v9 = vpop.f32.mrf.mxu0 }
 0x7c7   : > { %v6110_v54 = vpop.f32.mrf.mxu1 }
 0x7cd   : > { %v6063_v51 = vpop.f32.mrf.mxu0 }
 0x7ce   : > { %v6064_v38 = vadd.f32 %v6063_v51, %v6003_v59 }
 0x7cf   : > { %v6114_v37 = vpop.f32.mrf.mxu1 }
 0x7d0   : > { %v6115_v41 = vadd.f32 %v6114_v37, %v6064_v38  ;;  %v16333_v38 = vld [vmem:[#allocation134_spill] sm:$0xff] }
 0x7d5   : > { %v6067_v63 = vpop.f32.mrf.mxu0 }
 0x7d6   : > { %v6068_v50 = vadd.f32 %v6067_v63, %v6009_v34  ;;  %v6099_v34 = vadd.f32 %v6098_v19, %v6048_v30  ;;  %v5997_v63 = vadd.f32 %v5996_v43, %v5934_v48  ;;  %v16335_v48 = vld [vmem:[#allocation139_spill] sm:$0xff] }
 0x7d7   : > { %v6118_v6 = vpop.f32.mrf.mxu1  ;;  %v16339_v30 = vld [vmem:[#allocation131_spill] sm:$0xff] }
 0x7d8   : > { %v6119_v12 = vadd.f32 %v6118_v6, %v6068_v50  ;;  %v6060_v59 = vadd.f32 %v6059_v9, %v5997_v63  ;;  %v6129_v40 = vsub.f32 %v6099_v34, %v6115_v41  ;;  %v16328_v50 = vld [vmem:[#allocation127_spill] sm:$0xff] }
 0x7da   : > { %v6130_v44 = vsub.f32 %v6103_v18, %v6119_v12  ;;  %v6111_v39 = vadd.f32 %v6110_v54, %v6060_v59  ;;  %v6133_v27 = vand.u32 2147483647, %v6129_v40  ;;  %v16340_v12 = vld [vmem:[#allocation135_spill] sm:$0xff] }
 0x7dc   : > { %v6134_v31 = vand.u32 2147483647, %v6130_v44  ;;  %v6155_v46 = vand.u32 4294901760, %v6133_v27 }
 0x7dd   : > { %v6071_v36 = vpop.f32.mrf.mxu0 }
 0x7de   : > { %v6072_v42 = vadd.f32 %v6071_v36, %v6015_v1  ;;  %v6153_v14 = vand.u32 4294901760, %v6134_v31  ;;  %v6205_v62 = vsub.f32 %v6133_v27, %v6155_v46  ;;  %v16334_v1 = vld [vmem:[#allocation137_spill] sm:$0xff] }
 0x7df   : > { %v6122_v5 = vpop.f32.mrf.mxu1  ;;  %v16337_v36 = vld [vmem:[#allocation125_spill] sm:$0xff] }
 0x7e0   : > { %v6123_v25 = vadd.f32 %v6122_v5, %v6072_v42  ;;  %v6199_v19 = vsub.f32 %v6134_v31, %v6153_v14  ;;  %v6206_v49 = vand.u32 4294901760, %v6205_v62  ;;  %v16341_v42 = vld [vmem:[#allocation138_spill] sm:$0xff] }
 0x7e2   : > { %v6131_v23 = vsub.f32 %v6107_v11, %v6123_v25  ;;  %v6200_v26 = vand.u32 4294901760, %v6199_v19  ;;  %v6207_v21 = vsub.f32 %v6205_v62, %v6206_v49 }
 0x7e4   : > { %v6135_v7 = vand.u32 2147483647, %v6131_v23  ;;  %v6201_v33 = vsub.f32 %v6199_v19, %v6200_v26  ;;  %v6208_v0 = vand.u32 4294901760, %v6207_v21 }
 0x7e5   : > { %v6075_v51 = vpop.f32.mrf.mxu0 }
 0x7e6   : > { %v6076_v28 = vadd.f32 %v6075_v51, %v6021_v53  ;;  %v6151_v32 = vand.u32 4294901760, %v6135_v7  ;;  %v6202_v47 = vand.u32 4294901760, %v6201_v33 }
 0x7e7   : > { %v6126_v6 = vpop.f32.mrf.mxu1 }
 0x7e8   : > { %v6127_v35 = vadd.f32 %v6126_v6, %v6076_v28  ;;  %v6193_v43 = vsub.f32 %v6135_v7, %v6151_v32 }
 0x7ea   : > { %v6132_v37 = vsub.f32 %v6111_v39, %v6127_v35  ;;  %v6194_v9 = vand.u32 4294901760, %v6193_v43 }
 0x7ec   : > { %v6136_v24 = vand.u32 2147483647, %v6132_v37  ;;  %v6195_v54 = vsub.f32 %v6193_v43, %v6194_v9 }
 0x7ee   : > { %v6149_v20 = vand.u32 4294901760, %v6136_v24  ;;  %v6196_v61 = vand.u32 4294901760, %v6195_v54  ;;  %v16348_v54 = vld [vmem:[#allocation151_spill] sm:$0xff] }
 0x7f0   : > { %v6187_v45 = vsub.f32 %v6136_v24, %v6149_v20  ;;  %6150 = vmatpush.msrb.mxu2 %v6149_v20 }
 0x7f2   : > { %6152 = vmatpush.msrb.mxu2 %v6151_v32  ;;  %v6188_v52 = vand.u32 4294901760, %v6187_v45 }
 0x7f4   : > { %6154 = vmatpush.msrb.mxu2 %v6153_v14  ;;  %v6189_v58 = vsub.f32 %v6187_v45, %v6188_v52 }
 0x7f6   : > { %6156 = vmatpush.msrb.mxu2 %v6155_v46  ;;  %v6190_v10 = vand.u32 4294901760, %v6189_v58  ;;  %v16347_v58 = vld [vmem:[#allocation148_spill] sm:$0xff] }
 0x7f7   : > { %6162 = vmatmul.f32.vlgmr.msrb.gmra.mxu2 %v12656_v16 }
 0x7f8   : > { %6233 = vmatpush.msra.mxu2 %v6187_v45  ;;  %6191 = vmatpush.msrb.mxu3 %v6190_v10  ;;  %v16349_v10 = vld [vmem:[#allocation143_spill] sm:$0xff] }
 0x7fa   : > { %6236 = vmatpush.msra.mxu2 %v6193_v43  ;;  %6197 = vmatpush.msrb.mxu3 %v6196_v61  ;;  %v16343_v43 = vld [vmem:[#allocation142_spill] sm:$0xff] }
 0x7fb   : > { %v16350_v61 = vld [vmem:[#allocation154_spill] sm:$0xff] }
 0x7fc   : > { %6239 = vmatpush.msra.mxu2 %v6199_v19  ;;  %6203 = vmatpush.msrb.mxu3 %v6202_v47  ;;  %v16351_v47 = vld [vmem:[#allocation146_spill] sm:$0xff] }
 0x7fe   : > { %6242 = vmatpush.msra.mxu2 %v6205_v62  ;;  %6209 = vmatpush.msrb.mxu3 %v6208_v0  ;;  %v16346_v62 = vld [vmem:[#allocation147_spill] sm:$0xff] }
 0x7ff   : > { %6211 = vmatmul.f32.vlgmr.msrb.gmra.mxu3 %v12639_v15  ;;  %6170 = vmatmul.f32.gmra.mxu2 %v12664_v22 }
 0x800   : > { %6302 = vmatpush.msrb.mxu2 %v6188_v52  ;;  %6267 = vmatpush.msra.mxu3 %v6149_v20 }
 0x802   : > { %6306 = vmatpush.msrb.mxu2 %v6194_v9  ;;  %6269 = vmatpush.msra.mxu3 %v6151_v32  ;;  %v16345_v9 = vld [vmem:[#allocation145_spill] sm:$0xff] }
 0x804   : > { %6310 = vmatpush.msrb.mxu2 %v6200_v26  ;;  %6271 = vmatpush.msra.mxu3 %v6153_v14 }
 0x806   : > { %6314 = vmatpush.msrb.mxu2 %v6206_v49  ;;  %6273 = vmatpush.msra.mxu3 %v6155_v46 }
 0x807   : > { %6215 = vmatmul.f32.gmra.mxu3 %v12649_v55  ;;  %6245 = vmatmul.f32.vlgmr.msra.gmra.mxu2 %v12643_v17 }
 0x808   : > { %6337 = vmatpush.msrb.mxu3 %v6149_v20  ;;  %6372 = vmatpush.msra.mxu2 %v12682_v29  ;;  %v16344_v20 = vld [vmem:[#allocation144_spill] sm:$0xff] }
 0x80a   : > { %6339 = vmatpush.msrb.mxu3 %v6151_v32  ;;  %6374 = vmatpush.msra.mxu2 %v16328_v50 }
 0x80c   : > { %6341 = vmatpush.msrb.mxu3 %v6153_v14  ;;  %6376 = vmatpush.msra.mxu2 %v16329_v8  ;;  %v16342_v14 = vld [vmem:[#allocation141_spill] sm:$0xff] }
 0x80e   : > { %6343 = vmatpush.msrb.mxu3 %v6155_v46  ;;  %6378 = vmatpush.msra.mxu2 %v16330_v3 }
 0x80f   : > { %6250 = vmatmul.f32.gmra.mxu2 %v16331_v57  ;;  %6277 = vmatmul.f32.vlgmr.msra.gmra.mxu3 %v16332_v4 }
 0x810   : > { %6413 = vmatpush.msra.mxu3 %v16333_v38 }
 0x812   : > { %6419 = vmatpush.msra.mxu3 %v16334_v1 }
 0x814   : > { %6425 = vmatpush.msra.mxu3 %v16335_v48 }
 0x816   : > { %6431 = vmatpush.msra.mxu3 %v16336_v2 }
 0x817   : > { %6283 = vmatmul.f32.gmra.mxu3 %v16337_v36  ;;  %6316 = vmatmul.f32.vlgmr.msrb.gmra.mxu2 %v12639_v15 }
 0x818   : > { %6524 = vmatpush.msrb.mxu2 %v16338_v60 }
 0x81a   : > { %6528 = vmatpush.msrb.mxu2 %v16339_v30 }
 0x81c   : > { %6532 = vmatpush.msrb.mxu2 %v16340_v12 }
 0x81e   : > { %6536 = vmatpush.msrb.mxu2 %v16341_v42 }
 0x81f   : > { %6320 = vmatmul.f32.gmra.mxu2 %v12649_v55  ;;  %6345 = vmatmul.f32.vlgmr.msrb.gmra.mxu3 %v12639_v15 }
 0x820   : > { %6559 = vmatpush.msrb.mxu3 %v12682_v29 }
 0x822   : > { %6561 = vmatpush.msrb.mxu3 %v16328_v50 }
 0x824   : > { %6563 = vmatpush.msrb.mxu3 %v16329_v8 }
 0x826   : > { %6565 = vmatpush.msrb.mxu3 %v16330_v3 }
 0x827   : > { %6349 = vmatmul.f32.gmra.mxu3 %v12649_v55 }
 0x87a   : > { %v6163_v18 = vpop.f32.mrf.mxu2 }
 0x882   : > { %v6212_v5 = vpop.f32.mrf.mxu3  ;;  %v6171_v11 = vpop.f32.mrf.mxu2 }
 0x883   : > { %v6213_v44 = vadd.f32 %v6212_v5, %v6163_v18  ;;  %v16352_v18 = vld [vmem:[#allocation149_spill] sm:$0xff]  ;;  %v16353_v5 = vld [vmem:[#allocation152_spill] sm:$0xff] }
 0x88a   : > { %v6216_v13 = vpop.f32.mrf.mxu3  ;;  %v6246_v41 = vpop.f32.mrf.mxu2 }
 0x88b   : > { %v6247_v56 = vadd.f32 %v6246_v41, %v6213_v44  ;;  %v6217_v53 = vadd.f32 %v6216_v13, %v6171_v11  ;;  %v16354_v11 = vld [vmem:[#allocation169_spill] sm:$0xff]  ;;  %v16355_v13 = vld [vmem:[#allocation170_spill] sm:$0xff]  ;;  %v16360_v44 = vld [vmem:[#allocation172_spill] sm:$0xff] }
 0x88c   : > { %v16356_v41 = vld [vmem:[#allocation158_spill] sm:$0xff] }
 0x892   : > { %v6251_v25 = vpop.f32.mrf.mxu2  ;;  %v6278_v34 = vpop.f32.mrf.mxu3 }
 0x893   : > { %v6279_v59 = vadd.f32 %v6278_v34, %v6247_v56  ;;  %v6252_v31 = vadd.f32 %v6251_v25, %v6217_v53  ;;  %v16357_v25 = vld [vmem:[#allocation171_spill] sm:$0xff]  ;;  %v16358_v34 = vld [vmem:[#allocation161_spill] sm:$0xff] }
 0x894   : > { %v16362_v56 = vld [vmem:[#allocation159_spill] sm:$0xff]  ;;  %v16366_v53 = vld [vmem:[#allocation5_spill] sm:$0xff] }
 0x89a   : > { %v6284_v63 = vpop.f32.mrf.mxu3  ;;  %v6317_v23 = vpop.f32.mrf.mxu2 }
 0x89b   : > { %v6318_v40 = vadd.f32 %v6317_v23, %v6279_v59  ;;  %v6285_v27 = vadd.f32 %v6284_v63, %v6252_v31  ;;  %v16359_v63 = vld [vmem:[#allocation157_spill] sm:$0xff]  ;;  %v16363_v59 = vld [vmem:[#allocation166_spill] sm:$0xff] }
 0x89c   : > { %v16361_v23 = vld [vmem:[#allocation165_spill] sm:$0xff]  ;;  %v16368_v31 = vld [vmem:[#allocation6_spill] sm:$0xff] }
 0x8a2   : > { %v6346_v7 = vpop.f32.mrf.mxu3  ;;  %v6321_v6 = vpop.f32.mrf.mxu2 }
 0x8a3   : > { %v6347_v51 = vadd.f32 %v6346_v7, %v6318_v40  ;;  %v6322_v35 = vadd.f32 %v6321_v6, %v6285_v27  ;;  %v16364_v40 = vld [vmem:[#allocation162_spill] sm:$0xff]  ;;  %v16365_v7 = vld [vmem:[#allocation164_spill] sm:$0xff]  ;;  %v16371_v27 = vld [vmem:[#allocation19_spill] sm:$0xff] }
 0x8a4   : > { %v16370_v6 = vld [vmem:[#allocation160_spill] sm:$0xff] }
 0x8a5   : > { %v6354_v28 = vsel %vm655_vm2, %v6347_v51, 0  ;;  %v16367_v51 = vld [vmem:[#allocation14_spill] sm:$0xff] }
 0x8a6   : > { %v14019_v39 = vand.u32 4294901760, %v6354_v28 }
 0x8a8   : > { %v14022_v32 = vsub.f32 %v6354_v28, %v14019_v39  ;;  %6433 = vmatmul.f32.vlgmr.msra.gmra.mxu3 %v14019_v39  ;;  %v16369_v28 = vld [vmem:[#allocation17_spill] sm:$0xff] }
 0x8a9   : > { %6705 = vmatpush.msra.mxu3 %v16342_v14 }
 0x8aa   : > { %v6350_v37 = vpop.f32.mrf.mxu3  ;;  %6467 = vmatmul.f32.vlgmr.msrb.gmra.mxu0 %v14022_v32  ;;  %v14028_v46 = vand.u32 4294901760, %v14022_v32 }
 0x8ab   : > { %v6351_v24 = vadd.f32 %v6350_v37, %v6322_v35  ;;  %6707 = vmatpush.msra.mxu3 %v16343_v43  ;;  %6740 = vmatpush.msrb.mxu0 %v16344_v20  ;;  %v16372_v35 = vld [vmem:[#allocation163_spill] sm:$0xff]  ;;  %v16373_v37 = vld [vmem:[#allocation20_spill] sm:$0xff] }
 0x8ac   : > { %6499 = vmatmul.f32.vlgmr.msrb.gmra.mxu1 %v14028_v46  ;;  %v6382_v19 = vsub.f32 %v14022_v32, %v14028_v46 }
 0x8ad   : > { %v6357_v45 = vsel %vm655_vm2, %v6351_v24, 0  ;;  %6709 = vmatpush.msra.mxu3 %v16345_v9  ;;  %6744 = vmatpush.msrb.mxu0 %v16346_v62  ;;  %v16374_v24 = vld [vmem:[#allocation9_spill] sm:$0xff] }
 0x8ae   : > { %v14038_v52 = vand.u32 4294901760, %v6357_v45  ;;  %v14040_v26 = vand.u32 4294901760, %v6382_v19  ;;  %6775 = vmatpush.msrb.mxu1 %v16342_v14  ;;  %v16375_v19 = vld [vmem:[#allocation167_spill] sm:$0xff] }
 0x8af   : > { %6711 = vmatpush.msra.mxu3 %v16347_v58  ;;  %6748 = vmatpush.msrb.mxu0 %v16348_v54 }
 0x8b0   : > { %v14046_v49 = vsub.f32 %v6357_v45, %v14038_v52  ;;  %6384 = vmatmul.f32.vlgmr.msra.gmra.mxu2 %v14040_v26  ;;  %6437 = vmatmul.f32.gmra.mxu3 %v14038_v52  ;;  %v16376_v45 = vld [vmem:[#allocation12_spill] sm:$0xff] }
 0x8b1   : > { %6777 = vmatpush.msrb.mxu1 %v16343_v43  ;;  %6671 = vmatpush.msra.mxu2 %v16349_v10 }
 0x8b2   : > { %6472 = vmatmul.f32.gmra.mxu0 %v14046_v49  ;;  %v14054_v33 = vand.u32 4294901760, %v14046_v49 }
 0x8b3   : > { %6752 = vmatpush.msrb.mxu0 %v16350_v61  ;;  %6779 = vmatpush.msrb.mxu1 %v16345_v9 }
 0x8b4   : > { %6505 = vmatmul.f32.gmra.mxu1 %v14054_v33  ;;  %v6390_v21 = vsub.f32 %v14046_v49, %v14054_v33  ;;  %6674 = vmatpush.msra.mxu2 %v16351_v47 }
 0x8b5   : > { %6781 = vmatpush.msrb.mxu1 %v16347_v58 }
 0x8b6   : > { %v14063_v0 = vand.u32 4294901760, %v6390_v21  ;;  %6677 = vmatpush.msra.mxu2 %v16352_v18  ;;  %v16377_v21 = vld [vmem:[#allocation168_spill] sm:$0xff]  ;;  %v16403_v18 = vld [vmem:[#allocation91_spill] sm:$0xff] }
 0x8b8   : > { %6392 = vmatmul.f32.gmra.mxu2 %v14063_v0  ;;  %6567 = vmatmul.f32.vlgmr.msrb.gmra.mxu3 %v14019_v39 }
 0x8b9   : > { %6680 = vmatpush.msra.mxu2 %v16353_v5  ;;  %6845 = vmatpush.msrb.mxu3 %v16354_v11 }
 0x8ba   : > { %6600 = vmatmul.f32.vlgmr.msra.gmra.mxu0 %v14040_v26 }
 0x8bb   : > { %6851 = vmatpush.msrb.mxu3 %v16355_v13  ;;  %6887 = vmatpush.msra.mxu0 %v16356_v41 }
 0x8bc   : > { %6649 = vmatmul.f32.vlgmr.msra.gmra.mxu1 %v14019_v39 }
 0x8bd   : > { %6857 = vmatpush.msrb.mxu3 %v16357_v25  ;;  %6890 = vmatpush.msra.mxu0 %v16358_v34  ;;  %v16400_v34 = vld [vmem:[#allocation105_spill] sm:$0xff] }
 0x8be   : > { %6921 = vmatpush.msra.mxu1 %v16359_v63 }
 0x8bf   : > { %6863 = vmatpush.msrb.mxu3 %v16360_v44  ;;  %6893 = vmatpush.msra.mxu0 %v16361_v23 }
 0x8c0   : > { %6538 = vmatmul.f32.vlgmr.msrb.gmra.mxu2 %v14019_v39  ;;  %6571 = vmatmul.f32.gmra.mxu3 %v14038_v52 }
 0x8c1   : > { %6923 = vmatpush.msra.mxu1 %v16362_v56  ;;  %6804 = vmatpush.msrb.mxu2 %v16359_v63 }
 0x8c2   : > { %6608 = vmatmul.f32.gmra.mxu0 %v14063_v0 }
 0x8c3   : > { %6896 = vmatpush.msra.mxu0 %v16363_v59  ;;  %6925 = vmatpush.msra.mxu1 %v16364_v40  ;;  %v16398_v59 = vld [vmem:[#allocation94_spill] sm:$0xff] }
 0x8c4   : > { %6653 = vmatmul.f32.gmra.mxu1 %v14038_v52  ;;  %6806 = vmatpush.msrb.mxu2 %v16362_v56 }
 0x8c5   : > { %6927 = vmatpush.msra.mxu1 %v16365_v7 }
 0x8c6   : > { %6808 = vmatpush.msrb.mxu2 %v16364_v40 }
 0x8c8   : > { %6542 = vmatmul.f32.gmra.mxu2 %v14038_v52  ;;  %6715 = vmatmul.f32.vlgmr.msra.gmra.mxu3 %v14028_v46 }
 0x8c9   : > { %6810 = vmatpush.msrb.mxu2 %v16365_v7  ;;  %6991 = vmatpush.msra.mxu3 %v16359_v63 }
 0x8ca   : > { %6754 = vmatmul.f32.vlgmr.msrb.gmra.mxu0 %v14019_v39 }
 0x8cb   : > { %6993 = vmatpush.msra.mxu3 %v16362_v56  ;;  %7120 = vmatpush.msrb.mxu0 %v16366_v53  ;;  %v16399_v56 = vld [vmem:[#allocation100_spill] sm:$0xff] }
 0x8cc   : > { %6783 = vmatmul.f32.vlgmr.msrb.gmra.mxu1 %v14019_v39 }
 0x8cd   : > { %6995 = vmatpush.msra.mxu3 %v16364_v40  ;;  %7161 = vmatpush.msrb.mxu1 %v16367_v51 }
 0x8ce   : > { %7122 = vmatpush.msrb.mxu0 %v16368_v31 }
 0x8cf   : > { %6997 = vmatpush.msra.mxu3 %v16365_v7  ;;  %7167 = vmatpush.msrb.mxu1 %v16369_v28  ;;  %v16397_v28 = vld [vmem:[#allocation95_spill] sm:$0xff] }
 0x8d0   : > { %6683 = vmatmul.f32.vlgmr.msra.gmra.mxu2 %v14022_v32  ;;  %6721 = vmatmul.f32.gmra.mxu3 %v14054_v33 }
 0x8d1   : > { %6956 = vmatpush.msra.mxu2 %v16370_v6  ;;  %7173 = vmatpush.msrb.mxu1 %v16371_v27  ;;  %v16396_v27 = vld [vmem:[#allocation174_spill] sm:$0xff] }
 0x8d2   : > { %6758 = vmatmul.f32.gmra.mxu0 %v14038_v52 }
 0x8d3   : > { %6960 = vmatpush.msra.mxu2 %v16372_v35  ;;  %7179 = vmatpush.msrb.mxu1 %v16373_v37  ;;  %v16378_v37 = vld [vmem:[#allocation8_spill] sm:$0xff] }
 0x8d4   : > { %6787 = vmatmul.f32.gmra.mxu1 %v14038_v52  ;;  %7124 = vmatpush.msrb.mxu0 %v16374_v24 }
 0x8d5   : > { %6964 = vmatpush.msra.mxu2 %v16375_v19  ;;  %v16379_v19 = vld [vmem:[#allocation11_spill] sm:$0xff] }
 0x8d6   : > { %7126 = vmatpush.msrb.mxu0 %v16376_v45 }
 0x8d7   : > { %6968 = vmatpush.msra.mxu2 %v16377_v21  ;;  %v16384_v21 = vld [vmem:[#allocation18_spill] sm:$0xff] }
 0x8d8   : > { %6688 = vmatmul.f32.gmra.mxu2 %v14046_v49  ;;  %6865 = vmatmul.f32.vlgmr.msrb.gmra.mxu3 %v14019_v39 }
 0x8d9   : > { %7237 = vmatpush.msrb.mxu3 %v16366_v53 }
 0x8da   : > { %6899 = vmatmul.f32.vlgmr.msra.gmra.mxu0 %v14022_v32  ;;  %v16380_v32 = vld [vmem:[#allocation7_spill] sm:$0xff] }
 0x8db   : > { %7239 = vmatpush.msrb.mxu3 %v16368_v31  ;;  %7272 = vmatpush.msra.mxu0 %v16378_v37  ;;  %v16383_v37 = vld [vmem:[#allocation13_spill] sm:$0xff] }
 0x8dc   : > { %6931 = vmatmul.f32.vlgmr.msra.gmra.mxu1 %v14028_v46  ;;  %v16381_v46 = vld [vmem:[#allocation10_spill] sm:$0xff] }
 0x8dd   : > { %7241 = vmatpush.msrb.mxu3 %v16374_v24  ;;  %7307 = vmatpush.msra.mxu1 %v16366_v53 }
 0x8de   : > { %7276 = vmatpush.msra.mxu0 %v16379_v19  ;;  %v16382_v19 = vld [vmem:[#allocation15_spill] sm:$0xff] }
 0x8df   : > { %7243 = vmatpush.msrb.mxu3 %v16376_v45  ;;  %7309 = vmatpush.msra.mxu1 %v16368_v31 }
 0x8e0   : > { %6816 = vmatmul.f32.vlgmr.msrb.gmra.mxu2 %v14040_v26  ;;  %6869 = vmatmul.f32.gmra.mxu3 %v14038_v52  ;;  %v16385_v26 = vld [vmem:[#allocation16_spill] sm:$0xff] }
 0x8e1   : > { %7203 = vmatpush.msrb.mxu2 %v16380_v32  ;;  %7311 = vmatpush.msra.mxu1 %v16374_v24  ;;  %v16386_v32 = vld [vmem:[#allocation35_spill] sm:$0xff]  ;;  %v16395_v24 = vld [vmem:[#allocation89_spill] sm:$0xff] }
 0x8e2   : > { %6904 = vmatmul.f32.gmra.mxu0 %v14046_v49  ;;  %v16387_v49 = vld [vmem:[#allocation36_spill] sm:$0xff] }
 0x8e3   : > { %7206 = vmatpush.msrb.mxu2 %v16381_v46  ;;  %7313 = vmatpush.msra.mxu1 %v16376_v45  ;;  %v16388_v46 = vld [vmem:[#allocation37_spill] sm:$0xff]  ;;  %v16389_v45 = vld [vmem:[#allocation39_spill] sm:$0xff] }
 0x8e4   : > { %6937 = vmatmul.f32.gmra.mxu1 %v14054_v33  ;;  %7280 = vmatpush.msra.mxu0 %v16382_v19  ;;  %v16390_v33 = vld [vmem:[#allocation22_spill] sm:$0xff] }
 0x8e5   : > { %7209 = vmatpush.msrb.mxu2 %v16383_v37 }
 0x8e6   : > { %7284 = vmatpush.msra.mxu0 %v16384_v21  ;;  %v16391_v21 = vld [vmem:[#allocation25_spill] sm:$0xff] }
 0x8e7   : > { %7212 = vmatpush.msrb.mxu2 %v16385_v26  ;;  %v16392_v26 = vld [vmem:[#allocation27_spill] sm:$0xff] }
 0x8e8   : > { %6824 = vmatmul.f32.gmra.mxu2 %v14063_v0  ;;  %6999 = vmatmul.f32.vlgmr.msra.gmra.mxu3 %v14019_v39  ;;  %v16393_v0 = vld [vmem:[#allocation31_spill] sm:$0xff] }
 0x8e9   : > { %7377 = vmatpush.msra.mxu3 %v16386_v32 }
 0x8eb   : > { %7383 = vmatpush.msra.mxu3 %v16387_v49 }
 0x8ed   : > { %7389 = vmatpush.msra.mxu3 %v16388_v46 }
 0x8ef   : > { %7395 = vmatpush.msra.mxu3 %v16389_v45  ;;  %v16394_v45 = vld [vmem:[#allocation173_spill] sm:$0xff] }
 0x8f0   : > { %6970 = vmatmul.f32.vlgmr.msra.gmra.mxu2 %v14019_v39  ;;  %7003 = vmatmul.f32.gmra.mxu3 %v14038_v52  ;;  %v5132_v39 = vadd.f32 %v16395_v24, %v16394_v45  ;;  %v16401_v24 = vld [vmem:[#allocation92_spill] sm:$0xff] }
 0x8f1   : > { %7336 = vmatpush.msra.mxu2 %v16390_v33 }
 0x8f2   : > { %v5181_v31 = vadd.f32 %v16397_v28, %v5132_v39 }
 0x8f3   : > { %7338 = vmatpush.msra.mxu2 %v16391_v21 }
 0x8f4   : > { %v5215_v23 = vadd.f32 %v16399_v56, %v5181_v31 }
 0x8f5   : > { %7340 = vmatpush.msra.mxu2 %v16392_v26 }
 0x8f6   : > { %v5247_v41 = vadd.f32 %v16401_v24, %v5215_v23 }
 0x8f7   : > { %7342 = vmatpush.msra.mxu2 %v16393_v0 }
 0x8f8   : > { %6974 = vmatmul.f32.gmra.mxu2 %v14038_v52  ;;  %v5140_v52 = vadd.f32 %v16398_v59, %v16394_v45  ;;  %v16404_v45 = vld [vmem:[#allocation111_spill] sm:$0xff] }
 0x8fa   : > { %v5185_v25 = vadd.f32 %v16400_v34, %v5140_v52  ;;  %v16407_v52 = vld [vmem:[#allocation98_spill] sm:$0xff] }
 0x8fc   : > { %v5220_v47 = vadd.f32 %v16403_v18, %v5185_v25 }
 0x8fe   : > { %v5253_v23 = vadd.f32 %v16407_v52, %v5220_v47 }
 0x927   : > { %v6468_v49 = vpop.f32.mrf.mxu0 }
 0x929   : > { %v6500_v37 = vpop.f32.mrf.mxu1 }
 0x92b   : > { %v6434_v32 = vpop.f32.mrf.mxu3 }
 0x92f   : > { %v6473_v35 = vpop.f32.mrf.mxu0 }
 0x931   : > { %v6506_v51 = vpop.f32.mrf.mxu1 }
 0x933   : > { %v6385_v46 = vpop.f32.mrf.mxu2  ;;  %v6438_v19 = vpop.f32.mrf.mxu3 }
 0x934   : > { %v6386_v6 = vadd.f32 %v6385_v46, %v16396_v27  ;;  %v16402_v46 = vld [vmem:[#allocation116_spill] sm:$0xff] }
 0x935   : > { %v5286_v11 = vadd.f32 %v16402_v46, %v5247_v41 }
 0x936   : > { %v6435_v53 = vadd.f32 %v6434_v32, %v6386_v6 }
 0x937   : > { %v6601_v13 = vpop.f32.mrf.mxu0  ;;  %v5315_v56 = vadd.f32 %v16404_v45, %v5286_v11  ;;  %v16410_v11 = vld [vmem:[#allocation115_spill] sm:$0xff]  ;;  %v16411_v45 = vld [vmem:[#allocation114_spill] sm:$0xff] }
 0x938   : > { %v6469_v63 = vadd.f32 %v6468_v49, %v6435_v53  ;;  %v16405_v53 = vld [vmem:[#allocation90_spill] sm:$0xff]  ;;  %v16406_v49 = vld [vmem:[#allocation113_spill] sm:$0xff] }
 0x939   : > { %v6650_v28 = vpop.f32.mrf.mxu1  ;;  %v5348_v34 = vadd.f32 %v16406_v49, %v16405_v53 }
 0x93a   : > { %v6501_v6 = vadd.f32 %v6500_v37, %v6469_v63  ;;  %v16409_v37 = vld [vmem:[#allocation107_spill] sm:$0xff] }
 0x93b   : > { %v6393_v7 = vpop.f32.mrf.mxu2  ;;  %v6568_v40 = vpop.f32.mrf.mxu3 }
 0x93c   : > { %v6394_v44 = vadd.f32 %v6393_v7, %v16396_v27  ;;  %v16408_v27 = vld [vmem:[#allocation99_spill] sm:$0xff] }
 0x93d   : > { %v5290_v41 = vadd.f32 %v16408_v27, %v5253_v23  ;;  %v16415_v23 = vld [vmem:[#allocation109_spill] sm:$0xff] }
 0x93e   : > { %v6439_v39 = vadd.f32 %v6438_v19, %v6394_v44  ;;  %v5397_v19 = vadd.f32 %v16409_v37, %v5348_v34  ;;  %v16417_v37 = vld [vmem:[#allocation21_spill] sm:$0xff] }
 0x93f   : > { %v6609_v46 = vpop.f32.mrf.mxu0 }
 0x940   : > { %v6474_v7 = vadd.f32 %v6473_v35, %v6439_v39  ;;  %v5319_v39 = vadd.f32 %v16411_v45, %v5290_v41  ;;  %v16416_v41 = vld [vmem:[#allocation118_spill] sm:$0xff] }
 0x941   : > { %v6654_v35 = vpop.f32.mrf.mxu1 }
 0x942   : > { %v6507_v63 = vadd.f32 %v6506_v51, %v6474_v7 }
 0x943   : > { %v6539_v32 = vpop.f32.mrf.mxu2  ;;  %v6572_v5 = vpop.f32.mrf.mxu3 }
 0x944   : > { %v6540_v59 = vadd.f32 %v6539_v32, %v6501_v6  ;;  %v16412_v6 = vld [vmem:[#allocation93_spill] sm:$0xff] }
 0x945   : > { %v6602_v32 = vadd.f32 %v6601_v13, %v16412_v6 }
 0x946   : > { %v6569_v31 = vadd.f32 %v6568_v40, %v6540_v59  ;;  %v5431_v40 = vadd.f32 %v16410_v11, %v5397_v19  ;;  %v16413_v59 = vld [vmem:[#allocation108_spill] sm:$0xff] }
 0x947   : > { %v5356_v27 = vadd.f32 %v16413_v59, %v16405_v53  ;;  %v6651_v49 = vadd.f32 %v6650_v28, %v6602_v32  ;;  %v6755_v13 = vpop.f32.mrf.mxu0 }
 0x948   : > { %v7007_v24 = vadd.f32 %v6569_v31, %v5315_v56  ;;  %v16414_v31 = vld [vmem:[#allocation122_spill] sm:$0xff] }
 0x949   : > { %v5463_v51 = vadd.f32 %v16414_v31, %v5431_v40  ;;  %v6784_v28 = vpop.f32.mrf.mxu1 }
 0x94a   : > { %v11526_v44 = vmul.f32 -1.442695, %v7007_v24  ;;  %v5401_v24 = vadd.f32 %v16415_v23, %v5356_v27 }
 0x94b   : > { %v6543_v61 = vpop.f32.mrf.mxu2  ;;  %v6716_v18 = vpop.f32.mrf.mxu3 }
 0x94c   : > { %11697 = vpow2.f32 %v11526_v44  ;;  %v6544_v25 = vadd.f32 %v6543_v61, %v6507_v63  ;;  %v5502_v63 = vadd.f32 %v16416_v41, %v5463_v51  ;;  %v5436_v19 = vadd.f32 %v16417_v37, %v5401_v24 }
 0x94e   : > { %v6573_v47 = vadd.f32 %v6572_v5, %v6544_v25  ;;  %v6610_v25 = vadd.f32 %v6609_v46, %v16412_v6  ;;  %v16420_v46 = vld [vmem:[#allocation119_spill] sm:$0xff] }
 0x94f   : > { %v6759_v24 = vpop.f32.mrf.mxu0 }
 0x950   : > { %v7008_v56 = vadd.f32 %v6573_v47, %v5319_v39  ;;  %v16418_v39 = vld [vmem:[#allocation102_spill] sm:$0xff]  ;;  %v6655_v27 = vadd.f32 %v6654_v35, %v6610_v25 }
 0x951   : > { %v5531_v32 = vadd.f32 %v16418_v39, %v5502_v63  ;;  %v16419_v47 = vld [vmem:[#allocation106_spill] sm:$0xff]  ;;  %v16421_v63 = vld [vmem:[#allocation88_spill] sm:$0xff] }
 0x952   : > { %v11698_v7 = vpop.eup %11697  ;;  %v11527_v34 = vmul.f32 -1.442695, %v7008_v56  ;;  %v5469_v59 = vadd.f32 %v16419_v47, %v5436_v19  ;;  %v6788_v19 = vpop.f32.mrf.mxu1  ;;  %v16423_v25 = vld [vmem:[#allocation110_spill] sm:$0xff] }
 0x953   : > { %v14176_v52 = vadd.f32 1.0, %v11698_v7  ;;  %v6684_v61 = vpop.f32.mrf.mxu2  ;;  %v6722_v5 = vpop.f32.mrf.mxu3 }
 0x954   : > { %11699 = vpow2.f32 %v11527_v34  ;;  %v6685_v44 = vadd.f32 %v6684_v61, %v6651_v49  ;;  %v5506_v61 = vadd.f32 %v16420_v46, %v5469_v59 }
 0x955   : > { %11701 = vrcp.f32 %v14176_v52  ;;  %vm7022_vm13 = vweird.f32 %v14176_v52 }
 0x956   : > { %v6717_v11 = vadd.f32 %v6716_v18, %v6685_v44 }
 0x958   : > { %v6756_v40 = vadd.f32 %v6755_v13, %v6717_v11  ;;  %v16422_v13 = vld [vmem:[#allocation112_spill] sm:$0xff]  ;;  %v5535_v11 = vadd.f32 %v16423_v25, %v5506_v61 }
 0x959   : > { %v5564_v37 = vadd.f32 %v16422_v13, %v16421_v63  ;;  %v16428_v13 = vld [vmem:[#allocation176_spill] sm:$0xff] }
 0x95a   : > { %v11700_v45 = vpop.eup %11699  ;;  %v6785_v56 = vadd.f32 %v6784_v28, %v6756_v40 }
 0x95b   : > { %v14185_v31 = vadd.f32 1.0, %v11700_v45  ;;  %v6689_v51 = vpop.f32.mrf.mxu2  ;;  %v14187_v7 = vpop.eup %11701 }
 0x95c   : > { %v7047_v49 = vadd.f32 %v6785_v56, %v5531_v32  ;;  %v6690_v34 = vadd.f32 %v6689_v51, %v6655_v27  ;;  %v6866_v44 = vpop.f32.mrf.mxu3  ;;  %v7018_v41 = vmul.f32 %v14187_v7, %v14176_v52  ;;  %v16424_v32 = vld [vmem:[#allocation175_spill] sm:$0xff]  ;;  %v16425_v56 = vld [vmem:[#allocation96_spill] sm:$0xff]  ;;  %vm7023_vm12 = vweird.f32 %v14187_v7 }
 0x95d   : > { %11703 = vrcp.f32 %v14185_v31  ;;  %v5613_v47 = vadd.f32 %v16424_v32, %v5564_v37  ;;  %v7026_v32 = vand.u32 2147483647, %v14176_v52  ;;  %vm14217_vm14 = vmor %vm7022_vm13, %vm7023_vm12  ;;  %vm7037_vm0 = vweird.f32 %v14185_v31 }
 0x95e   : > { %v11528_v23 = vmul.f32 -1.442695, %v7047_v49  ;;  %v6723_v18 = vadd.f32 %v6722_v5, %v6690_v34  ;;  %v7019_v45 = vsub.f32 1.0, %v7018_v41  ;;  %v16426_v49 = vld [vmem:[#allocation120_spill] sm:$0xff] }
 0x95f   : > { %v5572_v34 = vadd.f32 %v16426_v49, %v16421_v63  ;;  %v16432_v49 = vld [vmem:[#allocation177_spill] sm:$0xff]  ;;  %vm7027_vm15 = vcmp.eq.f32.partialorder %v7026_v32, 8.507059e+37 }
 0x960   : > { %11705 = vpow2.f32 %v11528_v23  ;;  %v6760_v35 = vadd.f32 %v6759_v24, %v6723_v18  ;;  %v7020_v23 = vmul.f32 %v14187_v7, %v7019_v45  ;;  %v16427_v18 = vld [vmem:[#allocation121_spill] sm:$0xff]  ;;  %v16429_v45 = vld [vmem:[#allocation103_spill] sm:$0xff] }
 0x961   : > { %v5647_v24 = vadd.f32 %v16427_v18, %v5613_v47  ;;  %v5617_v37 = vadd.f32 %v16428_v13, %v5572_v34 }
 0x962   : > { %v6789_v28 = vadd.f32 %v6788_v19, %v6760_v35  ;;  %v6900_v19 = vpop.f32.mrf.mxu0 }
 0x963   : > { %v6817_v40 = vpop.f32.mrf.mxu2  ;;  %v14196_v5 = vpop.eup %11703 }
 0x964   : > { %v7048_v39 = vadd.f32 %v6789_v28, %v5535_v11  ;;  %v6818_v51 = vadd.f32 %v6817_v40, %v16425_v56  ;;  %v7033_v61 = vmul.f32 %v14196_v5, %v14185_v31  ;;  %v6870_v41 = vpop.f32.mrf.mxu3  ;;  %v7021_v11 = vadd.f32 %v14187_v7, %v7020_v23  ;;  %v16433_v23 = vld [vmem:[#allocation117_spill] sm:$0xff] }
 0x965   : > { %v7028_v28 = vand.u32 2147483648, %v14176_v52  ;;  %v5652_v18 = vadd.f32 %v16433_v23, %v5617_v37  ;;  %v16434_v37 = vld [vmem:[#allocation178_spill] sm:$0xff]  ;;  %vm7038_vm1 = vweird.f32 %v14196_v5 }
 0x966   : > { %v11706_v59 = vpop.eup %11705  ;;  %v11529_v27 = vmul.f32 -1.442695, %v7048_v39  ;;  %v6867_v35 = vadd.f32 %v6866_v44, %v6818_v51  ;;  %v7034_v40 = vsub.f32 1.0, %v7033_v61  ;;  %v5679_v39 = vadd.f32 %v16429_v45, %v5647_v24  ;;  %v6932_v61 = vpop.f32.mrf.mxu1  ;;  %vm14243_vm5 = vmor %vm7037_vm0, %vm7038_vm1 }
 0x967   : > { %v14202_v46 = vadd.f32 1.0, %v11706_v59  ;;  %v7025_v52 = vsel %vm14217_vm14, %v14187_v7, %v7021_v11 }
 0x968   : > { %11707 = vpow2.f32 %v11529_v27  ;;  %v6901_v59 = vadd.f32 %v6900_v19, %v6867_v35  ;;  %v5718_v34 = vadd.f32 %v16432_v49, %v5679_v39  ;;  %v7035_v35 = vmul.f32 %v14196_v5, %v7034_v40 }
 0x969   : > { %11709 = vrcp.f32 %v14202_v46  ;;  %vm7062_vm4 = vweird.f32 %v14202_v46 }
 0x96a   : > { %v6933_v39 = vadd.f32 %v6932_v61, %v6901_v59  ;;  %v5747_v23 = vadd.f32 %v16434_v37, %v5718_v34  ;;  %v6905_v40 = vpop.f32.mrf.mxu0  ;;  %v7068_v34 = vand.u32 2147483648, %v14202_v46 }
 0x96b   : > { %v6825_v25 = vpop.f32.mrf.mxu2 }
 0x96c   : > { %v6826_v44 = vadd.f32 %v6825_v25, %v16425_v56  ;;  %v7029_v25 = vor.u32 1.1754944e-38, %v7028_v28  ;;  %v7000_v63 = vpop.f32.mrf.mxu3  ;;  %v7036_v28 = vadd.f32 %v14196_v5, %v7035_v35  ;;  %v7069_v37 = vor.u32 1.1754944e-38, %v7068_v34 }
 0x96e   : > { %v11708_v47 = vpop.eup %11707  ;;  %v6871_v45 = vadd.f32 %v6870_v41, %v6826_v44  ;;  %v7030_v49 = vsel %vm7027_vm15, %v7029_v25, %v7025_v52  ;;  %v7041_v41 = vand.u32 2147483647, %v14185_v31  ;;  %v7043_v44 = vand.u32 2147483648, %v14185_v31 }
 0x96f   : > { %v11710_v51 = vpop.eup %11709  ;;  %v14223_v13 = vadd.f32 1.0, %v11708_v47  ;;  %v16435_v47 = vld [vmem:[#allocation23_spill] sm:$0xff]  ;;  %v7087_v32 = vmul.f32 %v7030_v49, %v5747_v23 }
 0x970   : > { %v7058_v24 = vmul.f32 %v11710_v51, %v14202_v46  ;;  %v5685_v56 = vadd.f32 %v16435_v47, %v5652_v18  ;;  %vm7063_vm3 = vweird.f32 %v11710_v51  ;;  %v6906_v18 = vadd.f32 %v6905_v40, %v6871_v45 }
 0x971   : > { %11711 = vrcp.f32 %v14223_v13  ;;  %vm14249_vm6 = vmor %vm7062_vm4, %vm7063_vm3  ;;  %v7040_v45 = vsel %vm14243_vm5, %v14196_v5, %v7036_v28  ;;  %vm7042_vm7 = vcmp.eq.f32.partialorder %v7041_v41, 8.507059e+37  ;;  %vm7077_vm11 = vweird.f32 %v14223_v13 }
 0x972   : > { %v7059_v19 = vsub.f32 1.0, %v7058_v24  ;;  %v16438_v24 = vld [vmem:[#allocation86_spill] sm:$0xff] }
 0x973   : > { %v6971_v6 = vpop.f32.mrf.mxu2  ;;  %v5722_v25 = vadd.f32 %v16438_v24, %v5685_v56  ;;  %v16442_v24 = vld [vmem:[#allocation101_spill] sm:$0xff] }
 0x974   : > { %v6972_v7 = vadd.f32 %v6971_v6, %v6933_v39  ;;  %v7060_v11 = vmul.f32 %v11710_v51, %v7059_v19  ;;  %v7066_v6 = vand.u32 2147483647, %v14202_v46  ;;  %v6938_v46 = vpop.f32.mrf.mxu1  ;;  %v7044_v39 = vor.u32 1.1754944e-38, %v7043_v44  ;;  %v7004_v52 = vpop.f32.mrf.mxu3 }
 0x975   : > { %v6939_v56 = vadd.f32 %v6938_v46, %v6906_v18 }
 0x976   : > { %v7001_v59 = vadd.f32 %v7000_v63, %v6972_v7  ;;  %v7061_v27 = vadd.f32 %v11710_v51, %v7060_v11  ;;  %vm7067_vm8 = vcmp.eq.f32.partialorder %v7066_v6, 8.507059e+37  ;;  %v7045_v47 = vsel %vm7042_vm7, %v7044_v39, %v7040_v45  ;;  %v16441_v7 = vld [vmem:[#allocation97_spill] sm:$0xff] }
 0x977   : > { %v11712_v61 = vpop.eup %11711  ;;  %v5751_v11 = vadd.f32 %v16441_v7, %v5722_v25  ;;  %v16446_v7 = vld [vmem:[#allocation28_spill] sm:$0xff] }
 0x978   : > { %v7073_v35 = vmul.f32 %v11712_v61, %v14223_v13  ;;  %v7089_v19 = vadd.f32 %v7087_v32, %v7001_v59  ;;  %v7065_v31 = vsel %vm14249_vm6, %v11710_v51, %v7061_v27  ;;  %vm7078_vm10 = vweird.f32 %v11712_v61 }
 0x979   : > { %v7070_v40 = vsel %vm7067_vm8, %v7069_v37, %v7065_v31  ;;  %v7083_v51 = vand.u32 2147483648, %v14223_v13  ;;  %v7088_v41 = vmul.f32 %v7045_v47, %v5751_v11  ;;  %v7081_v27 = vand.u32 2147483647, %v14223_v13  ;;  %vm7079_vm12 = vmor %vm7077_vm11, %vm7078_vm10 }
 0x97a   : > { %v7074_v49 = vsub.f32 1.0, %v7073_v35  ;;  %11713 = vtanh.f32 %v7089_v19  ;;  %v7093_v44 = vsub.f32 1.0, %v7070_v40  ;;  %v7097_v25 = vmul.f32 %v7070_v40, %v16442_v24  ;;  %v16453_v24 = vld [vmem:[#allocation51_spill] sm:$0xff] }
 0x97b   : > { %v6975_v23 = vpop.f32.mrf.mxu2  ;;  %v7084_v63 = vor.u32 1.1754944e-38, %v7083_v51  ;;  %vm7082_vm13 = vcmp.eq.f32.partialorder %v7081_v27, 8.507059e+37  ;;  %v16449_v51 = vld [vmem:[#allocation34_spill] sm:$0xff] }
 0x97c   : > { %v6976_v32 = vadd.f32 %v6975_v23, %v6939_v56  ;;  %v7075_v59 = vmul.f32 %v11712_v61, %v7074_v49 }
 0x97e   : > { %v7005_v5 = vadd.f32 %v7004_v52, %v6976_v32  ;;  %v7076_v28 = vadd.f32 %v11712_v61, %v7075_v59  ;;  %v16447_v32 = vld [vmem:[#allocation29_spill] sm:$0xff] }
 0x980   : > { %v11714_v34 = vpop.eup %11713  ;;  %v7090_v18 = vadd.f32 %v7088_v41, %v7005_v5  ;;  %v7080_v35 = vsel %vm7079_vm12, %v11712_v61, %v7076_v28  ;;  %v16444_v61 = vld [vmem:[#allocation104_spill] sm:$0xff] }
 0x981   : > { %v7095_v6 = vmul.f32 %v11714_v34, %v7093_v44  ;;  %v7085_v45 = vsel %vm7082_vm13, %v7084_v63, %v7080_v35  ;;  %v16448_v5 = vld [vmem:[#allocation32_spill] sm:$0xff]  ;;  %v16451_v34 = vld [vmem:[#allocation26_spill] sm:$0xff]  ;;  %v16455_v35 = vld [vmem:[#allocation41_spill] sm:$0xff] }
 0x982   : > { %11715 = vtanh.f32 %v7090_v18  ;;  %v7094_v39 = vsub.f32 1.0, %v7085_v45  ;;  %v7098_v56 = vmul.f32 %v7085_v45, %v16444_v61  ;;  %v16450_v44 = vld [vmem:[#allocation24_spill] sm:$0xff]  ;;  %v16460_v61 = vld [vmem:[#allocation46_spill] sm:$0xff] }
 0x983   : > { %v14263_v19 = vadd.f32 %v7097_v25, %v7095_v6  ;;  %v16452_v6 = vld [vmem:[#allocation30_spill] sm:$0xff]  ;;  %v16454_v25 = vld [vmem:[#allocation33_spill] sm:$0xff]  ;;  %v16456_v45 = vld [vmem:[#allocation52_spill] sm:$0xff] }
 0x985   : > { %16443 = vst [vmem:[#allocation89_spill] sm:$0xff] %v14263_v19  ;;  %v7102_v46 = vsel %vm655_vm2, %v14263_v19, 0 }
 0x986   : > { %v14267_v31 = vand.u32 4294901760, %v7102_v46 }
 0x988   : > { %v11716_v13 = vpop.eup %11715  ;;  %7181 = vmatmul.f32.vlgmr.msrb.gmra.mxu1 %v14267_v31  ;;  %v14271_v49 = vsub.f32 %v7102_v46, %v14267_v31  ;;  %v16457_v46 = vld [vmem:[#allocation43_spill] sm:$0xff] }
 0x989   : > { %v7096_v37 = vmul.f32 %v11716_v13, %v7094_v39  ;;  %7453 = vmatpush.msrb.mxu1 %v16390_v33  ;;  %v16458_v39 = vld [vmem:[#allocation38_spill] sm:$0xff]  ;;  %v7771_v13 = vand.u32 4294901760, %v14263_v19 }
 0x98a   : > { %7215 = vmatmul.f32.vlgmr.msrb.gmra.mxu2 %v14271_v49  ;;  %v14277_v23 = vand.u32 4294901760, %v14271_v49 }
 0x98b   : > { %v14279_v47 = vadd.f32 %v7098_v56, %v7096_v37  ;;  %7488 = vmatpush.msrb.mxu2 %v16446_v7  ;;  %7455 = vmatpush.msrb.mxu1 %v16391_v21  ;;  %v16459_v37 = vld [vmem:[#allocation53_spill] sm:$0xff]  ;;  %v16461_v56 = vld [vmem:[#allocation40_spill] sm:$0xff] }
 0x98c   : > { %7247 = vmatmul.f32.vlgmr.msrb.gmra.mxu3 %v14277_v23  ;;  %v7130_v11 = vsub.f32 %v14271_v49, %v14277_v23 }
 0x98d   : > { %16445 = vst [vmem:[#allocation95_spill] sm:$0xff] %v14279_v47  ;;  %v7105_v40 = vsel %vm655_vm2, %v14279_v47, 0  ;;  %7492 = vmatpush.msrb.mxu2 %v16447_v32  ;;  %7523 = vmatpush.msrb.mxu3 %v16390_v33  ;;  %v7769_v63 = vand.u32 4294901760, %v14279_v47 }
 0x98e   : > { %v14290_v59 = vand.u32 4294901760, %v7105_v40  ;;  %v14292_v52 = vand.u32 4294901760, %v7130_v11  ;;  %7457 = vmatpush.msrb.mxu1 %v16392_v26 }
 0x98f   : > { %7496 = vmatpush.msrb.mxu2 %v16448_v5  ;;  %7525 = vmatpush.msrb.mxu3 %v16391_v21  ;;  %v7853_v11 = vsub.f32 %v14279_v47, %v7769_v63 }
 0x990   : > { %7132 = vmatmul.f32.vlgmr.msrb.gmra.mxu0 %v14292_v52  ;;  %7185 = vmatmul.f32.gmra.mxu1 %v14290_v59  ;;  %v14300_v28 = vsub.f32 %v7105_v40, %v14290_v59  ;;  %v16462_v40 = vld [vmem:[#allocation48_spill] sm:$0xff] }
 0x991   : > { %7500 = vmatpush.msrb.mxu2 %v16449_v51  ;;  %7527 = vmatpush.msrb.mxu3 %v16392_v26 }
 0x992   : > { %7220 = vmatmul.f32.gmra.mxu2 %v14300_v28  ;;  %v14306_v41 = vand.u32 4294901760, %v14300_v28  ;;  %7459 = vmatpush.msrb.mxu1 %v16393_v0 }
 0x993   : > { %7529 = vmatpush.msrb.mxu3 %v16393_v0  ;;  %7419 = vmatpush.msrb.mxu0 %v16450_v44 }
 0x994   : > { %7253 = vmatmul.f32.gmra.mxu3 %v14306_v41  ;;  %v7138_v27 = vsub.f32 %v14300_v28, %v14306_v41 }
 0x995   : > { %7422 = vmatpush.msrb.mxu0 %v16451_v34 }
 0x996   : > { %v14315_v18 = vand.u32 4294901760, %v7138_v27  ;;  %v16463_v27 = vld [vmem:[#allocation42_spill] sm:$0xff] }
 0x997   : > { %7425 = vmatpush.msrb.mxu0 %v16452_v6 }
 0x998   : > { %7140 = vmatmul.f32.gmra.mxu0 %v14315_v18  ;;  %7315 = vmatmul.f32.vlgmr.msra.gmra.mxu1 %v14267_v31 }
 0x999   : > { %7593 = vmatpush.msra.mxu1 %v16453_v24  ;;  %7428 = vmatpush.msrb.mxu0 %v16454_v25 }
 0x99a   : > { %7348 = vmatmul.f32.vlgmr.msra.gmra.mxu2 %v14292_v52 }
 0x99b   : > { %7635 = vmatpush.msra.mxu2 %v16455_v35  ;;  %7599 = vmatpush.msra.mxu1 %v16456_v45  ;;  %v16464_v45 = vld [vmem:[#allocation54_spill] sm:$0xff] }
 0x99c   : > { %7397 = vmatmul.f32.vlgmr.msra.gmra.mxu3 %v14267_v31 }
 0x99d   : > { %7638 = vmatpush.msra.mxu2 %v16457_v46  ;;  %7669 = vmatpush.msra.mxu3 %v16458_v39  ;;  %v7859_v46 = vsub.f32 %v14263_v19, %v7771_v13 }
 0x99e   : > { %7605 = vmatpush.msra.mxu1 %v16459_v37  ;;  %v16465_v37 = vld [vmem:[#allocation44_spill] sm:$0xff] }
 0x99f   : > { %7641 = vmatpush.msra.mxu2 %v16460_v61  ;;  %7671 = vmatpush.msra.mxu3 %v16461_v56  ;;  %v7854_v61 = vand.u32 4294901760, %v7853_v11  ;;  %v7860_v35 = vand.u32 4294901760, %v7859_v46 }
 0x9a0   : > { %7286 = vmatmul.f32.vlgmr.msra.gmra.mxu0 %v14267_v31  ;;  %7319 = vmatmul.f32.gmra.mxu1 %v14290_v59 }
 0x9a1   : > { %7644 = vmatpush.msra.mxu2 %v16462_v40  ;;  %7673 = vmatpush.msra.mxu3 %v16463_v27  ;;  %v7855_v25 = vsub.f32 %v7853_v11, %v7854_v61  ;;  %v7861_v40 = vsub.f32 %v7859_v46, %v7860_v35 }
 0x9a2   : > { %7356 = vmatmul.f32.gmra.mxu2 %v14315_v18  ;;  %7611 = vmatpush.msra.mxu1 %v16464_v45 }
 0x9a3   : > { %7675 = vmatpush.msra.mxu3 %v16465_v37  ;;  %7552 = vmatpush.msra.mxu0 %v16458_v39  ;;  %v7856_v45 = vand.u32 4294901760, %v7855_v25  ;;  %v7862_v24 = vand.u32 4294901760, %v7861_v40  ;;  %v16467_v25 = vld [vmem:[#allocation47_spill] sm:$0xff] }
 0x9a4   : > { %7401 = vmatmul.f32.gmra.mxu3 %v14290_v59  ;;  %v16484_v40 = vld [vmem:[#allocation59_spill] sm:$0xff] }
 0x9a5   : > { %7554 = vmatpush.msra.mxu0 %v16461_v56 }
 0x9a7   : > { %7556 = vmatpush.msra.mxu0 %v16463_v27 }
 0x9a8   : > { %7290 = vmatmul.f32.gmra.mxu0 %v14290_v59  ;;  %7463 = vmatmul.f32.vlgmr.msrb.gmra.mxu1 %v14277_v23 }
 0x9a9   : > { %7739 = vmatpush.msrb.mxu1 %v16458_v39  ;;  %7558 = vmatpush.msra.mxu0 %v16465_v37  ;;  %v16466_v39 = vld [vmem:[#allocation45_spill] sm:$0xff] }
 0x9aa   : > { %7502 = vmatmul.f32.vlgmr.msrb.gmra.mxu2 %v14267_v31 }
 0x9ab   : > { %7770 = vmatpush.msrb.mxu2 %v7769_v63  ;;  %7741 = vmatpush.msrb.mxu1 %v16461_v56  ;;  %v16468_v56 = vld [vmem:[#allocation49_spill] sm:$0xff] }
 0x9ac   : > { %7531 = vmatmul.f32.vlgmr.msrb.gmra.mxu3 %v14267_v31 }
 0x9ad   : > { %7772 = vmatpush.msrb.mxu2 %v7771_v13  ;;  %7857 = vmatpush.msrb.mxu3 %v7856_v45  ;;  %v16469_v45 = vld [vmem:[#allocation50_spill] sm:$0xff] }
 0x9ae   : > { %7743 = vmatpush.msrb.mxu1 %v16463_v27 }
 0x9af   : > { %7863 = vmatpush.msrb.mxu3 %v7862_v24  ;;  %v16472_v24 = vld [vmem:[#allocation55_spill] sm:$0xff] }
 0x9b0   : > { %7431 = vmatmul.f32.vlgmr.msrb.gmra.mxu0 %v14271_v49  ;;  %7469 = vmatmul.f32.gmra.mxu1 %v14306_v41 }
 0x9b1   : > { %7745 = vmatpush.msrb.mxu1 %v16465_v37  ;;  %7704 = vmatpush.msrb.mxu0 %v16466_v39 }
 0x9b2   : > { %7506 = vmatmul.f32.gmra.mxu2 %v14290_v59 }
 0x9b3   : > { %7708 = vmatpush.msrb.mxu0 %v16467_v25 }
 0x9b4   : > { %7535 = vmatmul.f32.gmra.mxu3 %v14290_v59 }
 0x9b5   : > { %7712 = vmatpush.msrb.mxu0 %v16468_v56 }
 0x9b7   : > { %7716 = vmatpush.msrb.mxu0 %v16469_v45 }
 0x9b8   : > { %7436 = vmatmul.f32.gmra.mxu0 %v14300_v28  ;;  %7613 = vmatmul.f32.vlgmr.msra.gmra.mxu1 %v14267_v31 }
 0x9b9   : > { %7973 = vmatpush.msra.mxu1 %v7769_v63 }
 0x9ba   : > { %7647 = vmatmul.f32.vlgmr.msra.gmra.mxu2 %v14271_v49  ;;  %v16470_v49 = vld [vmem:[#allocation66_spill] sm:$0xff] }
 0x9bb   : > { %7975 = vmatpush.msra.mxu1 %v7771_v13  ;;  %8042 = vmatpush.msra.mxu2 %v7854_v61  ;;  %v16482_v61 = vld [vmem:[#allocation67_spill] sm:$0xff] }
 0x9bc   : > { %7679 = vmatmul.f32.vlgmr.msra.gmra.mxu3 %v14277_v23  ;;  %v16471_v23 = vld [vmem:[#allocation126_spill] sm:$0xff] }
 0x9bd   : > { %8046 = vmatpush.msra.mxu2 %v7860_v35  ;;  %8095 = vmatpush.msra.mxu3 %v7769_v63  ;;  %v16474_v35 = vld [vmem:[#allocation132_spill] sm:$0xff] }
 0x9be   : > { %v16478_v63 = vld [vmem:[#allocation64_spill] sm:$0xff] }
 0x9bf   : > { %8097 = vmatpush.msra.mxu3 %v7771_v13  ;;  %v16481_v13 = vld [vmem:[#allocation62_spill] sm:$0xff] }
 0x9c0   : > { %7564 = vmatmul.f32.vlgmr.msra.gmra.mxu0 %v14292_v52  ;;  %7617 = vmatmul.f32.gmra.mxu1 %v14290_v59  ;;  %v16473_v52 = vld [vmem:[#allocation129_spill] sm:$0xff] }
 0x9c1   : > { %7913 = vmatpush.msra.mxu0 %v7853_v11  ;;  %v16483_v11 = vld [vmem:[#allocation75_spill] sm:$0xff] }
 0x9c2   : > { %7652 = vmatmul.f32.gmra.mxu2 %v14300_v28  ;;  %v16475_v28 = vld [vmem:[#allocation136_spill] sm:$0xff] }
 0x9c3   : > { %7916 = vmatpush.msra.mxu0 %v7859_v46  ;;  %v16479_v46 = vld [vmem:[#allocation72_spill] sm:$0xff] }
 0x9c4   : > { %7685 = vmatmul.f32.gmra.mxu3 %v14306_v41  ;;  %v16476_v41 = vld [vmem:[#allocation69_spill] sm:$0xff] }
 0x9c8   : > { %7572 = vmatmul.f32.gmra.mxu0 %v14315_v18  ;;  %7747 = vmatmul.f32.vlgmr.msrb.gmra.mxu1 %v14267_v31  ;;  %v16477_v18 = vld [vmem:[#allocation56_spill] sm:$0xff] }
 0x9ca   : > { %7778 = vmatmul.f32.vlgmr.msrb.gmra.mxu2 %v16470_v49  ;;  %v16502_v49 = vld [vmem:[#allocation82_spill] sm:$0xff] }
 0x9cb   : > { %8457 = vmatpush.msrb.mxu2 %v16471_v23  ;;  %v16498_v23 = vld [vmem:[#allocation79_spill] sm:$0xff] }
 0x9cc   : > { %11530 = vmatmul.msk.f32.vlgmr.msrb.gmra.mxu3 %vm1718_vm9, %v16472_v24 }
 0x9cd   : > { %8460 = vmatpush.msrb.mxu2 %v16473_v52  ;;  %8491 = vmatpush.msrb.mxu3 %v12682_v29  ;;  %v16494_v52 = vld [vmem:[#allocation76_spill] sm:$0xff] }
 0x9cf   : > { %8463 = vmatpush.msrb.mxu2 %v16474_v35  ;;  %8493 = vmatpush.msrb.mxu3 %v16328_v50  ;;  %v16490_v35 = vld [vmem:[#allocation73_spill] sm:$0xff] }
 0x9d0   : > { %7718 = vmatmul.f32.vlgmr.msrb.gmra.mxu0 %v14267_v31  ;;  %7751 = vmatmul.f32.gmra.mxu1 %v14290_v59  ;;  %v16480_v31 = vld [vmem:[#allocation58_spill] sm:$0xff] }
 0x9d1   : > { %8466 = vmatpush.msrb.mxu2 %v16475_v28  ;;  %8495 = vmatpush.msrb.mxu3 %v16329_v8  ;;  %v16486_v28 = vld [vmem:[#allocation70_spill] sm:$0xff] }
 0x9d2   : > { %7786 = vmatmul.f32.gmra.mxu2 %v16476_v41  ;;  %v16485_v41 = vld [vmem:[#allocation65_spill] sm:$0xff] }
 0x9d3   : > { %8497 = vmatpush.msrb.mxu3 %v16330_v3 }
 0x9d4   : > { %11531 = vmatmul.msk.f32.gmra.mxu3 %vm1718_vm9, %v16477_v18 }
 0x9d8   : > { %7722 = vmatmul.f32.gmra.mxu0 %v14290_v59  ;;  %7979 = vmatmul.f32.vlgmr.msra.gmra.mxu1 %v16478_v63  ;;  %v16487_v59 = vld [vmem:[#allocation78_spill] sm:$0xff]  ;;  %v16488_v63 = vld [vmem:[#allocation61_spill] sm:$0xff] }
 0x9da   : > { %7794 = vmatmul.f32.gmra.mxu2 %v16479_v46  ;;  %v16489_v46 = vld [vmem:[#allocation68_spill] sm:$0xff] }
 0x9dc   : > { %11532 = vmatmul.msk.f32.gmra.mxu3 %vm1718_vm9, %v16480_v31 }
 0x9e0   : > { %7919 = vmatmul.f32.vlgmr.msra.gmra.mxu0 %v16481_v13  ;;  %7985 = vmatmul.f32.gmra.mxu1 %v16482_v61  ;;  %v16491_v13 = vld [vmem:[#allocation81_spill] sm:$0xff]  ;;  %v16492_v61 = vld [vmem:[#allocation63_spill] sm:$0xff] }
 0x9e2   : > { %7802 = vmatmul.f32.gmra.mxu2 %v16483_v11  ;;  %v16493_v11 = vld [vmem:[#allocation71_spill] sm:$0xff] }
 0x9e4   : > { %11533 = vmatmul.msk.f32.gmra.mxu3 %vm1718_vm9, %v16484_v40 }
 0x9e8   : > { %7924 = vmatmul.f32.gmra.mxu0 %v16485_v41  ;;  %7991 = vmatmul.f32.gmra.mxu1 %v16486_v28  ;;  %v16495_v41 = vld [vmem:[#allocation84_spill] sm:$0xff]  ;;  %v16496_v28 = vld [vmem:[#allocation57_spill] sm:$0xff] }
 0x9ea   : > { %7810 = vmatmul.f32.gmra.mxu2 %v16487_v59  ;;  %v16497_v59 = vld [vmem:[#allocation74_spill] sm:$0xff] }
 0x9ec   : > { %11534 = vmatmul.msk.f32.gmra.mxu3 %vm1718_vm9, %v16488_v63 }
 0x9f0   : > { %7929 = vmatmul.f32.gmra.mxu0 %v16489_v46  ;;  %7997 = vmatmul.f32.gmra.mxu1 %v16490_v35  ;;  %v16499_v46 = vld [vmem:[#allocation87_spill] sm:$0xff]  ;;  %v16500_v35 = vld [vmem:[#allocation60_spill] sm:$0xff] }
 0x9f2   : > { %7818 = vmatmul.f32.gmra.mxu2 %v16491_v13  ;;  %v16501_v13 = vld [vmem:[#allocation77_spill] sm:$0xff] }
 0x9f4   : > { %11535 = vmatmul.msk.f32.gmra.mxu3 %vm1718_vm9, %v16492_v61 }
 0x9f8   : > { %7934 = vmatmul.f32.gmra.mxu0 %v16493_v11  ;;  %8003 = vmatmul.f32.gmra.mxu1 %v16494_v52  ;;  %v16509_v52 = vld [vmem:[#allocation155_spill] sm:$0xff]  ;;  %v16511_v11 = vld [vmem:[#allocation156_spill] sm:$0xff] }
 0x9fa   : > { %7826 = vmatmul.f32.gmra.mxu2 %v16495_v41  ;;  %v16508_v41 = vld [vmem:[#allocation85_spill] sm:$0xff] }
 0x9fc   : > { %11536 = vmatmul.msk.f32.gmra.mxu3 %vm1718_vm9, %v16496_v28 }
 0xa00   : > { %7939 = vmatmul.f32.gmra.mxu0 %v16497_v59  ;;  %8009 = vmatmul.f32.gmra.mxu1 %v16498_v23  ;;  %v16503_v23 = vld [vmem:[#allocation150_spill] sm:$0xff] }
 0xa02   : > { %7834 = vmatmul.f32.gmra.mxu2 %v16499_v46 }
 0xa04   : > { %11537 = vmatmul.msk.f32.gmra.mxu3 %vm1718_vm9, %v16500_v35 }
 0xa08   : > { %7944 = vmatmul.f32.gmra.mxu0 %v16501_v13  ;;  %8015 = vmatmul.f32.gmra.mxu1 %v16502_v49  ;;  %v16506_v13 = vld [vmem:[#allocation153_spill] sm:$0xff]  ;;  %v16507_v49 = vld [vmem:[#allocation80_spill] sm:$0xff] }
 0xa0a   : > { %11538 = vmatmul.msk.f32.vlgmr.msra.gmra.mxu2 %vm1718_vm9, %v16472_v24 }
 0xa0b   : > { %8590 = vmatpush.msra.mxu2 %v16342_v14 }
 0xa0c   : > { %11546 = vmatmul.msk.f32.vlgmr.msra.gmra.mxu3 %vm1718_vm9, %v16472_v24 }
 0xa0d   : > { %8592 = vmatpush.msra.mxu2 %v16343_v43  ;;  %8631 = vmatpush.msra.mxu3 %v16503_v23  ;;  %v14428_v46 = vpop.f32.mrf.mxu2  ;;  %v14440_v23 = vpop.f32.mrf.mxu0 }
 0xa0e   : > { %16504 = vst [vmem:[#allocation94_spill] sm:$0xff] %v14428_v46 }
 0xa0f   : > { %v14430_v59 = vpop.f32.mrf.mxu3  ;;  %8594 = vmatpush.msra.mxu2 %v16345_v9  ;;  %8637 = vmatpush.msra.mxu3 %v16506_v13  ;;  %16510 = vst [vmem:[#allocation105_spill] sm:$0xff] %v14440_v23 }
 0xa10   : > { %16505 = vst [vmem:[#allocation100_spill] sm:$0xff] %v14430_v59  ;;  %7949 = vmatmul.f32.gmra.mxu0 %v16507_v49  ;;  %8021 = vmatmul.f32.gmra.mxu1 %v16508_v41  ;;  %v16514_v49 = vld [vmem:[#allocation83_spill] sm:$0xff]  ;;  %v14450_v41 = vpop.f32.mrf.mxu1 }
 0xa11   : > { %8596 = vmatpush.msra.mxu2 %v16347_v58  ;;  %8643 = vmatpush.msra.mxu3 %v16509_v52  ;;  %16515 = vst [vmem:[#allocation91_spill] sm:$0xff] %v14450_v41 }
 0xa12   : > { %11539 = vmatmul.msk.f32.gmra.mxu2 %vm1718_vm9, %v16477_v18 }
 0xa13   : > { %8649 = vmatpush.msra.mxu3 %v16511_v11 }
 0xa14   : > { %11547 = vmatmul.msk.f32.gmra.mxu3 %vm1718_vm9, %v16477_v18 }
 0xa15   : > { %v14445_v24 = vpop.f32.mrf.mxu2  ;;  %v14456_v52 = vpop.f32.mrf.mxu0 }
 0xa16   : > { %16512 = vst [vmem:[#allocation92_spill] sm:$0xff] %v14445_v24 }
 0xa17   : > { %v14447_v13 = vpop.f32.mrf.mxu3  ;;  %16516 = vst [vmem:[#allocation111_spill] sm:$0xff] %v14456_v52 }
 0xa18   : > { %16513 = vst [vmem:[#allocation116_spill] sm:$0xff] %v14447_v13  ;;  %7954 = vmatmul.f32.gmra.mxu0 %v16514_v49  ;;  %v14464_v18 = vpop.f32.mrf.mxu1 }
 0xa19   : > { %16519 = vst [vmem:[#allocation99_spill] sm:$0xff] %v14464_v18 }
 0xa1a   : > { %11540 = vmatmul.msk.f32.gmra.mxu2 %vm1718_vm9, %v16480_v31 }
 0xa1c   : > { %11548 = vmatmul.msk.f32.gmra.mxu3 %vm1718_vm9, %v16480_v31 }
 0xa1d   : > { %v14458_v11 = vpop.f32.mrf.mxu2  ;;  %v14470_v56 = vpop.f32.mrf.mxu0 }
 0xa1e   : > { %16517 = vst [vmem:[#allocation113_spill] sm:$0xff] %v14458_v11 }
 0xa1f   : > { %v14460_v45 = vpop.f32.mrf.mxu3  ;;  %16521 = vst [vmem:[#allocation115_spill] sm:$0xff] %v14470_v56 }
 0xa20   : > { %16518 = vst [vmem:[#allocation98_spill] sm:$0xff] %v14460_v45  ;;  %v14478_v31 = vpop.f32.mrf.mxu1 }
 0xa21   : > { %16523 = vst [vmem:[#allocation108_spill] sm:$0xff] %v14478_v31 }
 0xa22   : > { %11541 = vmatmul.msk.f32.gmra.mxu2 %vm1718_vm9, %v16484_v40 }
 0xa24   : > { %11549 = vmatmul.msk.f32.gmra.mxu3 %vm1718_vm9, %v16484_v40 }
 0xa25   : > { %v14468_v49 = vpop.f32.mrf.mxu2  ;;  %v14484_v27 = vpop.f32.mrf.mxu0 }
 0xa26   : > { %16520 = vst [vmem:[#allocation107_spill] sm:$0xff] %v14468_v49 }
 0xa27   : > { %v14472_v25 = vpop.f32.mrf.mxu3  ;;  %16526 = vst [vmem:[#allocation118_spill] sm:$0xff] %v14484_v27 }
 0xa28   : > { %16522 = vst [vmem:[#allocation114_spill] sm:$0xff] %v14472_v25  ;;  %v14494_v34 = vpop.f32.mrf.mxu1 }
 0xa29   : > { %16529 = vst [vmem:[#allocation106_spill] sm:$0xff] %v14494_v34 }
 0xa2a   : > { %11542 = vmatmul.msk.f32.gmra.mxu2 %vm1718_vm9, %v16488_v63 }
 0xa2c   : > { %11550 = vmatmul.msk.f32.gmra.mxu3 %vm1718_vm9, %v16488_v63 }
 0xa2d   : > { %v14480_v39 = vpop.f32.mrf.mxu2  ;;  %v14498_v63 = vpop.f32.mrf.mxu0 }
 0xa2e   : > { %16524 = vst [vmem:[#allocation122_spill] sm:$0xff] %v14480_v39 }
 0xa2f   : > { %v14482_v37 = vpop.f32.mrf.mxu3  ;;  %16530 = vst [vmem:[#allocation119_spill] sm:$0xff] %v14498_v63 }
 0xa30   : > { %16525 = vst [vmem:[#allocation109_spill] sm:$0xff] %v14482_v37  ;;  %v14506_v5 = vpop.f32.mrf.mxu1 }
 0xa31   : > { %16533 = vst [vmem:[#allocation175_spill] sm:$0xff] %v14506_v5 }
 0xa32   : > { %11543 = vmatmul.msk.f32.gmra.mxu2 %vm1718_vm9, %v16492_v61 }
 0xa34   : > { %11551 = vmatmul.msk.f32.gmra.mxu3 %vm1718_vm9, %v16492_v61 }
 0xa35   : > { %v14490_v40 = vpop.f32.mrf.mxu2  ;;  %v14512_v61 = vpop.f32.mrf.mxu0 }
 0xa36   : > { %16527 = vst [vmem:[#allocation21_spill] sm:$0xff] %v14490_v40 }
 0xa37   : > { %v14492_v6 = vpop.f32.mrf.mxu3  ;;  %16534 = vst [vmem:[#allocation120_spill] sm:$0xff] %v14512_v61 }
 0xa38   : > { %16528 = vst [vmem:[#allocation102_spill] sm:$0xff] %v14492_v6  ;;  %v14518_v47 = vpop.f32.mrf.mxu1 }
 0xa39   : > { %16537 = vst [vmem:[#allocation103_spill] sm:$0xff] %v14518_v47 }
 0xa3a   : > { %11544 = vmatmul.msk.f32.gmra.mxu2 %vm1718_vm9, %v16496_v28 }
 0xa3c   : > { %11552 = vmatmul.msk.f32.gmra.mxu3 %vm1718_vm9, %v16496_v28 }
 0xa3d   : > { %v14502_v44 = vpop.f32.mrf.mxu2  ;;  %v14520_v19 = vpop.f32.mrf.mxu0 }
 0xa3e   : > { %16531 = vst [vmem:[#allocation112_spill] sm:$0xff] %v14502_v44 }
 0xa3f   : > { %v14504_v51 = vpop.f32.mrf.mxu3  ;;  %16538 = vst [vmem:[#allocation177_spill] sm:$0xff] %v14520_v19 }
 0xa40   : > { %16532 = vst [vmem:[#allocation110_spill] sm:$0xff] %v14504_v51  ;;  %v14522_v44 = vpop.f32.mrf.mxu1 }
 0xa41   : > { %16539 = vst [vmem:[#allocation117_spill] sm:$0xff] %v14522_v44 }
 0xa42   : > { %11545 = vmatmul.msk.f32.gmra.mxu2 %vm1718_vm9, %v16500_v35 }
 0xa44   : > { %11553 = vmatmul.msk.f32.gmra.mxu3 %vm1718_vm9, %v16500_v35 }
 0xa45   : > { %v14514_v32 = vpop.f32.mrf.mxu2  ;;  %v14524_v37 = vpop.f32.mrf.mxu0 }
 0xa46   : > { %16535 = vst [vmem:[#allocation121_spill] sm:$0xff] %v14514_v32 }
 0xa47   : > { %v14516_v7 = vpop.f32.mrf.mxu3  ;;  %16540 = vst [vmem:[#allocation178_spill] sm:$0xff] %v14524_v37 }
 0xa48   : > { %16536 = vst [vmem:[#allocation176_spill] sm:$0xff] %v14516_v7  ;;  %v14526_v25 = vpop.f32.mrf.mxu1 }
 0xa49   : > { %16541 = vst [vmem:[#allocation23_spill] sm:$0xff] %v14526_v25 }
 0xa4d   : > { %v7779_v28 = vpop.f32.mrf.mxu2  ;;  %v14528_v61 = vpop.f32.mrf.mxu0 }
 0xa4e   : > { %16542 = vst [vmem:[#allocation86_spill] sm:$0xff] %v14528_v61 }
 0xa4f   : > { %v7866_v51 = vpop.f32.mrf.mxu3 }
 0xa50   : > { %v14530_v5 = vpop.f32.mrf.mxu1  ;;  %v7867_v42 = vadd.f32 %v7866_v51, %v7779_v28 }
 0xa51   : > { %16543 = vst [vmem:[#allocation97_spill] sm:$0xff] %v14530_v5 }
 0xa55   : > { %v7787_v6 = vpop.f32.mrf.mxu2  ;;  %v14532_v47 = vpop.f32.mrf.mxu0 }
 0xa56   : > { %16544 = vst [vmem:[#allocation101_spill] sm:$0xff] %v14532_v47 }
 0xa57   : > { %v7870_v40 = vpop.f32.mrf.mxu3 }
 0xa58   : > { %v14534_v34 = vpop.f32.mrf.mxu1  ;;  %v7871_v9 = vadd.f32 %v7870_v40, %v7787_v6 }
 0xa59   : > { %16545 = vst [vmem:[#allocation104_spill] sm:$0xff] %v14534_v34 }
 0xa5d   : > { %v7795_v39 = vpop.f32.mrf.mxu2  ;;  %v7920_v63 = vpop.f32.mrf.mxu0 }
 0xa5e   : > { %v7921_v1 = vadd.f32 %v7920_v63, %v7867_v42 }
 0xa5f   : > { %v7874_v35 = vpop.f32.mrf.mxu3 }
 0xa60   : > { %v7980_v37 = vpop.f32.mrf.mxu1  ;;  %v7875_v20 = vadd.f32 %v7874_v35, %v7795_v39 }
 0xa61   : > { %v7981_v6 = vadd.f32 %v7980_v37, %v7921_v1 }
 0xa65   : > { %v7803_v32 = vpop.f32.mrf.mxu2  ;;  %v7925_v11 = vpop.f32.mrf.mxu0 }
 0xa66   : > { %v7926_v30 = vadd.f32 %v7925_v11, %v7871_v9 }
 0xa67   : > { %v7878_v7 = vpop.f32.mrf.mxu3 }
 0xa68   : > { %v7986_v61 = vpop.f32.mrf.mxu1 }
 0xa69   : > { %v7987_v3 = vadd.f32 %v7986_v61, %v7926_v30 }
 0xa6d   : > { %v7811_v19 = vpop.f32.mrf.mxu2  ;;  %v7930_v31 = vpop.f32.mrf.mxu0 }
 0xa6e   : > { %v7931_v60 = vadd.f32 %v7930_v31, %v7875_v20 }
 0xa6f   : > { %v7882_v49 = vpop.f32.mrf.mxu3 }
 0xa70   : > { %v7992_v5 = vpop.f32.mrf.mxu1  ;;  %v7883_v43 = vadd.f32 %v7882_v49, %v7811_v19 }
 0xa71   : > { %v7993_v8 = vadd.f32 %v7992_v5, %v7931_v60 }
 0xa75   : > { %v7819_v44 = vpop.f32.mrf.mxu2  ;;  %v7935_v18 = vpop.f32.mrf.mxu0 }
 0xa77   : > { %v7886_v45 = vpop.f32.mrf.mxu3 }
 0xa78   : > { %v7998_v52 = vpop.f32.mrf.mxu1  ;;  %v7887_v58 = vadd.f32 %v7886_v45, %v7819_v44  ;;  %v7879_v45 = vadd.f32 %v7878_v7, %v7803_v32 }
 0xa7d   : > { %v7827_v27 = vpop.f32.mrf.mxu2  ;;  %v7940_v34 = vpop.f32.mrf.mxu0 }
 0xa7e   : > { %v7941_v36 = vadd.f32 %v7940_v34, %v7883_v43  ;;  %v7936_v43 = vadd.f32 %v7935_v18, %v7879_v45  ;;  %v16547_v45 = vld [vmem:[#allocation130_spill] sm:$0xff] }
 0xa7f   : > { %v7890_v13 = vpop.f32.mrf.mxu3 }
 0xa80   : > { %v8004_v23 = vpop.f32.mrf.mxu1  ;;  %v7891_v2 = vadd.f32 %v7890_v13, %v7827_v27 }
 0xa81   : > { %v8005_v50 = vadd.f32 %v8004_v23, %v7941_v36 }
 0xa85   : > { %v7835_v25 = vpop.f32.mrf.mxu2  ;;  %v7945_v21 = vpop.f32.mrf.mxu0 }
 0xa86   : > { %v7946_v14 = vadd.f32 %v7945_v21, %v7887_v58 }
 0xa87   : > { %v7894_v53 = vpop.f32.mrf.mxu3 }
 0xa88   : > { %v8010_v54 = vpop.f32.mrf.mxu1  ;;  %v7895_v9 = vadd.f32 %v7894_v53, %v7835_v25 }
 0xa89   : > { %v8011_v4 = vadd.f32 %v8010_v54, %v7946_v14 }
 0xa8d   : > { %v8049_v24 = vpop.f32.mrf.mxu2  ;;  %v7950_v62 = vpop.f32.mrf.mxu0 }
 0xa8e   : > { %v7951_v38 = vadd.f32 %v7950_v62, %v7891_v2  ;;  %v8050_v34 = vadd.f32 %v8049_v24, %v7981_v6  ;;  %v16548_v6 = vld [vmem:[#allocation133_spill] sm:$0xff] }
 0xa8f   : > { %v8100_v56 = vpop.f32.mrf.mxu3 }
 0xa90   : > { %v8016_v57 = vpop.f32.mrf.mxu1 }
 0xa91   : > { %v8017_v51 = vadd.f32 %v8016_v57, %v7951_v38 }
 0xa95   : > { %v8053_v47 = vpop.f32.mrf.mxu2  ;;  %v7955_v39 = vpop.f32.mrf.mxu0 }
 0xa96   : > { %v8054_v19 = vadd.f32 %v8053_v47, %v7987_v3  ;;  %v7956_v14 = vadd.f32 %v7955_v39, %v7895_v9  ;;  %v16549_v39 = vld [vmem:[#allocation124_spill] sm:$0xff] }
 0xa97   : > { %v8104_v59 = vpop.f32.mrf.mxu3  ;;  %v16554_v9 = vld [vmem:[#allocation140_spill] sm:$0xff] }
 0xa98   : > { %v8105_v62 = vadd.f32 %v8104_v59, %v8054_v19  ;;  %v8022_v3 = vpop.f32.mrf.mxu1  ;;  %v16550_v19 = vld [vmem:[#allocation123_spill] sm:$0xff] }
 0xa99   : > { %v8023_v38 = vadd.f32 %v8022_v3, %v7956_v14 }
 0xa9d   : > { %v8057_v46 = vpop.f32.mrf.mxu2 }
 0xa9e   : > { %v8058_v58 = vadd.f32 %v8057_v46, %v7993_v8 }
 0xa9f   : > { %v8108_v41 = vpop.f32.mrf.mxu3 }
 0xaa0   : > { %v8109_v30 = vadd.f32 %v8108_v41, %v8058_v58  ;;  %v16551_v58 = vld [vmem:[#allocation134_spill] sm:$0xff] }
 0xaa5   : > { %v8061_v0 = vpop.f32.mrf.mxu2 }
 0xaa7   : > { %v8112_v26 = vpop.f32.mrf.mxu3 }
 0xaad   : > { %v8065_v33 = vpop.f32.mrf.mxu2 }
 0xaae   : > { %v8066_v21 = vadd.f32 %v8065_v33, %v8005_v50 }
 0xaaf   : > { %v8116_v10 = vpop.f32.mrf.mxu3 }
 0xab0   : > { %v8117_v60 = vadd.f32 %v8116_v10, %v8066_v21  ;;  %v16552_v21 = vld [vmem:[#allocation137_spill] sm:$0xff] }
 0xab5   : > { %v8069_v12 = vpop.f32.mrf.mxu2 }
 0xab6   : > { %v8070_v44 = vadd.f32 %v8069_v12, %v8011_v4  ;;  %v8101_v4 = vadd.f32 %v8100_v56, %v8050_v34  ;;  %v7999_v12 = vadd.f32 %v7998_v52, %v7936_v43  ;;  %v16556_v43 = vld [vmem:[#allocation128_spill] sm:$0xff]  ;;  %v16557_v34 = vld [vmem:[#allocation131_spill] sm:$0xff] }
 0xab7   : > { %v8120_v48 = vpop.f32.mrf.mxu3 }
 0xab8   : > { %v8121_v27 = vadd.f32 %v8120_v48, %v8070_v44  ;;  %v8062_v8 = vadd.f32 %v8061_v0, %v7999_v12  ;;  %v8131_v50 = vsub.f32 %v8101_v4, %v8117_v60  ;;  %v16546_v44 = vld [vmem:[#allocation127_spill] sm:$0xff] }
 0xaba   : > { %v8132_v1 = vsub.f32 %v8105_v62, %v8121_v27  ;;  %v8113_v7 = vadd.f32 %v8112_v26, %v8062_v8  ;;  %v8135_v32 = vand.u32 2147483647, %v8131_v50  ;;  %v16558_v27 = vld [vmem:[#allocation135_spill] sm:$0xff] }
 0xabc   : > { %v8136_v53 = vand.u32 2147483647, %v8132_v1  ;;  %v8157_v49 = vand.u32 4294901760, %v8135_v32 }
 0xabd   : > { %v8073_v20 = vpop.f32.mrf.mxu2 }
 0xabe   : > { %v8074_v42 = vadd.f32 %v8073_v20, %v8017_v51  ;;  %v8155_v25 = vand.u32 4294901760, %v8136_v53  ;;  %v8207_v28 = vsub.f32 %v8135_v32, %v8157_v49  ;;  %v16553_v51 = vld [vmem:[#allocation139_spill] sm:$0xff]  ;;  %v16555_v20 = vld [vmem:[#allocation125_spill] sm:$0xff] }
 0xabf   : > { %v8124_v2 = vpop.f32.mrf.mxu3 }
 0xac0   : > { %v8125_v36 = vadd.f32 %v8124_v2, %v8074_v42  ;;  %v8201_v52 = vsub.f32 %v8136_v53, %v8155_v25  ;;  %v8208_v46 = vand.u32 4294901760, %v8207_v28  ;;  %v16559_v42 = vld [vmem:[#allocation138_spill] sm:$0xff] }
 0xac2   : > { %v8133_v54 = vsub.f32 %v8109_v30, %v8125_v36  ;;  %v8202_v18 = vand.u32 4294901760, %v8201_v52  ;;  %v8209_v11 = vsub.f32 %v8207_v28, %v8208_v46 }
 0xac4   : > { %v8137_v57 = vand.u32 2147483647, %v8133_v54  ;;  %v8203_v13 = vsub.f32 %v8201_v52, %v8202_v18  ;;  %v8210_v59 = vand.u32 4294901760, %v8209_v11 }
 0xac5   : > { %v8077_v33 = vpop.f32.mrf.mxu2 }
 0xac6   : > { %v8078_v47 = vadd.f32 %v8077_v33, %v8023_v38  ;;  %v8153_v5 = vand.u32 4294901760, %v8137_v57  ;;  %v8204_v40 = vand.u32 4294901760, %v8203_v13 }
 0xac7   : > { %v8128_v48 = vpop.f32.mrf.mxu3 }
 0xac8   : > { %v8129_v37 = vadd.f32 %v8128_v48, %v8078_v47  ;;  %v8195_v23 = vsub.f32 %v8137_v57, %v8153_v5 }
 0xaca   : > { %v8134_v10 = vsub.f32 %v8113_v7, %v8129_v37  ;;  %v8196_v0 = vand.u32 4294901760, %v8195_v23 }
 0xacc   : > { %v8138_v56 = vand.u32 2147483647, %v8134_v10  ;;  %v8197_v26 = vsub.f32 %v8195_v23, %v8196_v0 }
 0xace   : > { %v8151_v24 = vand.u32 4294901760, %v8138_v56  ;;  %v8198_v61 = vand.u32 4294901760, %v8197_v26  ;;  %v16566_v26 = vld [vmem:[#allocation151_spill] sm:$0xff] }
 0xad0   : > { %v8189_v35 = vsub.f32 %v8138_v56, %v8151_v24  ;;  %8152 = vmatpush.msrb.mxu0 %v8151_v24 }
 0xad2   : > { %8154 = vmatpush.msrb.mxu0 %v8153_v5  ;;  %v8190_v41 = vand.u32 4294901760, %v8189_v35 }
 0xad4   : > { %8156 = vmatpush.msrb.mxu0 %v8155_v25  ;;  %v8191_v63 = vsub.f32 %v8189_v35, %v8190_v41 }
 0xad6   : > { %8158 = vmatpush.msrb.mxu0 %v8157_v49  ;;  %v8192_v31 = vand.u32 4294901760, %v8191_v63  ;;  %v16565_v63 = vld [vmem:[#allocation148_spill] sm:$0xff] }
 0xad7   : > { %8164 = vmatmul.f32.vlgmr.msrb.gmra.mxu0 %v12656_v16 }
 0xad8   : > { %8235 = vmatpush.msra.mxu0 %v8189_v35  ;;  %8193 = vmatpush.msrb.mxu1 %v8192_v31  ;;  %v16567_v31 = vld [vmem:[#allocation143_spill] sm:$0xff] }
 0xada   : > { %8238 = vmatpush.msra.mxu0 %v8195_v23  ;;  %8199 = vmatpush.msrb.mxu1 %v8198_v61  ;;  %v16561_v23 = vld [vmem:[#allocation142_spill] sm:$0xff] }
 0xadb   : > { %v16568_v61 = vld [vmem:[#allocation154_spill] sm:$0xff] }
 0xadc   : > { %8241 = vmatpush.msra.mxu0 %v8201_v52  ;;  %8205 = vmatpush.msrb.mxu1 %v8204_v40  ;;  %v16569_v40 = vld [vmem:[#allocation146_spill] sm:$0xff] }
 0xade   : > { %8244 = vmatpush.msra.mxu0 %v8207_v28  ;;  %8211 = vmatpush.msrb.mxu1 %v8210_v59  ;;  %v16564_v28 = vld [vmem:[#allocation147_spill] sm:$0xff] }
 0xadf   : > { %8213 = vmatmul.f32.vlgmr.msrb.gmra.mxu1 %v12639_v15  ;;  %8172 = vmatmul.f32.gmra.mxu0 %v12664_v22 }
 0xae0   : > { %8304 = vmatpush.msrb.mxu0 %v8190_v41  ;;  %8269 = vmatpush.msra.mxu1 %v8151_v24 }
 0xae2   : > { %8308 = vmatpush.msrb.mxu0 %v8196_v0  ;;  %8271 = vmatpush.msra.mxu1 %v8153_v5  ;;  %v16563_v0 = vld [vmem:[#allocation145_spill] sm:$0xff] }
 0xae4   : > { %8312 = vmatpush.msrb.mxu0 %v8202_v18  ;;  %8273 = vmatpush.msra.mxu1 %v8155_v25 }
 0xae6   : > { %8316 = vmatpush.msrb.mxu0 %v8208_v46  ;;  %8275 = vmatpush.msra.mxu1 %v8157_v49 }
 0xae7   : > { %8217 = vmatmul.f32.gmra.mxu1 %v12649_v55  ;;  %8247 = vmatmul.f32.vlgmr.msra.gmra.mxu0 %v12643_v17 }
 0xae8   : > { %8339 = vmatpush.msrb.mxu1 %v8151_v24  ;;  %8374 = vmatpush.msra.mxu0 %v12682_v29  ;;  %v16562_v24 = vld [vmem:[#allocation144_spill] sm:$0xff] }
 0xaea   : > { %8341 = vmatpush.msrb.mxu1 %v8153_v5  ;;  %8376 = vmatpush.msra.mxu0 %v16546_v44 }
 0xaec   : > { %8343 = vmatpush.msrb.mxu1 %v8155_v25  ;;  %8378 = vmatpush.msra.mxu0 %v16547_v45  ;;  %v16560_v25 = vld [vmem:[#allocation141_spill] sm:$0xff] }
 0xaee   : > { %8345 = vmatpush.msrb.mxu1 %v8157_v49  ;;  %8380 = vmatpush.msra.mxu0 %v16548_v6 }
 0xaef   : > { %8252 = vmatmul.f32.gmra.mxu0 %v16549_v39  ;;  %8279 = vmatmul.f32.vlgmr.msra.gmra.mxu1 %v16550_v19 }
 0xaf0   : > { %8415 = vmatpush.msra.mxu1 %v16551_v58 }
 0xaf2   : > { %8421 = vmatpush.msra.mxu1 %v16552_v21 }
 0xaf4   : > { %8427 = vmatpush.msra.mxu1 %v16553_v51 }
 0xaf6   : > { %8433 = vmatpush.msra.mxu1 %v16554_v9 }
 0xaf7   : > { %8285 = vmatmul.f32.gmra.mxu1 %v16555_v20  ;;  %8318 = vmatmul.f32.vlgmr.msrb.gmra.mxu0 %v12639_v15 }
 0xaf8   : > { %8526 = vmatpush.msrb.mxu0 %v16556_v43 }
 0xafa   : > { %8530 = vmatpush.msrb.mxu0 %v16557_v34 }
 0xafc   : > { %8534 = vmatpush.msrb.mxu0 %v16558_v27 }
 0xafe   : > { %8538 = vmatpush.msrb.mxu0 %v16559_v42 }
 0xaff   : > { %8322 = vmatmul.f32.gmra.mxu0 %v12649_v55  ;;  %8347 = vmatmul.f32.vlgmr.msrb.gmra.mxu1 %v12639_v15 }
 0xb00   : > { %8561 = vmatpush.msrb.mxu1 %v12682_v29 }
 0xb02   : > { %8563 = vmatpush.msrb.mxu1 %v16546_v44 }
 0xb04   : > { %8565 = vmatpush.msrb.mxu1 %v16547_v45 }
 0xb06   : > { %8567 = vmatpush.msrb.mxu1 %v16548_v6 }
 0xb07   : > { %8351 = vmatmul.f32.gmra.mxu1 %v12649_v55 }
 0xb54   : > { %v8165_v2 = vpop.f32.mrf.mxu0 }
 0xb5c   : > { %v8214_v14 = vpop.f32.mrf.mxu1  ;;  %v8173_v62 = vpop.f32.mrf.mxu0 }
 0xb5d   : > { %v8215_v1 = vadd.f32 %v8214_v14, %v8165_v2  ;;  %v16570_v2 = vld [vmem:[#allocation149_spill] sm:$0xff]  ;;  %v16571_v14 = vld [vmem:[#allocation152_spill] sm:$0xff] }
 0xb64   : > { %v8218_v30 = vpop.f32.mrf.mxu1  ;;  %v8248_v60 = vpop.f32.mrf.mxu0 }
 0xb65   : > { %v8249_v3 = vadd.f32 %v8248_v60, %v8215_v1  ;;  %v8219_v38 = vadd.f32 %v8218_v30, %v8173_v62  ;;  %v16572_v62 = vld [vmem:[#allocation169_spill] sm:$0xff]  ;;  %v16573_v30 = vld [vmem:[#allocation170_spill] sm:$0xff]  ;;  %v16578_v1 = vld [vmem:[#allocation172_spill] sm:$0xff] }
 0xb66   : > { %v16574_v60 = vld [vmem:[#allocation158_spill] sm:$0xff] }
 0xb6c   : > { %v8253_v36 = vpop.f32.mrf.mxu0  ;;  %v8280_v4 = vpop.f32.mrf.mxu1 }
 0xb6d   : > { %v8281_v8 = vadd.f32 %v8280_v4, %v8249_v3  ;;  %v8254_v53 = vadd.f32 %v8253_v36, %v8219_v38  ;;  %v16575_v36 = vld [vmem:[#allocation171_spill] sm:$0xff]  ;;  %v16576_v4 = vld [vmem:[#allocation161_spill] sm:$0xff] }
 0xb6e   : > { %v16580_v3 = vld [vmem:[#allocation159_spill] sm:$0xff]  ;;  %v16584_v38 = vld [vmem:[#allocation5_spill] sm:$0xff] }
 0xb74   : > { %v8286_v12 = vpop.f32.mrf.mxu1  ;;  %v8319_v54 = vpop.f32.mrf.mxu0 }
 0xb75   : > { %v8320_v50 = vadd.f32 %v8319_v54, %v8281_v8  ;;  %v8287_v32 = vadd.f32 %v8286_v12, %v8254_v53  ;;  %v16577_v12 = vld [vmem:[#allocation157_spill] sm:$0xff]  ;;  %v16581_v8 = vld [vmem:[#allocation166_spill] sm:$0xff] }
 0xb76   : > { %v16579_v54 = vld [vmem:[#allocation165_spill] sm:$0xff]  ;;  %v16586_v53 = vld [vmem:[#allocation6_spill] sm:$0xff] }
 0xb7c   : > { %v8348_v57 = vpop.f32.mrf.mxu1  ;;  %v8323_v48 = vpop.f32.mrf.mxu0 }
 0xb7d   : > { %v8349_v33 = vadd.f32 %v8348_v57, %v8320_v50  ;;  %v8324_v37 = vadd.f32 %v8323_v48, %v8287_v32  ;;  %v16582_v50 = vld [vmem:[#allocation162_spill] sm:$0xff]  ;;  %v16583_v57 = vld [vmem:[#allocation164_spill] sm:$0xff]  ;;  %v16589_v32 = vld [vmem:[#allocation19_spill] sm:$0xff] }
 0xb7e   : > { %v16588_v48 = vld [vmem:[#allocation160_spill] sm:$0xff] }
 0xb7f   : > { %v8356_v47 = vsel %vm655_vm2, %v8349_v33, 0  ;;  %v16585_v33 = vld [vmem:[#allocation14_spill] sm:$0xff] }
 0xb80   : > { %v14565_v7 = vand.u32 4294901760, %v8356_v47 }
 0xb82   : > { %v14568_v5 = vsub.f32 %v8356_v47, %v14565_v7  ;;  %8435 = vmatmul.f32.vlgmr.msra.gmra.mxu1 %v14565_v7  ;;  %v16587_v47 = vld [vmem:[#allocation17_spill] sm:$0xff] }
 0xb83   : > { %8707 = vmatpush.msra.mxu1 %v16560_v25 }
 0xb84   : > { %v8352_v10 = vpop.f32.mrf.mxu1  ;;  %8469 = vmatmul.f32.vlgmr.msrb.gmra.mxu2 %v14568_v5  ;;  %v14574_v49 = vand.u32 4294901760, %v14568_v5 }
 0xb85   : > { %v8353_v56 = vadd.f32 %v8352_v10, %v8324_v37  ;;  %8709 = vmatpush.msra.mxu1 %v16561_v23  ;;  %8742 = vmatpush.msrb.mxu2 %v16562_v24  ;;  %v16590_v37 = vld [vmem:[#allocation163_spill] sm:$0xff]  ;;  %v16591_v10 = vld [vmem:[#allocation20_spill] sm:$0xff] }
 0xb86   : > { %8501 = vmatmul.f32.vlgmr.msrb.gmra.mxu3 %v14574_v49  ;;  %v8384_v52 = vsub.f32 %v14568_v5, %v14574_v49 }
 0xb87   : > { %v8359_v35 = vsel %vm655_vm2, %v8353_v56, 0  ;;  %8711 = vmatpush.msra.mxu1 %v16563_v0  ;;  %8746 = vmatpush.msrb.mxu2 %v16564_v28  ;;  %v16592_v56 = vld [vmem:[#allocation9_spill] sm:$0xff] }
 0xb88   : > { %v14584_v41 = vand.u32 4294901760, %v8359_v35  ;;  %v14586_v18 = vand.u32 4294901760, %v8384_v52  ;;  %8777 = vmatpush.msrb.mxu3 %v16560_v25  ;;  %v16593_v52 = vld [vmem:[#allocation167_spill] sm:$0xff] }
 0xb89   : > { %8713 = vmatpush.msra.mxu1 %v16565_v63  ;;  %8750 = vmatpush.msrb.mxu2 %v16566_v26 }
 0xb8a   : > { %v14592_v46 = vsub.f32 %v8359_v35, %v14584_v41  ;;  %8386 = vmatmul.f32.vlgmr.msra.gmra.mxu0 %v14586_v18  ;;  %8439 = vmatmul.f32.gmra.mxu1 %v14584_v41  ;;  %v16594_v35 = vld [vmem:[#allocation12_spill] sm:$0xff] }
 0xb8b   : > { %8779 = vmatpush.msrb.mxu3 %v16561_v23  ;;  %8673 = vmatpush.msra.mxu0 %v16567_v31 }
 0xb8c   : > { %8474 = vmatmul.f32.gmra.mxu2 %v14592_v46  ;;  %v14600_v13 = vand.u32 4294901760, %v14592_v46 }
 0xb8d   : > { %8754 = vmatpush.msrb.mxu2 %v16568_v61  ;;  %8781 = vmatpush.msrb.mxu3 %v16563_v0 }
 0xb8e   : > { %8507 = vmatmul.f32.gmra.mxu3 %v14600_v13  ;;  %v8392_v11 = vsub.f32 %v14592_v46, %v14600_v13  ;;  %8676 = vmatpush.msra.mxu0 %v16569_v40 }
 0xb8f   : > { %8783 = vmatpush.msrb.mxu3 %v16565_v63 }
 0xb90   : > { %v14609_v59 = vand.u32 4294901760, %v8392_v11  ;;  %8679 = vmatpush.msra.mxu0 %v16570_v2  ;;  %v16595_v11 = vld [vmem:[#allocation168_spill] sm:$0xff] }
 0xb92   : > { %8394 = vmatmul.f32.gmra.mxu0 %v14609_v59  ;;  %8569 = vmatmul.f32.vlgmr.msrb.gmra.mxu1 %v14565_v7 }
 0xb93   : > { %8682 = vmatpush.msra.mxu0 %v16571_v14  ;;  %8847 = vmatpush.msrb.mxu1 %v16572_v62  ;;  %v16621_v62 = vld [vmem:[#allocation92_spill] sm:$0xff] }
 0xb94   : > { %8602 = vmatmul.f32.vlgmr.msra.gmra.mxu2 %v14586_v18 }
 0xb95   : > { %8853 = vmatpush.msrb.mxu1 %v16573_v30  ;;  %8889 = vmatpush.msra.mxu2 %v16574_v60 }
 0xb96   : > { %8651 = vmatmul.f32.vlgmr.msra.gmra.mxu3 %v14565_v7 }
 0xb97   : > { %8859 = vmatpush.msrb.mxu1 %v16575_v36  ;;  %8892 = vmatpush.msra.mxu2 %v16576_v4  ;;  %v16619_v36 = vld [vmem:[#allocation99_spill] sm:$0xff] }
 0xb98   : > { %8923 = vmatpush.msra.mxu3 %v16577_v12 }
 0xb99   : > { %8865 = vmatpush.msrb.mxu1 %v16578_v1  ;;  %8895 = vmatpush.msra.mxu2 %v16579_v54 }
 0xb9a   : > { %8540 = vmatmul.f32.vlgmr.msrb.gmra.mxu0 %v14565_v7  ;;  %8573 = vmatmul.f32.gmra.mxu1 %v14584_v41 }
 0xb9b   : > { %8925 = vmatpush.msra.mxu3 %v16580_v3  ;;  %8806 = vmatpush.msrb.mxu0 %v16577_v12 }
 0xb9c   : > { %8610 = vmatmul.f32.gmra.mxu2 %v14609_v59 }
 0xb9d   : > { %8898 = vmatpush.msra.mxu2 %v16581_v8  ;;  %8927 = vmatpush.msra.mxu3 %v16582_v50  ;;  %v16617_v8 = vld [vmem:[#allocation111_spill] sm:$0xff] }
 0xb9e   : > { %8655 = vmatmul.f32.gmra.mxu3 %v14584_v41  ;;  %8808 = vmatpush.msrb.mxu0 %v16580_v3 }
 0xb9f   : > { %8929 = vmatpush.msra.mxu3 %v16583_v57 }
 0xba0   : > { %8810 = vmatpush.msrb.mxu0 %v16582_v50 }
 0xba2   : > { %8544 = vmatmul.f32.gmra.mxu0 %v14584_v41  ;;  %8717 = vmatmul.f32.vlgmr.msra.gmra.mxu1 %v14574_v49 }
 0xba3   : > { %8812 = vmatpush.msrb.mxu0 %v16583_v57  ;;  %8993 = vmatpush.msra.mxu1 %v16577_v12 }
 0xba4   : > { %8756 = vmatmul.f32.vlgmr.msrb.gmra.mxu2 %v14565_v7 }
 0xba5   : > { %8995 = vmatpush.msra.mxu1 %v16580_v3  ;;  %9122 = vmatpush.msrb.mxu2 %v16584_v38 }
 0xba6   : > { %8785 = vmatmul.f32.vlgmr.msrb.gmra.mxu3 %v14565_v7 }
 0xba7   : > { %8997 = vmatpush.msra.mxu1 %v16582_v50  ;;  %9163 = vmatpush.msrb.mxu3 %v16585_v33  ;;  %v16596_v33 = vld [vmem:[#allocation8_spill] sm:$0xff] }
 0xba8   : > { %9124 = vmatpush.msrb.mxu2 %v16586_v53 }
 0xba9   : > { %8999 = vmatpush.msra.mxu1 %v16583_v57  ;;  %9169 = vmatpush.msrb.mxu3 %v16587_v47  ;;  %v16597_v47 = vld [vmem:[#allocation11_spill] sm:$0xff]  ;;  %v16616_v57 = vld [vmem:[#allocation94_spill] sm:$0xff] }
 0xbaa   : > { %8685 = vmatmul.f32.vlgmr.msra.gmra.mxu0 %v14568_v5  ;;  %8723 = vmatmul.f32.gmra.mxu1 %v14600_v13 }
 0xbab   : > { %8958 = vmatpush.msra.mxu0 %v16588_v48  ;;  %9175 = vmatpush.msrb.mxu3 %v16589_v32  ;;  %v16601_v32 = vld [vmem:[#allocation13_spill] sm:$0xff] }
 0xbac   : > { %8760 = vmatmul.f32.gmra.mxu2 %v14584_v41 }
 0xbad   : > { %8962 = vmatpush.msra.mxu0 %v16590_v37  ;;  %9181 = vmatpush.msrb.mxu3 %v16591_v10  ;;  %v16604_v10 = vld [vmem:[#allocation35_spill] sm:$0xff] }
 0xbae   : > { %8789 = vmatmul.f32.gmra.mxu3 %v14584_v41  ;;  %9126 = vmatpush.msrb.mxu2 %v16592_v56 }
 0xbaf   : > { %8966 = vmatpush.msra.mxu0 %v16593_v52 }
 0xbb0   : > { %9128 = vmatpush.msrb.mxu2 %v16594_v35 }
 0xbb1   : > { %8970 = vmatpush.msra.mxu0 %v16595_v11 }
 0xbb2   : > { %8690 = vmatmul.f32.gmra.mxu0 %v14592_v46  ;;  %8867 = vmatmul.f32.vlgmr.msrb.gmra.mxu1 %v14565_v7 }
 0xbb3   : > { %9239 = vmatpush.msrb.mxu1 %v16584_v38 }
 0xbb4   : > { %8901 = vmatmul.f32.vlgmr.msra.gmra.mxu2 %v14568_v5  ;;  %v16598_v5 = vld [vmem:[#allocation7_spill] sm:$0xff] }
 0xbb5   : > { %9241 = vmatpush.msrb.mxu1 %v16586_v53  ;;  %9274 = vmatpush.msra.mxu2 %v16596_v33  ;;  %v16609_v33 = vld [vmem:[#allocation25_spill] sm:$0xff] }
 0xbb6   : > { %8933 = vmatmul.f32.vlgmr.msra.gmra.mxu3 %v14574_v49  ;;  %v16599_v49 = vld [vmem:[#allocation10_spill] sm:$0xff] }
 0xbb7   : > { %9243 = vmatpush.msrb.mxu1 %v16592_v56  ;;  %9309 = vmatpush.msra.mxu3 %v16584_v38  ;;  %v16600_v38 = vld [vmem:[#allocation15_spill] sm:$0xff] }
 0xbb8   : > { %9278 = vmatpush.msra.mxu2 %v16597_v47  ;;  %v16610_v47 = vld [vmem:[#allocation27_spill] sm:$0xff] }
 0xbb9   : > { %9245 = vmatpush.msrb.mxu1 %v16594_v35  ;;  %9311 = vmatpush.msra.mxu3 %v16586_v53  ;;  %v16602_v53 = vld [vmem:[#allocation18_spill] sm:$0xff] }
 0xbba   : > { %8818 = vmatmul.f32.vlgmr.msrb.gmra.mxu0 %v14586_v18  ;;  %8871 = vmatmul.f32.gmra.mxu1 %v14584_v41  ;;  %v16603_v18 = vld [vmem:[#allocation16_spill] sm:$0xff] }
 0xbbb   : > { %9205 = vmatpush.msrb.mxu0 %v16598_v5  ;;  %9313 = vmatpush.msra.mxu3 %v16592_v56  ;;  %v16606_v56 = vld [vmem:[#allocation37_spill] sm:$0xff] }
 0xbbc   : > { %8906 = vmatmul.f32.gmra.mxu2 %v14592_v46  ;;  %v16605_v46 = vld [vmem:[#allocation36_spill] sm:$0xff] }
 0xbbd   : > { %9208 = vmatpush.msrb.mxu0 %v16599_v49  ;;  %9315 = vmatpush.msra.mxu3 %v16594_v35  ;;  %v16607_v35 = vld [vmem:[#allocation39_spill] sm:$0xff] }
 0xbbe   : > { %8939 = vmatmul.f32.gmra.mxu3 %v14600_v13  ;;  %9282 = vmatpush.msra.mxu2 %v16600_v38  ;;  %v16608_v13 = vld [vmem:[#allocation22_spill] sm:$0xff] }
 0xbbf   : > { %9211 = vmatpush.msrb.mxu0 %v16601_v32  ;;  %v16612_v32 = vld [vmem:[#allocation173_spill] sm:$0xff] }
 0xbc0   : > { %9286 = vmatpush.msra.mxu2 %v16602_v53  ;;  %v16613_v53 = vld [vmem:[#allocation105_spill] sm:$0xff] }
 0xbc1   : > { %9214 = vmatpush.msrb.mxu0 %v16603_v18  ;;  %v7134_v18 = vadd.f32 %v16613_v53, %v16612_v32  ;;  %v16618_v53 = vld [vmem:[#allocation100_spill] sm:$0xff] }
 0xbc2   : > { %8826 = vmatmul.f32.gmra.mxu0 %v14609_v59  ;;  %9001 = vmatmul.f32.vlgmr.msra.gmra.mxu1 %v14565_v7  ;;  %v16611_v59 = vld [vmem:[#allocation31_spill] sm:$0xff] }
 0xbc3   : > { %9379 = vmatpush.msra.mxu1 %v16604_v10 }
 0xbc5   : > { %9385 = vmatpush.msra.mxu1 %v16605_v46  ;;  %v16614_v46 = vld [vmem:[#allocation174_spill] sm:$0xff] }
 0xbc7   : > { %9391 = vmatpush.msra.mxu1 %v16606_v56 }
 0xbc9   : > { %9397 = vmatpush.msra.mxu1 %v16607_v35  ;;  %v16615_v35 = vld [vmem:[#allocation91_spill] sm:$0xff] }
 0xbca   : > { %8972 = vmatmul.f32.vlgmr.msra.gmra.mxu0 %v14565_v7  ;;  %9005 = vmatmul.f32.gmra.mxu1 %v14584_v41  ;;  %v7183_v11 = vadd.f32 %v16615_v35, %v7134_v18 }
 0xbcb   : > { %9338 = vmatpush.msra.mxu0 %v16608_v13 }
 0xbcc   : > { %v7217_v50 = vadd.f32 %v16616_v57, %v7183_v11 }
 0xbcd   : > { %9340 = vmatpush.msra.mxu0 %v16609_v33 }
 0xbce   : > { %v7249_v4 = vadd.f32 %v16618_v53, %v7217_v50  ;;  %v16625_v53 = vld [vmem:[#allocation116_spill] sm:$0xff] }
 0xbcf   : > { %9342 = vmatpush.msra.mxu0 %v16610_v47 }
 0xbd1   : > { %9344 = vmatpush.msra.mxu0 %v16611_v59 }
 0xbd2   : > { %8976 = vmatmul.f32.gmra.mxu0 %v14584_v41  ;;  %v7142_v41 = vadd.f32 %v16617_v8, %v16612_v32  ;;  %v16622_v32 = vld [vmem:[#allocation108_spill] sm:$0xff] }
 0xbd4   : > { %v7187_v60 = vadd.f32 %v16619_v36, %v7142_v41 }
 0xbd6   : > { %v7222_v57 = vadd.f32 %v16621_v62, %v7187_v60 }
 0xbd8   : > { %v7255_v36 = vadd.f32 %v16625_v53, %v7222_v57 }
 0xbff   : > { %v8436_v5 = vpop.f32.mrf.mxu1 }
 0xc07   : > { %v8387_v49 = vpop.f32.mrf.mxu0  ;;  %v8440_v38 = vpop.f32.mrf.mxu1 }
 0xc08   : > { %v8470_v10 = vpop.f32.mrf.mxu2  ;;  %v8388_v56 = vadd.f32 %v8387_v49, %v16614_v46  ;;  %v16620_v49 = vld [vmem:[#allocation115_spill] sm:$0xff] }
 0xc09   : > { %v8502_v7 = vpop.f32.mrf.mxu3  ;;  %v7288_v30 = vadd.f32 %v16620_v49, %v7249_v4  ;;  %v16626_v4 = vld [vmem:[#allocation118_spill] sm:$0xff] }
 0xc0a   : > { %v8437_v52 = vadd.f32 %v8436_v5, %v8388_v56 }
 0xc0b   : > { %v7317_v2 = vadd.f32 %v16622_v32, %v7288_v30  ;;  %v16628_v30 = vld [vmem:[#allocation119_spill] sm:$0xff]  ;;  %v16629_v32 = vld [vmem:[#allocation106_spill] sm:$0xff] }
 0xc0c   : > { %v8471_v1 = vadd.f32 %v8470_v10, %v8437_v52 }
 0xc0e   : > { %v8503_v18 = vadd.f32 %v8502_v7, %v8471_v1  ;;  %v7292_v1 = vadd.f32 %v16626_v4, %v7255_v36  ;;  %v16627_v7 = vld [vmem:[#allocation98_spill] sm:$0xff] }
 0xc0f   : > { %v8395_v37 = vpop.f32.mrf.mxu0  ;;  %v8570_v48 = vpop.f32.mrf.mxu1 }
 0xc10   : > { %v8475_v3 = vpop.f32.mrf.mxu2  ;;  %v8396_v12 = vadd.f32 %v8395_v37, %v16614_v46  ;;  %v16623_v37 = vld [vmem:[#allocation90_spill] sm:$0xff]  ;;  %v16624_v46 = vld [vmem:[#allocation113_spill] sm:$0xff] }
 0xc11   : > { %v8508_v54 = vpop.f32.mrf.mxu3  ;;  %v7350_v50 = vadd.f32 %v16624_v46, %v16623_v37  ;;  %v16630_v46 = vld [vmem:[#allocation93_spill] sm:$0xff] }
 0xc12   : > { %v8441_v5 = vadd.f32 %v8440_v38, %v8396_v12 }
 0xc13   : > { %v7399_v49 = vadd.f32 %v16627_v7, %v7350_v50 }
 0xc14   : > { %v8476_v52 = vadd.f32 %v8475_v3, %v8441_v5  ;;  %v7321_v5 = vadd.f32 %v16629_v32, %v7292_v1  ;;  %v16634_v1 = vld [vmem:[#allocation122_spill] sm:$0xff] }
 0xc15   : > { %v7433_v3 = vadd.f32 %v16628_v30, %v7399_v49 }
 0xc16   : > { %v8509_v12 = vadd.f32 %v8508_v54, %v8476_v52  ;;  %v16632_v52 = vld [vmem:[#allocation175_spill] sm:$0xff] }
 0xc17   : > { %v8541_v56 = vpop.f32.mrf.mxu0  ;;  %v8574_v35 = vpop.f32.mrf.mxu1  ;;  %v7465_v53 = vadd.f32 %v16632_v52, %v7433_v3 }
 0xc18   : > { %v8542_v11 = vadd.f32 %v8541_v56, %v8503_v18  ;;  %v8603_v14 = vpop.f32.mrf.mxu2 }
 0xc19   : > { %v8652_v8 = vpop.f32.mrf.mxu3 }
 0xc1a   : > { %v8571_v10 = vadd.f32 %v8570_v48, %v8542_v11  ;;  %v8604_v11 = vadd.f32 %v8603_v14, %v16630_v46 }
 0xc1c   : > { %v9009_v41 = vadd.f32 %v8571_v10, %v7317_v2  ;;  %v16631_v2 = vld [vmem:[#allocation107_spill] sm:$0xff]  ;;  %v8653_v36 = vadd.f32 %v8652_v8, %v8604_v11 }
 0xc1d   : > { %v7358_v10 = vadd.f32 %v16631_v2, %v16623_v37 }
 0xc1e   : > { %v11554_v38 = vmul.f32 -1.442695, %v9009_v41 }
 0xc1f   : > { %v8545_v62 = vpop.f32.mrf.mxu0  ;;  %v8718_v60 = vpop.f32.mrf.mxu1 }
 0xc20   : > { %11717 = vpow2.f32 %v11554_v38  ;;  %v8546_v18 = vadd.f32 %v8545_v62, %v8509_v12  ;;  %v8611_v56 = vpop.f32.mrf.mxu2  ;;  %v16633_v38 = vld [vmem:[#allocation114_spill] sm:$0xff]  ;;  %v7504_v62 = vadd.f32 %v16634_v1, %v7465_v53 }
 0xc21   : > { %v8656_v48 = vpop.f32.mrf.mxu3  ;;  %v7403_v7 = vadd.f32 %v16633_v38, %v7358_v10  ;;  %v8612_v3 = vadd.f32 %v8611_v56, %v16630_v46 }
 0xc22   : > { %v8575_v57 = vadd.f32 %v8574_v35, %v8546_v18  ;;  %v16635_v18 = vld [vmem:[#allocation120_spill] sm:$0xff] }
 0xc23   : > { %v7438_v30 = vadd.f32 %v16635_v18, %v7403_v7  ;;  %v8657_v52 = vadd.f32 %v8656_v48, %v8612_v3  ;;  %v16638_v7 = vld [vmem:[#allocation21_spill] sm:$0xff]  ;;  %v16639_v18 = vld [vmem:[#allocation88_spill] sm:$0xff] }
 0xc24   : > { %v9010_v54 = vadd.f32 %v8575_v57, %v7321_v5  ;;  %v16636_v57 = vld [vmem:[#allocation109_spill] sm:$0xff] }
 0xc25   : > { %v7533_v2 = vadd.f32 %v16636_v57, %v7504_v62 }
 0xc26   : > { %v11718_v50 = vpop.eup %11717  ;;  %v11555_v41 = vmul.f32 -1.442695, %v9010_v54  ;;  %v16637_v54 = vld [vmem:[#allocation103_spill] sm:$0xff] }
 0xc27   : > { %v14722_v4 = vadd.f32 1.0, %v11718_v50  ;;  %v8686_v12 = vpop.f32.mrf.mxu0  ;;  %v8724_v14 = vpop.f32.mrf.mxu1  ;;  %v7471_v10 = vadd.f32 %v16637_v54, %v7438_v30  ;;  %v16640_v30 = vld [vmem:[#allocation177_spill] sm:$0xff] }
 0xc28   : > { %11719 = vpow2.f32 %v11555_v41  ;;  %v8687_v49 = vadd.f32 %v8686_v12, %v8653_v36  ;;  %v8757_v35 = vpop.f32.mrf.mxu2  ;;  %v7566_v3 = vadd.f32 %v16640_v30, %v16639_v18 }
 0xc29   : > { %11721 = vrcp.f32 %v14722_v4  ;;  %v8786_v8 = vpop.f32.mrf.mxu3  ;;  %v7508_v1 = vadd.f32 %v16638_v7, %v7471_v10  ;;  %v16642_v10 = vld [vmem:[#allocation117_spill] sm:$0xff]  ;;  %v16644_v7 = vld [vmem:[#allocation178_spill] sm:$0xff]  ;;  %vm9024_vm15 = vweird.f32 %v14722_v4 }
 0xc2a   : > { %v8719_v32 = vadd.f32 %v8718_v60, %v8687_v49 }
 0xc2c   : > { %v8758_v5 = vadd.f32 %v8757_v35, %v8719_v32 }
 0xc2e   : > { %v11720_v11 = vpop.eup %11719  ;;  %v8787_v50 = vadd.f32 %v8786_v8, %v8758_v5  ;;  %v16641_v8 = vld [vmem:[#allocation102_spill] sm:$0xff] }
 0xc2f   : > { %v14731_v36 = vadd.f32 1.0, %v11720_v11  ;;  %v8691_v53 = vpop.f32.mrf.mxu0  ;;  %v14733_v41 = vpop.eup %11721  ;;  %v7537_v5 = vadd.f32 %v16641_v8, %v7508_v1 }
 0xc30   : > { %v9049_v12 = vadd.f32 %v8787_v50, %v7533_v2  ;;  %v8692_v38 = vadd.f32 %v8691_v53, %v8657_v52  ;;  %v8761_v49 = vpop.f32.mrf.mxu2  ;;  %v8868_v35 = vpop.f32.mrf.mxu1  ;;  %v9020_v62 = vmul.f32 %v14733_v41, %v14722_v4  ;;  %v7615_v52 = vadd.f32 %v16642_v10, %v7566_v3  ;;  %v16647_v10 = vld [vmem:[#allocation110_spill] sm:$0xff] }
 0xc31   : > { %11723 = vrcp.f32 %v14731_v36  ;;  %v8790_v32 = vpop.f32.mrf.mxu3  ;;  %vm9025_vm14 = vweird.f32 %v14733_v41  ;;  %vm9039_vm3 = vweird.f32 %v14731_v36 }
 0xc32   : > { %v11556_v56 = vmul.f32 -1.442695, %v9049_v12  ;;  %v8725_v60 = vadd.f32 %v8724_v14, %v8692_v38  ;;  %v9021_v2 = vsub.f32 1.0, %v9020_v62  ;;  %v16643_v12 = vld [vmem:[#allocation96_spill] sm:$0xff]  ;;  %vm14763_vm0 = vmor %vm9024_vm15, %vm9025_vm14 }
 0xc33   : > { %v16645_v62 = vld [vmem:[#allocation112_spill] sm:$0xff] }
 0xc34   : > { %11725 = vpow2.f32 %v11556_v56  ;;  %v8762_v48 = vadd.f32 %v8761_v49, %v8725_v60  ;;  %v7574_v56 = vadd.f32 %v16644_v7, %v16639_v18  ;;  %v9022_v49 = vmul.f32 %v14733_v41, %v9021_v2 }
 0xc35   : > { %v9030_v2 = vand.u32 2147483648, %v14722_v4 }
 0xc36   : > { %v8791_v11 = vadd.f32 %v8790_v32, %v8762_v48  ;;  %v7649_v48 = vadd.f32 %v16645_v62, %v7615_v52  ;;  %v16646_v32 = vld [vmem:[#allocation23_spill] sm:$0xff]  ;;  %v9028_v52 = vand.u32 2147483647, %v14722_v4 }
 0xc37   : > { %v8819_v57 = vpop.f32.mrf.mxu0  ;;  %v14742_v14 = vpop.eup %11723  ;;  %v7619_v8 = vadd.f32 %v16646_v32, %v7574_v56  ;;  %v16651_v32 = vld [vmem:[#allocation86_spill] sm:$0xff] }
 0xc38   : > { %v9050_v54 = vadd.f32 %v8791_v11, %v7537_v5  ;;  %v8820_v38 = vadd.f32 %v8819_v57, %v16643_v12  ;;  %v9035_v1 = vmul.f32 %v14742_v14, %v14731_v36  ;;  %v8872_v30 = vpop.f32.mrf.mxu1  ;;  %v8902_v5 = vpop.f32.mrf.mxu2  ;;  %v9023_v57 = vadd.f32 %v14733_v41, %v9022_v49  ;;  %v16650_v49 = vld [vmem:[#allocation121_spill] sm:$0xff] }
 0xc39   : > { %v7654_v62 = vadd.f32 %v16650_v49, %v7619_v8  ;;  %vm9029_vm1 = vcmp.eq.f32.partialorder %v9028_v52, 8.507059e+37  ;;  %vm9040_vm4 = vweird.f32 %v14742_v14 }
 0xc3a   : > { %v11726_v50 = vpop.eup %11725  ;;  %v11557_v53 = vmul.f32 -1.442695, %v9050_v54  ;;  %v8869_v3 = vadd.f32 %v8868_v35, %v8820_v38  ;;  %v9036_v54 = vsub.f32 1.0, %v9035_v1  ;;  %v9027_v4 = vsel %vm14763_vm0, %v14733_v41, %v9023_v57  ;;  %vm14789_vm7 = vmor %vm9039_vm3, %vm9040_vm4 }
 0xc3b   : > { %v14748_v60 = vadd.f32 1.0, %v11726_v50  ;;  %v7681_v50 = vadd.f32 %v16647_v10, %v7649_v48  ;;  %v8934_v48 = vpop.f32.mrf.mxu3 }
 0xc3c   : > { %11727 = vpow2.f32 %v11557_v53  ;;  %v8903_v7 = vadd.f32 %v8902_v5, %v8869_v3  ;;  %v9031_v5 = vor.u32 1.1754944e-38, %v9030_v2 }
 0xc3d   : > { %11729 = vrcp.f32 %v14748_v60  ;;  %v7720_v18 = vadd.f32 %v16651_v32, %v7681_v50  ;;  %v16652_v50 = vld [vmem:[#allocation176_spill] sm:$0xff]  ;;  %v16653_v32 = vld [vmem:[#allocation97_spill] sm:$0xff]  ;;  %vm9064_vm6 = vweird.f32 %v14748_v60 }
 0xc3e   : > { %v9032_v49 = vsel %vm9029_vm1, %v9031_v5, %v9027_v4 }
 0xc3f   : > { %v8827_v11 = vpop.f32.mrf.mxu0  ;;  %v7749_v46 = vadd.f32 %v16653_v32, %v7720_v18 }
 0xc40   : > { %v8828_v35 = vadd.f32 %v8827_v11, %v16643_v12  ;;  %v9037_v11 = vmul.f32 %v14742_v14, %v9036_v54  ;;  %v8935_v12 = vadd.f32 %v8934_v48, %v8903_v7  ;;  %v9002_v37 = vpop.f32.mrf.mxu1  ;;  %v8907_v54 = vpop.f32.mrf.mxu2  ;;  %v9045_v7 = vand.u32 2147483648, %v14731_v36 }
 0xc41   : > { %v9089_v52 = vmul.f32 %v9032_v49, %v7749_v46  ;;  %v16656_v46 = vld [vmem:[#allocation101_spill] sm:$0xff] }
 0xc42   : > { %v11728_v53 = vpop.eup %11727  ;;  %v8873_v8 = vadd.f32 %v8872_v30, %v8828_v35  ;;  %v9038_v2 = vadd.f32 %v14742_v14, %v9037_v11  ;;  %v9043_v30 = vand.u32 2147483647, %v14731_v36  ;;  %v9070_v35 = vand.u32 2147483648, %v14748_v60 }
 0xc43   : > { %v11730_v56 = vpop.eup %11729  ;;  %v14769_v1 = vadd.f32 1.0, %v11728_v53  ;;  %v7687_v53 = vadd.f32 %v16652_v50, %v7654_v62 }
 0xc44   : > { %v9060_v3 = vmul.f32 %v11730_v56, %v14748_v60  ;;  %vm9065_vm5 = vweird.f32 %v11730_v56  ;;  %v8908_v18 = vadd.f32 %v8907_v54, %v8873_v8  ;;  %v9042_v11 = vsel %vm14789_vm7, %v14742_v14, %v9038_v2 }
 0xc45   : > { %11731 = vrcp.f32 %v14769_v1  ;;  %v7724_v4 = vadd.f32 %v16656_v46, %v7687_v53  ;;  %vm14794_vm8 = vmor %vm9064_vm6, %vm9065_vm5  ;;  %vm9044_vm10 = vcmp.eq.f32.partialorder %v9043_v30, 8.507059e+37  ;;  %v9071_v8 = vor.u32 1.1754944e-38, %v9070_v35  ;;  %v16660_v46 = vld [vmem:[#allocation89_spill] sm:$0xff] }
 0xc46   : > { %v9061_v10 = vsub.f32 1.0, %v9060_v3  ;;  %v9085_v2 = vand.u32 2147483648, %v14769_v1  ;;  %vm9079_vm13 = vweird.f32 %v14769_v1  ;;  %v9083_v35 = vand.u32 2147483647, %v14769_v1 }
 0xc47   : > { %v8973_v40 = vpop.f32.mrf.mxu0 }
 0xc48   : > { %v9062_v41 = vmul.f32 %v11730_v56, %v9061_v10  ;;  %v8974_v57 = vadd.f32 %v8973_v40, %v8935_v12  ;;  %v9068_v40 = vand.u32 2147483647, %v14748_v60  ;;  %v8940_v60 = vpop.f32.mrf.mxu3  ;;  %v9046_v10 = vor.u32 1.1754944e-38, %v9045_v7  ;;  %v9006_v14 = vpop.f32.mrf.mxu1 }
 0xc49   : > { %v8941_v50 = vadd.f32 %v8940_v60, %v8908_v18  ;;  %vm9084_vm15 = vcmp.eq.f32.partialorder %v9083_v35, 8.507059e+37 }
 0xc4a   : > { %v9003_v38 = vadd.f32 %v9002_v37, %v8974_v57  ;;  %v9063_v62 = vadd.f32 %v11730_v56, %v9062_v41  ;;  %vm9069_vm11 = vcmp.eq.f32.partialorder %v9068_v40, 8.507059e+37  ;;  %v9047_v32 = vsel %vm9044_vm10, %v9046_v10, %v9042_v11  ;;  %v16659_v41 = vld [vmem:[#allocation104_spill] sm:$0xff] }
 0xc4b   : > { %v11732_v48 = vpop.eup %11731  ;;  %v7753_v57 = vadd.f32 %v16659_v41, %v7724_v4  ;;  %v16664_v41 = vld [vmem:[#allocation28_spill] sm:$0xff] }
 0xc4c   : > { %v9075_v37 = vmul.f32 %v11732_v48, %v14769_v1  ;;  %v9091_v5 = vadd.f32 %v9089_v52, %v9003_v38  ;;  %v9067_v36 = vsel %vm14794_vm8, %v11730_v56, %v9063_v62  ;;  %vm9080_vm12 = vweird.f32 %v11732_v48 }
 0xc4d   : > { %v9072_v52 = vsel %vm9069_vm11, %v9071_v8, %v9067_v36  ;;  %v9090_v30 = vmul.f32 %v9047_v32, %v7753_v57  ;;  %vm9081_vm14 = vmor %vm9079_vm13, %vm9080_vm12 }
 0xc4e   : > { %v9076_v49 = vsub.f32 1.0, %v9075_v37  ;;  %11733 = vtanh.f32 %v9091_v5  ;;  %v9095_v7 = vsub.f32 1.0, %v9072_v52  ;;  %v9099_v4 = vmul.f32 %v9072_v52, %v16660_v46  ;;  %v16665_v52 = vld [vmem:[#allocation29_spill] sm:$0xff]  ;;  %v16674_v46 = vld [vmem:[#allocation52_spill] sm:$0xff] }
 0xc4f   : > { %v8977_v53 = vpop.f32.mrf.mxu0  ;;  %v9086_v37 = vor.u32 1.1754944e-38, %v9085_v2  ;;  %v16666_v2 = vld [vmem:[#allocation32_spill] sm:$0xff] }
 0xc50   : > { %v9077_v54 = vmul.f32 %v11732_v48, %v9076_v49  ;;  %v8978_v38 = vadd.f32 %v8977_v53, %v8941_v50 }
 0xc52   : > { %v9007_v12 = vadd.f32 %v9006_v14, %v8978_v38  ;;  %v9078_v56 = vadd.f32 %v11732_v48, %v9077_v54 }
 0xc54   : > { %v11734_v18 = vpop.eup %11733  ;;  %v9092_v62 = vadd.f32 %v9090_v30, %v9007_v12  ;;  %v9082_v3 = vsel %vm9081_vm14, %v11732_v48, %v9078_v56  ;;  %v16662_v48 = vld [vmem:[#allocation95_spill] sm:$0xff]  ;;  %v16667_v56 = vld [vmem:[#allocation34_spill] sm:$0xff] }
 0xc55   : > { %v9097_v40 = vmul.f32 %v11734_v18, %v9095_v7  ;;  %v9087_v11 = vsel %vm9084_vm15, %v9086_v37, %v9082_v3  ;;  %v16669_v7 = vld [vmem:[#allocation26_spill] sm:$0xff]  ;;  %v16671_v18 = vld [vmem:[#allocation51_spill] sm:$0xff] }
 0xc56   : > { %11735 = vtanh.f32 %v9092_v62  ;;  %v9096_v10 = vsub.f32 1.0, %v9087_v11  ;;  %v9100_v50 = vmul.f32 %v9087_v11, %v16662_v48  ;;  %v16673_v62 = vld [vmem:[#allocation41_spill] sm:$0xff]  ;;  %v16676_v3 = vld [vmem:[#allocation38_spill] sm:$0xff] }
 0xc57   : > { %v14809_v5 = vadd.f32 %v9099_v4, %v9097_v40  ;;  %v16675_v4 = vld [vmem:[#allocation43_spill] sm:$0xff]  ;;  %v16677_v11 = vld [vmem:[#allocation53_spill] sm:$0xff]  ;;  %v16681_v48 = vld [vmem:[#allocation42_spill] sm:$0xff] }
 0xc59   : > { %16661 = vst [vmem:[#allocation127_spill] sm:$0xff] %v14809_v5  ;;  %v9104_v60 = vsel %vm655_vm2, %v14809_v5, 0  ;;  %v9773_v37 = vand.u32 4294901760, %v14809_v5 }
 0xc5a   : > { %v14813_v36 = vand.u32 4294901760, %v9104_v60 }
 0xc5c   : > { %v11736_v1 = vpop.eup %11735  ;;  %9183 = vmatmul.f32.vlgmr.msrb.gmra.mxu3 %v14813_v36  ;;  %v14817_v8 = vsub.f32 %v9104_v60, %v14813_v36  ;;  %v16678_v60 = vld [vmem:[#allocation46_spill] sm:$0xff] }
 0xc5d   : > { %v9098_v49 = vmul.f32 %v11736_v1, %v9096_v10  ;;  %9455 = vmatpush.msrb.mxu3 %v16608_v13  ;;  %v16679_v10 = vld [vmem:[#allocation40_spill] sm:$0xff] }
 0xc5e   : > { %9217 = vmatmul.f32.vlgmr.msrb.gmra.mxu0 %v14817_v8  ;;  %v14823_v53 = vand.u32 4294901760, %v14817_v8 }
 0xc5f   : > { %v14825_v32 = vadd.f32 %v9100_v50, %v9098_v49  ;;  %9490 = vmatpush.msrb.mxu0 %v16664_v41  ;;  %9457 = vmatpush.msrb.mxu3 %v16609_v33  ;;  %v16680_v49 = vld [vmem:[#allocation48_spill] sm:$0xff]  ;;  %v9861_v50 = vsub.f32 %v14809_v5, %v9773_v37  ;;  %v16682_v41 = vld [vmem:[#allocation54_spill] sm:$0xff] }
 0xc60   : > { %9249 = vmatmul.f32.vlgmr.msrb.gmra.mxu1 %v14823_v53  ;;  %v9132_v57 = vsub.f32 %v14817_v8, %v14823_v53 }
 0xc61   : > { %16663 = vst [vmem:[#allocation130_spill] sm:$0xff] %v14825_v32  ;;  %v9107_v54 = vsel %vm655_vm2, %v14825_v32, 0  ;;  %9494 = vmatpush.msrb.mxu0 %v16665_v52  ;;  %9525 = vmatpush.msrb.mxu1 %v16608_v13  ;;  %v9771_v40 = vand.u32 4294901760, %v14825_v32  ;;  %v9862_v52 = vand.u32 4294901760, %v9861_v50 }
 0xc62   : > { %v14836_v38 = vand.u32 4294901760, %v9107_v54  ;;  %v14838_v14 = vand.u32 4294901760, %v9132_v57  ;;  %9459 = vmatpush.msrb.mxu3 %v16610_v47  ;;  %v16683_v57 = vld [vmem:[#allocation44_spill] sm:$0xff] }
 0xc63   : > { %9498 = vmatpush.msrb.mxu0 %v16666_v2  ;;  %9527 = vmatpush.msrb.mxu1 %v16609_v33  ;;  %v16668_v33 = vld [vmem:[#allocation24_spill] sm:$0xff]  ;;  %v9855_v1 = vsub.f32 %v14825_v32, %v9771_v40 }
 0xc64   : > { %9134 = vmatmul.f32.vlgmr.msrb.gmra.mxu2 %v14838_v14  ;;  %9187 = vmatmul.f32.gmra.mxu3 %v14836_v38  ;;  %v14846_v12 = vsub.f32 %v9107_v54, %v14836_v38 }
 0xc65   : > { %9502 = vmatpush.msrb.mxu0 %v16667_v56  ;;  %9529 = vmatpush.msrb.mxu1 %v16610_v47  ;;  %v16670_v47 = vld [vmem:[#allocation30_spill] sm:$0xff]  ;;  %v9856_v54 = vand.u32 4294901760, %v9855_v1  ;;  %v9863_v56 = vsub.f32 %v9861_v50, %v9862_v52 }
 0xc66   : > { %9222 = vmatmul.f32.gmra.mxu0 %v14846_v12  ;;  %v14852_v13 = vand.u32 4294901760, %v14846_v12  ;;  %9461 = vmatpush.msrb.mxu3 %v16611_v59 }
 0xc67   : > { %9531 = vmatpush.msrb.mxu1 %v16611_v59  ;;  %9421 = vmatpush.msrb.mxu2 %v16668_v33  ;;  %v16672_v59 = vld [vmem:[#allocation33_spill] sm:$0xff]  ;;  %v9857_v2 = vsub.f32 %v9855_v1, %v9856_v54 }
 0xc68   : > { %9255 = vmatmul.f32.gmra.mxu1 %v14852_v13  ;;  %v9140_v30 = vsub.f32 %v14846_v12, %v14852_v13 }
 0xc69   : > { %9424 = vmatpush.msrb.mxu2 %v16669_v7  ;;  %v9858_v33 = vand.u32 4294901760, %v9857_v2  ;;  %v16684_v7 = vld [vmem:[#allocation45_spill] sm:$0xff]  ;;  %v16713_v2 = vld [vmem:[#allocation84_spill] sm:$0xff] }
 0xc6a   : > { %v14861_v35 = vand.u32 4294901760, %v9140_v30  ;;  %v9864_v30 = vand.u32 4294901760, %v9863_v56  ;;  %v16714_v56 = vld [vmem:[#allocation57_spill] sm:$0xff] }
 0xc6b   : > { %9427 = vmatpush.msrb.mxu2 %v16670_v47  ;;  %v16685_v47 = vld [vmem:[#allocation47_spill] sm:$0xff] }
 0xc6c   : > { %9142 = vmatmul.f32.gmra.mxu2 %v14861_v35  ;;  %9317 = vmatmul.f32.vlgmr.msra.gmra.mxu3 %v14813_v36 }
 0xc6d   : > { %9595 = vmatpush.msra.mxu3 %v16671_v18  ;;  %9430 = vmatpush.msrb.mxu2 %v16672_v59  ;;  %v16686_v18 = vld [vmem:[#allocation49_spill] sm:$0xff]  ;;  %v16687_v59 = vld [vmem:[#allocation50_spill] sm:$0xff] }
 0xc6e   : > { %9350 = vmatmul.f32.vlgmr.msra.gmra.mxu0 %v14838_v14 }
 0xc6f   : > { %9637 = vmatpush.msra.mxu0 %v16673_v62  ;;  %9601 = vmatpush.msra.mxu3 %v16674_v46  ;;  %v16690_v62 = vld [vmem:[#allocation55_spill] sm:$0xff]  ;;  %v16696_v46 = vld [vmem:[#allocation64_spill] sm:$0xff] }
 0xc70   : > { %9399 = vmatmul.f32.vlgmr.msra.gmra.mxu1 %v14813_v36 }
 0xc71   : > { %9640 = vmatpush.msra.mxu0 %v16675_v4  ;;  %9671 = vmatpush.msra.mxu1 %v16676_v3  ;;  %v16697_v4 = vld [vmem:[#allocation72_spill] sm:$0xff] }
 0xc72   : > { %9607 = vmatpush.msra.mxu3 %v16677_v11  ;;  %v16701_v11 = vld [vmem:[#allocation75_spill] sm:$0xff] }
 0xc73   : > { %9643 = vmatpush.msra.mxu0 %v16678_v60  ;;  %9673 = vmatpush.msra.mxu1 %v16679_v10  ;;  %v16702_v60 = vld [vmem:[#allocation59_spill] sm:$0xff] }
 0xc74   : > { %9288 = vmatmul.f32.vlgmr.msra.gmra.mxu2 %v14813_v36  ;;  %9321 = vmatmul.f32.gmra.mxu3 %v14836_v38 }
 0xc75   : > { %9646 = vmatpush.msra.mxu0 %v16680_v49  ;;  %9675 = vmatpush.msra.mxu1 %v16681_v48  ;;  %v16706_v49 = vld [vmem:[#allocation61_spill] sm:$0xff] }
 0xc76   : > { %9358 = vmatmul.f32.gmra.mxu0 %v14861_v35  ;;  %9613 = vmatpush.msra.mxu3 %v16682_v41  ;;  %v16709_v41 = vld [vmem:[#allocation81_spill] sm:$0xff] }
 0xc77   : > { %9677 = vmatpush.msra.mxu1 %v16683_v57  ;;  %9554 = vmatpush.msra.mxu2 %v16676_v3 }
 0xc78   : > { %9403 = vmatmul.f32.gmra.mxu1 %v14836_v38 }
 0xc79   : > { %9556 = vmatpush.msra.mxu2 %v16679_v10 }
 0xc7b   : > { %9558 = vmatpush.msra.mxu2 %v16681_v48 }
 0xc7c   : > { %9292 = vmatmul.f32.gmra.mxu2 %v14836_v38  ;;  %9465 = vmatmul.f32.vlgmr.msrb.gmra.mxu3 %v14823_v53 }
 0xc7d   : > { %9741 = vmatpush.msrb.mxu3 %v16676_v3  ;;  %9560 = vmatpush.msra.mxu2 %v16683_v57  ;;  %v16699_v3 = vld [vmem:[#allocation62_spill] sm:$0xff] }
 0xc7e   : > { %9504 = vmatmul.f32.vlgmr.msrb.gmra.mxu0 %v14813_v36 }
 0xc7f   : > { %9772 = vmatpush.msrb.mxu0 %v9771_v40  ;;  %9743 = vmatpush.msrb.mxu3 %v16679_v10  ;;  %v16703_v10 = vld [vmem:[#allocation65_spill] sm:$0xff] }
 0xc80   : > { %9533 = vmatmul.f32.vlgmr.msrb.gmra.mxu1 %v14813_v36 }
 0xc81   : > { %9774 = vmatpush.msrb.mxu0 %v9773_v37  ;;  %9859 = vmatpush.msrb.mxu1 %v9858_v33  ;;  %v16715_v33 = vld [vmem:[#allocation74_spill] sm:$0xff] }
 0xc82   : > { %9745 = vmatpush.msrb.mxu3 %v16681_v48  ;;  %v16707_v48 = vld [vmem:[#allocation68_spill] sm:$0xff] }
 0xc83   : > { %9865 = vmatpush.msrb.mxu1 %v9864_v30  ;;  %v16716_v30 = vld [vmem:[#allocation79_spill] sm:$0xff] }
 0xc84   : > { %9433 = vmatmul.f32.vlgmr.msrb.gmra.mxu2 %v14817_v8  ;;  %9471 = vmatmul.f32.gmra.mxu3 %v14852_v13 }
 0xc85   : > { %9747 = vmatpush.msrb.mxu3 %v16683_v57  ;;  %9706 = vmatpush.msrb.mxu2 %v16684_v7  ;;  %v16710_v57 = vld [vmem:[#allocation63_spill] sm:$0xff] }
 0xc86   : > { %9508 = vmatmul.f32.gmra.mxu0 %v14836_v38  ;;  %v16717_v7 = vld [vmem:[#allocation87_spill] sm:$0xff] }
 0xc87   : > { %9710 = vmatpush.msrb.mxu2 %v16685_v47  ;;  %v16718_v47 = vld [vmem:[#allocation60_spill] sm:$0xff] }
 0xc88   : > { %9537 = vmatmul.f32.gmra.mxu1 %v14836_v38 }
 0xc89   : > { %9714 = vmatpush.msrb.mxu2 %v16686_v18 }
 0xc8b   : > { %9718 = vmatpush.msrb.mxu2 %v16687_v59  ;;  %v16720_v59 = vld [vmem:[#allocation77_spill] sm:$0xff] }
 0xc8c   : > { %9438 = vmatmul.f32.gmra.mxu2 %v14846_v12  ;;  %9615 = vmatmul.f32.vlgmr.msra.gmra.mxu3 %v14813_v36 }
 0xc8d   : > { %9975 = vmatpush.msra.mxu3 %v9771_v40 }
 0xc8e   : > { %9649 = vmatmul.f32.vlgmr.msra.gmra.mxu0 %v14817_v8  ;;  %v16688_v8 = vld [vmem:[#allocation66_spill] sm:$0xff] }
 0xc8f   : > { %9977 = vmatpush.msra.mxu3 %v9773_v37  ;;  %10044 = vmatpush.msra.mxu0 %v9856_v54  ;;  %v16711_v54 = vld [vmem:[#allocation71_spill] sm:$0xff] }
 0xc90   : > { %9681 = vmatmul.f32.vlgmr.msra.gmra.mxu1 %v14823_v53  ;;  %v16689_v53 = vld [vmem:[#allocation126_spill] sm:$0xff] }
 0xc91   : > { %10048 = vmatpush.msra.mxu0 %v9862_v52  ;;  %10097 = vmatpush.msra.mxu1 %v9771_v40  ;;  %v16692_v40 = vld [vmem:[#allocation132_spill] sm:$0xff] }
 0xc92   : > { %v16712_v52 = vld [vmem:[#allocation76_spill] sm:$0xff] }
 0xc93   : > { %10099 = vmatpush.msra.mxu1 %v9773_v37  ;;  %v16700_v37 = vld [vmem:[#allocation67_spill] sm:$0xff] }
 0xc94   : > { %9566 = vmatmul.f32.vlgmr.msra.gmra.mxu2 %v14838_v14  ;;  %9619 = vmatmul.f32.gmra.mxu3 %v14836_v38  ;;  %v16691_v14 = vld [vmem:[#allocation129_spill] sm:$0xff] }
 0xc95   : > { %9915 = vmatpush.msra.mxu2 %v9855_v1  ;;  %v16704_v1 = vld [vmem:[#allocation70_spill] sm:$0xff] }
 0xc96   : > { %9654 = vmatmul.f32.gmra.mxu0 %v14846_v12  ;;  %v16693_v12 = vld [vmem:[#allocation136_spill] sm:$0xff] }
 0xc97   : > { %9918 = vmatpush.msra.mxu2 %v9861_v50  ;;  %v16708_v50 = vld [vmem:[#allocation73_spill] sm:$0xff] }
 0xc98   : > { %9687 = vmatmul.f32.gmra.mxu1 %v14852_v13  ;;  %v16694_v13 = vld [vmem:[#allocation69_spill] sm:$0xff] }
 0xc9c   : > { %9574 = vmatmul.f32.gmra.mxu2 %v14861_v35  ;;  %9749 = vmatmul.f32.vlgmr.msrb.gmra.mxu3 %v14813_v36  ;;  %v16695_v35 = vld [vmem:[#allocation56_spill] sm:$0xff] }
 0xc9e   : > { %9780 = vmatmul.f32.vlgmr.msrb.gmra.mxu0 %v16688_v8  ;;  %v16721_v8 = vld [vmem:[#allocation82_spill] sm:$0xff] }
 0xc9f   : > { %10459 = vmatpush.msrb.mxu0 %v16689_v53 }
 0xca0   : > { %11558 = vmatmul.msk.f32.vlgmr.msrb.gmra.mxu1 %vm1718_vm9, %v16690_v62 }
 0xca1   : > { %10462 = vmatpush.msrb.mxu0 %v16691_v14  ;;  %10493 = vmatpush.msrb.mxu1 %v12682_v29  ;;  %v16723_v14 = vld [vmem:[#allocation150_spill] sm:$0xff] }
 0xca3   : > { %10465 = vmatpush.msrb.mxu0 %v16692_v40  ;;  %10495 = vmatpush.msrb.mxu1 %v16546_v44 }
 0xca4   : > { %9720 = vmatmul.f32.vlgmr.msrb.gmra.mxu2 %v14813_v36  ;;  %9753 = vmatmul.f32.gmra.mxu3 %v14836_v38  ;;  %v16698_v36 = vld [vmem:[#allocation58_spill] sm:$0xff] }
 0xca5   : > { %10468 = vmatpush.msrb.mxu0 %v16693_v12  ;;  %10497 = vmatpush.msrb.mxu1 %v16547_v45  ;;  %v16725_v12 = vld [vmem:[#allocation153_spill] sm:$0xff] }
 0xca6   : > { %9788 = vmatmul.f32.gmra.mxu0 %v16694_v13  ;;  %v16726_v13 = vld [vmem:[#allocation80_spill] sm:$0xff] }
 0xca7   : > { %10499 = vmatpush.msrb.mxu1 %v16548_v6 }
 0xca8   : > { %11559 = vmatmul.msk.f32.gmra.mxu1 %vm1718_vm9, %v16695_v35 }
 0xcac   : > { %9724 = vmatmul.f32.gmra.mxu2 %v14836_v38  ;;  %9981 = vmatmul.f32.vlgmr.msra.gmra.mxu3 %v16696_v46  ;;  %v16705_v38 = vld [vmem:[#allocation78_spill] sm:$0xff]  ;;  %v16727_v46 = vld [vmem:[#allocation85_spill] sm:$0xff] }
 0xcae   : > { %9796 = vmatmul.f32.gmra.mxu0 %v16697_v4 }
 0xcb0   : > { %11560 = vmatmul.msk.f32.gmra.mxu1 %vm1718_vm9, %v16698_v36 }
 0xcb4   : > { %9921 = vmatmul.f32.vlgmr.msra.gmra.mxu2 %v16699_v3  ;;  %9987 = vmatmul.f32.gmra.mxu3 %v16700_v37  ;;  %v16729_v3 = vld [vmem:[#allocation155_spill] sm:$0xff] }
 0xcb6   : > { %9804 = vmatmul.f32.gmra.mxu0 %v16701_v11  ;;  %v16732_v11 = vld [vmem:[#allocation156_spill] sm:$0xff] }
 0xcb8   : > { %11561 = vmatmul.msk.f32.gmra.mxu1 %vm1718_vm9, %v16702_v60 }
 0xcbc   : > { %9926 = vmatmul.f32.gmra.mxu2 %v16703_v10  ;;  %9993 = vmatmul.f32.gmra.mxu3 %v16704_v1  ;;  %v16734_v1 = vld [vmem:[#allocation83_spill] sm:$0xff] }
 0xcbe   : > { %9812 = vmatmul.f32.gmra.mxu0 %v16705_v38 }
 0xcc0   : > { %11562 = vmatmul.msk.f32.gmra.mxu1 %vm1718_vm9, %v16706_v49 }
 0xcc4   : > { %9931 = vmatmul.f32.gmra.mxu2 %v16707_v48  ;;  %9999 = vmatmul.f32.gmra.mxu3 %v16708_v50 }
 0xcc6   : > { %9820 = vmatmul.f32.gmra.mxu0 %v16709_v41 }
 0xcc8   : > { %11563 = vmatmul.msk.f32.gmra.mxu1 %vm1718_vm9, %v16710_v57 }
 0xccc   : > { %9936 = vmatmul.f32.gmra.mxu2 %v16711_v54  ;;  %10005 = vmatmul.f32.gmra.mxu3 %v16712_v52 }
 0xcce   : > { %9828 = vmatmul.f32.gmra.mxu0 %v16713_v2 }
 0xcd0   : > { %11564 = vmatmul.msk.f32.gmra.mxu1 %vm1718_vm9, %v16714_v56 }
 0xcd4   : > { %9941 = vmatmul.f32.gmra.mxu2 %v16715_v33  ;;  %10011 = vmatmul.f32.gmra.mxu3 %v16716_v30 }
 0xcd6   : > { %9836 = vmatmul.f32.gmra.mxu0 %v16717_v7 }
 0xcd8   : > { %11565 = vmatmul.msk.f32.gmra.mxu1 %vm1718_vm9, %v16718_v47 }
 0xcdb   : > { %v14965_v18 = vpop.f32.mrf.mxu0 }
 0xcdc   : > { %16719 = vst [vmem:[#allocation133_spill] sm:$0xff] %v14965_v18  ;;  %9946 = vmatmul.f32.gmra.mxu2 %v16720_v59  ;;  %10017 = vmatmul.f32.gmra.mxu3 %v16721_v8 }
 0xcdd   : > { %v14969_v53 = vpop.f32.mrf.mxu1 }
 0xcde   : > { %16722 = vst [vmem:[#allocation5_spill] sm:$0xff] %v14969_v53  ;;  %11566 = vmatmul.msk.f32.vlgmr.msra.gmra.mxu0 %vm1718_vm9, %v16690_v62 }
 0xcdf   : > { %10592 = vmatpush.msra.mxu0 %v16560_v25 }
 0xce0   : > { %11574 = vmatmul.msk.f32.vlgmr.msra.gmra.mxu1 %vm1718_vm9, %v16690_v62  ;;  %v14990_v62 = vpop.f32.mrf.mxu3 }
 0xce1   : > { %10594 = vmatpush.msra.mxu0 %v16561_v23  ;;  %10633 = vmatpush.msra.mxu1 %v16723_v14  ;;  %16730 = vst [vmem:[#allocation17_spill] sm:$0xff] %v14990_v62 }
 0xce3   : > { %v14978_v40 = vpop.f32.mrf.mxu0  ;;  %10596 = vmatpush.msra.mxu0 %v16563_v0  ;;  %10639 = vmatpush.msra.mxu1 %v16725_v12 }
 0xce4   : > { %16724 = vst [vmem:[#allocation14_spill] sm:$0xff] %v14978_v40  ;;  %9951 = vmatmul.f32.gmra.mxu2 %v16726_v13  ;;  %10023 = vmatmul.f32.gmra.mxu3 %v16727_v46 }
 0xce5   : > { %v14984_v4 = vpop.f32.mrf.mxu1  ;;  %10598 = vmatpush.msra.mxu0 %v16565_v63  ;;  %10645 = vmatpush.msra.mxu1 %v16729_v3 }
 0xce6   : > { %16728 = vst [vmem:[#allocation6_spill] sm:$0xff] %v14984_v4  ;;  %11567 = vmatmul.msk.f32.gmra.mxu0 %vm1718_vm9, %v16695_v35 }
 0xce7   : > { %v14992_v37 = vpop.f32.mrf.mxu2  ;;  %10651 = vmatpush.msra.mxu1 %v16732_v11 }
 0xce8   : > { %16731 = vst [vmem:[#allocation19_spill] sm:$0xff] %v14992_v37  ;;  %11575 = vmatmul.msk.f32.gmra.mxu1 %vm1718_vm9, %v16695_v35  ;;  %v15008_v50 = vpop.f32.mrf.mxu3 }
 0xce9   : > { %16737 = vst [vmem:[#allocation8_spill] sm:$0xff] %v15008_v50 }
 0xceb   : > { %v14997_v10 = vpop.f32.mrf.mxu0 }
 0xcec   : > { %16733 = vst [vmem:[#allocation20_spill] sm:$0xff] %v14997_v10  ;;  %9956 = vmatmul.f32.gmra.mxu2 %v16734_v1 }
 0xced   : > { %v15000_v38 = vpop.f32.mrf.mxu1 }
 0xcee   : > { %16735 = vst [vmem:[#allocation9_spill] sm:$0xff] %v15000_v38  ;;  %11568 = vmatmul.msk.f32.gmra.mxu0 %vm1718_vm9, %v16698_v36 }
 0xcef   : > { %v15004_v48 = vpop.f32.mrf.mxu2 }
 0xcf0   : > { %16736 = vst [vmem:[#allocation12_spill] sm:$0xff] %v15004_v48  ;;  %11576 = vmatmul.msk.f32.gmra.mxu1 %vm1718_vm9, %v16698_v36  ;;  %v15020_v52 = vpop.f32.mrf.mxu3 }
 0xcf1   : > { %16741 = vst [vmem:[#allocation15_spill] sm:$0xff] %v15020_v52 }
 0xcf3   : > { %v15010_v41 = vpop.f32.mrf.mxu0 }
 0xcf4   : > { %16738 = vst [vmem:[#allocation11_spill] sm:$0xff] %v15010_v41 }
 0xcf5   : > { %v15012_v54 = vpop.f32.mrf.mxu1 }
 0xcf6   : > { %16739 = vst [vmem:[#allocation7_spill] sm:$0xff] %v15012_v54  ;;  %11569 = vmatmul.msk.f32.gmra.mxu0 %vm1718_vm9, %v16702_v60 }
 0xcf7   : > { %v15016_v35 = vpop.f32.mrf.mxu2 }
 0xcf8   : > { %16740 = vst [vmem:[#allocation10_spill] sm:$0xff] %v15016_v35  ;;  %11577 = vmatmul.msk.f32.gmra.mxu1 %vm1718_vm9, %v16702_v60  ;;  %v15034_v7 = vpop.f32.mrf.mxu3 }
 0xcf9   : > { %16746 = vst [vmem:[#allocation36_spill] sm:$0xff] %v15034_v7 }
 0xcfb   : > { %v15022_v2 = vpop.f32.mrf.mxu0 }
 0xcfc   : > { %16742 = vst [vmem:[#allocation13_spill] sm:$0xff] %v15022_v2 }
 0xcfd   : > { %v15024_v33 = vpop.f32.mrf.mxu1 }
 0xcfe   : > { %16743 = vst [vmem:[#allocation18_spill] sm:$0xff] %v15024_v33  ;;  %11570 = vmatmul.msk.f32.gmra.mxu0 %vm1718_vm9, %v16706_v49 }
 0xcff   : > { %v15028_v36 = vpop.f32.mrf.mxu2 }
 0xd00   : > { %16744 = vst [vmem:[#allocation16_spill] sm:$0xff] %v15028_v36  ;;  %11578 = vmatmul.msk.f32.gmra.mxu1 %vm1718_vm9, %v16706_v49  ;;  %v15050_v49 = vpop.f32.mrf.mxu3 }
 0xd01   : > { %16751 = vst [vmem:[#allocation27_spill] sm:$0xff] %v15050_v49 }
 0xd03   : > { %v15032_v30 = vpop.f32.mrf.mxu0 }
 0xd04   : > { %16745 = vst [vmem:[#allocation35_spill] sm:$0xff] %v15032_v30 }
 0xd05   : > { %v15036_v59 = vpop.f32.mrf.mxu1 }
 0xd06   : > { %16747 = vst [vmem:[#allocation37_spill] sm:$0xff] %v15036_v59  ;;  %11571 = vmatmul.msk.f32.gmra.mxu0 %vm1718_vm9, %v16710_v57 }
 0xd07   : > { %v15042_v60 = vpop.f32.mrf.mxu2 }
 0xd08   : > { %11579 = vmatmul.msk.f32.gmra.mxu1 %vm1718_vm9, %v16710_v57  ;;  %16748 = vst [vmem:[#allocation39_spill] sm:$0xff] %v15042_v60  ;;  %v15064_v57 = vpop.f32.mrf.mxu3 }
 0xd09   : > { %16755 = vst [vmem:[#allocation94_spill] sm:$0xff] %v15064_v57 }
 0xd0b   : > { %v15044_v8 = vpop.f32.mrf.mxu0 }
 0xd0c   : > { %16749 = vst [vmem:[#allocation22_spill] sm:$0xff] %v15044_v8 }
 0xd0d   : > { %v15046_v14 = vpop.f32.mrf.mxu1 }
 0xd0e   : > { %16750 = vst [vmem:[#allocation25_spill] sm:$0xff] %v15046_v14  ;;  %11572 = vmatmul.msk.f32.gmra.mxu0 %vm1718_vm9, %v16714_v56 }
 0xd0f   : > { %v15054_v12 = vpop.f32.mrf.mxu2 }
 0xd10   : > { %11580 = vmatmul.msk.f32.gmra.mxu1 %vm1718_vm9, %v16714_v56  ;;  %16752 = vst [vmem:[#allocation31_spill] sm:$0xff] %v15054_v12  ;;  %v15068_v32 = vpop.f32.mrf.mxu3 }
 0xd11   : > { %16757 = vst [vmem:[#allocation100_spill] sm:$0xff] %v15068_v32 }
 0xd13   : > { %v15056_v13 = vpop.f32.mrf.mxu0 }
 0xd14   : > { %16753 = vst [vmem:[#allocation105_spill] sm:$0xff] %v15056_v13 }
 0xd15   : > { %v15058_v46 = vpop.f32.mrf.mxu1 }
 0xd16   : > { %16754 = vst [vmem:[#allocation91_spill] sm:$0xff] %v15058_v46  ;;  %11573 = vmatmul.msk.f32.gmra.mxu0 %vm1718_vm9, %v16718_v47 }
 0xd17   : > { %v15066_v11 = vpop.f32.mrf.mxu2 }
 0xd18   : > { %11581 = vmatmul.msk.f32.gmra.mxu1 %vm1718_vm9, %v16718_v47  ;;  %16756 = vst [vmem:[#allocation111_spill] sm:$0xff] %v15066_v11  ;;  %v15072_v46 = vpop.f32.mrf.mxu3 }
 0xd19   : > { %16759 = vst [vmem:[#allocation115_spill] sm:$0xff] %v15072_v46 }
 0xd1b   : > { %v9781_v3 = vpop.f32.mrf.mxu0 }
 0xd1d   : > { %v9868_v1 = vpop.f32.mrf.mxu1 }
 0xd1e   : > { %v9869_v24 = vadd.f32 %v9868_v1, %v9781_v3 }
 0xd1f   : > { %v15070_v14 = vpop.f32.mrf.mxu2 }
 0xd20   : > { %16758 = vst [vmem:[#allocation99_spill] sm:$0xff] %v15070_v14  ;;  %v15076_v33 = vpop.f32.mrf.mxu3 }
 0xd21   : > { %16761 = vst [vmem:[#allocation108_spill] sm:$0xff] %v15076_v33 }
 0xd23   : > { %v9789_v56 = vpop.f32.mrf.mxu0 }
 0xd25   : > { %v9872_v5 = vpop.f32.mrf.mxu1 }
 0xd26   : > { %v9873_v61 = vadd.f32 %v9872_v5, %v9789_v56 }
 0xd27   : > { %v15074_v59 = vpop.f32.mrf.mxu2 }
 0xd28   : > { %16760 = vst [vmem:[#allocation92_spill] sm:$0xff] %v15074_v59  ;;  %v15080_v32 = vpop.f32.mrf.mxu3 }
 0xd29   : > { %16763 = vst [vmem:[#allocation116_spill] sm:$0xff] %v15080_v32 }
 0xd2b   : > { %v9797_v13 = vpop.f32.mrf.mxu0 }
 0xd2d   : > { %v9876_v8 = vpop.f32.mrf.mxu1 }
 0xd2e   : > { %v9877_v26 = vadd.f32 %v9876_v8, %v9797_v13 }
 0xd2f   : > { %v15078_v57 = vpop.f32.mrf.mxu2 }
 0xd30   : > { %16762 = vst [vmem:[#allocation113_spill] sm:$0xff] %v15078_v57  ;;  %v9982_v7 = vpop.f32.mrf.mxu3 }
 0xd33   : > { %v9805_v30 = vpop.f32.mrf.mxu0 }
 0xd35   : > { %v9880_v47 = vpop.f32.mrf.mxu1 }
 0xd36   : > { %v9881_v19 = vadd.f32 %v9880_v47, %v9805_v30 }
 0xd37   : > { %v9922_v49 = vpop.f32.mrf.mxu2 }
 0xd38   : > { %v9988_v4 = vpop.f32.mrf.mxu3  ;;  %v9923_v27 = vadd.f32 %v9922_v49, %v9869_v24 }
 0xd3a   : > { %v9983_v5 = vadd.f32 %v9982_v7, %v9923_v27 }
 0xd3b   : > { %v9813_v11 = vpop.f32.mrf.mxu0 }
 0xd3d   : > { %v9884_v12 = vpop.f32.mrf.mxu1 }
 0xd3e   : > { %v9885_v2 = vadd.f32 %v9884_v12, %v9813_v11 }
 0xd3f   : > { %v9927_v59 = vpop.f32.mrf.mxu2 }
 0xd40   : > { %v9994_v40 = vpop.f32.mrf.mxu3  ;;  %v9928_v28 = vadd.f32 %v9927_v59, %v9873_v61 }
 0xd42   : > { %v9989_v9 = vadd.f32 %v9988_v4, %v9928_v28 }
 0xd43   : > { %v9821_v54 = vpop.f32.mrf.mxu0 }
 0xd45   : > { %v9888_v14 = vpop.f32.mrf.mxu1 }
 0xd46   : > { %v9889_v41 = vadd.f32 %v9888_v14, %v9821_v54 }
 0xd47   : > { %v9932_v33 = vpop.f32.mrf.mxu2 }
 0xd48   : > { %v10000_v32 = vpop.f32.mrf.mxu3  ;;  %v9933_v23 = vadd.f32 %v9932_v33, %v9877_v26 }
 0xd4a   : > { %v9995_v51 = vadd.f32 %v9994_v40, %v9933_v23 }
 0xd4b   : > { %v9829_v46 = vpop.f32.mrf.mxu0 }
 0xd4d   : > { %v9892_v60 = vpop.f32.mrf.mxu1 }
 0xd4e   : > { %v9893_v38 = vadd.f32 %v9892_v60, %v9829_v46 }
 0xd4f   : > { %v9937_v35 = vpop.f32.mrf.mxu2 }
 0xd50   : > { %v10006_v54 = vpop.f32.mrf.mxu3  ;;  %v9938_v61 = vadd.f32 %v9937_v35, %v9881_v19 }
 0xd53   : > { %v9837_v36 = vpop.f32.mrf.mxu0 }
 0xd55   : > { %v9896_v10 = vpop.f32.mrf.mxu1 }
 0xd56   : > { %v9897_v26 = vadd.f32 %v9896_v10, %v9837_v36 }
 0xd57   : > { %v9942_v50 = vpop.f32.mrf.mxu2 }
 0xd58   : > { %v10012_v46 = vpop.f32.mrf.mxu3  ;;  %v9943_v25 = vadd.f32 %v9942_v50, %v9885_v2 }
 0xd5a   : > { %v10007_v21 = vadd.f32 %v10006_v54, %v9943_v25 }
 0xd5b   : > { %v10051_v52 = vpop.f32.mrf.mxu0 }
 0xd5c   : > { %v10052_v50 = vadd.f32 %v10051_v52, %v9983_v5  ;;  %v16766_v5 = vld [vmem:[#allocation134_spill] sm:$0xff] }
 0xd5d   : > { %v10102_v57 = vpop.f32.mrf.mxu1 }
 0xd5f   : > { %v9947_v62 = vpop.f32.mrf.mxu2 }
 0xd60   : > { %v9948_v63 = vadd.f32 %v9947_v62, %v9889_v41  ;;  %v10018_v20 = vpop.f32.mrf.mxu3 }
 0xd62   : > { %v10013_v43 = vadd.f32 %v10012_v46, %v9948_v63 }
 0xd63   : > { %v10055_v12 = vpop.f32.mrf.mxu0 }
 0xd64   : > { %v10056_v39 = vadd.f32 %v10055_v12, %v9989_v9 }
 0xd65   : > { %v10106_v11 = vpop.f32.mrf.mxu1 }
 0xd67   : > { %v9952_v31 = vpop.f32.mrf.mxu2 }
 0xd68   : > { %v9953_v34 = vadd.f32 %v9952_v31, %v9893_v38  ;;  %v10107_v31 = vadd.f32 %v10106_v11, %v10056_v39 }
 0xd6a   : > { %v10019_v62 = vadd.f32 %v10018_v20, %v9953_v34 }
 0xd6b   : > { %v10059_v53 = vpop.f32.mrf.mxu0 }
 0xd6c   : > { %v10060_v56 = vadd.f32 %v10059_v53, %v9995_v51  ;;  %v10024_v51 = vpop.f32.mrf.mxu3 }
 0xd6d   : > { %v10110_v18 = vpop.f32.mrf.mxu1 }
 0xd6e   : > { %v10111_v38 = vadd.f32 %v10110_v18, %v10060_v56  ;;  %v16767_v56 = vld [vmem:[#allocation137_spill] sm:$0xff] }
 0xd6f   : > { %v9957_v41 = vpop.f32.mrf.mxu2 }
 0xd70   : > { %v9958_v28 = vadd.f32 %v9957_v41, %v9897_v26  ;;  %v16772_v41 = vld [vmem:[#allocation131_spill] sm:$0xff]  ;;  %v16774_v26 = vld [vmem:[#allocation138_spill] sm:$0xff] }
 0xd72   : > { %v10025_v34 = vadd.f32 %v10024_v51, %v9958_v28 }
 0xd73   : > { %v10063_v14 = vpop.f32.mrf.mxu0 }
 0xd75   : > { %v10114_v48 = vpop.f32.mrf.mxu1 }
 0xd7b   : > { %v10067_v60 = vpop.f32.mrf.mxu0 }
 0xd7c   : > { %v10068_v8 = vadd.f32 %v10067_v60, %v10007_v21 }
 0xd7d   : > { %v10118_v37 = vpop.f32.mrf.mxu1 }
 0xd7e   : > { %v10119_v23 = vadd.f32 %v10118_v37, %v10068_v8  ;;  %v16769_v8 = vld [vmem:[#allocation140_spill] sm:$0xff] }
 0xd83   : > { %v10071_v0 = vpop.f32.mrf.mxu0 }
 0xd84   : > { %v10072_v58 = vadd.f32 %v10071_v0, %v10013_v43  ;;  %v10103_v43 = vadd.f32 %v10102_v57, %v10052_v50  ;;  %v10001_v0 = vadd.f32 %v10000_v32, %v9938_v61  ;;  %v16771_v61 = vld [vmem:[#allocation128_spill] sm:$0xff] }
 0xd85   : > { %v10122_v42 = vpop.f32.mrf.mxu1 }
 0xd86   : > { %v10123_v2 = vadd.f32 %v10122_v42, %v10072_v58  ;;  %v10064_v21 = vadd.f32 %v10063_v14, %v10001_v0  ;;  %v10133_v20 = vsub.f32 %v10103_v43, %v10119_v23 }
 0xd88   : > { %v10134_v9 = vsub.f32 %v10107_v31, %v10123_v2  ;;  %v10115_v42 = vadd.f32 %v10114_v48, %v10064_v21  ;;  %v10137_v39 = vand.u32 2147483647, %v10133_v20 }
 0xd8a   : > { %v10138_v40 = vand.u32 2147483647, %v10134_v9  ;;  %v10159_v52 = vand.u32 4294901760, %v10137_v39 }
 0xd8b   : > { %v10075_v59 = vpop.f32.mrf.mxu0 }
 0xd8c   : > { %v10076_v24 = vadd.f32 %v10075_v59, %v10019_v62  ;;  %v10157_v35 = vand.u32 4294901760, %v10138_v40  ;;  %v10209_v13 = vsub.f32 %v10137_v39, %v10159_v52  ;;  %v16770_v62 = vld [vmem:[#allocation125_spill] sm:$0xff]  ;;  %v16773_v59 = vld [vmem:[#allocation135_spill] sm:$0xff] }
 0xd8d   : > { %v10126_v63 = vpop.f32.mrf.mxu1 }
 0xd8e   : > { %v10127_v25 = vadd.f32 %v10126_v63, %v10076_v24  ;;  %v10203_v30 = vsub.f32 %v10138_v40, %v10157_v35  ;;  %v10210_v47 = vand.u32 4294901760, %v10209_v13 }
 0xd90   : > { %v10135_v27 = vsub.f32 %v10111_v38, %v10127_v25  ;;  %v10204_v3 = vand.u32 4294901760, %v10203_v30  ;;  %v10211_v14 = vsub.f32 %v10209_v13, %v10210_v47 }
 0xd92   : > { %v10139_v19 = vand.u32 2147483647, %v10135_v27  ;;  %v10205_v11 = vsub.f32 %v10203_v30, %v10204_v3  ;;  %v10212_v46 = vand.u32 4294901760, %v10211_v14  ;;  %v16791_v14 = vld [vmem:[#allocation161_spill] sm:$0xff] }
 0xd93   : > { %v10079_v53 = vpop.f32.mrf.mxu0 }
 0xd94   : > { %v10080_v4 = vadd.f32 %v10079_v53, %v10025_v34  ;;  %v10155_v10 = vand.u32 4294901760, %v10139_v19  ;;  %v10206_v60 = vand.u32 4294901760, %v10205_v11  ;;  %v16775_v34 = vld [vmem:[#allocation141_spill] sm:$0xff]  ;;  %v16789_v11 = vld [vmem:[#allocation158_spill] sm:$0xff] }
 0xd95   : > { %v10130_v58 = vpop.f32.mrf.mxu1 }
 0xd96   : > { %v10131_v18 = vadd.f32 %v10130_v58, %v10080_v4  ;;  %v10197_v32 = vsub.f32 %v10139_v19, %v10155_v10  ;;  %v16776_v58 = vld [vmem:[#allocation142_spill] sm:$0xff] }
 0xd98   : > { %v10136_v37 = vsub.f32 %v10115_v42, %v10131_v18  ;;  %v10198_v49 = vand.u32 4294901760, %v10197_v32  ;;  %v16777_v42 = vld [vmem:[#allocation144_spill] sm:$0xff]  ;;  %v16778_v18 = vld [vmem:[#allocation145_spill] sm:$0xff] }
 0xd9a   : > { %v10140_v33 = vand.u32 2147483647, %v10136_v37  ;;  %v10199_v48 = vsub.f32 %v10197_v32, %v10198_v49 }
 0xd9c   : > { %v10153_v36 = vand.u32 4294901760, %v10140_v33  ;;  %v10200_v54 = vand.u32 4294901760, %v10199_v48  ;;  %v16786_v48 = vld [vmem:[#allocation152_spill] sm:$0xff] }
 0xd9e   : > { %v10191_v7 = vsub.f32 %v10140_v33, %v10153_v36  ;;  %10154 = vmatpush.msrb.mxu2 %v10153_v36  ;;  %v16780_v33 = vld [vmem:[#allocation148_spill] sm:$0xff] }
 0xda0   : > { %v10192_v57 = vand.u32 4294901760, %v10191_v7  ;;  %10156 = vmatpush.msrb.mxu2 %v10155_v10 }
 0xda2   : > { %10158 = vmatpush.msrb.mxu2 %v10157_v35  ;;  %v10193_v1 = vsub.f32 %v10191_v7, %v10192_v57 }
 0xda4   : > { %10160 = vmatpush.msrb.mxu2 %v10159_v52  ;;  %v10194_v12 = vand.u32 4294901760, %v10193_v1  ;;  %v16785_v1 = vld [vmem:[#allocation149_spill] sm:$0xff] }
 0xda5   : > { %10166 = vmatmul.f32.vlgmr.msrb.gmra.mxu2 %v12656_v16  ;;  %v16764_v16 = vld [vmem:[#allocation124_spill] sm:$0xff] }
 0xda6   : > { %10237 = vmatpush.msra.mxu2 %v10191_v7  ;;  %10195 = vmatpush.msrb.mxu3 %v10194_v12  ;;  %v16788_v12 = vld [vmem:[#allocation170_spill] sm:$0xff] }
 0xda8   : > { %10240 = vmatpush.msra.mxu2 %v10197_v32  ;;  %10201 = vmatpush.msrb.mxu3 %v10200_v54  ;;  %v16781_v32 = vld [vmem:[#allocation151_spill] sm:$0xff] }
 0xda9   : > { %v16790_v54 = vld [vmem:[#allocation171_spill] sm:$0xff] }
 0xdaa   : > { %10243 = vmatpush.msra.mxu2 %v10203_v30  ;;  %10207 = vmatpush.msrb.mxu3 %v10206_v60  ;;  %v16782_v30 = vld [vmem:[#allocation143_spill] sm:$0xff]  ;;  %v16792_v60 = vld [vmem:[#allocation157_spill] sm:$0xff] }
 0xdac   : > { %10246 = vmatpush.msra.mxu2 %v10209_v13  ;;  %10213 = vmatpush.msrb.mxu3 %v10212_v46  ;;  %v16793_v46 = vld [vmem:[#allocation172_spill] sm:$0xff] }
 0xdad   : > { %10215 = vmatmul.f32.vlgmr.msrb.gmra.mxu3 %v12639_v15  ;;  %10174 = vmatmul.f32.gmra.mxu2 %v12664_v22  ;;  %v16765_v22 = vld [vmem:[#allocation123_spill] sm:$0xff] }
 0xdae   : > { %10306 = vmatpush.msrb.mxu2 %v10192_v57  ;;  %10271 = vmatpush.msra.mxu3 %v10153_v36  ;;  %v16784_v57 = vld [vmem:[#allocation146_spill] sm:$0xff] }
 0xdb0   : > { %10310 = vmatpush.msrb.mxu2 %v10198_v49  ;;  %10273 = vmatpush.msra.mxu3 %v10155_v10  ;;  %v16783_v49 = vld [vmem:[#allocation154_spill] sm:$0xff] }
 0xdb2   : > { %10314 = vmatpush.msrb.mxu2 %v10204_v3  ;;  %10275 = vmatpush.msra.mxu3 %v10157_v35 }
 0xdb4   : > { %10318 = vmatpush.msrb.mxu2 %v10210_v47  ;;  %10277 = vmatpush.msra.mxu3 %v10159_v52  ;;  %v16787_v47 = vld [vmem:[#allocation169_spill] sm:$0xff] }
 0xdb5   : > { %10219 = vmatmul.f32.gmra.mxu3 %v12649_v55  ;;  %10249 = vmatmul.f32.vlgmr.msra.gmra.mxu2 %v12643_v17  ;;  %v16768_v17 = vld [vmem:[#allocation139_spill] sm:$0xff] }
 0xdb6   : > { %10341 = vmatpush.msrb.mxu3 %v10153_v36  ;;  %10376 = vmatpush.msra.mxu2 %v12682_v29 }
 0xdb8   : > { %10343 = vmatpush.msrb.mxu3 %v10155_v10  ;;  %10378 = vmatpush.msra.mxu2 %v16546_v44 }
 0xdba   : > { %10345 = vmatpush.msrb.mxu3 %v10157_v35  ;;  %10380 = vmatpush.msra.mxu2 %v16547_v45  ;;  %v16779_v35 = vld [vmem:[#allocation147_spill] sm:$0xff] }
 0xdbc   : > { %10347 = vmatpush.msrb.mxu3 %v10159_v52  ;;  %10382 = vmatpush.msra.mxu2 %v16548_v6 }
 0xdbd   : > { %10254 = vmatmul.f32.gmra.mxu2 %v16764_v16  ;;  %10281 = vmatmul.f32.vlgmr.msra.gmra.mxu3 %v16765_v22  ;;  %v16794_v16 = vld [vmem:[#allocation165_spill] sm:$0xff]  ;;  %v16795_v22 = vld [vmem:[#allocation159_spill] sm:$0xff] }
 0xdbe   : > { %10417 = vmatpush.msra.mxu3 %v16766_v5  ;;  %v16796_v5 = vld [vmem:[#allocation166_spill] sm:$0xff] }
 0xdc0   : > { %10423 = vmatpush.msra.mxu3 %v16767_v56  ;;  %v16797_v56 = vld [vmem:[#allocation162_spill] sm:$0xff] }
 0xdc2   : > { %10429 = vmatpush.msra.mxu3 %v16768_v17  ;;  %v16798_v17 = vld [vmem:[#allocation164_spill] sm:$0xff] }
 0xdc4   : > { %10435 = vmatpush.msra.mxu3 %v16769_v8  ;;  %v16799_v8 = vld [vmem:[#allocation160_spill] sm:$0xff] }
 0xdc5   : > { %10287 = vmatmul.f32.gmra.mxu3 %v16770_v62  ;;  %10320 = vmatmul.f32.vlgmr.msrb.gmra.mxu2 %v12639_v15  ;;  %v16800_v62 = vld [vmem:[#allocation163_spill] sm:$0xff] }
 0xdc6   : > { %10528 = vmatpush.msrb.mxu2 %v16771_v61  ;;  %v16801_v61 = vld [vmem:[#allocation167_spill] sm:$0xff] }
 0xdc8   : > { %10532 = vmatpush.msrb.mxu2 %v16772_v41  ;;  %v16802_v41 = vld [vmem:[#allocation168_spill] sm:$0xff] }
 0xdca   : > { %10536 = vmatpush.msrb.mxu2 %v16773_v59 }
 0xdcc   : > { %10540 = vmatpush.msrb.mxu2 %v16774_v26 }
 0xdcd   : > { %10324 = vmatmul.f32.gmra.mxu2 %v12649_v55  ;;  %10349 = vmatmul.f32.vlgmr.msrb.gmra.mxu3 %v12639_v15 }
 0xdce   : > { %10563 = vmatpush.msrb.mxu3 %v12682_v29 }
 0xdd0   : > { %10565 = vmatpush.msrb.mxu3 %v16546_v44 }
 0xdd2   : > { %10567 = vmatpush.msrb.mxu3 %v16547_v45 }
 0xdd4   : > { %10569 = vmatpush.msrb.mxu3 %v16548_v6 }
 0xdd5   : > { %10353 = vmatmul.f32.gmra.mxu3 %v12649_v55 }
 0xe28   : > { %v10167_v50 = vpop.f32.mrf.mxu2 }
 0xe30   : > { %v10216_v2 = vpop.f32.mrf.mxu3  ;;  %v10175_v24 = vpop.f32.mrf.mxu2 }
 0xe31   : > { %v10217_v25 = vadd.f32 %v10216_v2, %v10167_v50 }
 0xe38   : > { %v10220_v31 = vpop.f32.mrf.mxu3  ;;  %v10250_v63 = vpop.f32.mrf.mxu2 }
 0xe39   : > { %v10251_v43 = vadd.f32 %v10250_v63, %v10217_v25  ;;  %v10221_v9 = vadd.f32 %v10220_v31, %v10175_v24  ;;  %v16803_v31 = vld [vmem:[#allocation173_spill] sm:$0xff]  ;;  %v16804_v63 = vld [vmem:[#allocation19_spill] sm:$0xff] }
 0xe40   : > { %v10255_v38 = vpop.f32.mrf.mxu2  ;;  %v10282_v28 = vpop.f32.mrf.mxu3 }
 0xe41   : > { %v10283_v29 = vadd.f32 %v10282_v28, %v10251_v43  ;;  %v10256_v27 = vadd.f32 %v10255_v38, %v10221_v9  ;;  %v9136_v38 = vadd.f32 %v16804_v63, %v16803_v31 }
 0xe48   : > { %v10288_v23 = vpop.f32.mrf.mxu3  ;;  %v10321_v15 = vpop.f32.mrf.mxu2 }
 0xe49   : > { %v10322_v0 = vadd.f32 %v10321_v15, %v10283_v29  ;;  %v10289_v21 = vadd.f32 %v10288_v23, %v10256_v27  ;;  %v16805_v23 = vld [vmem:[#allocation174_spill] sm:$0xff]  ;;  %v16806_v15 = vld [vmem:[#allocation17_spill] sm:$0xff] }
 0xe4a   : > { %v9185_v43 = vadd.f32 %v16806_v15, %v9136_v38 }
 0xe50   : > { %v10350_v44 = vpop.f32.mrf.mxu3  ;;  %v10325_v55 = vpop.f32.mrf.mxu2 }
 0xe51   : > { %v10351_v45 = vadd.f32 %v10350_v44, %v10322_v0  ;;  %v10326_v19 = vadd.f32 %v10325_v55, %v10289_v21 }
 0xe53   : > { %v10358_v6 = vsel %vm655_vm2, %v10351_v45, 0  ;;  %v16807_v45 = vld [vmem:[#allocation12_spill] sm:$0xff] }
 0xe54   : > { %v15111_v51 = vand.u32 4294901760, %v10358_v6  ;;  %v9144_v27 = vadd.f32 %v16807_v45, %v16803_v31  ;;  %v16823_v31 = vld [vmem:[#allocation27_spill] sm:$0xff] }
 0xe55   : > { %v16826_v45 = vld [vmem:[#allocation31_spill] sm:$0xff] }
 0xe56   : > { %v15114_v20 = vsub.f32 %v10358_v6, %v15111_v51  ;;  %10437 = vmatmul.f32.vlgmr.msra.gmra.mxu3 %v15111_v51  ;;  %v16808_v6 = vld [vmem:[#allocation133_spill] sm:$0xff] }
 0xe57   : > { %10709 = vmatpush.msra.mxu3 %v16775_v34  ;;  %v9219_v55 = vadd.f32 %v16808_v6, %v9185_v43 }
 0xe58   : > { %v10354_v53 = vpop.f32.mrf.mxu3  ;;  %10471 = vmatmul.f32.vlgmr.msrb.gmra.mxu0 %v15114_v20  ;;  %v15120_v40 = vand.u32 4294901760, %v15114_v20 }
 0xe59   : > { %v10355_v4 = vadd.f32 %v10354_v53, %v10326_v19  ;;  %10711 = vmatpush.msra.mxu3 %v16776_v58  ;;  %10744 = vmatpush.msrb.mxu0 %v16777_v42 }
 0xe5a   : > { %10503 = vmatmul.f32.vlgmr.msrb.gmra.mxu1 %v15120_v40  ;;  %v10386_v39 = vsub.f32 %v15114_v20, %v15120_v40 }
 0xe5b   : > { %v10361_v10 = vsel %vm655_vm2, %v10355_v4, 0  ;;  %10713 = vmatpush.msra.mxu3 %v16778_v18  ;;  %10748 = vmatpush.msrb.mxu0 %v16779_v35  ;;  %v16811_v4 = vld [vmem:[#allocation10_spill] sm:$0xff] }
 0xe5c   : > { %v15130_v37 = vand.u32 4294901760, %v10361_v10  ;;  %v15132_v52 = vand.u32 4294901760, %v10386_v39  ;;  %10779 = vmatpush.msrb.mxu1 %v16775_v34  ;;  %v16810_v34 = vld [vmem:[#allocation5_spill] sm:$0xff] }
 0xe5d   : > { %10715 = vmatpush.msra.mxu3 %v16780_v33  ;;  %10752 = vmatpush.msrb.mxu0 %v16781_v32  ;;  %v9251_v53 = vadd.f32 %v16810_v34, %v9219_v55  ;;  %v16813_v32 = vld [vmem:[#allocation15_spill] sm:$0xff] }
 0xe5e   : > { %v10392_v36 = vsub.f32 %v10361_v10, %v15130_v37  ;;  %10388 = vmatmul.f32.vlgmr.msra.gmra.mxu2 %v15132_v52  ;;  %10441 = vmatmul.f32.gmra.mxu3 %v15130_v37 }
 0xe5f   : > { %10781 = vmatpush.msrb.mxu1 %v16776_v58  ;;  %10675 = vmatpush.msra.mxu2 %v16782_v30  ;;  %v9290_v58 = vadd.f32 %v16811_v4, %v9251_v53 }
 0xe60   : > { %10476 = vmatmul.f32.gmra.mxu0 %v10392_v36  ;;  %v10393_v7 = vand.u32 4294901760, %v10392_v36 }
 0xe61   : > { %10756 = vmatpush.msrb.mxu0 %v16783_v49  ;;  %10783 = vmatpush.msrb.mxu1 %v16778_v18  ;;  %v16814_v49 = vld [vmem:[#allocation90_spill] sm:$0xff] }
 0xe62   : > { %10509 = vmatmul.f32.gmra.mxu1 %v10393_v7  ;;  %v10394_v13 = vsub.f32 %v10392_v36, %v10393_v7  ;;  %10678 = vmatpush.msra.mxu2 %v16784_v57 }
 0xe63   : > { %10785 = vmatpush.msrb.mxu1 %v16780_v33 }
 0xe64   : > { %v10395_v3 = vand.u32 4294901760, %v10394_v13  ;;  %10681 = vmatpush.msra.mxu2 %v16785_v1  ;;  %v16815_v13 = vld [vmem:[#allocation20_spill] sm:$0xff] }
 0xe65   : > { %v9352_v57 = vadd.f32 %v16815_v13, %v16814_v49  ;;  %v16829_v13 = vld [vmem:[#allocation35_spill] sm:$0xff] }
 0xe66   : > { %10396 = vmatmul.f32.gmra.mxu2 %v10395_v3  ;;  %10571 = vmatmul.f32.vlgmr.msrb.gmra.mxu3 %v15111_v51 }
 0xe67   : > { %10684 = vmatpush.msra.mxu2 %v16786_v48  ;;  %10849 = vmatpush.msrb.mxu3 %v16787_v47  ;;  %v16817_v47 = vld [vmem:[#allocation16_spill] sm:$0xff] }
 0xe68   : > { %10604 = vmatmul.f32.vlgmr.msra.gmra.mxu0 %v15132_v52 }
 0xe69   : > { %10855 = vmatpush.msrb.mxu3 %v16788_v12  ;;  %10891 = vmatpush.msra.mxu0 %v16789_v11 }
 0xe6a   : > { %10653 = vmatmul.f32.vlgmr.msra.gmra.mxu1 %v15111_v51 }
 0xe6b   : > { %10861 = vmatpush.msrb.mxu3 %v16790_v54  ;;  %10894 = vmatpush.msra.mxu0 %v16791_v14 }
 0xe6c   : > { %10925 = vmatpush.msra.mxu1 %v16792_v60 }
 0xe6d   : > { %10867 = vmatpush.msrb.mxu3 %v16793_v46  ;;  %10897 = vmatpush.msra.mxu0 %v16794_v16 }
 0xe6e   : > { %10542 = vmatmul.f32.vlgmr.msrb.gmra.mxu2 %v15111_v51  ;;  %10575 = vmatmul.f32.gmra.mxu3 %v15130_v37 }
 0xe6f   : > { %10927 = vmatpush.msra.mxu1 %v16795_v22  ;;  %10808 = vmatpush.msrb.mxu2 %v16792_v60 }
 0xe70   : > { %10612 = vmatmul.f32.gmra.mxu0 %v10395_v3 }
 0xe71   : > { %10900 = vmatpush.msra.mxu0 %v16796_v5  ;;  %10929 = vmatpush.msra.mxu1 %v16797_v56 }
 0xe72   : > { %10657 = vmatmul.f32.gmra.mxu1 %v15130_v37  ;;  %10810 = vmatpush.msrb.mxu2 %v16795_v22 }
 0xe73   : > { %10931 = vmatpush.msra.mxu1 %v16798_v17 }
 0xe74   : > { %10812 = vmatpush.msrb.mxu2 %v16797_v56 }
 0xe76   : > { %10546 = vmatmul.f32.gmra.mxu2 %v15130_v37  ;;  %10719 = vmatmul.f32.vlgmr.msra.gmra.mxu3 %v15120_v40 }
 0xe77   : > { %10814 = vmatpush.msrb.mxu2 %v16798_v17  ;;  %10995 = vmatpush.msra.mxu3 %v16792_v60  ;;  %v16818_v60 = vld [vmem:[#allocation9_spill] sm:$0xff] }
 0xe78   : > { %10758 = vmatmul.f32.vlgmr.msrb.gmra.mxu0 %v15111_v51  ;;  %v9401_v46 = vadd.f32 %v16818_v60, %v9352_v57 }
 0xe79   : > { %10997 = vmatpush.msra.mxu3 %v16795_v22 }
 0xe7a   : > { %10787 = vmatmul.f32.vlgmr.msrb.gmra.mxu1 %v15111_v51 }
 0xe7b   : > { %10999 = vmatpush.msra.mxu3 %v16797_v56  ;;  %v16819_v56 = vld [vmem:[#allocation39_spill] sm:$0xff] }
 0xe7d   : > { %11001 = vmatpush.msra.mxu3 %v16798_v17  ;;  %v9435_v17 = vadd.f32 %v16819_v56, %v9401_v46 }
 0xe7e   : > { %10687 = vmatmul.f32.vlgmr.msra.gmra.mxu2 %v15114_v20  ;;  %10725 = vmatmul.f32.gmra.mxu3 %v10393_v7 }
 0xe7f   : > { %10960 = vmatpush.msra.mxu2 %v16799_v8  ;;  %v9467_v63 = vadd.f32 %v16823_v31, %v9435_v17 }
 0xe80   : > { %10762 = vmatmul.f32.gmra.mxu0 %v15130_v37 }
 0xe81   : > { %10964 = vmatpush.msra.mxu2 %v16800_v62  ;;  %v16820_v62 = vld [vmem:[#allocation36_spill] sm:$0xff] }
 0xe82   : > { %10791 = vmatmul.f32.gmra.mxu1 %v15130_v37 }
 0xe83   : > { %10968 = vmatpush.msra.mxu2 %v16801_v61 }
 0xe85   : > { %10972 = vmatpush.msra.mxu2 %v16802_v41  ;;  %v16821_v41 = vld [vmem:[#allocation93_spill] sm:$0xff] }
 0xe86   : > { %10692 = vmatmul.f32.gmra.mxu2 %v10392_v36  ;;  %10869 = vmatmul.f32.vlgmr.msrb.gmra.mxu3 %v15111_v51 }
 0xe88   : > { %10903 = vmatmul.f32.vlgmr.msra.gmra.mxu0 %v15114_v20  ;;  %v16809_v20 = vld [vmem:[#allocation8_spill] sm:$0xff] }
 0xe89   : > { %v9189_v19 = vadd.f32 %v16809_v20, %v9144_v27 }
 0xe8a   : > { %10935 = vmatmul.f32.vlgmr.msra.gmra.mxu1 %v15120_v40 }
 0xe8e   : > { %10820 = vmatmul.f32.vlgmr.msrb.gmra.mxu2 %v15132_v52  ;;  %10873 = vmatmul.f32.gmra.mxu3 %v15130_v37 }
 0xe90   : > { %10908 = vmatmul.f32.gmra.mxu0 %v10392_v36  ;;  %v9319_v36 = vadd.f32 %v16813_v32, %v9290_v58  ;;  %v16828_v58 = vld [vmem:[#allocation94_spill] sm:$0xff] }
 0xe92   : > { %10941 = vmatmul.f32.gmra.mxu1 %v10393_v7 }
 0xe96   : > { %10828 = vmatmul.f32.gmra.mxu2 %v10395_v3  ;;  %11003 = vmatmul.f32.vlgmr.msra.gmra.mxu3 %v15111_v51  ;;  %v16816_v3 = vld [vmem:[#allocation6_spill] sm:$0xff] }
 0xe9e   : > { %10974 = vmatmul.f32.vlgmr.msra.gmra.mxu2 %v15111_v51  ;;  %11007 = vmatmul.f32.gmra.mxu3 %v15130_v37 }
 0xea6   : > { %10978 = vmatmul.f32.gmra.mxu2 %v15130_v37  ;;  %v16812_v37 = vld [vmem:[#allocation14_spill] sm:$0xff] }
 0xea7   : > { %v9224_v52 = vadd.f32 %v16812_v37, %v9189_v19  ;;  %v11108_v19 = vld [vmem:[%s15383_s3 + $0xf8] sm:$0xff] }
 0xea8   : > { %v15228_v53 = vand.u32 4294901760, %v11108_v19 }
 0xea9   : > { %v9257_v1 = vadd.f32 %v16816_v3, %v9224_v52 }
 0xeaa   : > { %v11169_v37 = vsub.f32 %v11108_v19, %v15228_v53  ;;  %11249 = vmatpush.msrb.mxu3 %v15228_v53  ;;  %11132 = vmatpush.msrb.mxu0 %v15228_v53 }
 0xeab   : > { %v9294_v12 = vadd.f32 %v16817_v47, %v9257_v1  ;;  %v11105_v47 = vld [vmem:[%s15383_s3 + $0x38] sm:$0xff] }
 0xeac   : > { %11215 = vmatpush.msrb.mxu2 %v11169_v37 }
 0xead   : > { %v9323_v61 = vadd.f32 %v16820_v62, %v9294_v12 }
 0xed5   : > { %v10472_v26 = vpop.f32.mrf.mxu0 }
 0xed7   : > { %v10504_v50 = vpop.f32.mrf.mxu1 }
 0xed9   : > { %v10438_v59 = vpop.f32.mrf.mxu3 }
 0xedd   : > { %v10477_v28 = vpop.f32.mrf.mxu0 }
 0xedf   : > { %v10510_v29 = vpop.f32.mrf.mxu1 }
 0xee1   : > { %v10389_v2 = vpop.f32.mrf.mxu2  ;;  %v10442_v24 = vpop.f32.mrf.mxu3 }
 0xee2   : > { %v10390_v25 = vadd.f32 %v10389_v2, %v16805_v23 }
 0xee4   : > { %v10439_v0 = vadd.f32 %v10438_v59, %v10390_v25  ;;  %v16824_v25 = vld [vmem:[#allocation7_spill] sm:$0xff] }
 0xee5   : > { %v10605_v40 = vpop.f32.mrf.mxu0 }
 0xee6   : > { %v10473_v21 = vadd.f32 %v10472_v26, %v10439_v0  ;;  %v10606_v59 = vadd.f32 %v10605_v40, %v16821_v41  ;;  %v16827_v40 = vld [vmem:[#allocation18_spill] sm:$0xff] }
 0xee7   : > { %v10654_v42 = vpop.f32.mrf.mxu1 }
 0xee8   : > { %v10505_v10 = vadd.f32 %v10504_v50, %v10473_v21  ;;  %v16822_v50 = vld [vmem:[#allocation11_spill] sm:$0xff] }
 0xee9   : > { %v10397_v44 = vpop.f32.mrf.mxu2  ;;  %v10572_v9 = vpop.f32.mrf.mxu3  ;;  %v9360_v2 = vadd.f32 %v16822_v50, %v16814_v49  ;;  %v11106_v49 = vld [vmem:[%s15383_s3 + $0x78] sm:$0xff] }
 0xeea   : > { %v10398_v51 = vadd.f32 %v10397_v44, %v16805_v23  ;;  %v16825_v44 = vld [vmem:[#allocation13_spill] sm:$0xff]  ;;  %v15257_v60 = vand.u32 4294901760, %v11106_v49 }
 0xeeb   : > { %v9405_v15 = vadd.f32 %v16824_v25, %v9360_v2  ;;  %v16833_v25 = vld [vmem:[#allocation100_spill] sm:$0xff] }
 0xeec   : > { %v10443_v39 = vadd.f32 %v10442_v24, %v10398_v51  ;;  %v11181_v62 = vsub.f32 %v11106_v49, %v15257_v60 }
 0xeed   : > { %v10613_v11 = vpop.f32.mrf.mxu0  ;;  %v9440_v27 = vadd.f32 %v16826_v45, %v9405_v15 }
 0xeee   : > { %v10478_v7 = vadd.f32 %v10477_v28, %v10443_v39  ;;  %v10655_v28 = vadd.f32 %v10654_v42, %v10606_v59  ;;  %v10614_v51 = vadd.f32 %v10613_v11, %v16821_v41  ;;  %v11107_v39 = vld [vmem:[%s15383_s3 + $0xb8] sm:$0xff]  ;;  %v16832_v41 = vld [vmem:[#allocation37_spill] sm:$0xff] }
 0xeef   : > { %v10658_v8 = vpop.f32.mrf.mxu1  ;;  %v9473_v42 = vadd.f32 %v16828_v58, %v9440_v27  ;;  %v15236_v52 = vand.u32 4294901760, %v11107_v39 }
 0xef0   : > { %v10511_v14 = vadd.f32 %v10510_v29, %v10478_v7 }
 0xef1   : > { %v10543_v18 = vpop.f32.mrf.mxu2  ;;  %v10576_v35 = vpop.f32.mrf.mxu3  ;;  %11251 = vmatpush.msrb.mxu3 %v15236_v52  ;;  %11134 = vmatpush.msrb.mxu0 %v15236_v52  ;;  %v9510_v57 = vadd.f32 %v16829_v13, %v9473_v42  ;;  %v16838_v13 = vld [vmem:[#allocation25_spill] sm:$0xff] }
 0xef2   : > { %v10544_v33 = vadd.f32 %v10543_v18, %v10505_v10  ;;  %v10659_v18 = vadd.f32 %v10658_v8, %v10614_v51 }
 0xef3   : > { %11253 = vmatpush.msrb.mxu3 %v15257_v60  ;;  %v9539_v59 = vadd.f32 %v16832_v41, %v9510_v57  ;;  %11136 = vmatpush.msrb.mxu0 %v15257_v60 }
 0xef4   : > { %v10573_v30 = vadd.f32 %v10572_v9, %v10544_v33  ;;  %v9506_v9 = vadd.f32 %v16825_v44, %v9467_v63  ;;  %v11182_v63 = vand.u32 4294901760, %v11181_v62 }
 0xef5   : > { %v10759_v6 = vpop.f32.mrf.mxu0 }
 0xef6   : > { %v11011_v48 = vadd.f32 %v10573_v30, %v9319_v36  ;;  %v9535_v4 = vadd.f32 %v16827_v40, %v9506_v9  ;;  %v16834_v9 = vld [vmem:[#allocation99_spill] sm:$0xff]  ;;  %v16836_v40 = vld [vmem:[#allocation22_spill] sm:$0xff] }
 0xef7   : > { %v10788_v20 = vpop.f32.mrf.mxu1 }
 0xef8   : > { %v11582_v54 = vmul.f32 -1.442695, %v11011_v48  ;;  %v11170_v48 = vand.u32 4294901760, %v11169_v37 }
 0xef9   : > { %v10547_v16 = vpop.f32.mrf.mxu2  ;;  %v10720_v22 = vpop.f32.mrf.mxu3 }
 0xefa   : > { %11737 = vpow2.f32 %v11582_v54  ;;  %v10548_v5 = vadd.f32 %v10547_v16, %v10511_v14  ;;  %v11175_v14 = vsub.f32 %v11107_v39, %v15236_v52  ;;  %v11171_v16 = vsub.f32 %v11169_v37, %v11170_v48 }
 0xefc   : > { %v10577_v26 = vadd.f32 %v10576_v35, %v10548_v5  ;;  %v16831_v5 = vld [vmem:[#allocation111_spill] sm:$0xff]  ;;  %v11176_v8 = vand.u32 4294901760, %v11175_v14  ;;  %11218 = vmatpush.msrb.mxu2 %v11175_v14  ;;  %v11172_v50 = vand.u32 4294901760, %v11171_v16 }
 0xefd   : > { %v10763_v12 = vpop.f32.mrf.mxu0 }
 0xefe   : > { %v11012_v24 = vadd.f32 %v10577_v26, %v9323_v61  ;;  %v15262_v61 = vand.u32 4294901760, %v11105_v47  ;;  %v11177_v31 = vsub.f32 %v11175_v14, %v11176_v8  ;;  %11221 = vmatpush.msrb.mxu2 %v11181_v62  ;;  %11173 = vmatpush.msrb.mxu1 %v11172_v50  ;;  %v16843_v50 = vld [vmem:[#allocation108_spill] sm:$0xff] }
 0xeff   : > { %v10792_v17 = vpop.f32.mrf.mxu1 }
 0xf00   : > { %v11738_v38 = vpop.eup %11737  ;;  %v11583_v23 = vmul.f32 -1.442695, %v11012_v24  ;;  %11255 = vmatpush.msrb.mxu3 %v15262_v61  ;;  %11138 = vmatpush.msrb.mxu0 %v15262_v61 }
 0xf01   : > { %v15219_v43 = vadd.f32 1.0, %v11738_v38  ;;  %v10688_v29 = vpop.f32.mrf.mxu2  ;;  %v10726_v55 = vpop.f32.mrf.mxu3  ;;  %v11187_v38 = vsub.f32 %v11105_v47, %v15262_v61 }
 0xf02   : > { %11739 = vpow2.f32 %v11583_v23  ;;  %v10689_v0 = vadd.f32 %v10688_v29, %v10655_v28  ;;  %v11178_v29 = vand.u32 4294901760, %v11177_v31  ;;  %11284 = vmatpush.msra.mxu0 %v11170_v48 }
 0xf03   : > { %11741 = vrcp.f32 %v15219_v43  ;;  %11224 = vmatpush.msrb.mxu2 %v11187_v38  ;;  %v11188_v19 = vand.u32 4294901760, %v11187_v38  ;;  %vm11026_vm0 = vweird.f32 %v15219_v43 }
 0xf04   : > { %v10721_v21 = vadd.f32 %v10720_v22, %v10689_v0  ;;  %v16830_v22 = vld [vmem:[#allocation88_spill] sm:$0xff]  ;;  %v11183_v0 = vsub.f32 %v11181_v62, %v11182_v63  ;;  %11179 = vmatpush.msrb.mxu1 %v11178_v29  ;;  %11288 = vmatpush.msra.mxu0 %v11176_v8 }
 0xf05   : > { %v9568_v56 = vadd.f32 %v16831_v5, %v16830_v22  ;;  %v9576_v45 = vadd.f32 %v16834_v9, %v16830_v22  ;;  %v11189_v39 = vsub.f32 %v11187_v38, %v11188_v19 }
 0xf06   : > { %v10760_v34 = vadd.f32 %v10759_v6, %v10721_v21  ;;  %v16835_v6 = vld [vmem:[#allocation96_spill] sm:$0xff]  ;;  %11292 = vmatpush.msra.mxu0 %v11182_v63 }
 0xf07   : > { %v9617_v15 = vadd.f32 %v16833_v25, %v9568_v56  ;;  %v11190_v49 = vand.u32 4294901760, %v11189_v39  ;;  %v10936_v22 = vpop.f32.mrf.mxu1 }
 0xf08   : > { %v11740_v10 = vpop.eup %11739  ;;  %v10789_v35 = vadd.f32 %v10788_v20, %v10760_v34  ;;  %v11184_v20 = vand.u32 4294901760, %v11183_v0  ;;  %11296 = vmatpush.msra.mxu0 %v11188_v19 }
 0xf09   : > { %v15240_v33 = vadd.f32 1.0, %v11740_v10  ;;  %v10693_v32 = vpop.f32.mrf.mxu2  ;;  %v15242_v36 = vpop.eup %11741  ;;  %v16837_v10 = vld [vmem:[#allocation115_spill] sm:$0xff] }
 0xf0a   : > { %v11051_v30 = vadd.f32 %v10789_v35, %v9535_v4  ;;  %v10694_v7 = vadd.f32 %v10693_v32, %v10659_v18  ;;  %v10870_v11 = vpop.f32.mrf.mxu3  ;;  %v11022_v54 = vmul.f32 %v15242_v36, %v15219_v43  ;;  %v9651_v4 = vadd.f32 %v16836_v40, %v9617_v15  ;;  %11185 = vmatpush.msrb.mxu1 %v11184_v20  ;;  %v10904_v35 = vpop.f32.mrf.mxu0 }
 0xf0b   : > { %11743 = vrcp.f32 %v15240_v33  ;;  %v9621_v18 = vadd.f32 %v16837_v10, %v9576_v45  ;;  %vm11027_vm9 = vweird.f32 %v15242_v36  ;;  %vm11041_vm4 = vweird.f32 %v15240_v33 }
 0xf0c   : > { %v11584_v3 = vmul.f32 -1.442695, %v11051_v30  ;;  %v10727_v1 = vadd.f32 %v10726_v55, %v10694_v7  ;;  %v11023_v24 = vsub.f32 1.0, %v11022_v54  ;;  %v11032_v30 = vand.u32 2147483648, %v15219_v43  ;;  %vm15291_vm1 = vmor %vm11026_vm0, %vm11027_vm9  ;;  %11191 = vmatpush.msrb.mxu1 %v11190_v49  ;;  %v16841_v54 = vld [vmem:[#allocation92_spill] sm:$0xff] }
 0xf0d   : > { %v9683_v57 = vadd.f32 %v16838_v13, %v9651_v4  ;;  %v11045_v15 = vand.u32 2147483647, %v15240_v33  ;;  %v11047_v29 = vand.u32 2147483648, %v15240_v33 }
 0xf0e   : > { %11745 = vpow2.f32 %v11584_v3  ;;  %v10764_v46 = vadd.f32 %v10763_v12, %v10727_v1  ;;  %v11024_v21 = vmul.f32 %v15242_v36, %v11023_v24  ;;  %v11030_v3 = vand.u32 2147483647, %v15219_v43  ;;  %11319 = vmatpush.msra.mxu1 %v15228_v53  ;;  %v16844_v24 = vld [vmem:[#allocation91_spill] sm:$0xff] }
 0xf0f   : > { %v9722_v14 = vadd.f32 %v16841_v54, %v9683_v57  ;;  %vm11046_vm11 = vcmp.eq.f32.partialorder %v11045_v15, 8.507059e+37  ;;  %v11048_v40 = vor.u32 1.1754944e-38, %v11047_v29 }
 0xf10   : > { %v10793_v26 = vadd.f32 %v10792_v17, %v10764_v46  ;;  %v11025_v32 = vadd.f32 %v15242_v36, %v11024_v21  ;;  %v16842_v46 = vld [vmem:[#allocation105_spill] sm:$0xff]  ;;  %v11033_v17 = vor.u32 1.1754944e-38, %v11032_v30  ;;  %vm11031_vm3 = vcmp.eq.f32.partialorder %v11030_v3, 8.507059e+37  ;;  %11321 = vmatpush.msra.mxu1 %v15236_v52 }
 0xf11   : > { %v10821_v2 = vpop.f32.mrf.mxu2  ;;  %v15269_v23 = vpop.eup %11743  ;;  %v9656_v16 = vadd.f32 %v16842_v46, %v9621_v18  ;;  %v16850_v18 = vld [vmem:[#allocation116_spill] sm:$0xff] }
 0xf12   : > { %v11052_v28 = vadd.f32 %v10793_v26, %v9539_v59  ;;  %v10822_v55 = vadd.f32 %v10821_v2, %v16835_v6  ;;  %v11037_v34 = vmul.f32 %v15269_v23, %v15240_v33  ;;  %v10874_v58 = vpop.f32.mrf.mxu3  ;;  %v11029_v43 = vsel %vm15291_vm1, %v15242_v36, %v11025_v32  ;;  %11323 = vmatpush.msra.mxu1 %v15257_v60  ;;  %v10909_v52 = vpop.f32.mrf.mxu0 }
 0xf13   : > { %v11034_v26 = vsel %vm11031_vm3, %v11033_v17, %v11029_v43  ;;  %v9751_v2 = vadd.f32 %v16843_v50, %v9722_v14  ;;  %v9689_v36 = vadd.f32 %v16844_v24, %v9656_v16  ;;  %vm11042_vm5 = vweird.f32 %v15269_v23 }
 0xf14   : > { %v11746_v44 = vpop.eup %11745  ;;  %v11585_v27 = vmul.f32 -1.442695, %v11052_v28  ;;  %v10871_v42 = vadd.f32 %v10870_v11, %v10822_v55  ;;  %v11038_v7 = vsub.f32 1.0, %v11037_v34  ;;  %11325 = vmatpush.msra.mxu1 %v15262_v61  ;;  %vm15321_vm8 = vmor %vm11041_vm4, %vm11042_vm5  ;;  %v16847_v55 = vld [vmem:[#allocation113_spill] sm:$0xff]  ;;  %v10942_v34 = vpop.f32.mrf.mxu1 }
 0xf15   : > { %v15276_v51 = vadd.f32 1.0, %v11746_v44  ;;  %v11091_v25 = vmul.f32 %v11034_v26, %v9751_v2  ;;  %v9726_v21 = vadd.f32 %v16847_v55, %v9689_v36 }
 0xf16   : > { %11747 = vpow2.f32 %v11585_v27  ;;  %v10905_v47 = vadd.f32 %v10904_v35, %v10871_v42  ;;  %v11039_v8 = vmul.f32 %v15269_v23, %v11038_v7 }
 0xf17   : > { %11749 = vrcp.f32 %v15276_v51  ;;  %v11072_v9 = vand.u32 2147483648, %v15276_v51  ;;  %vm11066_vm7 = vweird.f32 %v15276_v51  ;;  %v11070_v27 = vand.u32 2147483647, %v15276_v51 }
 0xf18   : > { %v10937_v59 = vadd.f32 %v10936_v22, %v10905_v47  ;;  %v11040_v28 = vadd.f32 %v15269_v23, %v11039_v8  ;;  %v9755_v35 = vadd.f32 %v16850_v18, %v9726_v21 }
 0xf19   : > { %v10829_v37 = vpop.f32.mrf.mxu2  ;;  %vm11071_vm12 = vcmp.eq.f32.partialorder %v11070_v27, 8.507059e+37 }
 0xf1a   : > { %v10830_v48 = vadd.f32 %v10829_v37, %v16835_v6  ;;  %v11004_v31 = vpop.f32.mrf.mxu3 }
 0xf1c   : > { %v11748_v1 = vpop.eup %11747  ;;  %v10875_v41 = vadd.f32 %v10874_v58, %v10830_v48  ;;  %v11073_v58 = vor.u32 1.1754944e-38, %v11072_v9 }
 0xf1d   : > { %v11750_v11 = vpop.eup %11749  ;;  %v15297_v5 = vadd.f32 1.0, %v11748_v1 }
 0xf1e   : > { %v11062_v56 = vmul.f32 %v11750_v11, %v15276_v51  ;;  %vm11067_vm6 = vweird.f32 %v11750_v11  ;;  %v10910_v60 = vadd.f32 %v10909_v52, %v10875_v41  ;;  %v11044_v51 = vsel %vm15321_vm8, %v15269_v23, %v11040_v28  ;;  %v16852_v41 = vld [vmem:[#allocation130_spill] sm:$0xff] }
 0xf1f   : > { %11751 = vrcp.f32 %v15297_v5  ;;  %vm15328_vm10 = vmor %vm11066_vm7, %vm11067_vm6  ;;  %v11049_v10 = vsel %vm11046_vm11, %v11048_v40, %v11044_v51  ;;  %v11087_v13 = vand.u32 2147483648, %v15297_v5  ;;  %vm11081_vm14 = vweird.f32 %v15297_v5 }
 0xf20   : > { %v11063_v62 = vsub.f32 1.0, %v11062_v56  ;;  %v10943_v42 = vadd.f32 %v10942_v34, %v10910_v60  ;;  %v11092_v57 = vmul.f32 %v11049_v10, %v9755_v35  ;;  %v11085_v1 = vand.u32 2147483647, %v15297_v5 }
 0xf21   : > { %v10975_v53 = vpop.f32.mrf.mxu2  ;;  %v11088_v46 = vor.u32 1.1754944e-38, %v11087_v13 }
 0xf22   : > { %v10976_v63 = vadd.f32 %v10975_v53, %v10937_v59  ;;  %v11064_v38 = vmul.f32 %v11750_v11, %v11063_v62  ;;  %v11008_v7 = vpop.f32.mrf.mxu3  ;;  %vm11086_vm9 = vcmp.eq.f32.partialorder %v11085_v1, 8.507059e+37 }
 0xf24   : > { %v11005_v0 = vadd.f32 %v11004_v31, %v10976_v63  ;;  %v11065_v44 = vadd.f32 %v11750_v11, %v11064_v38 }
 0xf25   : > { %v11752_v45 = vpop.eup %11751 }
 0xf26   : > { %v11077_v61 = vmul.f32 %v11752_v45, %v15297_v5  ;;  %v11093_v19 = vadd.f32 %v11091_v25, %v11005_v0  ;;  %v11069_v33 = vsel %vm15328_vm10, %v11750_v11, %v11065_v44  ;;  %vm11082_vm13 = vweird.f32 %v11752_v45  ;;  %v16851_v11 = vld [vmem:[#allocation127_spill] sm:$0xff]  ;;  %v11646_v25 = vld [vmem:[%s15384_s4 + $0x7] ss:$0 sm:$0xff] }
 0xf27   : > { %v11074_v37 = vsel %vm11071_vm12, %v11073_v58, %v11069_v33  ;;  %vm11083_vm15 = vmor %vm11081_vm14, %vm11082_vm13 }
 0xf28   : > { %v11078_v4 = vsub.f32 1.0, %v11077_v61  ;;  %11753 = vtanh.f32 %v11093_v19  ;;  %v11097_v3 = vsub.f32 1.0, %v11074_v37  ;;  %v11101_v54 = vmul.f32 %v11074_v37, %v16851_v11 }
 0xf29   : > { %v10979_v39 = vpop.f32.mrf.mxu2 }
 0xf2a   : > { %v10980_v32 = vadd.f32 %v10979_v39, %v10943_v42  ;;  %v11079_v30 = vmul.f32 %v11752_v45, %v11078_v4 }
 0xf2c   : > { %v11009_v23 = vadd.f32 %v11008_v7, %v10980_v32  ;;  %v11080_v49 = vadd.f32 %v11752_v45, %v11079_v30 }
 0xf2e   : > { %v11754_v48 = vpop.eup %11753  ;;  %v11094_v47 = vadd.f32 %v11092_v57, %v11009_v23  ;;  %v11084_v14 = vsel %vm11083_vm15, %v11752_v45, %v11080_v49 }
 0xf2f   : > { %v11099_v12 = vmul.f32 %v11754_v48, %v11097_v3  ;;  %v11089_v22 = vsel %vm11086_vm9, %v11088_v46, %v11084_v14 }
 0xf30   : > { %11755 = vtanh.f32 %v11094_v47  ;;  %v11098_v17 = vsub.f32 1.0, %v11089_v22  ;;  %v11102_v59 = vmul.f32 %v11089_v22, %v16852_v41 }
 0xf31   : > { %v11103_v16 = vadd.f32 %v11101_v54, %v11099_v12 }
 0xf33   : > { %v11114_v43 = vsel %vm655_vm2, %v11103_v16, 0 }
 0xf34   : > { %v11139_v56 = vand.u32 4294901760, %v11114_v43 }
 0xf36   : > { %v11756_v8 = vpop.eup %11755  ;;  %11193 = vmatmul.f32.vlgmr.msrb.gmra.mxu1 %v11139_v56  ;;  %v11140_v62 = vsub.f32 %v11114_v43, %v11139_v56 }
 0xf37   : > { %v11100_v5 = vmul.f32 %v11756_v8, %v11098_v17 }
 0xf38   : > { %11227 = vmatmul.f32.vlgmr.msrb.gmra.mxu2 %v11140_v62  ;;  %v11141_v26 = vand.u32 4294901760, %v11140_v62 }
 0xf39   : > { %v11104_v50 = vadd.f32 %v11102_v59, %v11100_v5 }
 0xf3a   : > { %11259 = vmatmul.f32.vlgmr.msrb.gmra.mxu3 %v11141_v26  ;;  %v11142_v2 = vsub.f32 %v11140_v62, %v11141_v26 }
 0xf3b   : > { %v11117_v24 = vsel %vm655_vm2, %v11104_v50, 0 }
 0xf3c   : > { %v11143_v36 = vand.u32 4294901760, %v11142_v2  ;;  %v11147_v31 = vand.u32 4294901760, %v11117_v24 }
 0xf3e   : > { %11144 = vmatmul.f32.vlgmr.msrb.gmra.mxu0 %v11143_v36  ;;  %11197 = vmatmul.f32.gmra.mxu1 %v11147_v31  ;;  %v11148_v53 = vsub.f32 %v11117_v24, %v11147_v31 }
 0xf40   : > { %11232 = vmatmul.f32.gmra.mxu2 %v11148_v53  ;;  %v11149_v63 = vand.u32 4294901760, %v11148_v53 }
 0xf42   : > { %11265 = vmatmul.f32.gmra.mxu3 %v11149_v63  ;;  %v11150_v38 = vsub.f32 %v11148_v53, %v11149_v63 }
 0xf44   : > { %v11151_v28 = vand.u32 4294901760, %v11150_v38 }
 0xf46   : > { %11152 = vmatmul.f32.gmra.mxu0 %v11151_v28  ;;  %11327 = vmatmul.f32.vlgmr.msra.gmra.mxu1 %v11139_v56 }
 0xf4e   : > { %11298 = vmatmul.f32.vlgmr.msra.gmra.mxu0 %v11139_v56  ;;  %11331 = vmatmul.f32.gmra.mxu1 %v11147_v31 }
 0xf56   : > { %11302 = vmatmul.f32.gmra.mxu0 %v11147_v31 }
 0xfb3   : > { %v11194_v52 = vpop.f32.mrf.mxu1 }
 0xfbb   : > { %v11145_v15 = vpop.f32.mrf.mxu0  ;;  %v11198_v0 = vpop.f32.mrf.mxu1 }
 0xfbc   : > { %v11146_v29 = vadd.f32 %v11646_v25, %v11145_v15  ;;  %v11228_v9 = vpop.f32.mrf.mxu2 }
 0xfbd   : > { %v11260_v6 = vpop.f32.mrf.mxu3 }
 0xfbe   : > { %v11195_v44 = vadd.f32 %v11194_v52, %v11146_v29 }
 0xfc0   : > { %v11229_v45 = vadd.f32 %v11228_v9, %v11195_v44 }
 0xfc2   : > { %v11261_v55 = vadd.f32 %v11260_v6, %v11229_v45 }
 0xfc3   : > { %v11153_v60 = vpop.f32.mrf.mxu0  ;;  %v11328_v61 = vpop.f32.mrf.mxu1 }
 0xfc4   : > { %v11154_v27 = vadd.f32 %v11646_v25, %v11153_v60  ;;  %v11233_v51 = vpop.f32.mrf.mxu2 }
 0xfc5   : > { %v11266_v40 = vpop.f32.mrf.mxu3 }
 0xfc6   : > { %v11199_v21 = vadd.f32 %v11198_v0, %v11154_v27 }
 0xfc8   : > { %v11234_v34 = vadd.f32 %v11233_v51, %v11199_v21 }
 0xfca   : > { %v11267_v4 = vadd.f32 %v11266_v40, %v11234_v34 }
 0xfcb   : > { %v11299_v20 = vpop.f32.mrf.mxu0  ;;  %v11332_v39 = vpop.f32.mrf.mxu1 }
 0xfcc   : > { %v11300_v19 = vadd.f32 %v11299_v20, %v11261_v55 }
 0xfce   : > { %v11329_v33 = vadd.f32 %v11328_v61, %v11300_v19 }
 0xfd0   : > { %11335 = vst [vmem:[%s232_s17] sm:$0xff] %v11329_v33 }
 0xfd3   : > { %v11303_v58 = vpop.f32.mrf.mxu0 }
 0xfd4   : > { %v11304_v42 = vadd.f32 %v11303_v58, %v11267_v4 }
 0xfd6   : > { %v11333_v10 = vadd.f32 %v11332_v39, %v11304_v42 }
 0xfd8   : > { %11336 = vst [vmem:[%s232_s17 + $0x8] sm:$0xff] %v11333_v10 }
 0xfd9   : > { %11784 = shalt.err (!%p11781_p3)
}
 0xfda   : > { %s11824_s14 = smov 128   ;;  %s11825_s15 = smov 8  }
 0xfdb   : > { %11598 = dma.vmem_to_hbm [thread:$0]  (%p11894_p5), %s11351_s6, 256, %s11353_s7, %s11338_s22, %s11824_s14, %s11824_s14, %s11825_s15  }
 0xfdc PF: > { %p11604_p4 = scmp.ge.s32.totalorder %s11819_s21, 2  ;;  %s11367_s16 = sand.u32 1, %s11807_s18  }
 0xfdd   : > { %s11368_s17 = scalar_lea.sflag [#allocation3], %s11367_s16 }
 0xfde   : > { %p11601_p7 = pnand %p11604_p4, %p11898_p6 }
 0xfe0   : > { %p11602_p8 = pneg %p11601_p7 }
 0xfe2   : > { %11802 = dma.done.wait (%p11602_p8), %s11368_s17, 256  }
 0xfe3   : > { %11804 = vsyncadd (%p11602_p8), %s11368_s17, 4294967040  ;;  %p15_p9 = scmp.ge.s32.totalorder %s11881_s24, 10   ;;  %s16853_s18 = smov %s11811_s19 }
 0xfe4   : > { %s16854_s19 = smov %s11815_s20  ;;  %s16855_s20 = smov %s11892_s27 }
 0xfe5   : > { %s16856_s21 = smov %s11881_s24  ;;  %17 = sbr.rel (!%p15_p9) target bundleno = 3 (0x3), region = 78 }
 0xfea   :  { %11374 = vsyncpa [#allocation3], 1 }
 0xfeb   :  { %11376 = vsyncpa [#allocation3 + $0x1], 1 }

</bundles_post_ra>
